<compile_context>
chip_gen: v7x
topology: tpu7x:2x2x1
jax: 0.10.0
libtpu: 0.0.40
codegen_flags: <defaults>
</compile_context>

<pallas_src>
import functools

import jax
import jax.numpy as jnp
from jax import lax
from jax.experimental import pallas as pl
from jax.experimental.pallas import tpu as pltpu
import numpy as np


# ----------------------------------------------------------------------------
# small helpers
# ----------------------------------------------------------------------------

def _vmem_limit(block_bytes):
    """Generous headroom over the double-buffered working set, capped for
    v7x's 64 MiB physical VMEM."""
    return int(min(64 * 1024 * 1024, max(8 * 1024 * 1024, 6 * block_bytes)))


def _pick_tile(n, max_tile):
    """Largest divisor of n that is <= max_tile and sublane-friendly."""
    for t in range(min(n, max_tile), 0, -1):
        if n % t == 0 and (t % 8 == 0 or t == n):
            return t
    return n


def bn_fold(weight, bias, running_mean, running_var, eps=1e-3):
    scale = weight / jnp.sqrt(running_var + eps)
    return scale, bias - running_mean * scale


# ----------------------------------------------------------------------------
# Direct 3x3x3 conv (+ folded BN + ReLU, optional fused 1x1x1 head) kernel
# ----------------------------------------------------------------------------

def _direct_conv3d_kernel(H, Wp, fuse_head, *refs):
    """Grid = (B, D, kd).  kd (innermost, 'arbitrary') is the depth-tap
    reduction; the 9 in-plane (kh, kw) taps are contiguous sublane slices of
    the flattened padded plane, so no reshape/transpose is needed in-kernel."""
    if fuse_head:
        xp_ref, w_ref, s_ref, b_ref, w8_ref, b8_ref, o_ref, acc_ref = refs
    else:
        xp_ref, w_ref, s_ref, b_ref, o_ref, acc_ref = refs
        w8_ref = b8_ref = None

    kd = pl.program_id(2)

    @pl.when(kd == 0)
    def _init():
        acc_ref[...] = jnp.zeros_like(acc_ref)

    rows = H * Wp                      # output rows in "padded-W" row space
    contrib = None
    for kh in range(3):
        for kw in range(3):
            start = kh * Wp + kw       # static sublane offset of this tap
            xs = xp_ref[0, 0, start:start + rows, :]          # (rows, Cin)
            part = jnp.dot(xs, w_ref[0, 3 * kh + kw],
                           preferred_element_type=jnp.float32)
            contrib = part if contrib is None else contrib + part
    acc_ref[...] += contrib

    @pl.when(kd == pl.num_programs(2) - 1)
    def _fin():
        # f32 epilogue (v5e-safe): folded BN affine + ReLU.
        y = jnp.maximum(acc_ref[...] * s_ref[...] + b_ref[...], 0.0)
        if fuse_head:
            # fused 1x1x1 conv (conv8): tiny (rows, Cm)@(Cm, Cout) + bias + ReLU
            y = jnp.maximum(
                jnp.dot(y, w8_ref[...], preferred_element_type=jnp.float32)
                + b8_ref[...], 0.0)
        o_ref[0, 0] = y.astype(o_ref.dtype)


def direct_conv3x3_bn_relu(x_cl, w, scale, bias, head=None,
                           out_dtype=jnp.float32, compute_dtype=None):
    """x_cl: (B, D, H, W, Cin) channels-last.  w: (Cm, Cin, 3, 3, 3) (torch).
    head: optional (w8m (Cm, Cout), b8 (Cout,)) fused 1x1x1 conv epilogue.
    Returns (B, D, H, W, Cm or Cout)."""
    B, D, H, W, Cin = x_cl.shape
    Cm = w.shape[0]
    dt = x_cl.dtype if compute_dtype is None else compute_dtype

    Wp = W + 2                         # padded row width
    HWp = H * Wp                       # output rows per d-plane (incl. 2 junk cols)
    Dp = D + 2
    HpW = (H + 3) * Wp                 # flattened padded-plane rows (extra bottom row
                                       # covers the largest tap slice overrun)

    # Pad once in the wrapper (single pass), flatten (Hp, Wp) -> Hp*Wp (free).
    xp = jnp.pad(x_cl.astype(dt), ((0, 0), (1, 1), (1, 2), (1, 1), (0, 0)))
    xp = xp.reshape(B, Dp, HpW, Cin)

    # (Cm, Cin, 3, 3, 3) -> (kd, kh*3+kw, Cin, Cm)
    wmat = jnp.transpose(w, (2, 3, 4, 1, 0)).reshape(3, 9, Cin, Cm).astype(dt)
    s2 = scale.reshape(1, Cm).astype(jnp.float32)
    b2 = bias.reshape(1, Cm).astype(jnp.float32)

    in_specs = [
        pl.BlockSpec((1, 1, HpW, Cin), lambda b, d, kd: (b, d + kd, 0, 0)),
        pl.BlockSpec((1, 9, Cin, Cm), lambda b, d, kd: (kd, 0, 0, 0)),
        pl.BlockSpec((1, Cm), lambda b, d, kd: (0, 0)),
        pl.BlockSpec((1, Cm), lambda b, d, kd: (0, 0)),
    ]
    args = [xp, wmat, s2, b2]
    if head is not None:
        w8m, b8 = head
        Cout = w8m.shape[1]
        in_specs += [pl.BlockSpec((Cm, Cout), lambda b, d, kd: (0, 0)),
                     pl.BlockSpec((1, Cout), lambda b, d, kd: (0, 0))]
        args += [w8m.astype(jnp.float32),
                 b8.reshape(1, Cout).astype(jnp.float32)]
    else:
        Cout = Cm

    itm = jnp.dtype(dt).itemsize
    block_bytes = (HpW * Cin * itm + 9 * Cin * Cm * itm
                   + HWp * Cout * jnp.dtype(out_dtype).itemsize
                   + HWp * Cm * 4)

    out_raw = pl.pallas_call(
        functools.partial(_direct_conv3d_kernel, H, Wp, head is not None),
        out_shape=jax.ShapeDtypeStruct((B, D, HWp, Cout), out_dtype),
        grid=(B, D, 3),
        in_specs=in_specs,
        out_specs=pl.BlockSpec((1, 1, HWp, Cout), lambda b, d, kd: (b, d, 0, 0)),
        scratch_shapes=[pltpu.VMEM((HWp, Cm), jnp.float32)],
        compiler_params=pltpu.CompilerParams(
            dimension_semantics=("parallel", "parallel", "arbitrary"),
            vmem_limit_bytes=_vmem_limit(block_bytes)),
    )(*args)

    # Drop the 2 junk right-pad columns and restore (B, D, H, W, C).
    return out_raw.reshape(B, D, H, Wp, Cout)[:, :, :, :W, :]


# ----------------------------------------------------------------------------
# CAM channel attention: two-pass, N-tiled, channels-last (B, N, C) layout
# ----------------------------------------------------------------------------

def _cam_attn_kernel(gamma_ref, a_ref, attn_ref, acc_ref):
    """Pass 1: energy[c, c'] = sum_n a[n, c] * a[n, c'], accumulated over N
    tiles; finalize computes gamma * softmax(rowmax(E) - E) once per batch."""
    n = pl.program_id(1)

    @pl.when(n == 0)
    def _init():
        acc_ref[...] = jnp.zeros_like(acc_ref)

    a = a_ref[0]                                              # (tn, C)
    acc_ref[...] += lax.dot_general(a, a, (((0,), (0,)), ((), ())),
                                    preferred_element_type=jnp.float32)

    @pl.when(n == pl.num_programs(1) - 1)
    def _fin():
        energy = acc_ref[...]                                 # (C, C) f32
        e_new = jnp.max(energy, axis=-1, keepdims=True) - energy
        e_new = e_new - jnp.max(e_new, axis=-1, keepdims=True)  # stable shift
        p = jnp.exp(e_new)
        # Exact reciprocal: the (C, C) softmax is tiny and off the critical path.
        attn = p / jnp.sum(p, axis=-1, keepdims=True)
        attn_ref[0] = gamma_ref[0, 0] * attn                  # fold gamma in


def _cam_apply_kernel(attn_ref, a_ref, o_ref):
    """Pass 2: out = a @ (gamma*attn)^T + a, per N tile (attn precomputed)."""
    attn = attn_ref[0]                                        # (C, C) f32
    a = a_ref[0].astype(jnp.float32)                          # (tn, C)
    out = lax.dot_general(a, attn, (((1,), (1,)), ((), ())),
                          preferred_element_type=jnp.float32)
    o_ref[0] = (out + a).astype(o_ref.dtype)


def cam_attention(a_bnc, gamma, max_tile=4096):
    """a_bnc: (B, N, C) channels-last.  Returns gamma*attention(a) + a."""
    B, N, C = a_bnc.shape
    tn = _pick_tile(N, max_tile)
    nN = N // tn
    gamma_arr = jnp.asarray(gamma, jnp.float32).reshape(1, 1)
    blk_bytes = tn * C * jnp.dtype(a_bnc.dtype).itemsize + C * C * 4

    attn = pl.pallas_call(
        _cam_attn_kernel,
        out_shape=jax.ShapeDtypeStruct((B, C, C), jnp.float32),
        grid=(B, nN),
        in_specs=[
            pl.BlockSpec(memory_space=pltpu.MemorySpace.SMEM),      # gamma scalar
            pl.BlockSpec((1, tn, C), lambda b, n: (b, n, 0)),
        ],
        out_specs=pl.BlockSpec((1, C, C), lambda b, n: (b, 0, 0)),
        scratch_shapes=[pltpu.VMEM((C, C), jnp.float32)],
        compiler_params=pltpu.CompilerParams(
            dimension_semantics=("parallel", "arbitrary"),
            vmem_limit_bytes=_vmem_limit(blk_bytes)),
    )(gamma_arr, a_bnc)

    return pl.pallas_call(
        _cam_apply_kernel,
        out_shape=jax.ShapeDtypeStruct((B, N, C), a_bnc.dtype),
        grid=(B, nN),
        in_specs=[
            pl.BlockSpec((1, C, C), lambda b, n: (b, 0, 0)),
            pl.BlockSpec((1, tn, C), lambda b, n: (b, n, 0)),
        ],
        out_specs=pl.BlockSpec((1, tn, C), lambda b, n: (b, n, 0)),
        compiler_params=pltpu.CompilerParams(
            dimension_semantics=("parallel", "parallel"),
            vmem_limit_bytes=_vmem_limit(blk_bytes)),
    )(attn, a_bnc)


# ----------------------------------------------------------------------------
# CNetHead forward
# ----------------------------------------------------------------------------

@functools.partial(jax.jit, static_argnames=("compute_dtype",))
def cnet_head_forward(x, params, compute_dtype=None):
    """x: (B, in_channels, D, H, W) -> (B, out_channels, D, H, W).

    compute_dtype=jnp.bfloat16 casts the 3x3x3 conv operands (inputs/weights)
    to bf16 to halve conv HBM traffic; accumulation and all epilogues stay f32.
    """
    B, Cin, D, H, W = x.shape
    N = D * H * W

    # NCDHW -> channels-last once at the boundary (the only full-Cin XLA pass).
    x_cl = jnp.transpose(x, (0, 2, 3, 4, 1))

    # conv5c: Conv3d(3x3x3, no bias) + BN + ReLU  (direct-conv Pallas kernel)
    s1, b1 = bn_fold(params["bn5c_w"], params["bn5c_b"],
                     params["bn5c_rm"], params["bn5c_rv"])
    feat2 = direct_conv3x3_bn_relu(x_cl, params["w5c"], s1, b1,
                                   out_dtype=jnp.float32,
                                   compute_dtype=compute_dtype)   # (B,D,H,W,Cm)
    Cm = feat2.shape[-1]

    # CAM channel attention in channels-last (B, N, Cm) -- no transposes.
    sc_feat = cam_attention(feat2.reshape(B, N, Cm), params["cam_gamma"])
    sc_feat = sc_feat.reshape(B, D, H, W, Cm)

    # conv52 + BN + ReLU, with conv8 (1x1x1 + bias + ReLU) fused into the
    # epilogue so sc_conv never round-trips HBM.  conv7 is dead code: skipped.
    s2, b2 = bn_fold(params["bn52_w"], params["bn52_b"],
                     params["bn52_rm"], params["bn52_rv"])
    Cout = params["w8"].shape[0]
    w8m = params["w8"].reshape(Cout, Cm).T                        # (Cm, Cout)
    out_cl = direct_conv3x3_bn_relu(sc_feat, params["w52"], s2, b2,
                                    head=(w8m, params["b8"]),
                                    out_dtype=x.dtype,
                                    compute_dtype=compute_dtype)  # (B,D,H,W,Cout)

    return jnp.transpose(out_cl, (0, 4, 1, 2, 3))


# ----------------------------------------------------------------------------
# Pure-JAX reference (mirrors the PyTorch ops directly) for verification
# ----------------------------------------------------------------------------

def _conv3d_ref(x, w, padding, bias=None):
    out = lax.conv_general_dilated(
        x, w, window_strides=(1, 1, 1),
        padding=[(padding, padding)] * 3,
        dimension_numbers=("NCDHW", "OIDHW", "NCDHW"))
    if bias is not None:
        out = out + bias.reshape(1, -1, 1, 1, 1)
    return out


def _bn_ref(x, w, b, rm, rv, eps=1e-3):
    rs = lambda v: v.reshape(1, -1, 1, 1, 1)
    return (x - rs(rm)) / jnp.sqrt(rs(rv) + eps) * rs(w) + rs(b)


def cnet_head_reference(x, params):
    feat2 = jax.nn.relu(_bn_ref(_conv3d_ref(x, params["w5c"], 1),
                                params["bn5c_w"], params["bn5c_b"],
                                params["bn5c_rm"], params["bn5c_rv"]))
    B, C, D, H, W = feat2.shape
    q = feat2.reshape(B, C, -1)
    energy = jnp.einsum("bcn,bdn->bcd", q, q)
    e_new = jnp.max(energy, axis=-1, keepdims=True) - energy
    attn = jax.nn.softmax(e_new, axis=-1)
    cam_out = jnp.einsum("bcd,bdn->bcn", attn, q).reshape(B, C, D, H, W)
    sc_feat = params["cam_gamma"] * cam_out + feat2
    sc_conv = jax.nn.relu(_bn_ref(_conv3d_ref(sc_feat, params["w52"], 1),
                                  params["bn52_w"], params["bn52_b"],
                                  params["bn52_rm"], params["bn52_rv"]))
    return jax.nn.relu(_conv3d_ref(sc_conv, params["w8"], 0, params["b8"]))


# ----------------------------------------------------------------------------
# Parameter construction + demo
# ----------------------------------------------------------------------------

def init_params(key, in_channels, out_channels):
    inter = in_channels // 16
    ks = jax.random.split(key, 12)
    f32 = jnp.float32
    return {
        "w5c": 0.05 * jax.random.normal(ks[0], (inter, in_channels, 3, 3, 3), f32),
        "bn5c_w": 1.0 + 0.1 * jax.random.normal(ks[1], (inter,), f32),
        "bn5c_b": 0.1 * jax.random.normal(ks[2], (inter,), f32),
        "bn5c_rm": 0.1 * jax.random.normal(ks[3], (inter,), f32),
        "bn5c_rv": 0.5 + jnp.abs(jax.random.normal(ks[4], (inter,), f32)),
        # PyTorch initializes gamma to 0 (identity); use 0.5 so the attention
        # path is actually exercised while keeping the exact forward formula.
        "cam_gamma": jnp.float32(0.5),
        "w52": 0.05 * jax.random.normal(ks[5], (inter, inter, 3, 3, 3), f32),
        "bn52_w": 1.0 + 0.1 * jax.random.normal(ks[6], (inter,), f32),
        "bn52_b": 0.1 * jax.random.normal(ks[7], (inter,), f32),
        "bn52_rm": 0.1 * jax.random.normal(ks[8], (inter,), f32),
        "bn52_rv": 0.5 + jnp.abs(jax.random.normal(ks[9], (inter,), f32)),
        "w8": 0.1 * jax.random.normal(ks[10], (out_channels, inter, 1, 1, 1), f32),
        "b8": 0.1 * jax.random.normal(ks[11], (out_channels,), f32),
    }


if __name__ == "__main__":
    B, in_channels, out_channels = 2, 64, 3
    D, H, W = 4, 16, 16                       # N = 1024 -> single CAM N tile

    key = jax.random.PRNGKey(0)
    kx, kp = jax.random.split(key)
    x = jax.random.normal(kx, (B, in_channels, D, H, W), jnp.float32)
    params = init_params(kp, in_channels, out_channels)

    # Verified path: f32 operands, f32 accumulation.
    out = jax.block_until_ready(cnet_head_forward(x, params))
    assert out.shape == (B, out_channels, D, H, W), out.shape

    ref = jax.block_until_ready(cnet_head_reference(x, params))
    np.testing.assert_allclose(np.asarray(out), np.asarray(ref),
                               rtol=1e-3, atol=1e-3)

    # Optional bf16-operand path (halves conv HBM traffic, bf16 MXU rate).
    # Best-effort demo only: a tight bf16-vs-f32 comparison is not meaningful
    # through the softmax channel attention, so we only check shape/finiteness.
    try:
        out_bf16 = jax.block_until_ready(
            cnet_head_forward(x, params, compute_dtype=jnp.bfloat16))
        assert out_bf16.shape == (B, out_channels, D, H, W)
        assert bool(jnp.all(jnp.isfinite(out_bf16)))
    except Exception as e:  # pragma: no cover
        print(f"WARN: bf16 operand path unavailable on this backend: {e}")

    print("KERNEL_OK")
</pallas_src>

<mosaic_0001>
module attributes {stable_mosaic.version = 11 : i64} {
  func.func @_direct_conv3d_kernel(%arg0: i32, %arg1: i32, %arg2: i32, %arg3: memref<1x1x342x64xf32, #tpu.memory_space<vmem>>, %arg4: memref<1x9x64x4xf32, #tpu.memory_space<vmem>>, %arg5: memref<1x4xf32, #tpu.memory_space<vmem>>, %arg6: memref<1x4xf32, #tpu.memory_space<vmem>>, %arg7: memref<1x1x288x4xf32, #tpu.memory_space<vmem>>, %arg8: memref<288x4xf32, #tpu.memory_space<vmem>>) attributes {dimension_semantics = [#tpu.dimension_semantics<parallel>, #tpu.dimension_semantics<parallel>, #tpu.dimension_semantics<arbitrary>], iteration_bounds = array<i64: 2, 4, 3>, scalar_prefetch = 0 : i64, scratch_operands = 1 : i64, tpu.core_type = #tpu.core_type<tc>, window_params = [{transform_indices = @transform_0, window_bounds = array<i64: 1, 1, 342, 64>}, {transform_indices = @transform_1, window_bounds = array<i64: 1, 9, 64, 4>}, {pipeline_mode = #tpu.pipeline_mode<synchronous>, transform_indices = @transform_2, window_bounds = array<i64: 1, 4>}, {pipeline_mode = #tpu.pipeline_mode<synchronous>, transform_indices = @transform_3, window_bounds = array<i64: 1, 4>}, {transform_indices = @transform_4, window_bounds = array<i64: 1, 1, 288, 4>}]} {
    %c0_i32 = arith.constant 0 : i32
    %0 = arith.cmpi eq, %arg2, %c0_i32 : i32
    %1 = arith.extui %0 : i1 to i32
    %c0_i32_0 = arith.constant 0 : i32
    %2 = arith.cmpi ne, %1, %c0_i32_0 : i32
    scf.if %2 {
      %cst_71 = arith.constant 0.000000e+00 : f32
      %62 = vector.broadcast %cst_71 : f32 to vector<288x4xf32>
      %c0_72 = arith.constant 0 : index
      %c0_73 = arith.constant 0 : index
      %63 = vector.load %arg8[%c0_72, %c0_73] : memref<288x4xf32, #tpu.memory_space<vmem>>, vector<288x4xf32>
      tpu.vector_store %arg8[%c0_72, %c0_73], %62 {strides = array<i32>} : memref<288x4xf32, #tpu.memory_space<vmem>>, vector<288x4xf32>,
    } else {
    }
    %c0 = arith.constant 0 : index
    %c0_1 = arith.constant 0 : index
    %c0_2 = arith.constant 0 : index
    %c0_3 = arith.constant 0 : index
    %3 = vector.load %arg3[%c0, %c0_1, %c0_2, %c0_3] : memref<1x1x342x64xf32, #tpu.memory_space<vmem>>, vector<1x1x288x64xf32>
    %4 = vector.shape_cast %3 : vector<1x1x288x64xf32> to vector<288x64xf32>
    %c0_4 = arith.constant 0 : index
    %c0_5 = arith.constant 0 : index
    %c0_6 = arith.constant 0 : index
    %c0_7 = arith.constant 0 : index
    %5 = vector.load %arg4[%c0_4, %c0_5, %c0_6, %c0_7] : memref<1x9x64x4xf32, #tpu.memory_space<vmem>>, vector<1x1x64x4xf32>
    %6 = vector.shape_cast %5 : vector<1x1x64x4xf32> to vector<64x4xf32>
    %cst = arith.constant dense<0.000000e+00> : vector<288x4xf32>
    %7 = tpu.matmul %4, %6, %cst {dimension_numbers = #tpu.dot_dimension_numbers<[1], [0], [0], [1], [0, 0, 1, 1], [], []>} : vector<288x64xf32>, vector<64x4xf32>, vector<288x4xf32> -> vector<288x4xf32>
    %c0_8 = arith.constant 0 : index
    %c0_9 = arith.constant 0 : index
    %c1 = arith.constant 1 : index
    %c0_10 = arith.constant 0 : index
    %8 = vector.load %arg3[%c0_8, %c0_9, %c1, %c0_10] : memref<1x1x342x64xf32, #tpu.memory_space<vmem>>, vector<1x1x288x64xf32>
    %9 = vector.shape_cast %8 : vector<1x1x288x64xf32> to vector<288x64xf32>
    %c0_11 = arith.constant 0 : index
    %c1_12 = arith.constant 1 : index
    %c0_13 = arith.constant 0 : index
    %c0_14 = arith.constant 0 : index
    %10 = vector.load %arg4[%c0_11, %c1_12, %c0_13, %c0_14] : memref<1x9x64x4xf32, #tpu.memory_space<vmem>>, vector<1x1x64x4xf32>
    %11 = vector.shape_cast %10 : vector<1x1x64x4xf32> to vector<64x4xf32>
    %cst_15 = arith.constant dense<0.000000e+00> : vector<288x4xf32>
    %12 = tpu.matmul %9, %11, %cst_15 {dimension_numbers = #tpu.dot_dimension_numbers<[1], [0], [0], [1], [0, 0, 1, 1], [], []>} : vector<288x64xf32>, vector<64x4xf32>, vector<288x4xf32> -> vector<288x4xf32>
    %13 = arith.addf %7, %12 : vector<288x4xf32>
    %c0_16 = arith.constant 0 : index
    %c0_17 = arith.constant 0 : index
    %c2 = arith.constant 2 : index
    %c0_18 = arith.constant 0 : index
    %14 = vector.load %arg3[%c0_16, %c0_17, %c2, %c0_18] : memref<1x1x342x64xf32, #tpu.memory_space<vmem>>, vector<1x1x288x64xf32>
    %15 = vector.shape_cast %14 : vector<1x1x288x64xf32> to vector<288x64xf32>
    %c0_19 = arith.constant 0 : index
    %c2_20 = arith.constant 2 : index
    %c0_21 = arith.constant 0 : index
    %c0_22 = arith.constant 0 : index
    %16 = vector.load %arg4[%c0_19, %c2_20, %c0_21, %c0_22] : memref<1x9x64x4xf32, #tpu.memory_space<vmem>>, vector<1x1x64x4xf32>
    %17 = vector.shape_cast %16 : vector<1x1x64x4xf32> to vector<64x4xf32>
    %cst_23 = arith.constant dense<0.000000e+00> : vector<288x4xf32>
    %18 = tpu.matmul %15, %17, %cst_23 {dimension_numbers = #tpu.dot_dimension_numbers<[1], [0], [0], [1], [0, 0, 1, 1], [], []>} : vector<288x64xf32>, vector<64x4xf32>, vector<288x4xf32> -> vector<288x4xf32>
    %19 = arith.addf %13, %18 : vector<288x4xf32>
    %c0_24 = arith.constant 0 : index
    %c0_25 = arith.constant 0 : index
    %c18 = arith.constant 18 : index
    %c0_26 = arith.constant 0 : index
    %20 = vector.load %arg3[%c0_24, %c0_25, %c18, %c0_26] : memref<1x1x342x64xf32, #tpu.memory_space<vmem>>, vector<1x1x288x64xf32>
    %21 = vector.shape_cast %20 : vector<1x1x288x64xf32> to vector<288x64xf32>
    %c0_27 = arith.constant 0 : index
    %c3 = arith.constant 3 : index
    %c0_28 = arith.constant 0 : index
    %c0_29 = arith.constant 0 : index
    %22 = vector.load %arg4[%c0_27, %c3, %c0_28, %c0_29] : memref<1x9x64x4xf32, #tpu.memory_space<vmem>>, vector<1x1x64x4xf32>
    %23 = vector.shape_cast %22 : vector<1x1x64x4xf32> to vector<64x4xf32>
    %cst_30 = arith.constant dense<0.000000e+00> : vector<288x4xf32>
    %24 = tpu.matmul %21, %23, %cst_30 {dimension_numbers = #tpu.dot_dimension_numbers<[1], [0], [0], [1], [0, 0, 1, 1], [], []>} : vector<288x64xf32>, vector<64x4xf32>, vector<288x4xf32> -> vector<288x4xf32>
    %25 = arith.addf %19, %24 : vector<288x4xf32>
    %c0_31 = arith.constant 0 : index
    %c0_32 = arith.constant 0 : index
    %c19 = arith.constant 19 : index
    %c0_33 = arith.constant 0 : index
    %26 = vector.load %arg3[%c0_31, %c0_32, %c19, %c0_33] : memref<1x1x342x64xf32, #tpu.memory_space<vmem>>, vector<1x1x288x64xf32>
    %27 = vector.shape_cast %26 : vector<1x1x288x64xf32> to vector<288x64xf32>
    %c0_34 = arith.constant 0 : index
    %c4 = arith.constant 4 : index
    %c0_35 = arith.constant 0 : index
    %c0_36 = arith.constant 0 : index
    %28 = vector.load %arg4[%c0_34, %c4, %c0_35, %c0_36] : memref<1x9x64x4xf32, #tpu.memory_space<vmem>>, vector<1x1x64x4xf32>
    %29 = vector.shape_cast %28 : vector<1x1x64x4xf32> to vector<64x4xf32>
    %cst_37 = arith.constant dense<0.000000e+00> : vector<288x4xf32>
    %30 = tpu.matmul %27, %29, %cst_37 {dimension_numbers = #tpu.dot_dimension_numbers<[1], [0], [0], [1], [0, 0, 1, 1], [], []>} : vector<288x64xf32>, vector<64x4xf32>, vector<288x4xf32> -> vector<288x4xf32>
    %31 = arith.addf %25, %30 : vector<288x4xf32>
    %c0_38 = arith.constant 0 : index
    %c0_39 = arith.constant 0 : index
    %c20 = arith.constant 20 : index
    %c0_40 = arith.constant 0 : index
    %32 = vector.load %arg3[%c0_38, %c0_39, %c20, %c0_40] : memref<1x1x342x64xf32, #tpu.memory_space<vmem>>, vector<1x1x288x64xf32>
    %33 = vector.shape_cast %32 : vector<1x1x288x64xf32> to vector<288x64xf32>
    %c0_41 = arith.constant 0 : index
    %c5 = arith.constant 5 : index
    %c0_42 = arith.constant 0 : index
    %c0_43 = arith.constant 0 : index
    %34 = vector.load %arg4[%c0_41, %c5, %c0_42, %c0_43] : memref<1x9x64x4xf32, #tpu.memory_space<vmem>>, vector<1x1x64x4xf32>
    %35 = vector.shape_cast %34 : vector<1x1x64x4xf32> to vector<64x4xf32>
    %cst_44 = arith.constant dense<0.000000e+00> : vector<288x4xf32>
    %36 = tpu.matmul %33, %35, %cst_44 {dimension_numbers = #tpu.dot_dimension_numbers<[1], [0], [0], [1], [0, 0, 1, 1], [], []>} : vector<288x64xf32>, vector<64x4xf32>, vector<288x4xf32> -> vector<288x4xf32>
    %37 = arith.addf %31, %36 : vector<288x4xf32>
    %c0_45 = arith.constant 0 : index
    %c0_46 = arith.constant 0 : index
    %c36 = arith.constant 36 : index
    %c0_47 = arith.constant 0 : index
    %38 = vector.load %arg3[%c0_45, %c0_46, %c36, %c0_47] : memref<1x1x342x64xf32, #tpu.memory_space<vmem>>, vector<1x1x288x64xf32>
    %39 = vector.shape_cast %38 : vector<1x1x288x64xf32> to vector<288x64xf32>
    %c0_48 = arith.constant 0 : index
    %c6 = arith.constant 6 : index
    %c0_49 = arith.constant 0 : index
    %c0_50 = arith.constant 0 : index
    %40 = vector.load %arg4[%c0_48, %c6, %c0_49, %c0_50] : memref<1x9x64x4xf32, #tpu.memory_space<vmem>>, vector<1x1x64x4xf32>
    %41 = vector.shape_cast %40 : vector<1x1x64x4xf32> to vector<64x4xf32>
    %cst_51 = arith.constant dense<0.000000e+00> : vector<288x4xf32>
    %42 = tpu.matmul %39, %41, %cst_51 {dimension_numbers = #tpu.dot_dimension_numbers<[1], [0], [0], [1], [0, 0, 1, 1], [], []>} : vector<288x64xf32>, vector<64x4xf32>, vector<288x4xf32> -> vector<288x4xf32>
    %43 = arith.addf %37, %42 : vector<288x4xf32>
    %c0_52 = arith.constant 0 : index
    %c0_53 = arith.constant 0 : index
    %c37 = arith.constant 37 : index
    %c0_54 = arith.constant 0 : index
    %44 = vector.load %arg3[%c0_52, %c0_53, %c37, %c0_54] : memref<1x1x342x64xf32, #tpu.memory_space<vmem>>, vector<1x1x288x64xf32>
    %45 = vector.shape_cast %44 : vector<1x1x288x64xf32> to vector<288x64xf32>
    %c0_55 = arith.constant 0 : index
    %c7 = arith.constant 7 : index
    %c0_56 = arith.constant 0 : index
    %c0_57 = arith.constant 0 : index
    %46 = vector.load %arg4[%c0_55, %c7, %c0_56, %c0_57] : memref<1x9x64x4xf32, #tpu.memory_space<vmem>>, vector<1x1x64x4xf32>
    %47 = vector.shape_cast %46 : vector<1x1x64x4xf32> to vector<64x4xf32>
    %cst_58 = arith.constant dense<0.000000e+00> : vector<288x4xf32>
    %48 = tpu.matmul %45, %47, %cst_58 {dimension_numbers = #tpu.dot_dimension_numbers<[1], [0], [0], [1], [0, 0, 1, 1], [], []>} : vector<288x64xf32>, vector<64x4xf32>, vector<288x4xf32> -> vector<288x4xf32>
    %49 = arith.addf %43, %48 : vector<288x4xf32>
    %c0_59 = arith.constant 0 : index
    %c0_60 = arith.constant 0 : index
    %c38 = arith.constant 38 : index
    %c0_61 = arith.constant 0 : index
    %50 = vector.load %arg3[%c0_59, %c0_60, %c38, %c0_61] : memref<1x1x342x64xf32, #tpu.memory_space<vmem>>, vector<1x1x288x64xf32>
    %51 = vector.shape_cast %50 : vector<1x1x288x64xf32> to vector<288x64xf32>
    %c0_62 = arith.constant 0 : index
    %c8 = arith.constant 8 : index
    %c0_63 = arith.constant 0 : index
    %c0_64 = arith.constant 0 : index
    %52 = vector.load %arg4[%c0_62, %c8, %c0_63, %c0_64] : memref<1x9x64x4xf32, #tpu.memory_space<vmem>>, vector<1x1x64x4xf32>
    %53 = vector.shape_cast %52 : vector<1x1x64x4xf32> to vector<64x4xf32>
    %cst_65 = arith.constant dense<0.000000e+00> : vector<288x4xf32>
    %54 = tpu.matmul %51, %53, %cst_65 {dimension_numbers = #tpu.dot_dimension_numbers<[1], [0], [0], [1], [0, 0, 1, 1], [], []>} : vector<288x64xf32>, vector<64x4xf32>, vector<288x4xf32> -> vector<288x4xf32>
    %55 = arith.addf %49, %54 : vector<288x4xf32>
    %c0_66 = arith.constant 0 : index
    %c0_67 = arith.constant 0 : index
    %56 = vector.load %arg8[%c0_66, %c0_67] : memref<288x4xf32, #tpu.memory_space<vmem>>, vector<288x4xf32>
    %57 = arith.addf %56, %55 : vector<288x4xf32>
    %c0_68 = arith.constant 0 : index
    %c0_69 = arith.constant 0 : index
    %58 = vector.load %arg8[%c0_68, %c0_69] : memref<288x4xf32, #tpu.memory_space<vmem>>, vector<288x4xf32>
    tpu.vector_store %arg8[%c0_68, %c0_69], %57 {strides = array<i32>} : memref<288x4xf32, #tpu.memory_space<vmem>>, vector<288x4xf32>,
    %c2_i32 = arith.constant 2 : i32
    %59 = arith.cmpi eq, %arg2, %c2_i32 : i32
    %60 = arith.extui %59 : i1 to i32
    %c0_i32_70 = arith.constant 0 : i32
    %61 = arith.cmpi ne, %60, %c0_i32_70 : i32
    scf.if %61 {
      %c0_71 = arith.constant 0 : index
      %c0_72 = arith.constant 0 : index
      %62 = vector.load %arg8[%c0_71, %c0_72] : memref<288x4xf32, #tpu.memory_space<vmem>>, vector<288x4xf32>
      %c0_73 = arith.constant 0 : index
      %c0_74 = arith.constant 0 : index
      %63 = vector.load %arg5[%c0_73, %c0_74] : memref<1x4xf32, #tpu.memory_space<vmem>>, vector<1x4xf32>
      %64 = vector.broadcast %63 : vector<1x4xf32> to vector<288x4xf32>
      %65 = arith.mulf %62, %64 : vector<288x4xf32>
      %c0_75 = arith.constant 0 : index
      %c0_76 = arith.constant 0 : index
      %66 = vector.load %arg6[%c0_75, %c0_76] : memref<1x4xf32, #tpu.memory_space<vmem>>, vector<1x4xf32>
      %67 = vector.broadcast %66 : vector<1x4xf32> to vector<288x4xf32>
      %68 = arith.addf %65, %67 : vector<288x4xf32>
      %cst_77 = arith.constant 0.000000e+00 : f32
      %69 = vector.broadcast %cst_77 : f32 to vector<288x4xf32>
      %70 = arith.maximumf %68, %69 : vector<288x4xf32>
      %c0_78 = arith.constant 0 : index
      %c0_79 = arith.constant 0 : index
      %c0_80 = arith.constant 0 : index
      %c0_81 = arith.constant 0 : index
      %71 = vector.load %arg7[%c0_78, %c0_79, %c0_80, %c0_81] : memref<1x1x288x4xf32, #tpu.memory_space<vmem>>, vector<1x1x288x4xf32>
      %72 = vector.shape_cast %71 : vector<1x1x288x4xf32> to vector<288x4xf32>
      %73 = vector.shape_cast %70 : vector<288x4xf32> to vector<1x1x288x4xf32>
      tpu.vector_store %arg7[%c0_78, %c0_79, %c0_80, %c0_81], %73 {strides = array<i32>} : memref<1x1x288x4xf32, #tpu.memory_space<vmem>>, vector<1x1x288x4xf32>,
    } else {
    }
    return
  }
  func.func @transform_0(%arg0: i32, %arg1: i32, %arg2: i32) -> (i32, i32, i32, i32) {
    %0 = arith.addi %arg1, %arg2 : i32
    %c0_i32 = arith.constant 0 : i32
    %c0_i32_0 = arith.constant 0 : i32
    %c0_i32_1 = arith.constant 0 : i32
    return %arg0, %0, %c0_i32, %c0_i32_0 : i32, i32, i32, i32
  }
  func.func @transform_1(%arg0: i32, %arg1: i32, %arg2: i32) -> (i32, i32, i32, i32) {
    %c0_i32 = arith.constant 0 : i32
    %c0_i32_0 = arith.constant 0 : i32
    %c0_i32_1 = arith.constant 0 : i32
    %c0_i32_2 = arith.constant 0 : i32
    return %arg2, %c0_i32, %c0_i32_0, %c0_i32_1 : i32, i32, i32, i32
  }
  func.func @transform_2(%arg0: i32, %arg1: i32, %arg2: i32) -> (i32, i32) {
    %c0_i32 = arith.constant 0 : i32
    %c0_i32_0 = arith.constant 0 : i32
    %c0_i32_1 = arith.constant 0 : i32
    return %c0_i32, %c0_i32_0 : i32, i32
  }
  func.func @transform_3(%arg0: i32, %arg1: i32, %arg2: i32) -> (i32, i32) {
    %c0_i32 = arith.constant 0 : i32
    %c0_i32_0 = arith.constant 0 : i32
    %c0_i32_1 = arith.constant 0 : i32
    return %c0_i32, %c0_i32_0 : i32, i32
  }
  func.func @transform_4(%arg0: i32, %arg1: i32, %arg2: i32) -> (i32, i32, i32, i32) {
    %c0_i32 = arith.constant 0 : i32
    %c0_i32_0 = arith.constant 0 : i32
    %c0_i32_1 = arith.constant 0 : i32
    return %arg0, %arg1, %c0_i32, %c0_i32_0 : i32, i32, i32, i32
  }
}

module attributes {stable_mosaic.version = 11 : i64} {
  func.func @_cam_attn_kernel(%arg0: i32, %arg1: i32, %arg2: memref<1x1xf32, #tpu.memory_space<smem>>, %arg3: memref<1x1024x4xf32, #tpu.memory_space<vmem>>, %arg4: memref<1x4x4xf32, #tpu.memory_space<vmem>>, %arg5: memref<4x4xf32, #tpu.memory_space<vmem>>) attributes {dimension_semantics = [#tpu.dimension_semantics<parallel>, #tpu.dimension_semantics<arbitrary>], iteration_bounds = array<i64: 2, 1>, scalar_prefetch = 0 : i64, scratch_operands = 1 : i64, tpu.core_type = #tpu.core_type<tc>, window_params = [{transform_indices = @transform_0, window_bounds = array<i64: 1, 1>}, {transform_indices = @transform_1, window_bounds = array<i64: 1, 1024, 4>}, {transform_indices = @transform_2, window_bounds = array<i64: 1, 4, 4>}]} {
    %c0_i32 = arith.constant 0 : i32
    %0 = arith.cmpi eq, %arg1, %c0_i32 : i32
    %1 = arith.extui %0 : i1 to i32
    %c0_i32_0 = arith.constant 0 : i32
    %2 = arith.cmpi ne, %1, %c0_i32_0 : i32
    scf.if %2 {
      %cst_9 = arith.constant 0.000000e+00 : f32
      %12 = vector.broadcast %cst_9 : f32 to vector<4x4xf32>
      %c0_10 = arith.constant 0 : index
      %c0_11 = arith.constant 0 : index
      %13 = vector.load %arg5[%c0_10, %c0_11] : memref<4x4xf32, #tpu.memory_space<vmem>>, vector<4x4xf32>
      tpu.vector_store %arg5[%c0_10, %c0_11], %12 {strides = array<i32>} : memref<4x4xf32, #tpu.memory_space<vmem>>, vector<4x4xf32>,
    } else {
    }
    %c0 = arith.constant 0 : index
    %c0_1 = arith.constant 0 : index
    %c0_2 = arith.constant 0 : index
    %3 = vector.load %arg3[%c0, %c0_1, %c0_2] : memref<1x1024x4xf32, #tpu.memory_space<vmem>>, vector<1x1024x4xf32>
    %4 = vector.shape_cast %3 : vector<1x1024x4xf32> to vector<1024x4xf32>
    %c0_3 = arith.constant 0 : index
    %c0_4 = arith.constant 0 : index
    %5 = vector.load %arg5[%c0_3, %c0_4] : memref<4x4xf32, #tpu.memory_space<vmem>>, vector<4x4xf32>
    %cst = arith.constant dense<0.000000e+00> : vector<4x4xf32>
    %6 = tpu.matmul %4, %4, %cst {dimension_numbers = #tpu.dot_dimension_numbers<[0], [0], [1], [1], [0, 1, 1, 1], [], []>} : vector<1024x4xf32>, vector<1024x4xf32>, vector<4x4xf32> -> vector<4x4xf32>
    %7 = arith.addf %5, %6 : vector<4x4xf32>
    %c0_5 = arith.constant 0 : index
    %c0_6 = arith.constant 0 : index
    %8 = vector.load %arg5[%c0_5, %c0_6] : memref<4x4xf32, #tpu.memory_space<vmem>>, vector<4x4xf32>
    tpu.vector_store %arg5[%c0_5, %c0_6], %7 {strides = array<i32>} : memref<4x4xf32, #tpu.memory_space<vmem>>, vector<4x4xf32>,
    %c0_i32_7 = arith.constant 0 : i32
    %9 = arith.cmpi eq, %arg1, %c0_i32_7 : i32
    %10 = arith.extui %9 : i1 to i32
    %c0_i32_8 = arith.constant 0 : i32
    %11 = arith.cmpi ne, %10, %c0_i32_8 : i32
    scf.if %11 {
      %c0_9 = arith.constant 0 : index
      %c0_10 = arith.constant 0 : index
      %12 = vector.load %arg5[%c0_9, %c0_10] : memref<4x4xf32, #tpu.memory_space<vmem>>, vector<4x4xf32>
      %cst_11 = arith.constant dense<0xFF800000> : vector<4xf32>
      %13 = vector.multi_reduction <maximumf>, %12, %cst_11 [1] : vector<4x4xf32> to vector<4xf32>
      %14 = vector.shape_cast %13 : vector<4xf32> to vector<4x1xf32>
      %15 = vector.broadcast %14 : vector<4x1xf32> to vector<4x4xf32>
      %16 = arith.subf %15, %12 : vector<4x4xf32>
      %cst_12 = arith.constant dense<0xFF800000> : vector<4xf32>
      %17 = vector.multi_reduction <maximumf>, %16, %cst_12 [1] : vector<4x4xf32> to vector<4xf32>
      %18 = vector.shape_cast %17 : vector<4xf32> to vector<4x1xf32>
      %19 = vector.broadcast %18 : vector<4x1xf32> to vector<4x4xf32>
      %20 = arith.subf %16, %19 : vector<4x4xf32>
      %21 = math.exp %20 : vector<4x4xf32>
      %cst_13 = arith.constant dense<0.000000e+00> : vector<4xf32>
      %22 = vector.multi_reduction <add>, %21, %cst_13 [1] : vector<4x4xf32> to vector<4xf32>
      %23 = vector.shape_cast %22 : vector<4xf32> to vector<4x1xf32>
      %24 = vector.broadcast %23 : vector<4x1xf32> to vector<4x4xf32>
      %25 = arith.divf %21, %24 : vector<4x4xf32>
      %c0_14 = arith.constant 0 : index
      %c0_15 = arith.constant 0 : index
      %26 = memref.load %arg2[%c0_14, %c0_15] : memref<1x1xf32, #tpu.memory_space<smem>>
      %27 = vector.broadcast %26 : f32 to vector<4x4xf32>
      %28 = arith.mulf %27, %25 : vector<4x4xf32>
      %c0_16 = arith.constant 0 : index
      %c0_17 = arith.constant 0 : index
      %c0_18 = arith.constant 0 : index
      %29 = vector.load %arg4[%c0_16, %c0_17, %c0_18] : memref<1x4x4xf32, #tpu.memory_space<vmem>>, vector<1x4x4xf32>
      %30 = vector.shape_cast %29 : vector<1x4x4xf32> to vector<4x4xf32>
      %31 = vector.shape_cast %28 : vector<4x4xf32> to vector<1x4x4xf32>
      tpu.vector_store %arg4[%c0_16, %c0_17, %c0_18], %31 {strides = array<i32>} : memref<1x4x4xf32, #tpu.memory_space<vmem>>, vector<1x4x4xf32>,
    } else {
    }
    return
  }
  func.func @transform_0(%arg0: i32, %arg1: i32) -> (i32, i32) {
    %c0_i32 = arith.constant 0 : i32
    %c0_i32_0 = arith.constant 0 : i32
    %c0_i32_1 = arith.constant 0 : i32
    return %c0_i32, %c0_i32_0 : i32, i32
  }
  func.func @transform_1(%arg0: i32, %arg1: i32) -> (i32, i32, i32) {
    %c0_i32 = arith.constant 0 : i32
    %c0_i32_0 = arith.constant 0 : i32
    return %arg0, %arg1, %c0_i32 : i32, i32, i32
  }
  func.func @transform_2(%arg0: i32, %arg1: i32) -> (i32, i32, i32) {
    %c0_i32 = arith.constant 0 : i32
    %c0_i32_0 = arith.constant 0 : i32
    %c0_i32_1 = arith.constant 0 : i32
    return %arg0, %c0_i32, %c0_i32_0 : i32, i32, i32
  }
}

module attributes {stable_mosaic.version = 11 : i64} {
  func.func @_cam_apply_kernel(%arg0: i32, %arg1: i32, %arg2: memref<1x4x4xf32, #tpu.memory_space<vmem>>, %arg3: memref<1x1024x4xf32, #tpu.memory_space<vmem>>, %arg4: memref<1x1024x4xf32, #tpu.memory_space<vmem>>) attributes {dimension_semantics = [#tpu.dimension_semantics<parallel>, #tpu.dimension_semantics<parallel>], iteration_bounds = array<i64: 2, 1>, scalar_prefetch = 0 : i64, scratch_operands = 0 : i64, tpu.core_type = #tpu.core_type<tc>, window_params = [{transform_indices = @transform_0, window_bounds = array<i64: 1, 4, 4>}, {transform_indices = @transform_1, window_bounds = array<i64: 1, 1024, 4>}, {transform_indices = @transform_2, window_bounds = array<i64: 1, 1024, 4>}]} {
    %c0 = arith.constant 0 : index
    %c0_0 = arith.constant 0 : index
    %c0_1 = arith.constant 0 : index
    %0 = vector.load %arg2[%c0, %c0_0, %c0_1] : memref<1x4x4xf32, #tpu.memory_space<vmem>>, vector<1x4x4xf32>
    %1 = vector.shape_cast %0 : vector<1x4x4xf32> to vector<4x4xf32>
    %c0_2 = arith.constant 0 : index
    %c0_3 = arith.constant 0 : index
    %c0_4 = arith.constant 0 : index
    %2 = vector.load %arg3[%c0_2, %c0_3, %c0_4] : memref<1x1024x4xf32, #tpu.memory_space<vmem>>, vector<1x1024x4xf32>
    %3 = vector.shape_cast %2 : vector<1x1024x4xf32> to vector<1024x4xf32>
    %cst = arith.constant dense<0.000000e+00> : vector<1024x4xf32>
    %4 = tpu.matmul %3, %1, %cst {dimension_numbers = #tpu.dot_dimension_numbers<[1], [1], [0], [0], [0, 0, 1, 0], [], []>} : vector<1024x4xf32>, vector<4x4xf32>, vector<1024x4xf32> -> vector<1024x4xf32>
    %5 = arith.addf %4, %3 : vector<1024x4xf32>
    %c0_5 = arith.constant 0 : index
    %c0_6 = arith.constant 0 : index
    %c0_7 = arith.constant 0 : index
    %6 = vector.load %arg4[%c0_5, %c0_6, %c0_7] : memref<1x1024x4xf32, #tpu.memory_space<vmem>>, vector<1x1024x4xf32>
    %7 = vector.shape_cast %6 : vector<1x1024x4xf32> to vector<1024x4xf32>
    %8 = vector.shape_cast %5 : vector<1024x4xf32> to vector<1x1024x4xf32>
    tpu.vector_store %arg4[%c0_5, %c0_6, %c0_7], %8 {strides = array<i32>} : memref<1x1024x4xf32, #tpu.memory_space<vmem>>, vector<1x1024x4xf32>,
    return
  }
  func.func @transform_0(%arg0: i32, %arg1: i32) -> (i32, i32, i32) {
    %c0_i32 = arith.constant 0 : i32
    %c0_i32_0 = arith.constant 0 : i32
    %c0_i32_1 = arith.constant 0 : i32
    return %arg0, %c0_i32, %c0_i32_0 : i32, i32, i32
  }
  func.func @transform_1(%arg0: i32, %arg1: i32) -> (i32, i32, i32) {
    %c0_i32 = arith.constant 0 : i32
    %c0_i32_0 = arith.constant 0 : i32
    return %arg0, %arg1, %c0_i32 : i32, i32, i32
  }
  func.func @transform_2(%arg0: i32, %arg1: i32) -> (i32, i32, i32) {
    %c0_i32 = arith.constant 0 : i32
    %c0_i32_0 = arith.constant 0 : i32
    return %arg0, %arg1, %c0_i32 : i32, i32, i32
  }
}

module attributes {stable_mosaic.version = 11 : i64} {
  func.func @_direct_conv3d_kernel(%arg0: i32, %arg1: i32, %arg2: i32, %arg3: memref<1x1x342x4xf32, #tpu.memory_space<vmem>>, %arg4: memref<1x9x4x4xf32, #tpu.memory_space<vmem>>, %arg5: memref<1x4xf32, #tpu.memory_space<vmem>>, %arg6: memref<1x4xf32, #tpu.memory_space<vmem>>, %arg7: memref<4x3xf32, #tpu.memory_space<vmem>>, %arg8: memref<1x3xf32, #tpu.memory_space<vmem>>, %arg9: memref<1x1x288x3xf32, #tpu.memory_space<vmem>>, %arg10: memref<288x4xf32, #tpu.memory_space<vmem>>) attributes {dimension_semantics = [#tpu.dimension_semantics<parallel>, #tpu.dimension_semantics<parallel>, #tpu.dimension_semantics<arbitrary>], iteration_bounds = array<i64: 2, 4, 3>, scalar_prefetch = 0 : i64, scratch_operands = 1 : i64, tpu.core_type = #tpu.core_type<tc>, window_params = [{transform_indices = @transform_0, window_bounds = array<i64: 1, 1, 342, 4>}, {transform_indices = @transform_1, window_bounds = array<i64: 1, 9, 4, 4>}, {pipeline_mode = #tpu.pipeline_mode<synchronous>, transform_indices = @transform_2, window_bounds = array<i64: 1, 4>}, {pipeline_mode = #tpu.pipeline_mode<synchronous>, transform_indices = @transform_3, window_bounds = array<i64: 1, 4>}, {pipeline_mode = #tpu.pipeline_mode<synchronous>, transform_indices = @transform_4, window_bounds = array<i64: 4, 3>}, {pipeline_mode = #tpu.pipeline_mode<synchronous>, transform_indices = @transform_5, window_bounds = array<i64: 1, 3>}, {transform_indices = @transform_6, window_bounds = array<i64: 1, 1, 288, 3>}]} {
    %c0_i32 = arith.constant 0 : i32
    %0 = arith.cmpi eq, %arg2, %c0_i32 : i32
    %1 = arith.extui %0 : i1 to i32
    %c0_i32_0 = arith.constant 0 : i32
    %2 = arith.cmpi ne, %1, %c0_i32_0 : i32
    scf.if %2 {
      %cst_71 = arith.constant 0.000000e+00 : f32
      %62 = vector.broadcast %cst_71 : f32 to vector<288x4xf32>
      %c0_72 = arith.constant 0 : index
      %c0_73 = arith.constant 0 : index
      %63 = vector.load %arg10[%c0_72, %c0_73] : memref<288x4xf32, #tpu.memory_space<vmem>>, vector<288x4xf32>
      tpu.vector_store %arg10[%c0_72, %c0_73], %62 {strides = array<i32>} : memref<288x4xf32, #tpu.memory_space<vmem>>, vector<288x4xf32>,
    } else {
    }
    %c0 = arith.constant 0 : index
    %c0_1 = arith.constant 0 : index
    %c0_2 = arith.constant 0 : index
    %c0_3 = arith.constant 0 : index
    %3 = vector.load %arg3[%c0, %c0_1, %c0_2, %c0_3] : memref<1x1x342x4xf32, #tpu.memory_space<vmem>>, vector<1x1x288x4xf32>
    %4 = vector.shape_cast %3 : vector<1x1x288x4xf32> to vector<288x4xf32>
    %c0_4 = arith.constant 0 : index
    %c0_5 = arith.constant 0 : index
    %c0_6 = arith.constant 0 : index
    %c0_7 = arith.constant 0 : index
    %5 = vector.load %arg4[%c0_4, %c0_5, %c0_6, %c0_7] : memref<1x9x4x4xf32, #tpu.memory_space<vmem>>, vector<1x1x4x4xf32>
    %6 = vector.shape_cast %5 : vector<1x1x4x4xf32> to vector<4x4xf32>
    %cst = arith.constant dense<0.000000e+00> : vector<288x4xf32>
    %7 = tpu.matmul %4, %6, %cst {dimension_numbers = #tpu.dot_dimension_numbers<[1], [0], [0], [1], [0, 0, 1, 1], [], []>} : vector<288x4xf32>, vector<4x4xf32>, vector<288x4xf32> -> vector<288x4xf32>
    %c0_8 = arith.constant 0 : index
    %c0_9 = arith.constant 0 : index
    %c1 = arith.constant 1 : index
    %c0_10 = arith.constant 0 : index
    %8 = vector.load %arg3[%c0_8, %c0_9, %c1, %c0_10] : memref<1x1x342x4xf32, #tpu.memory_space<vmem>>, vector<1x1x288x4xf32>
    %9 = vector.shape_cast %8 : vector<1x1x288x4xf32> to vector<288x4xf32>
    %c0_11 = arith.constant 0 : index
    %c1_12 = arith.constant 1 : index
    %c0_13 = arith.constant 0 : index
    %c0_14 = arith.constant 0 : index
    %10 = vector.load %arg4[%c0_11, %c1_12, %c0_13, %c0_14] : memref<1x9x4x4xf32, #tpu.memory_space<vmem>>, vector<1x1x4x4xf32>
    %11 = vector.shape_cast %10 : vector<1x1x4x4xf32> to vector<4x4xf32>
    %cst_15 = arith.constant dense<0.000000e+00> : vector<288x4xf32>
    %12 = tpu.matmul %9, %11, %cst_15 {dimension_numbers = #tpu.dot_dimension_numbers<[1], [0], [0], [1], [0, 0, 1, 1], [], []>} : vector<288x4xf32>, vector<4x4xf32>, vector<288x4xf32> -> vector<288x4xf32>
    %13 = arith.addf %7, %12 : vector<288x4xf32>
    %c0_16 = arith.constant 0 : index
    %c0_17 = arith.constant 0 : index
    %c2 = arith.constant 2 : index
    %c0_18 = arith.constant 0 : index
    %14 = vector.load %arg3[%c0_16, %c0_17, %c2, %c0_18] : memref<1x1x342x4xf32, #tpu.memory_space<vmem>>, vector<1x1x288x4xf32>
    %15 = vector.shape_cast %14 : vector<1x1x288x4xf32> to vector<288x4xf32>
    %c0_19 = arith.constant 0 : index
    %c2_20 = arith.constant 2 : index
    %c0_21 = arith.constant 0 : index
    %c0_22 = arith.constant 0 : index
    %16 = vector.load %arg4[%c0_19, %c2_20, %c0_21, %c0_22] : memref<1x9x4x4xf32, #tpu.memory_space<vmem>>, vector<1x1x4x4xf32>
    %17 = vector.shape_cast %16 : vector<1x1x4x4xf32> to vector<4x4xf32>
    %cst_23 = arith.constant dense<0.000000e+00> : vector<288x4xf32>
    %18 = tpu.matmul %15, %17, %cst_23 {dimension_numbers = #tpu.dot_dimension_numbers<[1], [0], [0], [1], [0, 0, 1, 1], [], []>} : vector<288x4xf32>, vector<4x4xf32>, vector<288x4xf32> -> vector<288x4xf32>
    %19 = arith.addf %13, %18 : vector<288x4xf32>
    %c0_24 = arith.constant 0 : index
    %c0_25 = arith.constant 0 : index
    %c18 = arith.constant 18 : index
    %c0_26 = arith.constant 0 : index
    %20 = vector.load %arg3[%c0_24, %c0_25, %c18, %c0_26] : memref<1x1x342x4xf32, #tpu.memory_space<vmem>>, vector<1x1x288x4xf32>
    %21 = vector.shape_cast %20 : vector<1x1x288x4xf32> to vector<288x4xf32>
    %c0_27 = arith.constant 0 : index
    %c3 = arith.constant 3 : index
    %c0_28 = arith.constant 0 : index
    %c0_29 = arith.constant 0 : index
    %22 = vector.load %arg4[%c0_27, %c3, %c0_28, %c0_29] : memref<1x9x4x4xf32, #tpu.memory_space<vmem>>, vector<1x1x4x4xf32>
    %23 = vector.shape_cast %22 : vector<1x1x4x4xf32> to vector<4x4xf32>
    %cst_30 = arith.constant dense<0.000000e+00> : vector<288x4xf32>
    %24 = tpu.matmul %21, %23, %cst_30 {dimension_numbers = #tpu.dot_dimension_numbers<[1], [0], [0], [1], [0, 0, 1, 1], [], []>} : vector<288x4xf32>, vector<4x4xf32>, vector<288x4xf32> -> vector<288x4xf32>
    %25 = arith.addf %19, %24 : vector<288x4xf32>
    %c0_31 = arith.constant 0 : index
    %c0_32 = arith.constant 0 : index
    %c19 = arith.constant 19 : index
    %c0_33 = arith.constant 0 : index
    %26 = vector.load %arg3[%c0_31, %c0_32, %c19, %c0_33] : memref<1x1x342x4xf32, #tpu.memory_space<vmem>>, vector<1x1x288x4xf32>
    %27 = vector.shape_cast %26 : vector<1x1x288x4xf32> to vector<288x4xf32>
    %c0_34 = arith.constant 0 : index
    %c4 = arith.constant 4 : index
    %c0_35 = arith.constant 0 : index
    %c0_36 = arith.constant 0 : index
    %28 = vector.load %arg4[%c0_34, %c4, %c0_35, %c0_36] : memref<1x9x4x4xf32, #tpu.memory_space<vmem>>, vector<1x1x4x4xf32>
    %29 = vector.shape_cast %28 : vector<1x1x4x4xf32> to vector<4x4xf32>
    %cst_37 = arith.constant dense<0.000000e+00> : vector<288x4xf32>
    %30 = tpu.matmul %27, %29, %cst_37 {dimension_numbers = #tpu.dot_dimension_numbers<[1], [0], [0], [1], [0, 0, 1, 1], [], []>} : vector<288x4xf32>, vector<4x4xf32>, vector<288x4xf32> -> vector<288x4xf32>
    %31 = arith.addf %25, %30 : vector<288x4xf32>
    %c0_38 = arith.constant 0 : index
    %c0_39 = arith.constant 0 : index
    %c20 = arith.constant 20 : index
    %c0_40 = arith.constant 0 : index
    %32 = vector.load %arg3[%c0_38, %c0_39, %c20, %c0_40] : memref<1x1x342x4xf32, #tpu.memory_space<vmem>>, vector<1x1x288x4xf32>
    %33 = vector.shape_cast %32 : vector<1x1x288x4xf32> to vector<288x4xf32>
    %c0_41 = arith.constant 0 : index
    %c5 = arith.constant 5 : index
    %c0_42 = arith.constant 0 : index
    %c0_43 = arith.constant 0 : index
    %34 = vector.load %arg4[%c0_41, %c5, %c0_42, %c0_43] : memref<1x9x4x4xf32, #tpu.memory_space<vmem>>, vector<1x1x4x4xf32>
    %35 = vector.shape_cast %34 : vector<1x1x4x4xf32> to vector<4x4xf32>
    %cst_44 = arith.constant dense<0.000000e+00> : vector<288x4xf32>
    %36 = tpu.matmul %33, %35, %cst_44 {dimension_numbers = #tpu.dot_dimension_numbers<[1], [0], [0], [1], [0, 0, 1, 1], [], []>} : vector<288x4xf32>, vector<4x4xf32>, vector<288x4xf32> -> vector<288x4xf32>
    %37 = arith.addf %31, %36 : vector<288x4xf32>
    %c0_45 = arith.constant 0 : index
    %c0_46 = arith.constant 0 : index
    %c36 = arith.constant 36 : index
    %c0_47 = arith.constant 0 : index
    %38 = vector.load %arg3[%c0_45, %c0_46, %c36, %c0_47] : memref<1x1x342x4xf32, #tpu.memory_space<vmem>>, vector<1x1x288x4xf32>
    %39 = vector.shape_cast %38 : vector<1x1x288x4xf32> to vector<288x4xf32>
    %c0_48 = arith.constant 0 : index
    %c6 = arith.constant 6 : index
    %c0_49 = arith.constant 0 : index
    %c0_50 = arith.constant 0 : index
    %40 = vector.load %arg4[%c0_48, %c6, %c0_49, %c0_50] : memref<1x9x4x4xf32, #tpu.memory_space<vmem>>, vector<1x1x4x4xf32>
    %41 = vector.shape_cast %40 : vector<1x1x4x4xf32> to vector<4x4xf32>
    %cst_51 = arith.constant dense<0.000000e+00> : vector<288x4xf32>
    %42 = tpu.matmul %39, %41, %cst_51 {dimension_numbers = #tpu.dot_dimension_numbers<[1], [0], [0], [1], [0, 0, 1, 1], [], []>} : vector<288x4xf32>, vector<4x4xf32>, vector<288x4xf32> -> vector<288x4xf32>
    %43 = arith.addf %37, %42 : vector<288x4xf32>
    %c0_52 = arith.constant 0 : index
    %c0_53 = arith.constant 0 : index
    %c37 = arith.constant 37 : index
    %c0_54 = arith.constant 0 : index
    %44 = vector.load %arg3[%c0_52, %c0_53, %c37, %c0_54] : memref<1x1x342x4xf32, #tpu.memory_space<vmem>>, vector<1x1x288x4xf32>
    %45 = vector.shape_cast %44 : vector<1x1x288x4xf32> to vector<288x4xf32>
    %c0_55 = arith.constant 0 : index
    %c7 = arith.constant 7 : index
    %c0_56 = arith.constant 0 : index
    %c0_57 = arith.constant 0 : index
    %46 = vector.load %arg4[%c0_55, %c7, %c0_56, %c0_57] : memref<1x9x4x4xf32, #tpu.memory_space<vmem>>, vector<1x1x4x4xf32>
    %47 = vector.shape_cast %46 : vector<1x1x4x4xf32> to vector<4x4xf32>
    %cst_58 = arith.constant dense<0.000000e+00> : vector<288x4xf32>
    %48 = tpu.matmul %45, %47, %cst_58 {dimension_numbers = #tpu.dot_dimension_numbers<[1], [0], [0], [1], [0, 0, 1, 1], [], []>} : vector<288x4xf32>, vector<4x4xf32>, vector<288x4xf32> -> vector<288x4xf32>
    %49 = arith.addf %43, %48 : vector<288x4xf32>
    %c0_59 = arith.constant 0 : index
    %c0_60 = arith.constant 0 : index
    %c38 = arith.constant 38 : index
    %c0_61 = arith.constant 0 : index
    %50 = vector.load %arg3[%c0_59, %c0_60, %c38, %c0_61] : memref<1x1x342x4xf32, #tpu.memory_space<vmem>>, vector<1x1x288x4xf32>
    %51 = vector.shape_cast %50 : vector<1x1x288x4xf32> to vector<288x4xf32>
    %c0_62 = arith.constant 0 : index
    %c8 = arith.constant 8 : index
    %c0_63 = arith.constant 0 : index
    %c0_64 = arith.constant 0 : index
    %52 = vector.load %arg4[%c0_62, %c8, %c0_63, %c0_64] : memref<1x9x4x4xf32, #tpu.memory_space<vmem>>, vector<1x1x4x4xf32>
    %53 = vector.shape_cast %52 : vector<1x1x4x4xf32> to vector<4x4xf32>
    %cst_65 = arith.constant dense<0.000000e+00> : vector<288x4xf32>
    %54 = tpu.matmul %51, %53, %cst_65 {dimension_numbers = #tpu.dot_dimension_numbers<[1], [0], [0], [1], [0, 0, 1, 1], [], []>} : vector<288x4xf32>, vector<4x4xf32>, vector<288x4xf32> -> vector<288x4xf32>
    %55 = arith.addf %49, %54 : vector<288x4xf32>
    %c0_66 = arith.constant 0 : index
    %c0_67 = arith.constant 0 : index
    %56 = vector.load %arg10[%c0_66, %c0_67] : memref<288x4xf32, #tpu.memory_space<vmem>>, vector<288x4xf32>
    %57 = arith.addf %56, %55 : vector<288x4xf32>
    %c0_68 = arith.constant 0 : index
    %c0_69 = arith.constant 0 : index
    %58 = vector.load %arg10[%c0_68, %c0_69] : memref<288x4xf32, #tpu.memory_space<vmem>>, vector<288x4xf32>
    tpu.vector_store %arg10[%c0_68, %c0_69], %57 {strides = array<i32>} : memref<288x4xf32, #tpu.memory_space<vmem>>, vector<288x4xf32>,
    %c2_i32 = arith.constant 2 : i32
    %59 = arith.cmpi eq, %arg2, %c2_i32 : i32
    %60 = arith.extui %59 : i1 to i32
    %c0_i32_70 = arith.constant 0 : i32
    %61 = arith.cmpi ne, %60, %c0_i32_70 : i32
    scf.if %61 {
      %c0_71 = arith.constant 0 : index
      %c0_72 = arith.constant 0 : index
      %62 = vector.load %arg10[%c0_71, %c0_72] : memref<288x4xf32, #tpu.memory_space<vmem>>, vector<288x4xf32>
      %c0_73 = arith.constant 0 : index
      %c0_74 = arith.constant 0 : index
      %63 = vector.load %arg5[%c0_73, %c0_74] : memref<1x4xf32, #tpu.memory_space<vmem>>, vector<1x4xf32>
      %64 = vector.broadcast %63 : vector<1x4xf32> to vector<288x4xf32>
      %65 = arith.mulf %62, %64 : vector<288x4xf32>
      %c0_75 = arith.constant 0 : index
      %c0_76 = arith.constant 0 : index
      %66 = vector.load %arg6[%c0_75, %c0_76] : memref<1x4xf32, #tpu.memory_space<vmem>>, vector<1x4xf32>
      %67 = vector.broadcast %66 : vector<1x4xf32> to vector<288x4xf32>
      %68 = arith.addf %65, %67 : vector<288x4xf32>
      %cst_77 = arith.constant 0.000000e+00 : f32
      %69 = vector.broadcast %cst_77 : f32 to vector<288x4xf32>
      %70 = arith.maximumf %68, %69 : vector<288x4xf32>
      %c0_78 = arith.constant 0 : index
      %c0_79 = arith.constant 0 : index
      %71 = vector.load %arg7[%c0_78, %c0_79] : memref<4x3xf32, #tpu.memory_space<vmem>>, vector<4x3xf32>
      %cst_80 = arith.constant dense<0.000000e+00> : vector<288x3xf32>
      %72 = tpu.matmul %70, %71, %cst_80 {dimension_numbers = #tpu.dot_dimension_numbers<[1], [0], [0], [1], [0, 0, 1, 1], [], []>} : vector<288x4xf32>, vector<4x3xf32>, vector<288x3xf32> -> vector<288x3xf32>
      %c0_81 = arith.constant 0 : index
      %c0_82 = arith.constant 0 : index
      %73 = vector.load %arg8[%c0_81, %c0_82] : memref<1x3xf32, #tpu.memory_space<vmem>>, vector<1x3xf32>
      %74 = vector.broadcast %73 : vector<1x3xf32> to vector<288x3xf32>
      %75 = arith.addf %72, %74 : vector<288x3xf32>
      %cst_83 = arith.constant 0.000000e+00 : f32
      %76 = vector.broadcast %cst_83 : f32 to vector<288x3xf32>
      %77 = arith.maximumf %75, %76 : vector<288x3xf32>
      %c0_84 = arith.constant 0 : index
      %c0_85 = arith.constant 0 : index
      %c0_86 = arith.constant 0 : index
      %c0_87 = arith.constant 0 : index
      %78 = vector.load %arg9[%c0_84, %c0_85, %c0_86, %c0_87] : memref<1x1x288x3xf32, #tpu.memory_space<vmem>>, vector<1x1x288x3xf32>
      %79 = vector.shape_cast %78 : vector<1x1x288x3xf32> to vector<288x3xf32>
      %80 = vector.shape_cast %77 : vector<288x3xf32> to vector<1x1x288x3xf32>
      tpu.vector_store %arg9[%c0_84, %c0_85, %c0_86, %c0_87], %80 {strides = array<i32>} : memref<1x1x288x3xf32, #tpu.memory_space<vmem>>, vector<1x1x288x3xf32>,
    } else {
    }
    return
  }
  func.func @transform_0(%arg0: i32, %arg1: i32, %arg2: i32) -> (i32, i32, i32, i32) {
    %0 = arith.addi %arg1, %arg2 : i32
    %c0_i32 = arith.constant 0 : i32
    %c0_i32_0 = arith.constant 0 : i32
    %c0_i32_1 = arith.constant 0 : i32
    return %arg0, %0, %c0_i32, %c0_i32_0 : i32, i32, i32, i32
  }
  func.func @transform_1(%arg0: i32, %arg1: i32, %arg2: i32) -> (i32, i32, i32, i32) {
    %c0_i32 = arith.constant 0 : i32
    %c0_i32_0 = arith.constant 0 : i32
    %c0_i32_1 = arith.constant 0 : i32
    %c0_i32_2 = arith.constant 0 : i32
    return %arg2, %c0_i32, %c0_i32_0, %c0_i32_1 : i32, i32, i32, i32
  }
  func.func @transform_2(%arg0: i32, %arg1: i32, %arg2: i32) -> (i32, i32) {
    %c0_i32 = arith.constant 0 : i32
    %c0_i32_0 = arith.constant 0 : i32
    %c0_i32_1 = arith.constant 0 : i32
    return %c0_i32, %c0_i32_0 : i32, i32
  }
  func.func @transform_3(%arg0: i32, %arg1: i32, %arg2: i32) -> (i32, i32) {
    %c0_i32 = arith.constant 0 : i32
    %c0_i32_0 = arith.constant 0 : i32
    %c0_i32_1 = arith.constant 0 : i32
    return %c0_i32, %c0_i32_0 : i32, i32
  }
  func.func @transform_4(%arg0: i32, %arg1: i32, %arg2: i32) -> (i32, i32) {
    %c0_i32 = arith.constant 0 : i32
    %c0_i32_0 = arith.constant 0 : i32
    %c0_i32_1 = arith.constant 0 : i32
    return %c0_i32, %c0_i32_0 : i32, i32
  }
  func.func @transform_5(%arg0: i32, %arg1: i32, %arg2: i32) -> (i32, i32) {
    %c0_i32 = arith.constant 0 : i32
    %c0_i32_0 = arith.constant 0 : i32
    %c0_i32_1 = arith.constant 0 : i32
    return %c0_i32, %c0_i32_0 : i32, i32
  }
  func.func @transform_6(%arg0: i32, %arg1: i32, %arg2: i32) -> (i32, i32, i32, i32) {
    %c0_i32 = arith.constant 0 : i32
    %c0_i32_0 = arith.constant 0 : i32
    %c0_i32_1 = arith.constant 0 : i32
    return %arg0, %arg1, %c0_i32, %c0_i32_0 : i32, i32, i32, i32
  }
}

</mosaic_0001>

<bundles_post_ra>
// kernel: cnet_head_forward.4
= control target key start
LH: loop header
LB: loop body
LE: loop exit
PB: predicated region body
PF: predicated region fallthrough
CT: control target
= control target key end

     0   :  { %s6575_s15 = smov 0   ;;  %s6577_s16 = smov 0   ;;  %s7880_s0 = inlined_call_operand.vmem [shape: f32[2,6,342,64], index: 0, kind: input, shape index: {}]   ;;  %s7881_s1 = inlined_call_operand.vmem [shape: f32[3,9,64,4], index: 1, kind: input, shape index: {}]   ;;  %s7882_s2 = inlined_call_operand.vmem [shape: f32[1,4], index: 2, kind: input, shape index: {}]   ;;  %s7883_s3 = inlined_call_operand.vmem [shape: f32[1,4], index: 3, kind: input, shape index: {}]   ;;  %s7884_s4 = inlined_call_operand.vmem [shape: f32[2,4,288,4], index: 4, kind: output, shape index: {}]  }
   0x1   :  { %s6579_s17 = smov 0   ;;  %s6581_s18 = smov 0  }
   0x2   :  { %s6583_s19 = smov 0   ;;  %s6585_s20 = smov 0  }
   0x3   :  { %s6587_s21 = smov 0  }
   0x4 LB: > { %s26_s22 = sadd.s32 1, %s6535_s18  ;;  %s29_s23 = sadd.s32 1, %s6539_s19  ;;  %s6547_s21 = sphi %s6587_s21, %s14_s21   ;;  %s6543_s20 = sphi %s6585_s20, %s7892_s20   ;;  %s6539_s19 = sphi %s6583_s19, %s7891_s19   ;;  %s6535_s18 = sphi %s6581_s18, %s7890_s18   ;;  %s6531_s17 = sphi %s6579_s17, %s7889_s17   ;;  %s6527_s16 = sphi %s6577_s16, %s7888_s16   ;;  %s6523_s15 = sphi %s6575_s15, %s7887_s15  }
   0x5   : > { %p27_p0 = scmp.ge.s32.totalorder %s26_s22, 3  ;;  %p4567_p1 = scmp.ge.s32.totalorder %s6547_s21, 1 }
   0x6   : > { %p203_p2 = scmp.lt.s32.totalorder %s6547_s21, 25  ;;  %s33_s24 = sadd.s32 1, %s6543_s20 }
   0x7   : > { %s7894_s22 = smov (%p27_p0, %s26_s22), 0  ;;  %s7896_s23 = smov (!%p27_p0, %s29_s23), %s6539_s19 }
   0x8   : > { %p204_p3 = pnand %p4567_p1, %p203_p2  ;;  %p31_p4 = scmp.ge.s32.totalorder %s7896_s23, 4 }
   0x9   : > { %s243_s25 = sadd.s32 (!%p204_p3), %s6523_s15, %s6527_s16  ;;  %p244_p6 = scmp.lt.s32.totalorder (!%p204_p3), %s6531_s17, 1 }
   0xa   : > { %s7898_s23 = smov (%p31_p4, %s7896_s23), 0  ;;  %s7900_s24 = smov (!%p31_p4, %s33_s24), %s6543_s20 }
   0xb   : > { %p35_p5 = scmp.ge.s32.totalorder %s7900_s24, 2  ;;  %207 = sbr.rel (%p204_p3) target bundleno = 613 (0x265), region = 36 }
   0xc   : > { %p246_p7 = scmp.lt.s32.totalorder (!%p204_p3), %s243_s25, 5  ;;  %p254_p8 = scmp.lt.s32.totalorder (!%p204_p3), %s6523_s15, 2 }
   0xd   : > { %s7902_s24 = smov (%p35_p5, %s7900_s24), 0  ;;  %p261_p9 = scmp.lt.s32.totalorder (!%p204_p3), %s6527_s16, 3 }
   0xe   : > { %7885 = sst [smem:[#allocation3_spill]] %s7902_s24  ;;  %p4571_p10 = scmp.ne.s32.totalorder (!%p204_p3), %s6523_s15, 0 }
  0x12   : > { %s7904_s17 = smov (!%p244_p6, %s6531_s17), 1  ;;  %s7906_s25 = smov (!%p246_p7, %s243_s25), 5 }
  0x13   : > { %s6432_s26 = smul.u32 258, %s7904_s17  ;;  %s7908_s16 = smov (!%p261_p9, %s6527_s16), 3  ;;  %vm272_vm0 = vcmask (!%p4571_p10), 31744   ;;  %v6549_v0 = vmov (!%p4571_p10), 0.0  }
  0x14   : > { %s6431_s27 = smul.u32 43, %s7906_s25  ;;  %273 = vst.msk [vmem:[#allocation2] sm:$0xff] (!%p4571_p10), %vm272_vm0, %v6549_v0  ;;  %274 = vst.msk [vmem:[#allocation2 + $0x8] sm:$0xff] (!%p4571_p10), %vm272_vm0, %v6549_v0 }
  0x15   : > { %s255_s28 = scalar_select %p254_p8, %s6523_s15, 2 }
  0x16   : > { %s250_s29 = sadd.s32 %s6432_s26, %s6431_s27  ;;  %s6435_s12 = smul.u32 144, %s7904_s17  ;;  %275 = vst.msk [vmem:[#allocation2 + $0x10] sm:$0xff] (!%p4571_p10), %vm272_vm0, %v6549_v0  ;;  %276 = vst.msk [vmem:[#allocation2 + $0x18] sm:$0xff] (!%p4571_p10), %vm272_vm0, %v6549_v0 }
  0x17   : > { %s4568_s30 = sshll.u32 %s250_s29, 3  ;;  %s6433_s5 = smul.u32 576, %s255_s28  ;;  %277 = vst.msk [vmem:[#allocation2 + $0x20] sm:$0xff] (!%p4571_p10), %vm272_vm0, %v6549_v0  ;;  %278 = vst.msk [vmem:[#allocation2 + $0x28] sm:$0xff] (!%p4571_p10), %vm272_vm0, %v6549_v0 }
  0x18   : > { %s6629_s8 = scalar_lea.vmem %s7880_s0, %s4568_s30  ;;  %s6434_s13 = smul.u32 36, %s7908_s16  ;;  %279 = vst.msk [vmem:[#allocation2 + $0x30] sm:$0xff] (!%p4571_p10), %vm272_vm0, %v6549_v0  ;;  %280 = vst.msk [vmem:[#allocation2 + $0x38] sm:$0xff] (!%p4571_p10), %vm272_vm0, %v6549_v0 }
  0x19   : > { %s6634_s11 = scalar_lea.vmem %s7881_s1, %s6433_s5  ;;  %271 = sbr.rel (%p4571_p10) target bundleno = 39 (0x27), region = 40  ;;  %281 = vst.msk [vmem:[#allocation2 + $0x40] sm:$0xff] (!%p4571_p10), %vm272_vm0, %v6549_v0  ;;  %282 = vst.msk [vmem:[#allocation2 + $0x48] sm:$0xff] (!%p4571_p10), %vm272_vm0, %v6549_v0 }
  0x1a   : > { %s265_s14 = sadd.s32 %s6435_s12, %s6434_s13  ;;  %283 = vst.msk [vmem:[#allocation2 + $0x50] sm:$0xff] (!%p4571_p10), %vm272_vm0, %v6549_v0  ;;  %284 = vst.msk [vmem:[#allocation2 + $0x58] sm:$0xff] (!%p4571_p10), %vm272_vm0, %v6549_v0 }
  0x1b   : > { %s4570_s25 = sshll.u32 %s265_s14, 3  ;;  %285 = vst.msk [vmem:[#allocation2 + $0x60] sm:$0xff] (!%p4571_p10), %vm272_vm0, %v6549_v0  ;;  %286 = vst.msk [vmem:[#allocation2 + $0x68] sm:$0xff] (!%p4571_p10), %vm272_vm0, %v6549_v0 }
  0x1c   : > { %s6640_s27 = scalar_lea.vmem %s7884_s4, %s4570_s25  ;;  %287 = vst.msk [vmem:[#allocation2 + $0x70] sm:$0xff] (!%p4571_p10), %vm272_vm0, %v6549_v0  ;;  %288 = vst.msk [vmem:[#allocation2 + $0x78] sm:$0xff] (!%p4571_p10), %vm272_vm0, %v6549_v0 }
  0x1d   : > { %289 = vst.msk [vmem:[#allocation2 + $0x80] sm:$0xff] (!%p4571_p10), %vm272_vm0, %v6549_v0  ;;  %290 = vst.msk [vmem:[#allocation2 + $0x88] sm:$0xff] (!%p4571_p10), %vm272_vm0, %v6549_v0 }
  0x1e   : > { %291 = vst.msk [vmem:[#allocation2 + $0x90] sm:$0xff] (!%p4571_p10), %vm272_vm0, %v6549_v0  ;;  %292 = vst.msk [vmem:[#allocation2 + $0x98] sm:$0xff] (!%p4571_p10), %vm272_vm0, %v6549_v0 }
  0x1f   : > { %293 = vst.msk [vmem:[#allocation2 + $0xa0] sm:$0xff] (!%p4571_p10), %vm272_vm0, %v6549_v0  ;;  %294 = vst.msk [vmem:[#allocation2 + $0xa8] sm:$0xff] (!%p4571_p10), %vm272_vm0, %v6549_v0 }
  0x20   : > { %295 = vst.msk [vmem:[#allocation2 + $0xb0] sm:$0xff] %vm272_vm0, %v6549_v0  ;;  %296 = vst.msk [vmem:[#allocation2 + $0xb8] sm:$0xff] %vm272_vm0, %v6549_v0 }
  0x21   : > { %297 = vst.msk [vmem:[#allocation2 + $0xc0] sm:$0xff] %vm272_vm0, %v6549_v0  ;;  %298 = vst.msk [vmem:[#allocation2 + $0xc8] sm:$0xff] %vm272_vm0, %v6549_v0 }
  0x22   : > { %299 = vst.msk [vmem:[#allocation2 + $0xd0] sm:$0xff] %vm272_vm0, %v6549_v0  ;;  %300 = vst.msk [vmem:[#allocation2 + $0xd8] sm:$0xff] %vm272_vm0, %v6549_v0 }
  0x23   : > { %301 = vst.msk [vmem:[#allocation2 + $0xe0] sm:$0xff] %vm272_vm0, %v6549_v0  ;;  %302 = vst.msk [vmem:[#allocation2 + $0xe8] sm:$0xff] %vm272_vm0, %v6549_v0 }
  0x24   : > { %303 = vst.msk [vmem:[#allocation2 + $0xf0] sm:$0xff] %vm272_vm0, %v6549_v0  ;;  %304 = vst.msk [vmem:[#allocation2 + $0xf8] sm:$0xff] %vm272_vm0, %v6549_v0 }
  0x25   : > { %305 = vst.msk [vmem:[#allocation2 + $0x100] sm:$0xff] %vm272_vm0, %v6549_v0  ;;  %306 = vst.msk [vmem:[#allocation2 + $0x108] sm:$0xff] %vm272_vm0, %v6549_v0 }
  0x26   : > { %307 = vst.msk [vmem:[#allocation2 + $0x110] sm:$0xff] %vm272_vm0, %v6549_v0  ;;  %308 = vst.msk [vmem:[#allocation2 + $0x118] sm:$0xff] %vm272_vm0, %v6549_v0 }
  0x27 PF: > { %v4572_v1 = vld [vmem:[%s6634_s11 + $0x40] sm:$0xff]  ;;  %v4573_v2 = vld [vmem:[%s6634_s11 + $0x48] sm:$0xff]  ;;  %v4574_v6 = vld [vmem:[%s6634_s11 + $0x50] sm:$0xff]  ;;  %vm398_vm1 = vcmask 523264   ;;  %vm4215_vm2 = vcmask 31744   ;;  %p4960_p11 = scmp.ne.s32.totalorder %s6523_s15, 2 }
  0x28   : > { %v4740_v3 = vld [vmem:[%s6634_s11 + $0x100] sm:$0xff]  ;;  %v5991_v4 = vpack.c.bf16 %v4573_v2, %v4572_v1  ;;  %v4741_v5 = vld [vmem:[%s6634_s11 + $0x108] sm:$0xff]  ;;  %v4575_v7 = vld [vmem:[%s6634_s11 + $0x58] sm:$0xff] }
  0x29   : > { %v6685_v8 = vpack.c.bf16 %v4741_v5, %v4740_v3  ;;  %v5995_v9 = vpack.c.bf16 %v4575_v7, %v4574_v6  ;;  %v4742_v10 = vld [vmem:[%s6634_s11 + $0x110] sm:$0xff]  ;;  %v4743_v11 = vld [vmem:[%s6634_s11 + $0x118] sm:$0xff]  ;;  %v4576_v12 = vld [vmem:[%s6634_s11 + $0x60] sm:$0xff] }
  0x2a   : > { %5992 = vmatprep.subr.bf16.mxu1 %v5991_v4  ;;  %v6690_v13 = vpack.c.bf16 %v4743_v11, %v4742_v10  ;;  %v4577_v14 = vld [vmem:[%s6634_s11 + $0x68] sm:$0xff]  ;;  %v4744_v15 = vld [vmem:[%s6634_s11 + $0x120] sm:$0xff]  ;;  %v1973_v19 = vld [vmem:[%s6629_s8 + $0x13] sm:$0xff] }
  0x2b   : > { %v4745_v16 = vld [vmem:[%s6634_s11 + $0x128] sm:$0xff]  ;;  %6056 = vmatprep.subr.bf16.mxu0 %v6685_v8  ;;  %5994 = vmatpush3.bf16.msra.mxu1 %v5991_v4  ;;  %v5999_v17 = vpack.c.bf16 %v4577_v14, %v4576_v12  ;;  %v4578_v21 = vld [vmem:[%s6634_s11 + $0x70] sm:$0xff]  ;;  %v4579_v22 = vld [vmem:[%s6634_s11 + $0x78] sm:$0xff] }
  0x2c   : > { %6058 = vmatpush3.bf16.msra.mxu0 %v6685_v8  ;;  %5996 = vmatprep.subr.bf16.mxu1 %v5995_v9  ;;  %v353_v18 = vld [vmem:[%s6629_s8 + $0x1] sm:$0xff]  ;;  %v6700_v20 = vpack.c.bf16 %v4745_v16, %v4744_v15  ;;  %v4746_v23 = vld [vmem:[%s6634_s11 + $0x130] sm:$0xff]  ;;  %v4747_v24 = vld [vmem:[%s6634_s11 + $0x138] sm:$0xff]  ;;  %v6003_v25 = vpack.c.bf16 %v4579_v22, %v4578_v21 }
  0x2d   : > { %6060 = vmatprep.subr.bf16.mxu0 %v6690_v13  ;;  %5377 = vmatprep.mubr.msk.f32.mxu1 %vm398_vm1, %v353_v18  ;;  %v6710_v26 = vpack.c.bf16 %v4747_v24, %v4746_v23  ;;  %v345_v27 = vld [vmem:[%s6634_s11] sm:$0xff]  ;;  %v346_v28 = vld [vmem:[%s6634_s11 + $0x8] sm:$0xff]  ;;  %v4786_v33 = vld [vmem:[%s6634_s11 + $0x150] sm:$0xff] }
  0x2e   : > { %5657 = vmatprep.mubr.msk.f32.mxu0 %vm398_vm1, %v1973_v19  ;;  %v4784_v29 = vld [vmem:[%s6634_s11 + $0x140] sm:$0xff]  ;;  %v4785_v30 = vld [vmem:[%s6634_s11 + $0x148] sm:$0xff]  ;;  %v6007_v31 = vpack.c.bf16 %v346_v28, %v345_v27  ;;  %v4787_v34 = vld [vmem:[%s6634_s11 + $0x158] sm:$0xff] }
  0x2f   : > { %5998 = vmatpush3.bf16.msra.mxu1 %v5995_v9  ;;  %v6071_v32 = vpack.c.bf16 %v4785_v30, %v4784_v29  ;;  %v354_v35 = vld [vmem:[%s6629_s8 + $0x9] sm:$0xff]  ;;  %v348_v37 = vld [vmem:[%s6634_s11 + $0x18] sm:$0xff]  ;;  %v6075_v40 = vpack.c.bf16 %v4787_v34, %v4786_v33  ;;  %v4788_v43 = vld [vmem:[%s6634_s11 + $0x160] sm:$0xff] }
  0x30   : > { %6062 = vmatpush3.bf16.msra.mxu0 %v6690_v13  ;;  %6000 = vmatprep.subr.bf16.mxu1 %v5999_v17  ;;  %v347_v36 = vld [vmem:[%s6634_s11 + $0x10] sm:$0xff]  ;;  %v1974_v38 = vld [vmem:[%s6629_s8 + $0x1b] sm:$0xff]  ;;  %v1975_v41 = vld [vmem:[%s6629_s8 + $0x23] sm:$0xff] }
  0x31   : > { %6064 = vmatprep.subr.bf16.mxu0 %v6700_v20  ;;  %v355_v39 = vld [vmem:[%s6629_s8 + $0x11] sm:$0xff]  ;;  %v6011_v42 = vpack.c.bf16 %v348_v37, %v347_v36  ;;  %v4789_v44 = vld [vmem:[%s6634_s11 + $0x168] sm:$0xff]  ;;  %v356_v45 = vld [vmem:[%s6629_s8 + $0x19] sm:$0xff] }
  0x32   : > { %v1976_v46 = vld [vmem:[%s6629_s8 + $0x2b] sm:$0xff]  ;;  %v357_v47 = vld [vmem:[%s6629_s8 + $0x21] sm:$0xff]  ;;  %v1977_v48 = vld [vmem:[%s6629_s8 + $0x33] sm:$0xff]  ;;  %v6079_v49 = vpack.c.bf16 %v4789_v44, %v4788_v43 }
  0x33   : > { %6002 = vmatpush3.bf16.msra.mxu1 %v5999_v17  ;;  %v349_v50 = vld [vmem:[%s6634_s11 + $0x20] sm:$0xff]  ;;  %v350_v51 = vld [vmem:[%s6634_s11 + $0x28] sm:$0xff]  ;;  %v4790_v52 = vld [vmem:[%s6634_s11 + $0x170] sm:$0xff] }
  0x34   : > { %6066 = vmatpush3.bf16.msra.mxu0 %v6700_v20  ;;  %6004 = vmatprep.subr.bf16.mxu1 %v6003_v25  ;;  %v4791_v53 = vld [vmem:[%s6634_s11 + $0x178] sm:$0xff]  ;;  %v6015_v54 = vpack.c.bf16 %v350_v51, %v349_v50  ;;  %v358_v55 = vld [vmem:[%s6629_s8 + $0x29] sm:$0xff]  ;;  %v4828_v60 = vld [vmem:[%s6634_s11 + $0x180] sm:$0xff] }
  0x35   : > { %6068 = vmatprep.subr.bf16.mxu0 %v6710_v26  ;;  %v1978_v56 = vld [vmem:[%s6629_s8 + $0x3b] sm:$0xff]  ;;  %v359_v57 = vld [vmem:[%s6629_s8 + $0x31] sm:$0xff]  ;;  %v1979_v58 = vld [vmem:[%s6629_s8 + $0x43] sm:$0xff]  ;;  %v6083_v59 = vpack.c.bf16 %v4791_v53, %v4790_v52 }
  0x36   : > { %v4829_v61 = vld [vmem:[%s6634_s11 + $0x188] sm:$0xff]  ;;  %v360_v62 = vld [vmem:[%s6629_s8 + $0x39] sm:$0xff]  ;;  %v351_v1 = vld [vmem:[%s6634_s11 + $0x30] sm:$0xff] }
  0x37   : > { %6006 = vmatpush3.bf16.msra.mxu1 %v6003_v25  ;;  %v1980_v63 = vld [vmem:[%s6629_s8 + $0x4b] sm:$0xff]  ;;  %v361_v0 = vld [vmem:[%s6629_s8 + $0x41] sm:$0xff]  ;;  %v352_v2 = vld [vmem:[%s6634_s11 + $0x38] sm:$0xff]  ;;  %v6761_v4 = vpack.c.bf16 %v4829_v61, %v4828_v60 }
  0x38   : > { %6070 = vmatpush3.bf16.msra.mxu0 %v6710_v26  ;;  %6008 = vmatprep.subr.bf16.mxu1 %v6007_v31  ;;  %v1981_v3 = vld [vmem:[%s6629_s8 + $0x53] sm:$0xff]  ;;  %v6019_v5 = vpack.c.bf16 %v352_v2, %v351_v1  ;;  %v362_v6 = vld [vmem:[%s6629_s8 + $0x49] sm:$0xff]  ;;  %v1982_v7 = vld [vmem:[%s6629_s8 + $0x5b] sm:$0xff] }
  0x39   : > { %6072 = vmatprep.subr.bf16.mxu0 %v6071_v32  ;;  %v363_v9 = vld [vmem:[%s6629_s8 + $0x51] sm:$0xff]  ;;  %v1983_v10 = vld [vmem:[%s6629_s8 + $0x63] sm:$0xff]  ;;  %v364_v11 = vld [vmem:[%s6629_s8 + $0x59] sm:$0xff] }
  0x3a   : > { %5378 = vmatmul.mubr.msk.f32.vlgmr.msra.gmra.mrb[0].mxu1 %vm398_vm1, %v354_v35  ;;  %v1984_v12 = vld [vmem:[%s6629_s8 + $0x6b] sm:$0xff]  ;;  %v365_v14 = vld [vmem:[%s6629_s8 + $0x61] sm:$0xff]  ;;  %v1985_v17 = vld [vmem:[%s6629_s8 + $0x73] sm:$0xff] }
  0x3b   : > { %5658 = vmatmul.mubr.msk.f32.vlgmr.msra.gmra.mrb[0].mxu0 %vm398_vm1, %v1974_v38  ;;  %6010 = vmatpush3.bf16.msra.mxu1 %v6007_v31  ;;  %v4652_v15 = vld [vmem:[%s6634_s11 + $0x80] sm:$0xff]  ;;  %v4653_v16 = vld [vmem:[%s6634_s11 + $0x88] sm:$0xff]  ;;  %v367_v22 = vld [vmem:[%s6629_s8 + $0x71] sm:$0xff] }
  0x3c   : > { %6074 = vmatpush3.bf16.msra.mxu0 %v6071_v32  ;;  %5380 = vmatprep.mubr.msk.f32.mxu1 %vm398_vm1, %v355_v39  ;;  %v6782_v18 = vpack.c.bf16 %v4653_v16, %v4652_v15  ;;  %v366_v19 = vld [vmem:[%s6629_s8 + $0x69] sm:$0xff]  ;;  %v1986_v21 = vld [vmem:[%s6629_s8 + $0x7b] sm:$0xff]  ;;  %v1989_v28 = vld [vmem:[%s6629_s8 + $0x93] sm:$0xff] }
  0x3d   : > { %5660 = vmatprep.mubr.msk.f32.mxu0 %vm398_vm1, %v1975_v41  ;;  %6076 = vmatprep.subr.bf16.mxu0 %v6075_v40  ;;  %v1987_v23 = vld [vmem:[%s6629_s8 + $0x83] sm:$0xff]  ;;  %v368_v24 = vld [vmem:[%s6629_s8 + $0x79] sm:$0xff]  ;;  %v1988_v25 = vld [vmem:[%s6629_s8 + $0x8b] sm:$0xff] }
  0x3e   : > { %5381 = vmatmul.mubr.msk.f32.gmra.mrb[2].mxu1 %vm398_vm1, %v356_v45  ;;  %6012 = vmatprep.subr.bf16.mxu1 %v6011_v42  ;;  %v369_v27 = vld [vmem:[%s6629_s8 + $0x81] sm:$0xff]  ;;  %v370_v29 = vld [vmem:[%s6629_s8 + $0x89] sm:$0xff]  ;;  %v371_v31 = vld [vmem:[%s6629_s8 + $0x91] sm:$0xff] }
  0x3f   : > { %5661 = vmatmul.mubr.msk.f32.gmra.mrb[2].mxu0 %vm398_vm1, %v1976_v46  ;;  %5383 = vmatprep.mubr.msk.f32.mxu1 %vm398_vm1, %v357_v47  ;;  %v1990_v30 = vld [vmem:[%s6629_s8 + $0x9b] sm:$0xff]  ;;  %v4830_v33 = vld [vmem:[%s6634_s11 + $0x190] sm:$0xff]  ;;  %v6819_v38 = vld [vmem:[%s6629_s8 + $0x24] sm:$0xff] }
  0x40   : > { %5663 = vmatprep.mubr.msk.f32.mxu0 %vm398_vm1, %v1977_v48  ;;  %6078 = vmatpush3.bf16.msra.mxu0 %v6075_v40  ;;  %v2407_v32 = vld [vmem:[%s6629_s8 + $0x14] sm:$0xff]  ;;  %v2408_v36 = vld [vmem:[%s6629_s8 + $0x1c] sm:$0xff]  ;;  %v4833_v41 = vld [vmem:[%s6634_s11 + $0x1a8] sm:$0xff] }
  0x41   : > { %6080 = vmatprep.subr.bf16.mxu0 %v6079_v49  ;;  %6014 = vmatpush3.bf16.msra.mxu1 %v6011_v42  ;;  %v4831_v34 = vld [vmem:[%s6634_s11 + $0x198] sm:$0xff]  ;;  %v373_v37 = vld [vmem:[%s6629_s8 + $0xa1] sm:$0xff]  ;;  %v374_v42 = vld [vmem:[%s6629_s8 + $0xa9] sm:$0xff] }
  0x42   : > { %5384 = vmatmul.mubr.msk.f32.gmra.mrb[4].mxu1 %vm398_vm1, %v358_v55  ;;  %6016 = vmatprep.subr.bf16.mxu1 %v6015_v54  ;;  %v372_v35 = vld [vmem:[%s6629_s8 + $0x99] sm:$0xff]  ;;  %v6091_v39 = vpack.c.bf16 %v4831_v34, %v4830_v33  ;;  %v6831_v43 = vld [vmem:[%s6629_s8 + $0x2c] sm:$0xff]  ;;  %v377_v51 = vld [vmem:[%s6629_s8 + $0xc1] sm:$0xff] }
  0x43   : > { %5664 = vmatmul.mubr.msk.f32.gmra.mrb[4].mxu0 %vm398_vm1, %v1978_v56  ;;  %5386 = vmatprep.mubr.msk.f32.mxu1 %vm398_vm1, %v359_v57  ;;  %v4832_v40 = vld [vmem:[%s6634_s11 + $0x1a0] sm:$0xff]  ;;  %v375_v44 = vld [vmem:[%s6629_s8 + $0xb1] sm:$0xff]  ;;  %v4873_v55 = vld [vmem:[%s6634_s11 + $0x1c8] sm:$0xff] }
  0x44   : > { %5666 = vmatprep.mubr.msk.f32.mxu0 %vm398_vm1, %v1979_v58  ;;  %6082 = vmatpush3.bf16.msra.mxu0 %v6079_v49  ;;  %v6835_v45 = vld [vmem:[%s6629_s8 + $0x34] sm:$0xff]  ;;  %v6095_v46 = vpack.c.bf16 %v4833_v41, %v4832_v40  ;;  %v6847_v50 = vld [vmem:[%s6629_s8 + $0x3c] sm:$0xff]  ;;  %v6851_v52 = vld [vmem:[%s6629_s8 + $0x44] sm:$0xff] }
  0x45   : > { %6084 = vmatprep.subr.bf16.mxu0 %v6083_v59  ;;  %6018 = vmatpush3.bf16.msra.mxu1 %v6015_v54  ;;  %v4834_v47 = vld [vmem:[%s6634_s11 + $0x1b0] sm:$0xff]  ;;  %v4835_v48 = vld [vmem:[%s6634_s11 + $0x1b8] sm:$0xff]  ;;  %v4872_v54 = vld [vmem:[%s6634_s11 + $0x1c0] sm:$0xff] }
  0x46   : > { %5387 = vmatmul.mubr.msk.f32.gmra.mrb[6].mxu1 %vm398_vm1, %v360_v62  ;;  %6020 = vmatprep.subr.bf16.mxu1 %v6019_v5  ;;  %v376_v49 = vld [vmem:[%s6629_s8 + $0xb9] sm:$0xff]  ;;  %v6099_v53 = vpack.c.bf16 %v4835_v48, %v4834_v47  ;;  %v378_v56 = vld [vmem:[%s6629_s8 + $0xc9] sm:$0xff]  ;;  %v379_v58 = vld [vmem:[%s6629_s8 + $0xd1] sm:$0xff]  ;;  %v6869_v60 = vpack.c.bf16 %v4873_v55, %v4872_v54 }
  0x47   : > { %5667 = vmatmul.mubr.msk.f32.gmra.mrb[6].mxu0 %vm398_vm1, %v1980_v63  ;;  %5389 = vmatprep.mubr.msk.f32.mxu1 %vm398_vm1, %v361_v0  ;;  %v6863_v57 = vld [vmem:[%s6629_s8 + $0x4c] sm:$0xff]  ;;  %v380_v61 = vld [vmem:[%s6629_s8 + $0xd9] sm:$0xff]  ;;  %v381_v63 = vld [vmem:[%s6629_s8 + $0xe1] sm:$0xff] }
  0x48   : > { %5669 = vmatprep.mubr.msk.f32.mxu0 %vm398_vm1, %v1981_v3  ;;  %6086 = vmatpush3.bf16.msra.mxu0 %v6083_v59  ;;  %v6867_v59 = vld [vmem:[%s6629_s8 + $0x54] sm:$0xff]  ;;  %v6879_v62 = vld [vmem:[%s6629_s8 + $0x5c] sm:$0xff]  ;;  %v6883_v0 = vld [vmem:[%s6629_s8 + $0x64] sm:$0xff] }
  0x49   : > { %6088 = vmatprep.subr.bf16.mxu0 %v6761_v4  ;;  %6022 = vmatpush3.bf16.msra.mxu1 %v6019_v5  ;;  %v382_v1 = vld [vmem:[%s6629_s8 + $0xe9] sm:$0xff]  ;;  %v383_v3 = vld [vmem:[%s6629_s8 + $0xf1] sm:$0xff]  ;;  %v384_v5 = vld [vmem:[%s6629_s8 + $0xf9] sm:$0xff] }
  0x4a   : > { %5390 = vmatmul.mubr.msk.f32.gmra.mrb[8].mxu1 %vm398_vm1, %v362_v6  ;;  %6024 = vmatprep.subr.bf16.mxu1 %v6782_v18  ;;  %v6894_v2 = vld [vmem:[%s6629_s8 + $0x6c] sm:$0xff]  ;;  %v6908_v6 = vld [vmem:[%s6629_s8 + $0x7c] sm:$0xff]  ;;  %v6973_v34 = vld [vmem:[%s6629_s8 + $0xc4] sm:$0xff] }
  0x4b   : > { %5670 = vmatmul.mubr.msk.f32.gmra.mrb[8].mxu0 %vm398_vm1, %v1982_v7  ;;  %5392 = vmatprep.mubr.msk.f32.mxu1 %vm398_vm1, %v363_v9  ;;  %v385_v7 = vld [vmem:[%s6629_s8 + $0x101] sm:$0xff]  ;;  %v388_v15 = vld [vmem:[%s6629_s8 + $0x119] sm:$0xff]  ;;  %v315_v40 = vld [vmem:[%s6629_s8 + $0x30] sm:$0xff] }
  0x4c   : > { %5672 = vmatprep.mubr.msk.f32.mxu0 %vm398_vm1, %v1983_v10  ;;  %v6912_v9 = vld [vmem:[%s6629_s8 + $0x84] sm:$0xff]  ;;  %v6936_v16 = vld [vmem:[%s6629_s8 + $0x9c] sm:$0xff]  ;;  %v6989_v41 = vld [vmem:[%s6629_s8 + $0xd4] sm:$0xff] }
  0x4d   : > { %v386_v10 = vld [vmem:[%s6629_s8 + $0x109] sm:$0xff]  ;;  %v313_v33 = vld [vmem:[%s6629_s8 + $0x20] sm:$0xff]  ;;  %v316_v47 = vld [vmem:[%s6629_s8 + $0x38] sm:$0xff] }
  0x4e   : > { %5393 = vmatmul.mubr.msk.f32.gmra.mrb[10].mxu1 %vm398_vm1, %v364_v11  ;;  %v6922_v11 = vld [vmem:[%s6629_s8 + $0x8c] sm:$0xff]  ;;  %v7001_v48 = vld [vmem:[%s6629_s8 + $0xdc] sm:$0xff] }
  0x4f   : > { %5673 = vmatmul.mubr.msk.f32.gmra.mrb[10].mxu0 %vm398_vm1, %v1984_v12  ;;  %5395 = vmatprep.mubr.msk.f32.mxu1 %vm398_vm1, %v365_v14  ;;  %v387_v12 = vld [vmem:[%s6629_s8 + $0x111] sm:$0xff]  ;;  %v318_v54 = vld [vmem:[%s6629_s8 + $0x48] sm:$0xff] }
  0x50   : > { %5675 = vmatprep.mubr.msk.f32.mxu0 %vm398_vm1, %v1985_v17  ;;  %v6926_v14 = vld [vmem:[%s6629_s8 + $0x94] sm:$0xff]  ;;  %v309_v17 = vld [vmem:[%s6629_s8] sm:$0xff]  ;;  %v7017_v55 = vld [vmem:[%s6629_s8 + $0xec] sm:$0xff] }
  0x52   : > { %5396 = vmatmul.mubr.msk.f32.gmra.mrb[12].mxu1 %vm398_vm1, %v366_v19  ;;  %v6940_v19 = vld [vmem:[%s6629_s8 + $0xa4] sm:$0xff] }
  0x53   : > { %5676 = vmatmul.mubr.msk.f32.gmra.mrb[12].mxu0 %vm398_vm1, %v1986_v21  ;;  %5398 = vmatprep.mubr.msk.f32.mxu1 %vm398_vm1, %v367_v22  ;;  %v4654_v21 = vld [vmem:[%s6634_s11 + $0x90] sm:$0xff]  ;;  %v4655_v22 = vld [vmem:[%s6634_s11 + $0x98] sm:$0xff] }
  0x54   : > { %5678 = vmatprep.mubr.msk.f32.mxu0 %vm398_vm1, %v1987_v23  ;;  %v310_v23 = vld [vmem:[%s6629_s8 + $0x8] sm:$0xff] }
  0x56   : > { %5399 = vmatmul.mubr.msk.f32.gmra.mrb[14].mxu1 %vm398_vm1, %v368_v24  ;;  %v6952_v24 = vld [vmem:[%s6629_s8 + $0xac] sm:$0xff] }
  0x57   : > { %5679 = vmatmul.mubr.msk.f32.gmra.mrb[14].mxu0 %vm398_vm1, %v1988_v25  ;;  %5401 = vmatprep.mubr.msk.f32.mxu1 %vm398_vm1, %v369_v27  ;;  %v311_v25 = vld [vmem:[%s6629_s8 + $0x10] sm:$0xff] }
  0x58   : > { %5681 = vmatprep.mubr.msk.f32.mxu0 %vm398_vm1, %v1989_v28  ;;  %v6956_v27 = vld [vmem:[%s6629_s8 + $0xb4] sm:$0xff]  ;;  %v6027_v28 = vpack.c.bf16 %v4655_v22, %v4654_v21  ;;  %v325_v21 = vld [vmem:[%s6629_s8 + $0x80] sm:$0xff] }
  0x59   : > { %v7064_v22 = vld [vmem:[%s6629_s8 + $0x124] sm:$0xff] }
  0x5a   : > { %5402 = vmatmul.mubr.msk.f32.gmra.mrb[16].mxu1 %vm398_vm1, %v370_v29  ;;  %v4656_v29 = vld [vmem:[%s6634_s11 + $0xa0] sm:$0xff] }
  0x5b   : > { %5682 = vmatmul.mubr.msk.f32.gmra.mrb[16].mxu0 %vm398_vm1, %v1990_v30  ;;  %5404 = vmatprep.mubr.msk.f32.mxu1 %vm398_vm1, %v371_v31  ;;  %v4657_v30 = vld [vmem:[%s6634_s11 + $0xa8] sm:$0xff]  ;;  %v312_v31 = vld [vmem:[%s6629_s8 + $0x18] sm:$0xff] }
  0x5c   : > { %5727 = vmatprep.mubr.msk.f32.mxu0 %vm398_vm1, %v2407_v32  ;;  %v6969_v32 = vld [vmem:[%s6629_s8 + $0xbc] sm:$0xff] }
  0x5e   : > { %5405 = vmatmul.mubr.msk.f32.gmra.mrb[18].mxu1 %vm398_vm1, %v372_v35  ;;  %v6031_v35 = vpack.c.bf16 %v4657_v30, %v4656_v29  ;;  %v4874_v29 = vld [vmem:[%s6634_s11 + $0x1d0] sm:$0xff]  ;;  %v4875_v30 = vld [vmem:[%s6634_s11 + $0x1d8] sm:$0xff] }
  0x5f   : > { %5728 = vmatmul.mubr.msk.f32.vlgmr.msra.gmra.mrb[0].mxu0 %vm398_vm1, %v2408_v36  ;;  %5407 = vmatprep.mubr.msk.f32.mxu1 %vm398_vm1, %v373_v37  ;;  %v4659_v36 = vld [vmem:[%s6634_s11 + $0xb8] sm:$0xff]  ;;  %v314_v37 = vld [vmem:[%s6629_s8 + $0x28] sm:$0xff] }
  0x60   : > { %6090 = vmatpush3.bf16.msra.mxu0 %v6761_v4  ;;  %5730 = vmatprep.mubr.msk.f32.mxu0 %vm398_vm1, %v6819_v38  ;;  %v6898_v4 = vld [vmem:[%s6629_s8 + $0x74] sm:$0xff] }
  0x61   : > { %6092 = vmatprep.subr.bf16.mxu0 %v6091_v39 }
  0x62   : > { %5408 = vmatmul.mubr.msk.f32.gmra.mrb[20].mxu1 %vm398_vm1, %v374_v42 }
  0x63   : > { %5731 = vmatmul.mubr.msk.f32.gmra.mrb[2].mxu0 %vm398_vm1, %v6831_v43  ;;  %5410 = vmatprep.mubr.msk.f32.mxu1 %vm398_vm1, %v375_v44  ;;  %v4696_v44 = vld [vmem:[%s6634_s11 + $0xc0] sm:$0xff] }
  0x64   : > { %5733 = vmatprep.mubr.msk.f32.mxu0 %vm398_vm1, %v6835_v45  ;;  %6094 = vmatpush3.bf16.msra.mxu0 %v6091_v39  ;;  %v6985_v39 = vld [vmem:[%s6629_s8 + $0xcc] sm:$0xff] }
  0x65   : > { %6096 = vmatprep.subr.bf16.mxu0 %v6095_v46 }
  0x66   : > { %5411 = vmatmul.mubr.msk.f32.gmra.mrb[22].mxu1 %vm398_vm1, %v376_v49  ;;  %v317_v49 = vld [vmem:[%s6629_s8 + $0x40] sm:$0xff] }
  0x67   : > { %5734 = vmatmul.mubr.msk.f32.gmra.mrb[4].mxu0 %vm398_vm1, %v6847_v50  ;;  %5413 = vmatprep.mubr.msk.f32.mxu1 %vm398_vm1, %v377_v51  ;;  %v7005_v51 = vld [vmem:[%s6629_s8 + $0xe4] sm:$0xff] }
  0x68   : > { %5736 = vmatprep.mubr.msk.f32.mxu0 %vm398_vm1, %v6851_v52  ;;  %6098 = vmatpush3.bf16.msra.mxu0 %v6095_v46  ;;  %v4697_v46 = vld [vmem:[%s6634_s11 + $0xc8] sm:$0xff] }
  0x69   : > { %6100 = vmatprep.subr.bf16.mxu0 %v6099_v53 }
  0x6a   : > { %5414 = vmatmul.mubr.msk.f32.gmra.mrb[24].mxu1 %vm398_vm1, %v378_v56  ;;  %v319_v56 = vld [vmem:[%s6629_s8 + $0x50] sm:$0xff] }
  0x6b   : > { %5737 = vmatmul.mubr.msk.f32.gmra.mrb[6].mxu0 %vm398_vm1, %v6863_v57  ;;  %5416 = vmatprep.mubr.msk.f32.mxu1 %vm398_vm1, %v379_v58  ;;  %v7021_v58 = vld [vmem:[%s6629_s8 + $0xf4] sm:$0xff] }
  0x6c   : > { %5739 = vmatprep.mubr.msk.f32.mxu0 %vm398_vm1, %v6867_v59  ;;  %6102 = vmatpush3.bf16.msra.mxu0 %v6099_v53  ;;  %v7007_v53 = vpack.c.bf16 %v4697_v46, %v4696_v44  ;;  %v4879_v44 = vld [vmem:[%s6634_s11 + $0x1f8] sm:$0xff]  ;;  %v4916_v46 = vld [vmem:[%s6634_s11 + $0x200] sm:$0xff] }
  0x6d   : > { %6104 = vmatprep.subr.bf16.mxu0 %v6869_v60 }
  0x6e   : > { %5417 = vmatmul.mubr.msk.f32.gmra.mrb[26].mxu1 %vm398_vm1, %v380_v61  ;;  %v320_v61 = vld [vmem:[%s6629_s8 + $0x58] sm:$0xff] }
  0x6f   : > { %5740 = vmatmul.mubr.msk.f32.gmra.mrb[8].mxu0 %vm398_vm1, %v6879_v62  ;;  %5419 = vmatprep.mubr.msk.f32.mxu1 %vm398_vm1, %v381_v63  ;;  %v7032_v63 = vld [vmem:[%s6629_s8 + $0xfc] sm:$0xff] }
  0x70   : > { %5742 = vmatprep.mubr.msk.f32.mxu0 %vm398_vm1, %v6883_v0 }
  0x72   : > { %5420 = vmatmul.mubr.msk.f32.gmra.mrb[28].mxu1 %vm398_vm1, %v382_v1  ;;  %v321_v1 = vld [vmem:[%s6629_s8 + $0x60] sm:$0xff] }
  0x73   : > { %5743 = vmatmul.mubr.msk.f32.gmra.mrb[10].mxu0 %vm398_vm1, %v6894_v2  ;;  %5422 = vmatprep.mubr.msk.f32.mxu1 %vm398_vm1, %v383_v3  ;;  %v7036_v3 = vld [vmem:[%s6629_s8 + $0x104] sm:$0xff] }
  0x74   : > { %5745 = vmatprep.mubr.msk.f32.mxu0 %vm398_vm1, %v6898_v4 }
  0x76   : > { %5423 = vmatmul.mubr.msk.f32.gmra.mrb[30].mxu1 %vm398_vm1, %v384_v5  ;;  %v322_v5 = vld [vmem:[%s6629_s8 + $0x68] sm:$0xff] }
  0x77   : > { %5746 = vmatmul.mubr.msk.f32.gmra.mrb[12].mxu0 %vm398_vm1, %v6908_v6  ;;  %5425 = vmatprep.mubr.msk.f32.mxu1 %vm398_vm1, %v385_v7  ;;  %v7046_v7 = vld [vmem:[%s6629_s8 + $0x10c] sm:$0xff] }
  0x78   : > { %5748 = vmatprep.mubr.msk.f32.mxu0 %vm398_vm1, %v6912_v9 }
  0x7a   : > { %5426 = vmatmul.mubr.msk.f32.gmra.mrb[32].mxu1 %vm398_vm1, %v386_v10  ;;  %v323_v10 = vld [vmem:[%s6629_s8 + $0x70] sm:$0xff] }
  0x7b   : > { %5749 = vmatmul.mubr.msk.f32.gmra.mrb[14].mxu0 %vm398_vm1, %v6922_v11  ;;  %5428 = vmatprep.mubr.msk.f32.mxu1 %vm398_vm1, %v387_v12  ;;  %v7050_v12 = vld [vmem:[%s6629_s8 + $0x114] sm:$0xff] }
  0x7c   : > { %5751 = vmatprep.mubr.msk.f32.mxu0 %vm398_vm1, %v6926_v14 }
  0x7e   : > { %5429 = vmatmul.mubr.msk.f32.gmra.mrb[34].mxu1 %vm398_vm1, %v388_v15  ;;  %v324_v15 = vld [vmem:[%s6629_s8 + $0x78] sm:$0xff] }
  0x7f   : > { %5752 = vmatmul.mubr.msk.f32.gmra.mrb[16].mxu0 %vm398_vm1, %v6936_v16  ;;  %5447 = vmatprep.mubr.msk.f32.mxu1 %vm398_vm1, %v309_v17  ;;  %v7060_v17 = vld [vmem:[%s6629_s8 + $0x11c] sm:$0xff] }
  0x80   : > { %5754 = vmatprep.mubr.msk.f32.mxu0 %vm398_vm1, %v6940_v19 }
  0x82   : > { %5448 = vmatmul.mubr.msk.f32.vlgmr.msra.gmra.mrb[0].mxu1 %vm398_vm1, %v310_v23  ;;  %v326_v23 = vld [vmem:[%s6629_s8 + $0x88] sm:$0xff] }
  0x83   : > { %5755 = vmatmul.mubr.msk.f32.gmra.mrb[18].mxu0 %vm398_vm1, %v6952_v24  ;;  %6026 = vmatpush3.bf16.msra.mxu1 %v6782_v18  ;;  %v4658_v18 = vld [vmem:[%s6634_s11 + $0xb0] sm:$0xff] }
  0x84   : > { %5450 = vmatprep.mubr.msk.f32.mxu1 %vm398_vm1, %v311_v25  ;;  %5757 = vmatprep.mubr.msk.f32.mxu0 %vm398_vm1, %v6956_v27  ;;  %v6035_v42 = vpack.c.bf16 %v4659_v36, %v4658_v18  ;;  %v7074_v25 = vld [vmem:[%s6629_s8 + $0x12c] sm:$0xff]  ;;  %v4876_v18 = vld [vmem:[%s6634_s11 + $0x1e0] sm:$0xff] }
  0x85   : > { %6028 = vmatprep.subr.bf16.mxu1 %v6027_v28  ;;  %v4877_v36 = vld [vmem:[%s6634_s11 + $0x1e8] sm:$0xff] }
  0x86   : > { %5451 = vmatmul.mubr.msk.f32.gmra.mrb[2].mxu1 %vm398_vm1, %v312_v31  ;;  %v328_v31 = vld [vmem:[%s6629_s8 + $0x98] sm:$0xff] }
  0x87   : > { %5758 = vmatmul.mubr.msk.f32.gmra.mrb[20].mxu0 %vm398_vm1, %v6969_v32  ;;  %5453 = vmatprep.mubr.msk.f32.mxu1 %vm398_vm1, %v313_v33  ;;  %v329_v33 = vld [vmem:[%s6629_s8 + $0xa0] sm:$0xff] }
  0x88   : > { %5760 = vmatprep.mubr.msk.f32.mxu0 %vm398_vm1, %v6973_v34  ;;  %6030 = vmatpush3.bf16.msra.mxu1 %v6027_v28  ;;  %v327_v28 = vld [vmem:[%s6629_s8 + $0x90] sm:$0xff] }
  0x89   : > { %6032 = vmatprep.subr.bf16.mxu1 %v6031_v35 }
  0x8a   : > { %5454 = vmatmul.mubr.msk.f32.gmra.mrb[4].mxu1 %vm398_vm1, %v314_v37  ;;  %v330_v37 = vld [vmem:[%s6629_s8 + $0xa8] sm:$0xff] }
  0x8b   : > { %5761 = vmatmul.mubr.msk.f32.gmra.mrb[22].mxu0 %vm398_vm1, %v6985_v39  ;;  %5456 = vmatprep.mubr.msk.f32.mxu1 %vm398_vm1, %v315_v40  ;;  %v6111_v40 = vpack.c.bf16 %v4877_v36, %v4876_v18  ;;  %v3277_v18 = vld [vmem:[%s6629_s8 + $0x35] sm:$0xff] }
  0x8c   : > { %5763 = vmatprep.mubr.msk.f32.mxu0 %vm398_vm1, %v6989_v41  ;;  %6034 = vmatpush3.bf16.msra.mxu1 %v6031_v35  ;;  %v6107_v35 = vpack.c.bf16 %v4875_v30, %v4874_v29  ;;  %v3275_v29 = vld [vmem:[%s6629_s8 + $0x25] sm:$0xff]  ;;  %v4918_v30 = vld [vmem:[%s6634_s11 + $0x210] sm:$0xff] }
  0x8d   : > { %6036 = vmatprep.subr.bf16.mxu1 %v6035_v42 }
  0x8e   : > { %5457 = vmatmul.mubr.msk.f32.gmra.mrb[6].mxu1 %vm398_vm1, %v316_v47  ;;  %v4917_v47 = vld [vmem:[%s6634_s11 + $0x208] sm:$0xff] }
  0x8f   : > { %5764 = vmatmul.mubr.msk.f32.gmra.mrb[24].mxu0 %vm398_vm1, %v7001_v48  ;;  %5459 = vmatprep.mubr.msk.f32.mxu1 %vm398_vm1, %v317_v49  ;;  %v7118_v49 = vpack.c.bf16 %v4917_v47, %v4916_v46  ;;  %v4923_v46 = vld [vmem:[%s6634_s11 + $0x238] sm:$0xff] }
  0x90   : > { %5766 = vmatprep.mubr.msk.f32.mxu0 %vm398_vm1, %v7005_v51  ;;  %6038 = vmatpush3.bf16.msra.mxu1 %v6035_v42  ;;  %v4878_v42 = vld [vmem:[%s6634_s11 + $0x1f0] sm:$0xff]  ;;  %v7333_v47 = vld [vmem:[%s6629_s8 + $0xba] sm:$0xff] }
  0x91   : > { %6040 = vmatprep.subr.bf16.mxu1 %v7007_v53 }
  0x92   : > { %5460 = vmatmul.mubr.msk.f32.gmra.mrb[8].mxu1 %vm398_vm1, %v318_v54  ;;  %v339_v54 = vld [vmem:[%s6629_s8 + $0xf0] sm:$0xff] }
  0x93   : > { %5767 = vmatmul.mubr.msk.f32.gmra.mrb[26].mxu0 %vm398_vm1, %v7017_v55  ;;  %5462 = vmatprep.mubr.msk.f32.mxu1 %vm398_vm1, %v319_v56  ;;  %v4698_v56 = vld [vmem:[%s6634_s11 + $0xd0] sm:$0xff] }
  0x94   : > { %5769 = vmatprep.mubr.msk.f32.mxu0 %vm398_vm1, %v7021_v58 }
  0x96   : > { %5463 = vmatmul.mubr.msk.f32.gmra.mrb[10].mxu1 %vm398_vm1, %v320_v61  ;;  %v7171_v61 = vld [vmem:[%s6629_s8 + $0x12] sm:$0xff] }
  0x97   : > { %5770 = vmatmul.mubr.msk.f32.gmra.mrb[28].mxu0 %vm398_vm1, %v7032_v63  ;;  %5465 = vmatprep.mubr.msk.f32.mxu1 %vm398_vm1, %v321_v1  ;;  %v4700_v1 = vld [vmem:[%s6634_s11 + $0xe0] sm:$0xff] }
  0x98   : > { %5772 = vmatprep.mubr.msk.f32.mxu0 %vm398_vm1, %v7036_v3 }
  0x9a   : > { %5466 = vmatmul.mubr.msk.f32.gmra.mrb[12].mxu1 %vm398_vm1, %v322_v5  ;;  %v4701_v5 = vld [vmem:[%s6634_s11 + $0xe8] sm:$0xff] }
  0x9b   : > { %5773 = vmatmul.mubr.msk.f32.gmra.mrb[30].mxu0 %vm398_vm1, %v7046_v7  ;;  %5468 = vmatprep.mubr.msk.f32.mxu1 %vm398_vm1, %v323_v10  ;;  %v6047_v10 = vpack.c.bf16 %v4701_v5, %v4700_v1  ;;  %v3288_v1 = vld [vmem:[%s6629_s8 + $0x8d] sm:$0xff]  ;;  %v7394_v5 = vld [vmem:[%s6629_s8 + $0x102] sm:$0xff] }
  0x9c   : > { %5775 = vmatprep.mubr.msk.f32.mxu0 %vm398_vm1, %v7050_v12 }
  0x9e   : > { %5469 = vmatmul.mubr.msk.f32.gmra.mrb[14].mxu1 %vm398_vm1, %v324_v15  ;;  %v4703_v15 = vld [vmem:[%s6634_s11 + $0xf8] sm:$0xff] }
  0x9f   : > { %5776 = vmatmul.mubr.msk.f32.gmra.mrb[32].mxu0 %vm398_vm1, %v7060_v17  ;;  %5471 = vmatprep.mubr.msk.f32.mxu1 %vm398_vm1, %v325_v21 }
  0xa0   : > { %5778 = vmatprep.mubr.msk.f32.mxu0 %vm398_vm1, %v7064_v22 }
  0xa2   : > { %5472 = vmatmul.mubr.msk.f32.gmra.mrb[16].mxu1 %vm398_vm1, %v326_v23  ;;  %v2875_v23 = vld [vmem:[%s6629_s8 + $0x134] sm:$0xff] }
  0xa3   : > { %5779 = vmatmul.mubr.msk.f32.gmra.mrb[34].mxu0 %vm398_vm1, %v7074_v25  ;;  %5474 = vmatprep.mubr.msk.f32.mxu1 %vm398_vm1, %v327_v28  ;;  %v7289_v28 = vld [vmem:[%s6629_s8 + $0x92] sm:$0xff] }
  0xa4   : > { %5797 = vmatprep.mubr.msk.f32.mxu0 %vm398_vm1, %v6819_v38  ;;  %v331_v38 = vld [vmem:[%s6629_s8 + $0xb0] sm:$0xff] }
  0xa6   : > { %5475 = vmatmul.mubr.msk.f32.gmra.mrb[18].mxu1 %vm398_vm1, %v328_v31  ;;  %v7300_v31 = vld [vmem:[%s6629_s8 + $0x9a] sm:$0xff] }
  0xa7   : > { %5798 = vmatmul.mubr.msk.f32.vlgmr.msra.gmra.mrb[0].mxu0 %vm398_vm1, %v6831_v43  ;;  %5477 = vmatprep.mubr.msk.f32.mxu1 %vm398_vm1, %v329_v33  ;;  %v332_v43 = vld [vmem:[%s6629_s8 + $0xb8] sm:$0xff]  ;;  %v3276_v33 = vld [vmem:[%s6629_s8 + $0x2d] sm:$0xff] }
  0xa8   : > { %6106 = vmatpush3.bf16.msra.mxu0 %v6869_v60  ;;  %5800 = vmatprep.mubr.msk.f32.mxu0 %vm398_vm1, %v6835_v45  ;;  %v333_v45 = vld [vmem:[%s6629_s8 + $0xc0] sm:$0xff]  ;;  %v6115_v60 = vpack.c.bf16 %v4879_v44, %v4878_v42  ;;  %v7322_v44 = vld [vmem:[%s6629_s8 + $0xb2] sm:$0xff] }
  0xa9   : > { %6108 = vmatprep.subr.bf16.mxu0 %v6107_v35  ;;  %v3278_v42 = vld [vmem:[%s6629_s8 + $0x3d] sm:$0xff] }
  0xaa   : > { %5478 = vmatmul.mubr.msk.f32.gmra.mrb[20].mxu1 %vm398_vm1, %v330_v37  ;;  %v4920_v37 = vld [vmem:[%s6634_s11 + $0x220] sm:$0xff] }
  0xab   : > { %5801 = vmatmul.mubr.msk.f32.gmra.mrb[2].mxu0 %vm398_vm1, %v6847_v50  ;;  %5480 = vmatprep.mubr.msk.f32.mxu1 %vm398_vm1, %v331_v38  ;;  %v334_v50 = vld [vmem:[%s6629_s8 + $0xc8] sm:$0xff] }
  0xac   : > { %5803 = vmatprep.mubr.msk.f32.mxu0 %vm398_vm1, %v6851_v52  ;;  %6110 = vmatpush3.bf16.msra.mxu0 %v6107_v35  ;;  %v335_v52 = vld [vmem:[%s6629_s8 + $0xd0] sm:$0xff]  ;;  %v7305_v35 = vld [vmem:[%s6629_s8 + $0xa2] sm:$0xff] }
  0xad   : > { %6112 = vmatprep.subr.bf16.mxu0 %v6111_v40  ;;  %v4921_v38 = vld [vmem:[%s6634_s11 + $0x228] sm:$0xff] }
  0xae   : > { %5481 = vmatmul.mubr.msk.f32.gmra.mrb[22].mxu1 %vm398_vm1, %v332_v43  ;;  %v3279_v43 = vld [vmem:[%s6629_s8 + $0x45] sm:$0xff] }
  0xaf   : > { %5804 = vmatmul.mubr.msk.f32.gmra.mrb[4].mxu0 %vm398_vm1, %v6863_v57  ;;  %5483 = vmatprep.mubr.msk.f32.mxu1 %vm398_vm1, %v333_v45  ;;  %v336_v57 = vld [vmem:[%s6629_s8 + $0xd8] sm:$0xff]  ;;  %v6127_v45 = vpack.c.bf16 %v4921_v38, %v4920_v37 }
  0xb0   : > { %5806 = vmatprep.mubr.msk.f32.mxu0 %vm398_vm1, %v6867_v59  ;;  %6114 = vmatpush3.bf16.msra.mxu0 %v6111_v40  ;;  %v337_v59 = vld [vmem:[%s6629_s8 + $0xe0] sm:$0xff]  ;;  %v7316_v40 = vld [vmem:[%s6629_s8 + $0xaa] sm:$0xff]  ;;  %v3719_v37 = vld [vmem:[%s6629_s8 + $0x76] sm:$0xff] }
  0xb1   : > { %6116 = vmatprep.subr.bf16.mxu0 %v6115_v60  ;;  %v3720_v38 = vld [vmem:[%s6629_s8 + $0x7e] sm:$0xff] }
  0xb2   : > { %5484 = vmatmul.mubr.msk.f32.gmra.mrb[24].mxu1 %vm398_vm1, %v334_v50  ;;  %v3280_v50 = vld [vmem:[%s6629_s8 + $0x4d] sm:$0xff] }
  0xb3   : > { %5807 = vmatmul.mubr.msk.f32.gmra.mrb[6].mxu0 %vm398_vm1, %v6879_v62  ;;  %5486 = vmatprep.mubr.msk.f32.mxu1 %vm398_vm1, %v335_v52  ;;  %v338_v62 = vld [vmem:[%s6629_s8 + $0xe8] sm:$0xff] }
  0xb4   : > { %5809 = vmatprep.mubr.msk.f32.mxu0 %vm398_vm1, %v6883_v0  ;;  %6118 = vmatpush3.bf16.msra.mxu0 %v6115_v60  ;;  %v340_v0 = vld [vmem:[%s6629_s8 + $0xf8] sm:$0xff]  ;;  %v4922_v60 = vld [vmem:[%s6634_s11 + $0x230] sm:$0xff]  ;;  %v7338_v52 = vld [vmem:[%s6629_s8 + $0xc2] sm:$0xff] }
  0xb5   : > { %6120 = vmatprep.subr.bf16.mxu0 %v7118_v49 }
  0xb6   : > { %5487 = vmatmul.mubr.msk.f32.gmra.mrb[26].mxu1 %vm398_vm1, %v336_v57  ;;  %v6131_v57 = vpack.c.bf16 %v4923_v46, %v4922_v60  ;;  %v3725_v60 = vld [vmem:[%s6629_s8 + $0xa6] sm:$0xff] }
  0xb7   : > { %5810 = vmatmul.mubr.msk.f32.gmra.mrb[8].mxu0 %vm398_vm1, %v6894_v2  ;;  %5489 = vmatprep.mubr.msk.f32.mxu1 %vm398_vm1, %v337_v59  ;;  %v341_v2 = vld [vmem:[%s6629_s8 + $0x100] sm:$0xff]  ;;  %v7347_v59 = vld [vmem:[%s6629_s8 + $0xca] sm:$0xff] }
  0xb8   : > { %5812 = vmatprep.mubr.msk.f32.mxu0 %vm398_vm1, %v6898_v4  ;;  %v342_v4 = vld [vmem:[%s6629_s8 + $0x108] sm:$0xff] }
  0xb9   : > { %v1574_v46 = vld [vmem:[%s6629_s8 + $0x12a] sm:$0xff] }
  0xba   : > { %5490 = vmatmul.mubr.msk.f32.gmra.mrb[28].mxu1 %vm398_vm1, %v338_v62  ;;  %v3282_v62 = vld [vmem:[%s6629_s8 + $0x5d] sm:$0xff] }
  0xbb   : > { %5813 = vmatmul.mubr.msk.f32.gmra.mrb[10].mxu0 %vm398_vm1, %v6908_v6  ;;  %5492 = vmatprep.mubr.msk.f32.mxu1 %vm398_vm1, %v339_v54  ;;  %v343_v6 = vld [vmem:[%s6629_s8 + $0x110] sm:$0xff] }
  0xbc   : > { %5815 = vmatprep.mubr.msk.f32.mxu0 %vm398_vm1, %v6912_v9  ;;  %v344_v9 = vld [vmem:[%s6629_s8 + $0x118] sm:$0xff] }
  0xbd   : > { %v7352_v54 = vld [vmem:[%s6629_s8 + $0xd2] sm:$0xff] }
  0xbe   : > { %5493 = vmatmul.mubr.msk.f32.gmra.mrb[30].mxu1 %vm398_vm1, %v340_v0  ;;  %v3283_v0 = vld [vmem:[%s6629_s8 + $0x65] sm:$0xff] }
  0xbf   : > { %5816 = vmatmul.mubr.msk.f32.gmra.mrb[12].mxu0 %vm398_vm1, %v6922_v11  ;;  %5495 = vmatprep.mubr.msk.f32.mxu1 %vm398_vm1, %v341_v2  ;;  %v1105_v11 = vld [vmem:[%s6629_s8 + $0x2] sm:$0xff]  ;;  %v7361_v2 = vld [vmem:[%s6629_s8 + $0xda] sm:$0xff] }
  0xc0   : > { %5818 = vmatprep.mubr.msk.f32.mxu0 %vm398_vm1, %v6926_v14  ;;  %v4699_v14 = vld [vmem:[%s6634_s11 + $0xd8] sm:$0xff] }
  0xc2   : > { %5496 = vmatmul.mubr.msk.f32.gmra.mrb[32].mxu1 %vm398_vm1, %v342_v4  ;;  %v3284_v4 = vld [vmem:[%s6629_s8 + $0x6d] sm:$0xff] }
  0xc3   : > { %5819 = vmatmul.mubr.msk.f32.gmra.mrb[14].mxu0 %vm398_vm1, %v6936_v16  ;;  %5498 = vmatprep.mubr.msk.f32.mxu1 %vm398_vm1, %v343_v6  ;;  %v1106_v16 = vld [vmem:[%s6629_s8 + $0xa] sm:$0xff]  ;;  %v7366_v6 = vld [vmem:[%s6629_s8 + $0xe2] sm:$0xff] }
  0xc4   : > { %5821 = vmatprep.mubr.msk.f32.mxu0 %vm398_vm1, %v6940_v19  ;;  %v6043_v19 = vpack.c.bf16 %v4699_v14, %v4698_v56  ;;  %v3286_v56 = vld [vmem:[%s6629_s8 + $0x7d] sm:$0xff]  ;;  %v7380_v14 = vld [vmem:[%s6629_s8 + $0xf2] sm:$0xff] }
  0xc6   : > { %5499 = vmatmul.mubr.msk.f32.gmra.mrb[34].mxu1 %vm398_vm1, %v344_v9  ;;  %v3285_v9 = vld [vmem:[%s6629_s8 + $0x75] sm:$0xff] }
  0xc7   : > { %5822 = vmatmul.mubr.msk.f32.gmra.mrb[16].mxu0 %vm398_vm1, %v6952_v24  ;;  %5517 = vmatprep.mubr.msk.f32.mxu1 %vm398_vm1, %v1105_v11  ;;  %v7180_v24 = vld [vmem:[%s6629_s8 + $0x1a] sm:$0xff]  ;;  %v7375_v11 = vld [vmem:[%s6629_s8 + $0xea] sm:$0xff] }
  0xc8   : > { %5824 = vmatprep.mubr.msk.f32.mxu0 %vm398_vm1, %v6956_v27  ;;  %v7187_v27 = vld [vmem:[%s6629_s8 + $0x22] sm:$0xff] }
  0xca   : > { %5518 = vmatmul.mubr.msk.f32.vlgmr.msra.gmra.mrb[0].mxu1 %vm398_vm1, %v1106_v16  ;;  %v3287_v16 = vld [vmem:[%s6629_s8 + $0x85] sm:$0xff] }
  0xcb   : > { %5825 = vmatmul.mubr.msk.f32.gmra.mrb[18].mxu0 %vm398_vm1, %v6969_v32  ;;  %6042 = vmatpush3.bf16.msra.mxu1 %v7007_v53  ;;  %v4702_v32 = vld [vmem:[%s6634_s11 + $0xf0] sm:$0xff] }
  0xcc   : > { %5520 = vmatprep.mubr.msk.f32.mxu1 %vm398_vm1, %v7171_v61  ;;  %5827 = vmatprep.mubr.msk.f32.mxu0 %vm398_vm1, %v6973_v34  ;;  %v7198_v53 = vld [vmem:[%s6629_s8 + $0x2a] sm:$0xff]  ;;  %v7203_v34 = vld [vmem:[%s6629_s8 + $0x32] sm:$0xff]  ;;  %v6051_v21 = vpack.c.bf16 %v4703_v15, %v4702_v32  ;;  %v3290_v15 = vld [vmem:[%s6629_s8 + $0x9d] sm:$0xff] }
  0xcd   : > { %6044 = vmatprep.subr.bf16.mxu1 %v6043_v19  ;;  %v7403_v32 = vld [vmem:[%s6629_s8 + $0x10a] sm:$0xff] }
  0xce   : > { %5521 = vmatmul.mubr.msk.f32.gmra.mrb[2].mxu1 %vm398_vm1, %v7180_v24 }
  0xcf   : > { %5828 = vmatmul.mubr.msk.f32.gmra.mrb[20].mxu0 %vm398_vm1, %v6985_v39  ;;  %5523 = vmatprep.mubr.msk.f32.mxu1 %vm398_vm1, %v7187_v27  ;;  %v7212_v39 = vld [vmem:[%s6629_s8 + $0x3a] sm:$0xff] }
  0xd0   : > { %5830 = vmatprep.mubr.msk.f32.mxu0 %vm398_vm1, %v6989_v41  ;;  %6046 = vmatpush3.bf16.msra.mxu1 %v6043_v19  ;;  %v7217_v41 = vld [vmem:[%s6629_s8 + $0x42] sm:$0xff]  ;;  %v7389_v19 = vld [vmem:[%s6629_s8 + $0xfa] sm:$0xff] }
  0xd1   : > { %6048 = vmatprep.subr.bf16.mxu1 %v6047_v10 }
  0xd2   : > { %5524 = vmatmul.mubr.msk.f32.gmra.mrb[4].mxu1 %vm398_vm1, %v7198_v53 }
  0xd3   : > { %5831 = vmatmul.mubr.msk.f32.gmra.mrb[22].mxu0 %vm398_vm1, %v7001_v48  ;;  %5526 = vmatprep.mubr.msk.f32.mxu1 %vm398_vm1, %v7203_v34  ;;  %v7226_v48 = vld [vmem:[%s6629_s8 + $0x4a] sm:$0xff] }
  0xd4   : > { %5833 = vmatprep.mubr.msk.f32.mxu0 %vm398_vm1, %v7005_v51  ;;  %6050 = vmatpush3.bf16.msra.mxu1 %v6047_v10  ;;  %v7231_v51 = vld [vmem:[%s6629_s8 + $0x52] sm:$0xff] }
  0xd5   : > { %6052 = vmatprep.subr.bf16.mxu1 %v6051_v21  ;;  %v3289_v10 = vld [vmem:[%s6629_s8 + $0x95] sm:$0xff] }
  0xd6   : > { %5527 = vmatmul.mubr.msk.f32.gmra.mrb[6].mxu1 %vm398_vm1, %v7212_v39 }
  0xd7   : > { %5834 = vmatmul.mubr.msk.f32.gmra.mrb[24].mxu0 %vm398_vm1, %v7017_v55  ;;  %5529 = vmatprep.mubr.msk.f32.mxu1 %vm398_vm1, %v7217_v41  ;;  %v7241_v55 = vld [vmem:[%s6629_s8 + $0x5a] sm:$0xff] }
  0xd8   : > { %5836 = vmatprep.mubr.msk.f32.mxu0 %vm398_vm1, %v7021_v58  ;;  %6054 = vmatpush3.bf16.msra.mxu1 %v6051_v21  ;;  %v7246_v58 = vld [vmem:[%s6629_s8 + $0x62] sm:$0xff]  ;;  %v7408_v21 = vld [vmem:[%s6629_s8 + $0x112] sm:$0xff] }
  0xd9   : > { %6135 = vmatprep.subr.bf16.mxu1 %v6685_v8 }
  0xda   : > { %5530 = vmatmul.mubr.msk.f32.gmra.mrb[8].mxu1 %vm398_vm1, %v7226_v48 }
  0xdb   : > { %5837 = vmatmul.mubr.msk.f32.gmra.mrb[26].mxu0 %vm398_vm1, %v7032_v63  ;;  %5532 = vmatprep.mubr.msk.f32.mxu1 %vm398_vm1, %v7231_v51  ;;  %v7255_v63 = vld [vmem:[%s6629_s8 + $0x6a] sm:$0xff] }
  0xdc   : > { %5839 = vmatprep.mubr.msk.f32.mxu0 %vm398_vm1, %v7036_v3  ;;  %v7260_v3 = vld [vmem:[%s6629_s8 + $0x72] sm:$0xff] }
  0xde   : > { %5533 = vmatmul.mubr.msk.f32.gmra.mrb[10].mxu1 %vm398_vm1, %v7241_v55 }
  0xdf   : > { %5840 = vmatmul.mubr.msk.f32.gmra.mrb[28].mxu0 %vm398_vm1, %v7046_v7  ;;  %5535 = vmatprep.mubr.msk.f32.mxu1 %vm398_vm1, %v7246_v58  ;;  %v7269_v7 = vld [vmem:[%s6629_s8 + $0x7a] sm:$0xff] }
  0xe0   : > { %5842 = vmatprep.mubr.msk.f32.mxu0 %vm398_vm1, %v7050_v12  ;;  %v7274_v12 = vld [vmem:[%s6629_s8 + $0x82] sm:$0xff] }
  0xe2   : > { %5536 = vmatmul.mubr.msk.f32.gmra.mrb[12].mxu1 %vm398_vm1, %v7255_v63 }
  0xe3   : > { %5843 = vmatmul.mubr.msk.f32.gmra.mrb[30].mxu0 %vm398_vm1, %v7060_v17  ;;  %5538 = vmatprep.mubr.msk.f32.mxu1 %vm398_vm1, %v7260_v3  ;;  %v7284_v17 = vld [vmem:[%s6629_s8 + $0x8a] sm:$0xff] }
  0xe4   : > { %5845 = vmatprep.mubr.msk.f32.mxu0 %vm398_vm1, %v7064_v22  ;;  %v2876_v22 = vld [vmem:[%s6629_s8 + $0x13c] sm:$0xff] }
  0xe6   : > { %5539 = vmatmul.mubr.msk.f32.gmra.mrb[14].mxu1 %vm398_vm1, %v7269_v7 }
  0xe7   : > { %5846 = vmatmul.mubr.msk.f32.gmra.mrb[32].mxu0 %vm398_vm1, %v7074_v25  ;;  %5541 = vmatprep.mubr.msk.f32.mxu1 %vm398_vm1, %v7274_v12  ;;  %v4919_v25 = vld [vmem:[%s6634_s11 + $0x218] sm:$0xff] }
  0xe8   : > { %5848 = vmatprep.mubr.msk.f32.mxu0 %vm398_vm1, %v2875_v23  ;;  %v6123_v36 = vpack.c.bf16 %v4919_v25, %v4918_v30  ;;  %v3291_v23 = vld [vmem:[%s6629_s8 + $0xa5] sm:$0xff]  ;;  %v3293_v30 = vld [vmem:[%s6629_s8 + $0xb5] sm:$0xff]  ;;  %v3294_v25 = vld [vmem:[%s6629_s8 + $0xbd] sm:$0xff] }
  0xea   : > { %5542 = vmatmul.mubr.msk.f32.gmra.mrb[16].mxu1 %vm398_vm1, %v7284_v17 }
  0xeb   : > { %5849 = vmatmul.mubr.msk.f32.gmra.mrb[34].mxu0 %vm398_vm1, %v2876_v22  ;;  %5544 = vmatprep.mubr.msk.f32.mxu1 %vm398_vm1, %v7289_v28  ;;  %v7417_v22 = vld [vmem:[%s6629_s8 + $0x11a] sm:$0xff] }
  0xec   : > { %5867 = vmatprep.mubr.msk.f32.mxu0 %vm398_vm1, %v3275_v29  ;;  %v3292_v29 = vld [vmem:[%s6629_s8 + $0xad] sm:$0xff] }
  0xee   : > { %5545 = vmatmul.mubr.msk.f32.gmra.mrb[18].mxu1 %vm398_vm1, %v7300_v31 }
  0xef   : > { %5868 = vmatmul.mubr.msk.f32.vlgmr.msra.gmra.mrb[0].mxu0 %vm398_vm1, %v3276_v33  ;;  %5547 = vmatprep.mubr.msk.f32.mxu1 %vm398_vm1, %v7305_v35  ;;  %v3295_v33 = vld [vmem:[%s6629_s8 + $0xc5] sm:$0xff] }
  0xf0   : > { %6122 = vmatpush3.bf16.msra.mxu0 %v7118_v49  ;;  %5870 = vmatprep.mubr.msk.f32.mxu0 %vm398_vm1, %v3277_v18  ;;  %v3281_v49 = vld [vmem:[%s6629_s8 + $0x55] sm:$0xff] }
  0xf1   : > { %6124 = vmatprep.subr.bf16.mxu0 %v6123_v36  ;;  %v3297_v18 = vld [vmem:[%s6629_s8 + $0xd5] sm:$0xff] }
  0xf2   : > { %5548 = vmatmul.mubr.msk.f32.gmra.mrb[20].mxu1 %vm398_vm1, %v7316_v40 }
  0xf3   : > { %5871 = vmatmul.mubr.msk.f32.gmra.mrb[2].mxu0 %vm398_vm1, %v3278_v42  ;;  %5550 = vmatprep.mubr.msk.f32.mxu1 %vm398_vm1, %v7322_v44  ;;  %v3722_v42 = vld [vmem:[%s6629_s8 + $0x8e] sm:$0xff] }
  0xf4   : > { %5873 = vmatprep.mubr.msk.f32.mxu0 %vm398_vm1, %v3279_v43  ;;  %6126 = vmatpush3.bf16.msra.mxu0 %v6123_v36  ;;  %v3718_v36 = vld [vmem:[%s6629_s8 + $0x6e] sm:$0xff]  ;;  %v3724_v43 = vld [vmem:[%s6629_s8 + $0x9e] sm:$0xff] }
  0xf5   : > { %6128 = vmatprep.subr.bf16.mxu0 %v6127_v45 }
  0xf6   : > { %5551 = vmatmul.mubr.msk.f32.gmra.mrb[22].mxu1 %vm398_vm1, %v7333_v47 }
  0xf7   : > { %5874 = vmatmul.mubr.msk.f32.gmra.mrb[4].mxu0 %vm398_vm1, %v3280_v50  ;;  %5553 = vmatprep.mubr.msk.f32.mxu1 %vm398_vm1, %v7338_v52  ;;  %v1991_v50 = vld [vmem:[%s6629_s8 + $0xa3] sm:$0xff] }
  0xf8   : > { %5876 = vmatprep.mubr.msk.f32.mxu0 %vm398_vm1, %v3281_v49  ;;  %6130 = vmatpush3.bf16.msra.mxu0 %v6127_v45  ;;  %v1573_v45 = vld [vmem:[%s6629_s8 + $0x122] sm:$0xff]  ;;  %v1992_v49 = vld [vmem:[%s6629_s8 + $0xab] sm:$0xff] }
  0xf9   : > { %6132 = vmatprep.subr.bf16.mxu0 %v6131_v57 }
  0xfa   : > { %5554 = vmatmul.mubr.msk.f32.gmra.mrb[24].mxu1 %vm398_vm1, %v7347_v59 }
  0xfb   : > { %5877 = vmatmul.mubr.msk.f32.gmra.mrb[6].mxu0 %vm398_vm1, %v3282_v62  ;;  %5556 = vmatprep.mubr.msk.f32.mxu1 %vm398_vm1, %v7352_v54  ;;  %v3729_v62 = vld [vmem:[%s6629_s8 + $0xc6] sm:$0xff] }
  0xfc   : > { %5879 = vmatprep.mubr.msk.f32.mxu0 %vm398_vm1, %v3283_v0  ;;  %6134 = vmatpush3.bf16.msra.mxu0 %v6131_v57  ;;  %v3728_v57 = vld [vmem:[%s6629_s8 + $0xbe] sm:$0xff]  ;;  %v3730_v0 = vld [vmem:[%s6629_s8 + $0xce] sm:$0xff] }
  0xfe   : > { %5557 = vmatmul.mubr.msk.f32.gmra.mrb[26].mxu1 %vm398_vm1, %v7361_v2 }
  0xff   : > { %5880 = vmatmul.mubr.msk.f32.gmra.mrb[8].mxu0 %vm398_vm1, %v3284_v4  ;;  %5559 = vmatprep.mubr.msk.f32.mxu1 %vm398_vm1, %v7366_v6  ;;  %v3731_v4 = vld [vmem:[%s6629_s8 + $0xd6] sm:$0xff] }
 0x100   : > { %5882 = vmatprep.mubr.msk.f32.mxu0 %vm398_vm1, %v3285_v9  ;;  %v3732_v9 = vld [vmem:[%s6629_s8 + $0xde] sm:$0xff] }
 0x102   : > { %5560 = vmatmul.mubr.msk.f32.gmra.mrb[28].mxu1 %vm398_vm1, %v7375_v11 }
 0x103   : > { %5883 = vmatmul.mubr.msk.f32.gmra.mrb[10].mxu0 %vm398_vm1, %v3286_v56  ;;  %5562 = vmatprep.mubr.msk.f32.mxu1 %vm398_vm1, %v7380_v14  ;;  %v3733_v56 = vld [vmem:[%s6629_s8 + $0xe6] sm:$0xff] }
 0x104   : > { %5885 = vmatprep.mubr.msk.f32.mxu0 %vm398_vm1, %v3287_v16  ;;  %v3734_v16 = vld [vmem:[%s6629_s8 + $0xee] sm:$0xff] }
 0x106   : > { %5563 = vmatmul.mubr.msk.f32.gmra.mrb[30].mxu1 %vm398_vm1, %v7389_v19 }
 0x107   : > { %5886 = vmatmul.mubr.msk.f32.gmra.mrb[12].mxu0 %vm398_vm1, %v3288_v1  ;;  %5565 = vmatprep.mubr.msk.f32.mxu1 %vm398_vm1, %v7394_v5  ;;  %v3735_v1 = vld [vmem:[%s6629_s8 + $0xf6] sm:$0xff] }
 0x108   : > { %5888 = vmatprep.mubr.msk.f32.mxu0 %vm398_vm1, %v3289_v10  ;;  %v3736_v10 = vld [vmem:[%s6629_s8 + $0xfe] sm:$0xff] }
 0x10a   : > { %5566 = vmatmul.mubr.msk.f32.gmra.mrb[32].mxu1 %vm398_vm1, %v7403_v32 }
 0x10b   : > { %5889 = vmatmul.mubr.msk.f32.gmra.mrb[14].mxu0 %vm398_vm1, %v3290_v15  ;;  %5568 = vmatprep.mubr.msk.f32.mxu1 %vm398_vm1, %v7408_v21  ;;  %v3737_v15 = vld [vmem:[%s6629_s8 + $0x106] sm:$0xff] }
 0x10c   : > { %5891 = vmatprep.mubr.msk.f32.mxu0 %vm398_vm1, %v3291_v23  ;;  %v3738_v23 = vld [vmem:[%s6629_s8 + $0x10e] sm:$0xff] }
 0x10e   : > { %5569 = vmatmul.mubr.msk.f32.gmra.mrb[34].mxu1 %vm398_vm1, %v7417_v22 }
 0x10f   : > { %5892 = vmatmul.mubr.msk.f32.gmra.mrb[16].mxu0 %vm398_vm1, %v3292_v29  ;;  %5587 = vmatprep.mubr.msk.f32.mxu1 %vm398_vm1, %v7171_v61  ;;  %v3296_v61 = vld [vmem:[%s6629_s8 + $0xcd] sm:$0xff]  ;;  %v3739_v29 = vld [vmem:[%s6629_s8 + $0x116] sm:$0xff] }
 0x110   : > { %5894 = vmatprep.mubr.msk.f32.mxu0 %vm398_vm1, %v3293_v30  ;;  %v2004_v30 = vld [vmem:[%s6629_s8 + $0x10b] sm:$0xff] }
 0x112   : > { %5588 = vmatmul.mubr.msk.f32.vlgmr.msra.gmra.mrb[0].mxu1 %vm398_vm1, %v7180_v24  ;;  %v3299_v24 = vld [vmem:[%s6629_s8 + $0xe5] sm:$0xff] }
 0x113   : > { %5895 = vmatmul.mubr.msk.f32.gmra.mrb[18].mxu0 %vm398_vm1, %v3294_v25  ;;  %6139 = vmatpush3.bf16.msra.mxu1 %v6685_v8  ;;  %v3298_v8 = vld [vmem:[%s6629_s8 + $0xdd] sm:$0xff] }
 0x114   : > { %5590 = vmatprep.mubr.msk.f32.mxu1 %vm398_vm1, %v7187_v27  ;;  %5897 = vmatprep.mubr.msk.f32.mxu0 %vm398_vm1, %v3295_v33  ;;  %v3300_v27 = vld [vmem:[%s6629_s8 + $0xed] sm:$0xff]  ;;  %v3740_v25 = vld [vmem:[%s6629_s8 + $0x11e] sm:$0xff] }
 0x115   : > { %6136 = vmatprep.subr.bf16.mxu1 %v6690_v13  ;;  %v2005_v33 = vld [vmem:[%s6629_s8 + $0x113] sm:$0xff] }
 0x116   : > { %5591 = vmatmul.mubr.msk.f32.gmra.mrb[2].mxu1 %vm398_vm1, %v7198_v53  ;;  %v3302_v53 = vld [vmem:[%s6629_s8 + $0xfd] sm:$0xff] }
 0x117   : > { %5898 = vmatmul.mubr.msk.f32.gmra.mrb[20].mxu0 %vm398_vm1, %v3296_v61  ;;  %5593 = vmatprep.mubr.msk.f32.mxu1 %vm398_vm1, %v7203_v34  ;;  %v3303_v34 = vld [vmem:[%s6629_s8 + $0x105] sm:$0xff] }
 0x118   : > { %5900 = vmatprep.mubr.msk.f32.mxu0 %vm398_vm1, %v3297_v18  ;;  %6140 = vmatpush3.bf16.msra.mxu1 %v6690_v13  ;;  %v3301_v13 = vld [vmem:[%s6629_s8 + $0xf5] sm:$0xff]  ;;  %v3741_v61 = vld [vmem:[%s6629_s8 + $0x126] sm:$0xff] }
 0x119   : > { %6137 = vmatprep.subr.bf16.mxu1 %v6700_v20  ;;  %v2006_v18 = vld [vmem:[%s6629_s8 + $0x11b] sm:$0xff] }
 0x11a   : > { %5594 = vmatmul.mubr.msk.f32.gmra.mrb[4].mxu1 %vm398_vm1, %v7212_v39  ;;  %v3305_v39 = vld [vmem:[%s6629_s8 + $0x115] sm:$0xff] }
 0x11b   : > { %5901 = vmatmul.mubr.msk.f32.gmra.mrb[22].mxu0 %vm398_vm1, %v3298_v8  ;;  %5596 = vmatprep.mubr.msk.f32.mxu1 %vm398_vm1, %v7217_v41  ;;  %v3307_v41 = vld [vmem:[%s6629_s8 + $0x125] sm:$0xff]  ;;  %v3742_v8 = vld [vmem:[%s6629_s8 + $0x12e] sm:$0xff] }
 0x11c   : > { %5903 = vmatprep.mubr.msk.f32.mxu0 %vm398_vm1, %v3299_v24  ;;  %6141 = vmatpush3.bf16.msra.mxu1 %v6700_v20  ;;  %v3304_v20 = vld [vmem:[%s6629_s8 + $0x10d] sm:$0xff]  ;;  %v2007_v24 = vld [vmem:[%s6629_s8 + $0x123] sm:$0xff] }
 0x11d   : > { %6138 = vmatprep.subr.bf16.mxu1 %v6710_v26 }
 0x11e   : > { %5597 = vmatmul.mubr.msk.f32.gmra.mrb[6].mxu1 %vm398_vm1, %v7226_v48  ;;  %v3308_v48 = vld [vmem:[%s6629_s8 + $0x12d] sm:$0xff] }
 0x11f   : > { %5904 = vmatmul.mubr.msk.f32.gmra.mrb[24].mxu0 %vm398_vm1, %v3300_v27  ;;  %5599 = vmatprep.mubr.msk.f32.mxu1 %vm398_vm1, %v7231_v51  ;;  %v3309_v51 = vld [vmem:[%s6629_s8 + $0x135] sm:$0xff] }
 0x120   : > { %5906 = vmatprep.mubr.msk.f32.mxu0 %vm398_vm1, %v3301_v13  ;;  %6142 = vmatpush3.bf16.msra.mxu1 %v6710_v26  ;;  %v3306_v26 = vld [vmem:[%s6629_s8 + $0x11d] sm:$0xff]  ;;  %v2008_v13 = vld [vmem:[%s6629_s8 + $0x12b] sm:$0xff] }
 0x121   : > { %v3743_v27 = vld [vmem:[%s6629_s8 + $0x136] sm:$0xff] }
 0x122   : > { %5600 = vmatmul.mubr.msk.f32.gmra.mrb[8].mxu1 %vm398_vm1, %v7241_v55  ;;  %v3310_v55 = vld [vmem:[%s6629_s8 + $0x13d] sm:$0xff] }
 0x123   : > { %5907 = vmatmul.mubr.msk.f32.gmra.mrb[26].mxu0 %vm398_vm1, %v3302_v53  ;;  %5602 = vmatprep.mubr.msk.f32.mxu1 %vm398_vm1, %v7246_v58  ;;  %v3709_v58 = vld [vmem:[%s6629_s8 + $0x26] sm:$0xff]  ;;  %v3744_v53 = vld [vmem:[%s6629_s8 + $0x13e] sm:$0xff] }
 0x124   : > { %5909 = vmatprep.mubr.msk.f32.mxu0 %vm398_vm1, %v3303_v34 }
 0x126   : > { %5603 = vmatmul.mubr.msk.f32.gmra.mrb[10].mxu1 %vm398_vm1, %v7255_v63  ;;  %v3710_v63 = vld [vmem:[%s6629_s8 + $0x2e] sm:$0xff] }
 0x127   : > { %5910 = vmatmul.mubr.msk.f32.gmra.mrb[28].mxu0 %vm398_vm1, %v3304_v20  ;;  %5605 = vmatprep.mubr.msk.f32.mxu1 %vm398_vm1, %v7260_v3  ;;  %v3711_v3 = vld [vmem:[%s6629_s8 + $0x36] sm:$0xff] }
 0x128   : > { %5912 = vmatprep.mubr.msk.f32.mxu0 %vm398_vm1, %v3305_v39 }
 0x12a   : > { %5606 = vmatmul.mubr.msk.f32.gmra.mrb[12].mxu1 %vm398_vm1, %v7269_v7  ;;  %v3712_v7 = vld [vmem:[%s6629_s8 + $0x3e] sm:$0xff] }
 0x12b   : > { %5913 = vmatmul.mubr.msk.f32.gmra.mrb[30].mxu0 %vm398_vm1, %v3306_v26  ;;  %5608 = vmatprep.mubr.msk.f32.mxu1 %vm398_vm1, %v7274_v12  ;;  %v3713_v12 = vld [vmem:[%s6629_s8 + $0x46] sm:$0xff] }
 0x12c   : > { %5915 = vmatprep.mubr.msk.f32.mxu0 %vm398_vm1, %v3307_v41 }
 0x12e   : > { %5609 = vmatmul.mubr.msk.f32.gmra.mrb[14].mxu1 %vm398_vm1, %v7284_v17  ;;  %v3714_v17 = vld [vmem:[%s6629_s8 + $0x4e] sm:$0xff] }
 0x12f   : > { %5916 = vmatmul.mubr.msk.f32.gmra.mrb[32].mxu0 %vm398_vm1, %v3308_v48  ;;  %5611 = vmatprep.mubr.msk.f32.mxu1 %vm398_vm1, %v7289_v28  ;;  %v3715_v28 = vld [vmem:[%s6629_s8 + $0x56] sm:$0xff] }
 0x130   : > { %5918 = vmatprep.mubr.msk.f32.mxu0 %vm398_vm1, %v3309_v51 }
 0x132   : > { %5612 = vmatmul.mubr.msk.f32.gmra.mrb[16].mxu1 %vm398_vm1, %v7300_v31  ;;  %v3716_v31 = vld [vmem:[%s6629_s8 + $0x5e] sm:$0xff] }
 0x133   : > { %5919 = vmatmul.mubr.msk.f32.gmra.mrb[34].mxu0 %vm398_vm1, %v3310_v55  ;;  %5614 = vmatprep.mubr.msk.f32.mxu1 %vm398_vm1, %v7305_v35  ;;  %v3717_v35 = vld [vmem:[%s6629_s8 + $0x66] sm:$0xff] }
 0x134   : > { %5937 = vmatprep.mubr.msk.f32.mxu0 %vm398_vm1, %v3709_v58 }
 0x136   : > { %5615 = vmatmul.mubr.msk.f32.gmra.mrb[18].mxu1 %vm398_vm1, %v7316_v40  ;;  %v3721_v40 = vld [vmem:[%s6629_s8 + $0x86] sm:$0xff] }
 0x137   : > { %5938 = vmatmul.mubr.msk.f32.vlgmr.msra.gmra.mrb[0].mxu0 %vm398_vm1, %v3710_v63  ;;  %5617 = vmatprep.mubr.msk.f32.mxu1 %vm398_vm1, %v7322_v44  ;;  %v3723_v44 = vld [vmem:[%s6629_s8 + $0x96] sm:$0xff] }
 0x138   : > { %5940 = vmatprep.mubr.msk.f32.mxu0 %vm398_vm1, %v3711_v3 }
 0x13a   : > { %5618 = vmatmul.mubr.msk.f32.gmra.mrb[20].mxu1 %vm398_vm1, %v7333_v47  ;;  %v3726_v47 = vld [vmem:[%s6629_s8 + $0xae] sm:$0xff] }
 0x13b   : > { %5941 = vmatmul.mubr.msk.f32.gmra.mrb[2].mxu0 %vm398_vm1, %v3712_v7  ;;  %5620 = vmatprep.mubr.msk.f32.mxu1 %vm398_vm1, %v7338_v52  ;;  %v3727_v52 = vld [vmem:[%s6629_s8 + $0xb6] sm:$0xff] }
 0x13c   : > { %5943 = vmatprep.mubr.msk.f32.mxu0 %vm398_vm1, %v3713_v12 }
 0x13e   : > { %5621 = vmatmul.mubr.msk.f32.gmra.mrb[22].mxu1 %vm398_vm1, %v7347_v59  ;;  %v1993_v59 = vld [vmem:[%s6629_s8 + $0xb3] sm:$0xff] }
 0x13f   : > { %5944 = vmatmul.mubr.msk.f32.gmra.mrb[4].mxu0 %vm398_vm1, %v3714_v17  ;;  %5623 = vmatprep.mubr.msk.f32.mxu1 %vm398_vm1, %v7352_v54  ;;  %v1994_v54 = vld [vmem:[%s6629_s8 + $0xbb] sm:$0xff] }
 0x140   : > { %5946 = vmatprep.mubr.msk.f32.mxu0 %vm398_vm1, %v3715_v28 }
 0x142   : > { %5624 = vmatmul.mubr.msk.f32.gmra.mrb[24].mxu1 %vm398_vm1, %v7361_v2  ;;  %v1995_v2 = vld [vmem:[%s6629_s8 + $0xc3] sm:$0xff] }
 0x143   : > { %5947 = vmatmul.mubr.msk.f32.gmra.mrb[6].mxu0 %vm398_vm1, %v3716_v31  ;;  %5626 = vmatprep.mubr.msk.f32.mxu1 %vm398_vm1, %v7366_v6  ;;  %v1996_v6 = vld [vmem:[%s6629_s8 + $0xcb] sm:$0xff] }
 0x144   : > { %5949 = vmatprep.mubr.msk.f32.mxu0 %vm398_vm1, %v3717_v35 }
 0x146   : > { %5627 = vmatmul.mubr.msk.f32.gmra.mrb[26].mxu1 %vm398_vm1, %v7375_v11  ;;  %v1997_v11 = vld [vmem:[%s6629_s8 + $0xd3] sm:$0xff] }
 0x147   : > { %5950 = vmatmul.mubr.msk.f32.gmra.mrb[8].mxu0 %vm398_vm1, %v3718_v36  ;;  %5629 = vmatprep.mubr.msk.f32.mxu1 %vm398_vm1, %v7380_v14  ;;  %v1998_v14 = vld [vmem:[%s6629_s8 + $0xdb] sm:$0xff] }
 0x148   : > { %5952 = vmatprep.mubr.msk.f32.mxu0 %vm398_vm1, %v3719_v37 }
 0x14a   : > { %5630 = vmatmul.mubr.msk.f32.gmra.mrb[28].mxu1 %vm398_vm1, %v7389_v19  ;;  %v1999_v19 = vld [vmem:[%s6629_s8 + $0xe3] sm:$0xff] }
 0x14b   : > { %5953 = vmatmul.mubr.msk.f32.gmra.mrb[10].mxu0 %vm398_vm1, %v3720_v38  ;;  %5632 = vmatprep.mubr.msk.f32.mxu1 %vm398_vm1, %v7394_v5  ;;  %v2000_v5 = vld [vmem:[%s6629_s8 + $0xeb] sm:$0xff] }
 0x14c   : > { %5955 = vmatprep.mubr.msk.f32.mxu0 %vm398_vm1, %v3721_v40  ;;  %v4144_v38 = vld [vmem:[#allocation2 + $0x8] sm:$0xff] }
 0x14e   : > { %5633 = vmatmul.mubr.msk.f32.gmra.mrb[30].mxu1 %vm398_vm1, %v7403_v32  ;;  %v2001_v32 = vld [vmem:[%s6629_s8 + $0xf3] sm:$0xff] }
 0x14f   : > { %5956 = vmatmul.mubr.msk.f32.gmra.mrb[12].mxu0 %vm398_vm1, %v3722_v42  ;;  %5635 = vmatprep.mubr.msk.f32.mxu1 %vm398_vm1, %v7408_v21  ;;  %v2002_v21 = vld [vmem:[%s6629_s8 + $0xfb] sm:$0xff] }
 0x150   : > { %5958 = vmatprep.mubr.msk.f32.mxu0 %vm398_vm1, %v3723_v44  ;;  %v4143_v44 = vld [vmem:[#allocation2] sm:$0xff] }
 0x152   : > { %5636 = vmatmul.mubr.msk.f32.gmra.mrb[32].mxu1 %vm398_vm1, %v7417_v22  ;;  %v2003_v22 = vld [vmem:[%s6629_s8 + $0x103] sm:$0xff] }
 0x153   : > { %5959 = vmatmul.mubr.msk.f32.gmra.mrb[14].mxu0 %vm398_vm1, %v3724_v43  ;;  %5638 = vmatprep.mubr.msk.f32.mxu1 %vm398_vm1, %v1573_v45 }
 0x154   : > { %5961 = vmatprep.mubr.msk.f32.mxu0 %vm398_vm1, %v3725_v60 }
 0x156   : > { %5639 = vmatmul.mubr.msk.f32.gmra.mrb[34].mxu1 %vm398_vm1, %v1574_v46 }
 0x157   : > { %5962 = vmatmul.mubr.msk.f32.gmra.mrb[16].mxu0 %vm398_vm1, %v3726_v47  ;;  %5684 = vmatprep.mubr.msk.f32.mxu1 %vm398_vm1, %v1991_v50  ;;  %v4146_v47 = vld [vmem:[#allocation2 + $0x18] sm:$0xff] }
 0x158   : > { %5964 = vmatprep.mubr.msk.f32.mxu0 %vm398_vm1, %v3727_v52 }
 0x15a   : > { %5685 = vmatmul.mubr.msk.f32.vlgmr.msra.gmra.mrb[18].mxu1 %vm398_vm1, %v1992_v49  ;;  %v4145_v49 = vld [vmem:[#allocation2 + $0x10] sm:$0xff] }
 0x15b   : > { %5965 = vmatmul.mubr.msk.f32.gmra.mrb[18].mxu0 %vm398_vm1, %v3728_v57  ;;  %5687 = vmatprep.mubr.msk.f32.mxu1 %vm398_vm1, %v1993_v59 }
 0x15c   : > { %5967 = vmatprep.mubr.msk.f32.mxu0 %vm398_vm1, %v3729_v62 }
 0x15e   : > { %5688 = vmatmul.mubr.msk.f32.gmra.mrb[20].mxu1 %vm398_vm1, %v1994_v54 }
 0x15f   : > { %5968 = vmatmul.mubr.msk.f32.gmra.mrb[20].mxu0 %vm398_vm1, %v3730_v0  ;;  %5690 = vmatprep.mubr.msk.f32.mxu1 %vm398_vm1, %v1995_v2  ;;  %v4148_v0 = vld [vmem:[#allocation2 + $0x28] sm:$0xff] }
 0x160   : > { %5970 = vmatprep.mubr.msk.f32.mxu0 %vm398_vm1, %v3731_v4 }
 0x162   : > { %5691 = vmatmul.mubr.msk.f32.gmra.mrb[22].mxu1 %vm398_vm1, %v1996_v6  ;;  %v4147_v6 = vld [vmem:[#allocation2 + $0x20] sm:$0xff] }
 0x163   : > { %5971 = vmatmul.mubr.msk.f32.gmra.mrb[22].mxu0 %vm398_vm1, %v3732_v9  ;;  %5693 = vmatprep.mubr.msk.f32.mxu1 %vm398_vm1, %v1997_v11 }
 0x164   : > { %5973 = vmatprep.mubr.msk.f32.mxu0 %vm398_vm1, %v3733_v56 }
 0x166   : > { %5694 = vmatmul.mubr.msk.f32.gmra.mrb[24].mxu1 %vm398_vm1, %v1998_v14 }
 0x167   : > { %5974 = vmatmul.mubr.msk.f32.gmra.mrb[24].mxu0 %vm398_vm1, %v3734_v16  ;;  %5696 = vmatprep.mubr.msk.f32.mxu1 %vm398_vm1, %v1999_v19  ;;  %v4150_v16 = vld [vmem:[#allocation2 + $0x38] sm:$0xff] }
 0x168   : > { %5976 = vmatprep.mubr.msk.f32.mxu0 %vm398_vm1, %v3735_v1 }
 0x16a   : > { %5697 = vmatmul.mubr.msk.f32.gmra.mrb[26].mxu1 %vm398_vm1, %v2000_v5  ;;  %v4149_v5 = vld [vmem:[#allocation2 + $0x30] sm:$0xff] }
 0x16b   : > { %5977 = vmatmul.mubr.msk.f32.gmra.mrb[26].mxu0 %vm398_vm1, %v3736_v10  ;;  %5699 = vmatprep.mubr.msk.f32.mxu1 %vm398_vm1, %v2001_v32 }
 0x16c   : > { %5979 = vmatprep.mubr.msk.f32.mxu0 %vm398_vm1, %v3737_v15 }
 0x16e   : > { %5700 = vmatmul.mubr.msk.f32.gmra.mrb[28].mxu1 %vm398_vm1, %v2002_v21 }
 0x16f   : > { %5980 = vmatmul.mubr.msk.f32.gmra.mrb[28].mxu0 %vm398_vm1, %v3738_v23  ;;  %5702 = vmatprep.mubr.msk.f32.mxu1 %vm398_vm1, %v2003_v22  ;;  %v4152_v23 = vld [vmem:[#allocation2 + $0x48] sm:$0xff] }
 0x170   : > { %5982 = vmatprep.mubr.msk.f32.mxu0 %vm398_vm1, %v3739_v29 }
 0x172   : > { %5703 = vmatmul.mubr.msk.f32.gmra.mrb[30].mxu1 %vm398_vm1, %v2004_v30  ;;  %v4151_v30 = vld [vmem:[#allocation2 + $0x40] sm:$0xff] }
 0x173   : > { %5983 = vmatmul.mubr.msk.f32.gmra.mrb[30].mxu0 %vm398_vm1, %v3740_v25  ;;  %5705 = vmatprep.mubr.msk.f32.mxu1 %vm398_vm1, %v2005_v33 }
 0x174   : > { %5985 = vmatprep.mubr.msk.f32.mxu0 %vm398_vm1, %v3741_v61 }
 0x176   : > { %5706 = vmatmul.mubr.msk.f32.gmra.mrb[32].mxu1 %vm398_vm1, %v2006_v18 }
 0x177   : > { %5986 = vmatmul.mubr.msk.f32.gmra.mrb[32].mxu0 %vm398_vm1, %v3742_v8  ;;  %5708 = vmatprep.mubr.msk.f32.mxu1 %vm398_vm1, %v2007_v24  ;;  %v4154_v8 = vld [vmem:[#allocation2 + $0x58] sm:$0xff] }
 0x178   : > { %5988 = vmatprep.mubr.msk.f32.mxu0 %vm398_vm1, %v3743_v27 }
 0x17a   : > { %5709 = vmatmul.mubr.msk.f32.gmra.mrb[34].mxu1 %vm398_vm1, %v2008_v13  ;;  %v4153_v13 = vld [vmem:[#allocation2 + $0x50] sm:$0xff] }
 0x17b   : > { %5989 = vmatmul.mubr.msk.f32.gmra.mrb[34].mxu0 %vm398_vm1, %v3744_v53 }
 0x1e5   : > { %v5589_v34 = vpop.f32.mrb[0].mxu1 }
 0x1e6   : > { %v1758_v20 = vpop.f32.mrb[1].mxu1 }
 0x1e9   : > { %v5592_v39 = vpop.f32.mrb[2].mxu1 }
 0x1ea   : > { %v1768_v26 = vpop.f32.mrb[3].mxu1 }
 0x1ed   : > { %v5595_v41 = vpop.f32.mrb[4].mxu1 }
 0x1ee   : > { %v1778_v48 = vpop.f32.mrb[5].mxu1 }
 0x1f1   : > { %v5598_v51 = vpop.f32.mrb[6].mxu1 }
 0x1f2   : > { %v1788_v55 = vpop.f32.mrb[7].mxu1 }
 0x1f5   : > { %v5601_v58 = vpop.f32.mrb[8].mxu1 }
 0x1f6   : > { %v1798_v63 = vpop.f32.mrb[9].mxu1 }
 0x1f9   : > { %v5604_v3 = vpop.f32.mrb[10].mxu1 }
 0x1fa   : > { %v7647_v7 = vpop.f32.mrb[11].mxu1 }
 0x1fd   : > { %v7649_v12 = vpop.f32.mrb[12].mxu1 }
 0x1fe   : > { %v7651_v17 = vpop.f32.mrb[13].mxu1 }
 0x201   : > { %v7653_v28 = vpop.f32.mrb[14].mxu1 }
 0x202   : > { %v7655_v31 = vpop.f32.mrb[15].mxu1 }
 0x205   : > { %v7657_v35 = vpop.f32.mrb[16].mxu1 }
 0x206   : > { %v7659_v36 = vpop.f32.mrb[17].mxu1 }
 0x20a   : > { %v5939_v37 = vpop.f32.mrb[0].mxu0 }
 0x20b   : > { %v6143_v40 = vadd.f32 %v5939_v37, %v5589_v34  ;;  %v3928_v42 = vpop.f32.mrb[1].mxu0  ;;  %v4158_v37 = vld [vmem:[#allocation2 + $0x78] sm:$0xff] }
 0x20c   : > { %v6144_v43 = vadd.f32 %v3928_v42, %v1758_v20 }
 0x20d   : > { %v4180_v45 = vadd.f32 %v6143_v40, %v4144_v38  ;;  %v4157_v40 = vld [vmem:[#allocation2 + $0x70] sm:$0xff] }
 0x20e   : > { %v4179_v60 = vadd.f32 %v6144_v43, %v4143_v44  ;;  %v5942_v46 = vpop.f32.mrb[2].mxu0 }
 0x20f   : > { %4217 = vst.msk [vmem:[#allocation2 + $0x8] sm:$0xff] %vm4215_vm2, %v4180_v45  ;;  %v6145_v50 = vadd.f32 %v5942_v46, %v5592_v39  ;;  %v3938_v52 = vpop.f32.mrb[3].mxu0  ;;  %v4160_v45 = vld [vmem:[#allocation2 + $0x88] sm:$0xff]  ;;  %v4159_v46 = vld [vmem:[#allocation2 + $0x80] sm:$0xff] }
 0x210   : > { %4216 = vst.msk [vmem:[#allocation2] sm:$0xff] %vm4215_vm2, %v4179_v60  ;;  %v6146_v57 = vadd.f32 %v3938_v52, %v1768_v26  ;;  %v4156_v26 = vld [vmem:[#allocation2 + $0x68] sm:$0xff] }
 0x211   : > { %v4182_v59 = vadd.f32 %v6145_v50, %v4146_v47 }
 0x212   : > { %v4181_v62 = vadd.f32 %v6146_v57, %v4145_v49  ;;  %v5945_v54 = vpop.f32.mrb[4].mxu0  ;;  %v4162_v57 = vld [vmem:[#allocation2 + $0x98] sm:$0xff] }
 0x213   : > { %4219 = vst.msk [vmem:[#allocation2 + $0x18] sm:$0xff] %vm4215_vm2, %v4182_v59  ;;  %v6147_v2 = vadd.f32 %v5945_v54, %v5595_v41  ;;  %v3948_v4 = vpop.f32.mrb[5].mxu0  ;;  %v4161_v54 = vld [vmem:[#allocation2 + $0x90] sm:$0xff] }
 0x214   : > { %4218 = vst.msk [vmem:[#allocation2 + $0x10] sm:$0xff] %vm4215_vm2, %v4181_v62  ;;  %v6148_v9 = vadd.f32 %v3948_v4, %v1778_v48 }
 0x215   : > { %v4184_v11 = vadd.f32 %v6147_v2, %v4148_v0 }
 0x216   : > { %v4183_v56 = vadd.f32 %v6148_v9, %v4147_v6  ;;  %v5948_v14 = vpop.f32.mrb[6].mxu0  ;;  %v4164_v9 = vld [vmem:[#allocation2 + $0xa8] sm:$0xff] }
 0x217   : > { %4221 = vst.msk [vmem:[#allocation2 + $0x28] sm:$0xff] %vm4215_vm2, %v4184_v11  ;;  %v6149_v19 = vadd.f32 %v5948_v14, %v5598_v51  ;;  %v3958_v1 = vpop.f32.mrb[7].mxu0  ;;  %v4155_v51 = vld [vmem:[#allocation2 + $0x60] sm:$0xff] }
 0x218   : > { %4220 = vst.msk [vmem:[#allocation2 + $0x20] sm:$0xff] %vm4215_vm2, %v4183_v56  ;;  %v6150_v10 = vadd.f32 %v3958_v1, %v1788_v55  ;;  %v4163_v14 = vld [vmem:[#allocation2 + $0xa0] sm:$0xff] }
 0x219   : > { %v4186_v32 = vadd.f32 %v6149_v19, %v4150_v16 }
 0x21a   : > { %v4185_v15 = vadd.f32 %v6150_v10, %v4149_v5  ;;  %v5951_v21 = vpop.f32.mrb[8].mxu0 }
 0x21b   : > { %4223 = vst.msk [vmem:[#allocation2 + $0x38] sm:$0xff] %vm4215_vm2, %v4186_v32  ;;  %v6151_v22 = vadd.f32 %v5951_v21, %v5601_v58  ;;  %v3968_v29 = vpop.f32.mrb[9].mxu0  ;;  %v4166_v32 = vld [vmem:[#allocation2 + $0xb8] sm:$0xff] }
 0x21c   : > { %4222 = vst.msk [vmem:[#allocation2 + $0x30] sm:$0xff] %vm4215_vm2, %v4185_v15  ;;  %v6152_v25 = vadd.f32 %v3968_v29, %v1798_v63 }
 0x21d   : > { %v4188_v33 = vadd.f32 %v6151_v22, %v4152_v23  ;;  %v4165_v22 = vld [vmem:[#allocation2 + $0xb0] sm:$0xff] }
 0x21e   : > { %v4187_v61 = vadd.f32 %v6152_v25, %v4151_v30  ;;  %v5954_v18 = vpop.f32.mrb[10].mxu0 }
 0x21f   : > { %4225 = vst.msk [vmem:[#allocation2 + $0x48] sm:$0xff] %vm4215_vm2, %v4188_v33  ;;  %v6153_v24 = vadd.f32 %v5954_v18, %v5604_v3  ;;  %v3978_v27 = vpop.f32.mrb[11].mxu0  ;;  %v4168_v18 = vld [vmem:[#allocation2 + $0xc8] sm:$0xff] }
 0x220   : > { %4224 = vst.msk [vmem:[#allocation2 + $0x40] sm:$0xff] %vm4215_vm2, %v4187_v61  ;;  %v6154_v53 = vadd.f32 %v3978_v27, %v7647_v7 }
 0x221   : > { %v4190_v34 = vadd.f32 %v6153_v24, %v4154_v8 }
 0x222   : > { %v4189_v20 = vadd.f32 %v6154_v53, %v4153_v13  ;;  %v5957_v39 = vpop.f32.mrb[12].mxu0  ;;  %v4167_v13 = vld [vmem:[#allocation2 + $0xc0] sm:$0xff] }
 0x223   : > { %4227 = vst.msk [vmem:[#allocation2 + $0x58] sm:$0xff] %vm4215_vm2, %v4190_v34  ;;  %v6155_v41 = vadd.f32 %v5957_v39, %v7649_v12  ;;  %v3988_v48 = vpop.f32.mrb[13].mxu0 }
 0x224   : > { %4226 = vst.msk [vmem:[#allocation2 + $0x50] sm:$0xff] %vm4215_vm2, %v4189_v20  ;;  %v6156_v55 = vadd.f32 %v3988_v48, %v7651_v17 }
 0x225   : > { %v4192_v58 = vadd.f32 %v6155_v41, %v4156_v26  ;;  %v4170_v41 = vld [vmem:[#allocation2 + $0xd8] sm:$0xff] }
 0x226   : > { %v4191_v63 = vadd.f32 %v6156_v55, %v4155_v51  ;;  %v5960_v3 = vpop.f32.mrb[14].mxu0 }
 0x227   : > { %4229 = vst.msk [vmem:[#allocation2 + $0x68] sm:$0xff] %vm4215_vm2, %v4192_v58  ;;  %v6157_v7 = vadd.f32 %v5960_v3, %v7653_v28  ;;  %v3998_v38 = vpop.f32.mrb[15].mxu0  ;;  %v4169_v58 = vld [vmem:[#allocation2 + $0xd0] sm:$0xff] }
 0x228   : > { %4228 = vst.msk [vmem:[#allocation2 + $0x60] sm:$0xff] %vm4215_vm2, %v4191_v63  ;;  %v6158_v12 = vadd.f32 %v3998_v38, %v7655_v31 }
 0x229   : > { %v4194_v42 = vadd.f32 %v6157_v7, %v4158_v37 }
 0x22a   : > { %v4193_v44 = vadd.f32 %v6158_v12, %v4157_v40  ;;  %v5963_v43 = vpop.f32.mrb[16].mxu0  ;;  %v4172_v40 = vld [vmem:[#allocation2 + $0xe8] sm:$0xff] }
 0x22b   : > { %4231 = vst.msk [vmem:[#allocation2 + $0x78] sm:$0xff] %vm4215_vm2, %v4194_v42  ;;  %v6159_v17 = vadd.f32 %v5963_v43, %v7657_v35  ;;  %v4008_v60 = vpop.f32.mrb[17].mxu0  ;;  %v4171_v43 = vld [vmem:[#allocation2 + $0xe0] sm:$0xff] }
 0x22c   : > { %4230 = vst.msk [vmem:[#allocation2 + $0x70] sm:$0xff] %vm4215_vm2, %v4193_v44  ;;  %v6160_v28 = vadd.f32 %v4008_v60, %v7659_v36 }
 0x22d   : > { %v4196_v47 = vadd.f32 %v6159_v17, %v4160_v45  ;;  %v5686_v50 = vpop.f32.mrb[18].mxu1 }
 0x22e   : > { %v4195_v52 = vadd.f32 %v6160_v28, %v4159_v46  ;;  %v5966_v49 = vpop.f32.mrb[18].mxu0  ;;  %v2282_v31 = vpop.f32.mrb[19].mxu1 }
 0x22f   : > { %4233 = vst.msk [vmem:[#allocation2 + $0x88] sm:$0xff] %vm4215_vm2, %v4196_v47  ;;  %v6161_v59 = vadd.f32 %v5966_v49, %v5686_v50  ;;  %v4018_v62 = vpop.f32.mrb[19].mxu0  ;;  %v4174_v47 = vld [vmem:[#allocation2 + $0xf8] sm:$0xff] }
 0x230   : > { %4232 = vst.msk [vmem:[#allocation2 + $0x80] sm:$0xff] %vm4215_vm2, %v4195_v52  ;;  %v6162_v35 = vadd.f32 %v4018_v62, %v2282_v31 }
 0x231   : > { %v4198_v0 = vadd.f32 %v6161_v59, %v4162_v57  ;;  %v5689_v2 = vpop.f32.mrb[20].mxu1  ;;  %v4173_v57 = vld [vmem:[#allocation2 + $0xf0] sm:$0xff] }
 0x232   : > { %v4197_v4 = vadd.f32 %v6162_v35, %v4161_v54  ;;  %v5969_v6 = vpop.f32.mrb[20].mxu0  ;;  %v2292_v36 = vpop.f32.mrb[21].mxu1 }
 0x233   : > { %4235 = vst.msk [vmem:[#allocation2 + $0x98] sm:$0xff] %vm4215_vm2, %v4198_v0  ;;  %v6163_v11 = vadd.f32 %v5969_v6, %v5689_v2  ;;  %v4028_v56 = vpop.f32.mrb[21].mxu0  ;;  %v4176_v0 = vld [vmem:[#allocation2 + $0x108] sm:$0xff] }
 0x234   : > { %4234 = vst.msk [vmem:[#allocation2 + $0x90] sm:$0xff] %vm4215_vm2, %v4197_v4  ;;  %v6164_v16 = vadd.f32 %v4028_v56, %v2292_v36 }
 0x235   : > { %v4200_v19 = vadd.f32 %v6163_v11, %v4164_v9  ;;  %v5692_v1 = vpop.f32.mrb[22].mxu1  ;;  %v4175_v9 = vld [vmem:[#allocation2 + $0x100] sm:$0xff] }
 0x236   : > { %v4199_v5 = vadd.f32 %v6164_v16, %v4163_v14  ;;  %v5972_v10 = vpop.f32.mrb[22].mxu0  ;;  %v2302_v15 = vpop.f32.mrb[23].mxu1 }
 0x237   : > { %4237 = vst.msk [vmem:[#allocation2 + $0xa8] sm:$0xff] %vm4215_vm2, %v4200_v19  ;;  %v6165_v21 = vadd.f32 %v5972_v10, %v5692_v1  ;;  %v4038_v23 = vpop.f32.mrb[23].mxu0  ;;  %v4178_v19 = vld [vmem:[#allocation2 + $0x118] sm:$0xff] }
 0x238   : > { %4236 = vst.msk [vmem:[#allocation2 + $0xa0] sm:$0xff] %vm4215_vm2, %v4199_v5  ;;  %v6166_v29 = vadd.f32 %v4038_v23, %v2302_v15 }
 0x239   : > { %v4202_v30 = vadd.f32 %v6165_v21, %v4166_v32  ;;  %v5695_v25 = vpop.f32.mrb[24].mxu1  ;;  %v4177_v32 = vld [vmem:[#allocation2 + $0x110] sm:$0xff] }
 0x23a   : > { %v4201_v33 = vadd.f32 %v6166_v29, %v4165_v22  ;;  %v5975_v61 = vpop.f32.mrb[24].mxu0  ;;  %v2312_v8 = vpop.f32.mrb[25].mxu1  ;;  %v4256_v22 = vld [vmem:[#allocation2] sm:$0xff] (!%p4960_p11) }
 0x23b   : > { %4239 = vst.msk [vmem:[#allocation2 + $0xb8] sm:$0xff] %vm4215_vm2, %v4202_v30  ;;  %v6167_v24 = vadd.f32 %v5975_v61, %v5695_v25  ;;  %v4048_v27 = vpop.f32.mrb[25].mxu0  ;;  %v7708_v29 = vld [vmem:[%s7882_s2] ss:$0 sm:$0xff] (!%p4960_p11)  ;;  %v4258_v61 = vld [vmem:[#allocation2 + $0x10] sm:$0xff] (!%p4960_p11) }
 0x23c   : > { %4238 = vst.msk [vmem:[#allocation2 + $0xb0] sm:$0xff] %vm4215_vm2, %v4201_v33  ;;  %v6168_v53 = vadd.f32 %v4048_v27, %v2312_v8  ;;  %v7713_v30 = vld [vmem:[%s7883_s3] ss:$0 sm:$0xff] (!%p4960_p11)  ;;  %v4299_v25 = vmul.f32 (!%p4960_p11), %v7708_v29, %v4256_v22  ;;  %v4257_v33 = vld [vmem:[#allocation2 + $0x8] sm:$0xff] (!%p4960_p11) }
 0x23d   : > { %v4204_v34 = vadd.f32 %v6167_v24, %v4168_v18  ;;  %v5698_v20 = vpop.f32.mrb[26].mxu1  ;;  %v4259_v18 = vld [vmem:[#allocation2 + $0x18] sm:$0xff] (!%p4960_p11)  ;;  %v4300_v8 = vmul.f32 (!%p4960_p11), %v7708_v29, %v4257_v33  ;;  %v4301_v24 = vmul.f32 (!%p4960_p11), %v7708_v29, %v4258_v61 }
 0x23e   : > { %v4203_v39 = vadd.f32 %v6168_v53, %v4167_v13  ;;  %v5978_v26 = vpop.f32.mrb[26].mxu0  ;;  %v2322_v48 = vpop.f32.mrb[27].mxu1  ;;  %v4302_v27 = vmul.f32 (!%p4960_p11), %v7708_v29, %v4259_v18  ;;  %v4260_v13 = vld [vmem:[#allocation2 + $0x20] sm:$0xff] (!%p4960_p11)  ;;  %v4261_v53 = vld [vmem:[#allocation2 + $0x28] sm:$0xff] (!%p4960_p11) }
 0x23f   : > { %4241 = vst.msk [vmem:[#allocation2 + $0xc8] sm:$0xff] %vm4215_vm2, %v4204_v34  ;;  %v6169_v51 = vadd.f32 %v5978_v26, %v5698_v20  ;;  %v4058_v55 = vpop.f32.mrb[27].mxu0  ;;  %v4262_v34 = vld [vmem:[#allocation2 + $0x30] sm:$0xff] (!%p4960_p11)  ;;  %v4342_v20 = vadd.f32 (!%p4960_p11), %v7713_v30, %v4299_v25  ;;  %v4304_v26 = vmul.f32 (!%p4960_p11), %v7708_v29, %v4261_v53  ;;  %v4276_v33 = vld [vmem:[#allocation2 + $0xa0] sm:$0xff] (!%p4960_p11)  ;;  %v4277_v61 = vld [vmem:[#allocation2 + $0xa8] sm:$0xff] (!%p4960_p11) }
 0x240   : > { %4240 = vst.msk [vmem:[#allocation2 + $0xc0] sm:$0xff] %vm4215_vm2, %v4203_v39  ;;  %v6170_v63 = vadd.f32 %v4058_v55, %v2322_v48  ;;  %v4303_v39 = vmul.f32 (!%p4960_p11), %v7708_v29, %v4260_v13  ;;  %v4263_v48 = vld [vmem:[#allocation2 + $0x38] sm:$0xff] (!%p4960_p11)  ;;  %v4344_v55 = vadd.f32 (!%p4960_p11), %v7713_v30, %v4301_v24 }
 0x241   : > { %v4206_v3 = vadd.f32 %v6169_v51, %v4170_v41  ;;  %v5701_v37 = vpop.f32.mrb[28].mxu1  ;;  %v4305_v41 = vmul.f32 (!%p4960_p11), %v7708_v29, %v4262_v34  ;;  %v4343_v51 = vadd.f32 (!%p4960_p11), %v7713_v30, %v4300_v8 }
 0x242   : > { %v4205_v7 = vadd.f32 %v6170_v63, %v4169_v58  ;;  %v5981_v38 = vpop.f32.mrb[28].mxu0  ;;  %v2332_v12 = vpop.f32.mrb[29].mxu1  ;;  %v4345_v58 = vadd.f32 (!%p4960_p11), %v7713_v30, %v4302_v27  ;;  %v4306_v63 = vmul.f32 (!%p4960_p11), %v7708_v29, %v4263_v48  ;;  %v4279_v53 = vld [vmem:[#allocation2 + $0xb8] sm:$0xff] (!%p4960_p11)  ;;  %v4319_v48 = vmul.f32 (!%p4960_p11), %v7708_v29, %v4276_v33 }
 0x243   : > { %4243 = vst.msk [vmem:[#allocation2 + $0xd8] sm:$0xff] %vm4215_vm2, %v4206_v3  ;;  %v6171_v42 = vadd.f32 %v5981_v38, %v5701_v37  ;;  %v4068_v44 = vpop.f32.mrb[29].mxu0  ;;  %v4264_v3 = vld [vmem:[#allocation2 + $0x40] sm:$0xff] (!%p4960_p11)  ;;  %v4378_v37 = vmax.f32 (!%p4960_p11), %v4342_v20, 0.0  ;;  %v4347_v38 = vadd.f32 (!%p4960_p11), %v7713_v30, %v4304_v26  ;;  %v4278_v18 = vld [vmem:[#allocation2 + $0xb0] sm:$0xff] (!%p4960_p11) }
 0x244   : > { %4242 = vst.msk [vmem:[#allocation2 + $0xd0] sm:$0xff] %vm4215_vm2, %v4205_v7  ;;  %v6172_v45 = vadd.f32 %v4068_v44, %v2332_v12  ;;  %v4346_v7 = vadd.f32 (!%p4960_p11), %v7713_v30, %v4303_v39  ;;  %v4265_v12 = vld [vmem:[#allocation2 + $0x48] sm:$0xff] (!%p4960_p11)  ;;  %v4267_v44 = vld [vmem:[#allocation2 + $0x58] sm:$0xff] (!%p4960_p11) }
 0x245   : > { %v4208_v17 = vadd.f32 %v6171_v42, %v4172_v40  ;;  %v5704_v60 = vpop.f32.mrb[30].mxu1  ;;  %v4348_v40 = vadd.f32 (!%p4960_p11), %v7713_v30, %v4305_v41  ;;  %v4266_v42 = vld [vmem:[#allocation2 + $0x50] sm:$0xff] (!%p4960_p11)  ;;  %4414 = vst.msk [vmem:[%s6640_s27] sm:$0xff] (!%p4960_p11), %vm4215_vm2, %v4378_v37  ;;  %v4322_v37 = vmul.f32 (!%p4960_p11), %v7708_v29, %v4279_v53 }
 0x246   : > { %v4207_v46 = vadd.f32 %v6172_v45, %v4171_v43  ;;  %v5984_v28 = vpop.f32.mrb[30].mxu0  ;;  %v2342_v50 = vpop.f32.mrb[31].mxu1  ;;  %v4379_v43 = vmax.f32 (!%p4960_p11), %v4343_v51, 0.0  ;;  %v4380_v45 = vmax.f32 (!%p4960_p11), %v4344_v55, 0.0  ;;  %v4320_v51 = vmul.f32 (!%p4960_p11), %v7708_v29, %v4277_v61 }
 0x247   : > { %4245 = vst.msk [vmem:[#allocation2 + $0xe8] sm:$0xff] %vm4215_vm2, %v4208_v17  ;;  %v6173_v52 = vadd.f32 %v5984_v28, %v5704_v60  ;;  %v4078_v49 = vpop.f32.mrb[31].mxu0  ;;  %v4381_v17 = vmax.f32 (!%p4960_p11), %v4345_v58, 0.0  ;;  %v4349_v60 = vadd.f32 (!%p4960_p11), %v7713_v30, %v4306_v63  ;;  %v4269_v28 = vld [vmem:[#allocation2 + $0x68] sm:$0xff] (!%p4960_p11)  ;;  %v4321_v55 = vmul.f32 (!%p4960_p11), %v7708_v29, %v4278_v18 }
 0x248   : > { %4244 = vst.msk [vmem:[#allocation2 + $0xe0] sm:$0xff] %vm4215_vm2, %v4207_v46  ;;  %v6174_v31 = vadd.f32 %v4078_v49, %v2342_v50  ;;  %v4268_v46 = vld [vmem:[#allocation2 + $0x60] sm:$0xff] (!%p4960_p11)  ;;  %v4382_v50 = vmax.f32 (!%p4960_p11), %v4346_v7, 0.0  ;;  %v4384_v49 = vmax.f32 (!%p4960_p11), %v4348_v40, 0.0  ;;  %4415 = vst.msk [vmem:[%s6640_s27 + $0x8] sm:$0xff] (!%p4960_p11), %vm4215_vm2, %v4379_v43  ;;  %v4362_v40 = vadd.f32 (!%p4960_p11), %v7713_v30, %v4319_v48 }
 0x249   : > { %v4210_v59 = vadd.f32 %v6173_v52, %v4174_v47  ;;  %v5707_v62 = vpop.f32.mrb[32].mxu1  ;;  %v4270_v47 = vld [vmem:[#allocation2 + $0x70] sm:$0xff] (!%p4960_p11)  ;;  %v4383_v52 = vmax.f32 (!%p4960_p11), %v4347_v38, 0.0  ;;  %4416 = vst.msk [vmem:[%s6640_s27 + $0x10] sm:$0xff] (!%p4960_p11), %vm4215_vm2, %v4380_v45  ;;  %4417 = vst.msk [vmem:[%s6640_s27 + $0x18] sm:$0xff] (!%p4960_p11), %vm4215_vm2, %v4381_v17  ;;  %v4280_v7 = vld [vmem:[#allocation2 + $0xc0] sm:$0xff] (!%p4960_p11) }
 0x24a   : > { %v4209_v54 = vadd.f32 %v6174_v31, %v4173_v57  ;;  %v5987_v35 = vpop.f32.mrb[32].mxu0  ;;  %v2352_v2 = vpop.f32.mrb[33].mxu1  ;;  %v4307_v57 = vmul.f32 (!%p4960_p11), %v7708_v29, %v4264_v3  ;;  %v4271_v31 = vld [vmem:[#allocation2 + $0x78] sm:$0xff] (!%p4960_p11)  ;;  %4418 = vst.msk [vmem:[%s6640_s27 + $0x20] sm:$0xff] (!%p4960_p11), %vm4215_vm2, %v4382_v50  ;;  %4420 = vst.msk [vmem:[%s6640_s27 + $0x30] sm:$0xff] (!%p4960_p11), %vm4215_vm2, %v4384_v49  ;;  %v4398_v49 = vmax.f32 (!%p4960_p11), %v4362_v40, 0.0 }
 0x24b   : > { %4247 = vst.msk [vmem:[#allocation2 + $0xf8] sm:$0xff] %vm4215_vm2, %v4210_v59  ;;  %v6175_v4 = vadd.f32 %v5987_v35, %v5707_v62  ;;  %v4088_v6 = vpop.f32.mrb[33].mxu0  ;;  %v4385_v59 = vmax.f32 (!%p4960_p11), %v4349_v60, 0.0  ;;  %v4308_v62 = vmul.f32 (!%p4960_p11), %v7708_v29, %v4265_v12  ;;  %v4310_v35 = vmul.f32 (!%p4960_p11), %v7708_v29, %v4267_v44  ;;  %4419 = vst.msk [vmem:[%s6640_s27 + $0x28] sm:$0xff] (!%p4960_p11), %vm4215_vm2, %v4383_v52  ;;  %v4281_v44 = vld [vmem:[#allocation2 + $0xc8] sm:$0xff] (!%p4960_p11)  ;;  %v4282_v43 = vld [vmem:[#allocation2 + $0xd0] sm:$0xff] (!%p4960_p11) }
 0x24c   : > { %4246 = vst.msk [vmem:[#allocation2 + $0xf0] sm:$0xff] %vm4215_vm2, %v4209_v54  ;;  %v6176_v36 = vadd.f32 %v4088_v6, %v2352_v2  ;;  %v4309_v54 = vmul.f32 (!%p4960_p11), %v7708_v29, %v4266_v42  ;;  %v4311_v2 = vmul.f32 (!%p4960_p11), %v7708_v29, %v4268_v46  ;;  %v4313_v6 = vmul.f32 (!%p4960_p11), %v7708_v29, %v4270_v47  ;;  %v4283_v45 = vld [vmem:[#allocation2 + $0xd8] sm:$0xff] (!%p4960_p11) }
 0x24d   : > { %v4212_v11 = vadd.f32 %v6175_v4, %v4176_v0  ;;  %v5710_v56 = vpop.f32.mrb[34].mxu1  ;;  %v4350_v0 = vadd.f32 (!%p4960_p11), %v7713_v30, %v4307_v57  ;;  %v4312_v4 = vmul.f32 (!%p4960_p11), %v7708_v29, %v4269_v28  ;;  %4421 = vst.msk [vmem:[%s6640_s27 + $0x38] sm:$0xff] (!%p4960_p11), %vm4215_vm2, %v4385_v59  ;;  %v4363_v12 = vadd.f32 (!%p4960_p11), %v7713_v30, %v4320_v51 }
 0x24e   : > { %v4211_v14 = vadd.f32 %v6176_v36, %v4175_v9  ;;  %v5990_v16 = vpop.f32.mrb[34].mxu0  ;;  %v2362_v1 = vpop.f32.mrb[35].mxu1  ;;  %4255 = sbr.rel (%p4960_p11) target bundleno = 613 (0x265), region = 44  ;;  %v4351_v9 = vadd.f32 (!%p4960_p11), %v7713_v30, %v4308_v62  ;;  %v4352_v36 = vadd.f32 (!%p4960_p11), %v7713_v30, %v4309_v54  ;;  %v4364_v42 = vadd.f32 (!%p4960_p11), %v7713_v30, %v4321_v55  ;;  %v4285_v50 = vld [vmem:[#allocation2 + $0xe8] sm:$0xff] (!%p4960_p11)  ;;  %4434 = vst.msk [vmem:[%s6640_s27 + $0xa0] sm:$0xff] (!%p4960_p11), %vm4215_vm2, %v4398_v49 }
 0x24f   : > { %4249 = vst.msk [vmem:[#allocation2 + $0x108] sm:$0xff] %vm4215_vm2, %v4212_v11  ;;  %v6177_v5 = vadd.f32 %v5990_v16, %v5710_v56  ;;  %v4098_v10 = vpop.f32.mrb[35].mxu0  ;;  %v4353_v11 = vadd.f32 (!%p4960_p11), %v7713_v30, %v4310_v35  ;;  %v4314_v56 = vmul.f32 (!%p4960_p11), %v7708_v29, %v4271_v31  ;;  %v4386_v16 = vmax.f32 (!%p4960_p11), %v4350_v0, 0.0  ;;  %v4284_v47 = vld [vmem:[#allocation2 + $0xe0] sm:$0xff] (!%p4960_p11) }
 0x250   : > { %4248 = vst.msk [vmem:[#allocation2 + $0x100] sm:$0xff] %vm4215_vm2, %v4211_v14  ;;  %v6178_v15 = vadd.f32 %v4098_v10, %v2362_v1  ;;  %v4272_v14 = vld [vmem:[#allocation2 + $0x80] sm:$0xff] (!%p4960_p11)  ;;  %v4355_v1 = vadd.f32 (!%p4960_p11), %v7713_v30, %v4312_v4  ;;  %v4273_v10 = vld [vmem:[#allocation2 + $0x88] sm:$0xff] (!%p4960_p11)  ;;  %v4365_v28 = vadd.f32 (!%p4960_p11), %v7713_v30, %v4322_v37  ;;  %v4399_v57 = vmax.f32 (!%p4960_p11), %v4363_v12, 0.0 }
 0x251   : > { %v4214_v21 = vadd.f32 %v6177_v5, %v4178_v19  ;;  %v4354_v19 = vadd.f32 (!%p4960_p11), %v7713_v30, %v4311_v2  ;;  %v4356_v5 = vadd.f32 (!%p4960_p11), %v7713_v30, %v4313_v6  ;;  %v4389_v22 = vmax.f32 (!%p4960_p11), %v4353_v11, 0.0  ;;  %4422 = vst.msk [vmem:[%s6640_s27 + $0x40] sm:$0xff] (!%p4960_p11), %vm4215_vm2, %v4386_v16 }
 0x252   : > { %v4213_v23 = vadd.f32 %v6178_v15, %v4177_v32  ;;  %v4274_v32 = vld [vmem:[#allocation2 + $0x90] sm:$0xff] (!%p4960_p11)  ;;  %v4275_v15 = vld [vmem:[#allocation2 + $0x98] sm:$0xff] (!%p4960_p11)  ;;  %v4357_v25 = vadd.f32 (!%p4960_p11), %v7713_v30, %v4314_v56  ;;  %v4391_v24 = vmax.f32 (!%p4960_p11), %v4355_v1, 0.0  ;;  %v4315_v13 = vmul.f32 (!%p4960_p11), %v7708_v29, %v4272_v14  ;;  %4435 = vst.msk [vmem:[%s6640_s27 + $0xa8] sm:$0xff] (!%p4960_p11), %vm4215_vm2, %v4399_v57 }
 0x253   : > { %4251 = vst.msk [vmem:[#allocation2 + $0x118] sm:$0xff] %vm4215_vm2, %v4214_v21  ;;  %v4387_v21 = vmax.f32 (!%p4960_p11), %v4351_v9, 0.0  ;;  %v4390_v8 = vmax.f32 (!%p4960_p11), %v4354_v19, 0.0  ;;  %v4392_v27 = vmax.f32 (!%p4960_p11), %v4356_v5, 0.0  ;;  %4425 = vst.msk [vmem:[%s6640_s27 + $0x58] sm:$0xff] (!%p4960_p11), %vm4215_vm2, %v4389_v22  ;;  %v4316_v20 = vmul.f32 (!%p4960_p11), %v7708_v29, %v4273_v10  ;;  %v4286_v52 = vld [vmem:[#allocation2 + $0xf0] sm:$0xff] (!%p4960_p11) }
 0x254   : > { %4250 = vst.msk [vmem:[#allocation2 + $0x110] sm:$0xff] %vm4215_vm2, %v4213_v23  ;;  %v4388_v23 = vmax.f32 (!%p4960_p11), %v4352_v36, 0.0  ;;  %v4393_v34 = vmax.f32 (!%p4960_p11), %v4357_v25, 0.0  ;;  %v4317_v39 = vmul.f32 (!%p4960_p11), %v7708_v29, %v4274_v32  ;;  %v4318_v26 = vmul.f32 (!%p4960_p11), %v7708_v29, %v4275_v15  ;;  %4427 = vst.msk [vmem:[%s6640_s27 + $0x68] sm:$0xff] (!%p4960_p11), %vm4215_vm2, %v4391_v24  ;;  %v4287_v62 = vld [vmem:[#allocation2 + $0xf8] sm:$0xff] (!%p4960_p11) }
 0x255   : > { %4423 = vst.msk [vmem:[%s6640_s27 + $0x48] sm:$0xff] %vm4215_vm2, %v4387_v21  ;;  %4426 = vst.msk [vmem:[%s6640_s27 + $0x60] sm:$0xff] %vm4215_vm2, %v4390_v8  ;;  %v4358_v41 = vadd.f32 %v7713_v30, %v4315_v13  ;;  %v4359_v58 = vadd.f32 %v7713_v30, %v4316_v20  ;;  %v4400_v31 = vmax.f32 %v4364_v42, 0.0  ;;  %v4323_v59 = vmul.f32 %v7708_v29, %v4280_v7 }
 0x256   : > { %4424 = vst.msk [vmem:[%s6640_s27 + $0x50] sm:$0xff] %vm4215_vm2, %v4388_v23  ;;  %4428 = vst.msk [vmem:[%s6640_s27 + $0x70] sm:$0xff] %vm4215_vm2, %v4392_v27  ;;  %v4360_v63 = vadd.f32 %v7713_v30, %v4317_v39  ;;  %v4361_v3 = vadd.f32 %v7713_v30, %v4318_v26  ;;  %v4401_v54 = vmax.f32 %v4365_v28, 0.0  ;;  %v4324_v35 = vmul.f32 %v7708_v29, %v4281_v44  ;;  %v4289_v15 = vld [vmem:[#allocation2 + $0x108] sm:$0xff] }
 0x257   : > { %4429 = vst.msk [vmem:[%s6640_s27 + $0x78] sm:$0xff] %vm4215_vm2, %v4393_v34  ;;  %v4394_v38 = vmax.f32 %v4358_v41, 0.0  ;;  %v4395_v17 = vmax.f32 %v4359_v58, 0.0  ;;  %v4325_v0 = vmul.f32 %v7708_v29, %v4282_v43  ;;  %v4326_v2 = vmul.f32 %v7708_v29, %v4283_v45  ;;  %4436 = vst.msk [vmem:[%s6640_s27 + $0xb0] sm:$0xff] %vm4215_vm2, %v4400_v31  ;;  %v4288_v19 = vld [vmem:[#allocation2 + $0x100] sm:$0xff] }
 0x258   : > { %v4396_v60 = vmax.f32 %v4360_v63, 0.0  ;;  %v4397_v46 = vmax.f32 %v4361_v3, 0.0  ;;  %v4366_v4 = vadd.f32 %v7713_v30, %v4323_v59  ;;  %v4327_v6 = vmul.f32 %v7708_v29, %v4284_v47  ;;  %4437 = vst.msk [vmem:[%s6640_s27 + $0xb8] sm:$0xff] %vm4215_vm2, %v4401_v54 }
 0x259   : > { %4430 = vst.msk [vmem:[%s6640_s27 + $0x80] sm:$0xff] %vm4215_vm2, %v4394_v38  ;;  %4431 = vst.msk [vmem:[%s6640_s27 + $0x88] sm:$0xff] %vm4215_vm2, %v4395_v17  ;;  %v4328_v9 = vmul.f32 %v7708_v29, %v4285_v50  ;;  %v4329_v36 = vmul.f32 %v7708_v29, %v4286_v52  ;;  %v4367_v11 = vadd.f32 %v7713_v30, %v4324_v35 }
 0x25a   : > { %4432 = vst.msk [vmem:[%s6640_s27 + $0x90] sm:$0xff] %vm4215_vm2, %v4396_v60  ;;  %4433 = vst.msk [vmem:[%s6640_s27 + $0x98] sm:$0xff] %vm4215_vm2, %v4397_v46  ;;  %v4368_v56 = vadd.f32 %v7713_v30, %v4325_v0  ;;  %v4369_v14 = vadd.f32 %v7713_v30, %v4326_v2  ;;  %v4330_v16 = vmul.f32 %v7708_v29, %v4287_v62  ;;  %v4402_v1 = vmax.f32 %v4366_v4, 0.0  ;;  %v4291_v23 = vld [vmem:[#allocation2 + $0x118] sm:$0xff] }
 0x25b   : > { %v4370_v5 = vadd.f32 %v7713_v30, %v4327_v6  ;;  %v4371_v10 = vadd.f32 %v7713_v30, %v4328_v9  ;;  %v4372_v32 = vadd.f32 %v7713_v30, %v4329_v36  ;;  %v4290_v21 = vld [vmem:[#allocation2 + $0x110] sm:$0xff]  ;;  %v4403_v22 = vmax.f32 %v4367_v11, 0.0 }
 0x25c   : > { %v4404_v25 = vmax.f32 %v4368_v56, 0.0  ;;  %v4405_v33 = vmax.f32 %v4369_v14, 0.0  ;;  %v4373_v61 = vadd.f32 %v7713_v30, %v4330_v16  ;;  %4438 = vst.msk [vmem:[%s6640_s27 + $0xc0] sm:$0xff] %vm4215_vm2, %v4402_v1  ;;  %v4331_v27 = vmul.f32 %v7708_v29, %v4288_v19 }
 0x25d   : > { %v4406_v18 = vmax.f32 %v4370_v5, 0.0  ;;  %v4407_v8 = vmax.f32 %v4371_v10, 0.0  ;;  %v4408_v24 = vmax.f32 %v4372_v32, 0.0  ;;  %4439 = vst.msk [vmem:[%s6640_s27 + $0xc8] sm:$0xff] %vm4215_vm2, %v4403_v22  ;;  %v4332_v53 = vmul.f32 %v7708_v29, %v4289_v15 }
 0x25e   : > { %4440 = vst.msk [vmem:[%s6640_s27 + $0xd0] sm:$0xff] %vm4215_vm2, %v4404_v25  ;;  %4441 = vst.msk [vmem:[%s6640_s27 + $0xd8] sm:$0xff] %vm4215_vm2, %v4405_v33  ;;  %v4409_v13 = vmax.f32 %v4373_v61, 0.0  ;;  %v4333_v34 = vmul.f32 %v7708_v29, %v4290_v21  ;;  %v4334_v20 = vmul.f32 %v7708_v29, %v4291_v23  ;;  %v4374_v39 = vadd.f32 %v7713_v30, %v4331_v27 }
 0x25f   : > { %4442 = vst.msk [vmem:[%s6640_s27 + $0xe0] sm:$0xff] %vm4215_vm2, %v4406_v18  ;;  %4443 = vst.msk [vmem:[%s6640_s27 + $0xe8] sm:$0xff] %vm4215_vm2, %v4407_v8  ;;  %v4375_v26 = vadd.f32 %v7713_v30, %v4332_v53 }
 0x260   : > { %4444 = vst.msk [vmem:[%s6640_s27 + $0xf0] sm:$0xff] %vm4215_vm2, %v4408_v24  ;;  %4445 = vst.msk [vmem:[%s6640_s27 + $0xf8] sm:$0xff] %vm4215_vm2, %v4409_v13  ;;  %v4376_v41 = vadd.f32 %v7713_v30, %v4333_v34  ;;  %v4377_v48 = vadd.f32 %v7713_v30, %v4334_v20  ;;  %v4410_v51 = vmax.f32 %v4374_v39, 0.0 }
 0x261   : > { %v4411_v55 = vmax.f32 %v4375_v26, 0.0 }
 0x262   : > { %v4412_v29 = vmax.f32 %v4376_v41, 0.0  ;;  %v4413_v58 = vmax.f32 %v4377_v48, 0.0  ;;  %4446 = vst.msk [vmem:[%s6640_s27 + $0x100] sm:$0xff] %vm4215_vm2, %v4410_v51 }
 0x263   : > { %4447 = vst.msk [vmem:[%s6640_s27 + $0x108] sm:$0xff] %vm4215_vm2, %v4411_v55 }
 0x264   : > { %4448 = vst.msk [vmem:[%s6640_s27 + $0x110] sm:$0xff] %vm4215_vm2, %v4412_v29  ;;  %4449 = vst.msk [vmem:[%s6640_s27 + $0x118] sm:$0xff] %vm4215_vm2, %v4413_v58 }
 0x265 PF: > { %s14_s21 = sadd.s32 1, %s6547_s21   ;;  %s7886_s29 = sld [smem:[#allocation3_spill]] }
 0x266   : > { %p11_p12 = scmp.ge.s32.totalorder %s14_s21, 26   ;;  %s7887_s15 = smov %s6535_s18 }
 0x267   : > { %s7888_s16 = smov %s6539_s19  ;;  %s7889_s17 = smov %s6543_s20 }
 0x268   : > { %s7890_s18 = smov %s7894_s22  ;;  %s7891_s19 = smov %s7898_s23 }
 0x269   :  { %13 = sbr.rel (!%p11_p12) target bundleno = 4 (0x4), region = 85 }
 0x26b   : > { %s7892_s20 = smov %s7886_s29 }

// kernel: cnet_head_forward.5
= control target key start
LH: loop header
LB: loop body
LE: loop exit
PB: predicated region body
PF: predicated region fallthrough
CT: control target
= control target key end

     0   :  { %s1434_s11 = smov 0   ;;  %s1436_s12 = smov 0   ;;  %s2007_s0 = inlined_call_operand.<no memory space> [shape: f32[1,1], index: 0, kind: input, shape index: {}]   ;;  %s2008_s1 = inlined_call_operand.vmem [shape: f32[2,1024,4], index: 1, kind: input, shape index: {}]   ;;  %s2009_s2 = inlined_call_operand.vmem [shape: f32[2,4,4], index: 2, kind: output, shape index: {}]  }
   0x1   :  { %7 = sst [smem:[#allocation3]] %s2007_s0  ;;  %s1438_s13 = smov 0  }
   0x2 LB: > { %s25_s0 = sadd.s32 1, %s1409_s12  ;;  %p939_p0 = scmp.ge.s32.totalorder %s1413_s13, 1  ;;  %s1413_s13 = sphi %s1438_s13, %s13_s13   ;;  %s1409_s12 = sphi %s1436_s12, %s2036_s12   ;;  %s1405_s11 = sphi %s1434_s11, %s2035_s11  }
   0x3   : > { %p27_p1 = scmp.ge.s32.totalorder %s25_s0, 2  ;;  %p132_p2 = scmp.lt.s32.totalorder %s1413_s13, 3 }
   0x5   : > { %s2038_s0 = smov (%p27_p1, %s25_s0), 0  ;;  %p133_p3 = pnand %p939_p0, %p132_p2 }
   0x7   : > { %136 = sbr.rel (%p133_p3) target bundleno = 912 (0x390), region = 28 }
   0xe   : > { %p158_p4 = scmp.lt.s32.totalorder %s1405_s11, 1  ;;  %vm175_vm0 = vcmask 27648   ;;  %s864_s18 = sld [smem:[#allocation3]] }
  0x10   : > { %s2040_s11 = smov (!%p158_p4, %s1405_s11), 1 }
  0x11   : > { %s945_s14 = sshll.u32 %s2040_s11, 10  ;;  %s942_s19 = sshll.u32 %s2040_s11, 2 }
  0x12   : > { %s1458_s17 = scalar_lea.vmem %s2008_s1, %s945_s14  ;;  %s170_s22 = scalar_lea.vmem %s2009_s2, %s942_s19 }
  0x13   : > { %v209_v0 = vld [vmem:[%s1458_s17 + $0x100] sm:$0xff]  ;;  %v210_v5 = vld [vmem:[%s1458_s17 + $0x108] sm:$0xff]  ;;  %v211_v13 = vld [vmem:[%s1458_s17 + $0x110] sm:$0xff] }
  0x14   : > { %v225_v1 = vld [vmem:[%s1458_s17 + $0x180] sm:$0xff]  ;;  %v226_v6 = vld [vmem:[%s1458_s17 + $0x188] sm:$0xff]  ;;  %v1120_v11 = vpack.c.bf16 %v210_v5, %v209_v0  ;;  %v227_v17 = vld [vmem:[%s1458_s17 + $0x190] sm:$0xff] }
  0x15   : > { %v177_v2 = vld [vmem:[%s1458_s17] sm:$0xff]  ;;  %v1276_v3 = vpack.i.bf16 %v209_v0, %v225_v1  ;;  %v178_v8 = vld [vmem:[%s1458_s17 + $0x8] sm:$0xff]  ;;  %v1118_v10 = vpack.c.bf16 %v226_v6, %v225_v1  ;;  %v1278_v12 = vpack.i.bf16 %v210_v5, %v226_v6  ;;  %v179_v18 = vld [vmem:[%s1458_s17 + $0x10] sm:$0xff]  ;;  %v1280_v27 = vpack.i.bf16 %v211_v13, %v227_v17 }
  0x16   : > { %v193_v4 = vld [vmem:[%s1458_s17 + $0x80] sm:$0xff]  ;;  %v194_v9 = vld [vmem:[%s1458_s17 + $0x88] sm:$0xff]  ;;  %v1088_v15 = vpack.c.bf16 %v178_v8, %v177_v2  ;;  %v228_v19 = vld [vmem:[%s1458_s17 + $0x198] sm:$0xff] }
  0x17   : > { %v1239_v7 = vpack.i.bf16 %v177_v2, %v193_v4  ;;  %1277 = vxpose.xlu1.b32.start [1/16] (narrow) %v1276_v3, 8  ;;  %v1086_v14 = vpack.c.bf16 %v194_v9, %v193_v4  ;;  %v1241_v16 = vpack.i.bf16 %v178_v8, %v194_v9  ;;  %1119 = vmatprep.subr.bf16.mxu1 %v1118_v10  ;;  %v195_v20 = vld [vmem:[%s1458_s17 + $0x90] sm:$0xff]  ;;  %v180_v22 = vld [vmem:[%s1458_s17 + $0x18] sm:$0xff]  ;;  %v197_v29 = vld [vmem:[%s1458_s17 + $0xa0] sm:$0xff] }
  0x18   : > { %v1122_v21 = vpack.c.bf16 %v228_v19, %v227_v17  ;;  %v196_v23 = vld [vmem:[%s1458_s17 + $0x98] sm:$0xff]  ;;  %v1092_v26 = vpack.c.bf16 %v180_v22, %v179_v18  ;;  %1121 = vmatpush3.bf16.msra.mxu1 %v1120_v11  ;;  %v1478_v30 = vld [vmem:[%s1458_s17 + $0xa8] sm:$0xff]  ;;  %v1243_v31 = vpack.i.bf16 %v179_v18, %v195_v20  ;;  %v229_v32 = vld [vmem:[%s1458_s17 + $0x1a0] sm:$0xff] }
  0x19   : > { %1240 = vxpose.xlu0.b32.start [1/16] (narrow) %v1239_v7, 8  ;;  %1087 = vmatprep.subr.bf16.mxu0 %v1086_v14  ;;  %v212_v24 = vld [vmem:[%s1458_s17 + $0x118] sm:$0xff]  ;;  %v1090_v25 = vpack.c.bf16 %v196_v23, %v195_v20  ;;  %v1482_v33 = vld [vmem:[%s1458_s17 + $0x1a8] sm:$0xff]  ;;  %v1094_v34 = vpack.c.bf16 %v1478_v30, %v197_v29  ;;  %v181_v35 = vld [vmem:[%s1458_s17 + $0x20] sm:$0xff]  ;;  %v1245_v44 = vpack.i.bf16 %v180_v22, %v196_v23 }
  0x1a   : > { %1089 = vmatpush3.bf16.msra.mxu0 %v1088_v15  ;;  %v1124_v28 = vpack.c.bf16 %v212_v24, %v211_v13  ;;  %1123 = vmatprep.subr.bf16.mxu1 %v1122_v21  ;;  %v1126_v36 = vpack.c.bf16 %v1482_v33, %v229_v32  ;;  %v1488_v37 = vld [vmem:[%s1458_s17 + $0x28] sm:$0xff]  ;;  %v213_v38 = vld [vmem:[%s1458_s17 + $0x120] sm:$0xff]  ;;  %v1282_v41 = vpack.i.bf16 %v212_v24, %v228_v19  ;;  %v1497_v43 = vld [vmem:[%s1458_s17 + $0x1b0] sm:$0xff] }
  0x1b   : > { %1279 = vxpose.xlu1.b32.cont [2/16] (narrow) %v1278_v12, 8  ;;  %1091 = vmatprep.subr.bf16.mxu0 %v1090_v25  ;;  %v1492_v39 = vld [vmem:[%s1458_s17 + $0x128] sm:$0xff]  ;;  %v1096_v40 = vpack.c.bf16 %v1488_v37, %v181_v35  ;;  %v1500_v45 = vld [vmem:[%s1458_s17 + $0xb0] sm:$0xff]  ;;  %v1503_v46 = vld [vmem:[%s1458_s17 + $0x1b8] sm:$0xff]  ;;  %v1284_v55 = vpack.i.bf16 %v213_v38, %v229_v32  ;;  %v1247_v59 = vpack.i.bf16 %v181_v35, %v197_v29 }
  0x1c   : > { %v1128_v42 = vpack.c.bf16 %v1492_v39, %v213_v38  ;;  %1125 = vmatpush3.bf16.msra.mxu1 %v1124_v28  ;;  %v1506_v47 = vld [vmem:[%s1458_s17 + $0xb8] sm:$0xff]  ;;  %v1509_v48 = vld [vmem:[%s1458_s17 + $0x30] sm:$0xff]  ;;  %v1130_v49 = vpack.c.bf16 %v1503_v46, %v1497_v43  ;;  %v1529_v57 = vld [vmem:[%s1458_s17 + $0xc0] sm:$0xff]  ;;  %v1286_v5 = vpack.i.bf16 %v1492_v39, %v1482_v33  ;;  %v1249_v9 = vpack.i.bf16 %v1488_v37, %v1478_v30 }
  0x1d   : > { %1242 = vxpose.xlu0.b32.cont [2/16] (narrow) %v1241_v16, 8  ;;  %v1514_v50 = vld [vmem:[%s1458_s17 + $0x38] sm:$0xff]  ;;  %v1098_v51 = vpack.c.bf16 %v1506_v47, %v1500_v45  ;;  %1127 = vmatprep.subr.bf16.mxu1 %v1126_v36  ;;  %v1519_v52 = vld [vmem:[%s1458_s17 + $0x130] sm:$0xff]  ;;  %v1532_v58 = vld [vmem:[%s1458_s17 + $0xc8] sm:$0xff]  ;;  %v1251_v28 = vpack.i.bf16 %v1509_v48, %v1500_v45 }
  0x1e   : > { %1093 = vmatpush3.bf16.msra.mxu0 %v1092_v26  ;;  %v1522_v53 = vld [vmem:[%s1458_s17 + $0x138] sm:$0xff]  ;;  %v1100_v54 = vpack.c.bf16 %v1514_v50, %v1509_v48  ;;  %v1535_v60 = vld [vmem:[%s1458_s17 + $0x1c0] sm:$0xff]  ;;  %v1538_v61 = vld [vmem:[%s1458_s17 + $0x1c8] sm:$0xff]  ;;  %v1102_v62 = vpack.c.bf16 %v1532_v58, %v1529_v57  ;;  %v1288_v23 = vpack.i.bf16 %v1519_v52, %v1497_v43 }
  0x1f   : > { %1281 = vxpose.xlu1.b32.cont [3/16] (narrow) %v1280_v27, 8  ;;  %1095 = vmatprep.subr.bf16.mxu0 %v1094_v34  ;;  %v1132_v56 = vpack.c.bf16 %v1522_v53, %v1519_v52  ;;  %v1543_v63 = vld [vmem:[%s1458_s17 + $0x40] sm:$0xff]  ;;  %v1134_v0 = vpack.c.bf16 %v1538_v61, %v1535_v60  ;;  %v1548_v1 = vld [vmem:[%s1458_s17 + $0x48] sm:$0xff]  ;;  %v1563_v7 = vld [vmem:[%s1458_s17 + $0x1d0] sm:$0xff]  ;;  %v1253_v52 = vpack.i.bf16 %v1514_v50, %v1506_v47 }
  0x20   : > { %1129 = vmatpush3.bf16.msra.mxu1 %v1128_v42  ;;  %v1551_v2 = vld [vmem:[%s1458_s17 + $0x140] sm:$0xff]  ;;  %v1554_v3 = vld [vmem:[%s1458_s17 + $0x148] sm:$0xff]  ;;  %v1104_v4 = vpack.c.bf16 %v1548_v1, %v1543_v63  ;;  %v1566_v8 = vld [vmem:[%s1458_s17 + $0x50] sm:$0xff] }
  0x21   : > { %1244 = vxpose.xlu0.b32.cont [3/16] (narrow) %v1243_v31, 8  ;;  %1131 = vmatprep.subr.bf16.mxu1 %v1130_v49  ;;  %v1136_v6 = vpack.c.bf16 %v1554_v3, %v1551_v2  ;;  %v1571_v10 = vld [vmem:[%s1458_s17 + $0xd0] sm:$0xff]  ;;  %v1574_v11 = vld [vmem:[%s1458_s17 + $0x1d8] sm:$0xff]  ;;  %v1587_v16 = vld [vmem:[%s1458_s17 + $0x300] sm:$0xff]  ;;  %v1292_v47 = vpack.i.bf16 %v1551_v2, %v1535_v60  ;;  %v1257_v60 = vpack.i.bf16 %v1548_v1, %v1532_v58 }
  0x22   : > { %1097 = vmatpush3.bf16.msra.mxu0 %v1096_v40  ;;  %v1577_v12 = vld [vmem:[%s1458_s17 + $0xd8] sm:$0xff]  ;;  %v1138_v13 = vpack.c.bf16 %v1574_v11, %v1563_v7  ;;  %v1590_v17 = vld [vmem:[%s1458_s17 + $0x308] sm:$0xff]  ;;  %v1593_v18 = vld [vmem:[%s1458_s17 + $0x150] sm:$0xff] }
  0x23   : > { %1283 = vxpose.xlu1.b32.cont [4/16] (narrow) %v1282_v41, 8  ;;  %1099 = vmatprep.subr.bf16.mxu0 %v1098_v51  ;;  %v1582_v14 = vld [vmem:[%s1458_s17 + $0x58] sm:$0xff]  ;;  %v1106_v15 = vpack.c.bf16 %v1577_v12, %v1571_v10  ;;  %v1601_v21 = vld [vmem:[%s1458_s17 + $0xe0] sm:$0xff]  ;;  %v1610_v25 = vld [vmem:[%s1458_s17 + $0xe8] sm:$0xff] }
  0x24   : > { %1133 = vmatpush3.bf16.msra.mxu1 %v1132_v56  ;;  %v1596_v19 = vld [vmem:[%s1458_s17 + $0x158] sm:$0xff]  ;;  %v1108_v20 = vpack.c.bf16 %v1582_v14, %v1566_v8  ;;  %v1613_v26 = vld [vmem:[%s1458_s17 + $0x200] sm:$0xff]  ;;  %v1616_v27 = vld [vmem:[%s1458_s17 + $0x208] sm:$0xff]  ;;  %v1110_v33 = vpack.c.bf16 %v1610_v25, %v1601_v21 }
  0x25   : > { %1246 = vxpose.xlu0.b32.cont [4/16] (narrow) %v1245_v44, 8  ;;  %1135 = vmatprep.subr.bf16.mxu1 %v1134_v0  ;;  %v1140_v24 = vpack.c.bf16 %v1596_v19, %v1593_v18  ;;  %v1621_v29 = vld [vmem:[%s1458_s17 + $0x160] sm:$0xff]  ;;  %v1630_v32 = vld [vmem:[%s1458_s17 + $0x1e8] sm:$0xff]  ;;  %v1642_v37 = vld [vmem:[%s1458_s17 + $0x310] sm:$0xff]  ;;  %v1290_v44 = vpack.i.bf16 %v1522_v53, %v1503_v46  ;;  %v1298_v2 = vpack.i.bf16 %v1596_v19, %v1574_v11 }
  0x26   : > { %1101 = vmatpush3.bf16.msra.mxu0 %v1100_v54  ;;  %v1624_v30 = vld [vmem:[%s1458_s17 + $0x1e0] sm:$0xff]  ;;  %v1639_v36 = vld [vmem:[%s1458_s17 + $0x68] sm:$0xff]  ;;  %v1645_v38 = vld [vmem:[%s1458_s17 + $0x318] sm:$0xff] }
  0x27   : > { %1285 = vxpose.xlu1.b32.cont [5/16] (narrow) %v1284_v55, 8  ;;  %1103 = vmatprep.subr.bf16.mxu0 %v1102_v62  ;;  %v1627_v31 = vld [vmem:[%s1458_s17 + $0x60] sm:$0xff]  ;;  %v1142_v35 = vpack.c.bf16 %v1630_v32, %v1624_v30  ;;  %v1648_v39 = vld [vmem:[%s1458_s17 + $0x168] sm:$0xff]  ;;  %v1653_v41 = vld [vmem:[%s1458_s17 + $0x210] sm:$0xff]  ;;  %v1300_v58 = vpack.i.bf16 %v1621_v29, %v1624_v30 }
  0x28   : > { %1137 = vmatpush3.bf16.msra.mxu1 %v1136_v6  ;;  %v1112_v40 = vpack.c.bf16 %v1639_v36, %v1627_v31  ;;  %v1658_v43 = vld [vmem:[%s1458_s17 + $0x218] sm:$0xff]  ;;  %v1144_v45 = vpack.c.bf16 %v1648_v39, %v1621_v29  ;;  %v239_v48 = vld [vmem:[%s1458_s17 + $0x1f0] sm:$0xff]  ;;  %v258_v6 = vld [vmem:[%s1458_s17 + $0x288] sm:$0xff]  ;;  %v1263_v1 = vpack.i.bf16 %v1627_v31, %v1601_v21 }
  0x29   : > { %1248 = vxpose.xlu0.b32.cont [5/16] (narrow) %v1247_v59, 8  ;;  %1139 = vmatprep.subr.bf16.mxu1 %v1138_v13  ;;  %v1666_v49 = vld [vmem:[%s1458_s17 + $0x1f8] sm:$0xff]  ;;  %v207_v54 = vld [vmem:[%s1458_s17 + $0xf0] sm:$0xff]  ;;  %v289_v13 = vld [vmem:[%s1458_s17 + $0x380] sm:$0xff]  ;;  %v1315_v21 = vpack.i.bf16 %v1616_v27, %v258_v6 }
  0x2a   : > { %1105 = vmatpush3.bf16.msra.mxu0 %v1104_v4  ;;  %v1146_v46 = vpack.c.bf16 %v1666_v49, %v239_v48  ;;  %v208_v53 = vld [vmem:[%s1458_s17 + $0xf8] sm:$0xff]  ;;  %v191_v55 = vld [vmem:[%s1458_s17 + $0x70] sm:$0xff] }
  0x2b   : > { %1287 = vxpose.xlu1.b32.cont [6/16] (narrow) %v1286_v5, 8  ;;  %1107 = vmatprep.subr.bf16.mxu0 %v1106_v15  ;;  %v192_v56 = vld [vmem:[%s1458_s17 + $0x78] sm:$0xff]  ;;  %v1114_v59 = vpack.c.bf16 %v208_v53, %v207_v54  ;;  %v223_v62 = vld [vmem:[%s1458_s17 + $0x170] sm:$0xff]  ;;  %v257_v5 = vld [vmem:[%s1458_s17 + $0x280] sm:$0xff] }
  0x2c   : > { %1141 = vmatpush3.bf16.msra.mxu1 %v1140_v24  ;;  %v224_v0 = vld [vmem:[%s1458_s17 + $0x178] sm:$0xff]  ;;  %v1116_v4 = vpack.c.bf16 %v192_v56, %v191_v55  ;;  %v290_v15 = vld [vmem:[%s1458_s17 + $0x388] sm:$0xff]  ;;  %v1294_v24 = vpack.i.bf16 %v1554_v3, %v1538_v61  ;;  %v1261_v61 = vpack.i.bf16 %v1582_v14, %v1577_v12  ;;  %v1302_v3 = vpack.i.bf16 %v1648_v39, %v1630_v32  ;;  %v1736_v39 = vld [vmem:[%s1458_s17 + $0x3a0] sm:$0xff] }
  0x2d   : > { %1250 = vxpose.xlu0.b32.cont [6/16] (narrow) %v1249_v9, 8  ;;  %1143 = vmatprep.subr.bf16.mxu1 %v1142_v35  ;;  %v1148_v50 = vpack.c.bf16 %v224_v0, %v223_v62  ;;  %v1255_v9 = vpack.i.bf16 %v1543_v63, %v1529_v57  ;;  %v1296_v57 = vpack.i.bf16 %v1593_v18, %v1563_v7  ;;  %v1723_v31 = vld [vmem:[%s1458_s17 + $0x398] sm:$0xff] }
  0x2e   : > { %1109 = vmatpush3.bf16.msra.mxu0 %v1108_v20  ;;  %v1150_v20 = vpack.c.bf16 %v258_v6, %v257_v5  ;;  %v1259_v63 = vpack.i.bf16 %v1566_v8, %v1571_v10  ;;  %v1265_v7 = vpack.i.bf16 %v1639_v36, %v1610_v25  ;;  %v1304_v8 = vpack.i.bf16 %v223_v62, %v239_v48  ;;  %v1713_v25 = vld [vmem:[%s1458_s17 + $0x390] sm:$0xff]  ;;  %v1726_v32 = vld [vmem:[%s1458_s17 + $0x298] sm:$0xff]  ;;  %v1733_v36 = vld [vmem:[%s1458_s17 + $0x320] sm:$0xff] }
  0x2f   : > { %1289 = vxpose.xlu1.b32.cont [7/16] (narrow) %v1288_v23, 8  ;;  %1111 = vmatprep.subr.bf16.mxu0 %v1110_v33  ;;  %v1182_v23 = vpack.c.bf16 %v290_v15, %v289_v13  ;;  %v1267_v10 = vpack.i.bf16 %v191_v55, %v207_v54  ;;  %v1306_v11 = vpack.i.bf16 %v224_v0, %v1666_v49  ;;  %v1749_v49 = vld [vmem:[%s1458_s17 + $0x328] sm:$0xff]  ;;  %v1771_v62 = vld [vmem:[%s1458_s17 + $0x230] sm:$0xff]  ;;  %v1787_v6 = vld [vmem:[%s1458_s17 + $0x238] sm:$0xff] }
  0x30   : > { %1145 = vmatpush3.bf16.msra.mxu1 %v1144_v45  ;;  %v1269_v12 = vpack.i.bf16 %v192_v56, %v208_v53  ;;  %v1350_v14 = vpack.i.bf16 %v1587_v16, %v289_v13  ;;  %v1313_v18 = vpack.i.bf16 %v1613_v26, %v257_v5  ;;  %v1352_v19 = vpack.i.bf16 %v1590_v17, %v290_v15  ;;  %v1755_v54 = vld [vmem:[%s1458_s17 + $0x228] sm:$0xff]  ;;  %v1765_v56 = vld [vmem:[%s1458_s17 + $0x330] sm:$0xff]  ;;  %v1784_v5 = vld [vmem:[%s1458_s17 + $0x3b8] sm:$0xff] }
  0x31   : > { %1252 = vxpose.xlu0.b32.cont [7/16] (narrow) %v1251_v28, 8  ;;  %1147 = vmatprep.subr.bf16.mxu1 %v1146_v46  ;;  %v1716_v28 = vld [vmem:[%s1458_s17 + $0x290] sm:$0xff]  ;;  %v1354_v29 = vpack.i.bf16 %v1642_v37, %v1713_v25  ;;  %v1356_v33 = vpack.i.bf16 %v1645_v38, %v1723_v31  ;;  %v1319_v35 = vpack.i.bf16 %v1658_v43, %v1726_v32  ;;  %v1758_v46 = vld [vmem:[%s1458_s17 + $0x2a8] sm:$0xff]  ;;  %v1912_v42 = vld [vmem:[%s1458_s17 + $0x3f8] sm:$0xff] }
  0x32   : > { %1113 = vmatpush3.bf16.msra.mxu0 %v1112_v40  ;;  %v1317_v30 = vpack.i.bf16 %v1653_v41, %v1716_v28  ;;  %v1739_v40 = vld [vmem:[%s1458_s17 + $0x220] sm:$0xff]  ;;  %v1358_v45 = vpack.i.bf16 %v1733_v36, %v1736_v39  ;;  %v1323_v55 = vpack.i.bf16 %v1755_v54, %v1758_v46  ;;  %v1774_v0 = vld [vmem:[%s1458_s17 + $0x2b0] sm:$0xff]  ;;  %v1915_v34 = vld [vmem:[%s1458_s17 + $0x278] sm:$0xff] }
  0x33   : > { %1291 = vxpose.xlu1.b32.cont [8/16] (narrow) %v1290_v44, 8  ;;  %1115 = vmatprep.subr.bf16.mxu0 %v1114_v59  ;;  %v1742_v44 = vld [vmem:[%s1458_s17 + $0x2a0] sm:$0xff]  ;;  %v1768_v59 = vld [vmem:[%s1458_s17 + $0x3b0] sm:$0xff]  ;;  %v1918_v22 = vld [vmem:[%s1458_s17 + $0x2f8] sm:$0xff] }
  0x34   : > { %1149 = vmatpush3.bf16.msra.mxu1 %v1148_v50  ;;  %v1321_v48 = vpack.i.bf16 %v1739_v40, %v1742_v44  ;;  %v1781_v50 = vld [vmem:[%s1458_s17 + $0x338] sm:$0xff] }
  0x35   : > { %1254 = vxpose.xlu0.b32.cont [8/16] (narrow) %v1253_v52, 8  ;;  %1183 = vmatprep.subr.bf16.mxu1 %v1182_v23  ;;  %v1752_v52 = vld [vmem:[%s1458_s17 + $0x3a8] sm:$0xff]  ;;  %v1364_v13 = vpack.i.bf16 %v1781_v50, %v1784_v5  ;;  %v1800_v23 = vld [vmem:[%s1458_s17 + $0x3c0] sm:$0xff] }
  0x36   : > { %1117 = vmatpush3.bf16.msra.mxu0 %v1116_v4  ;;  %v1360_v53 = vpack.i.bf16 %v1749_v49, %v1752_v52  ;;  %v1362_v4 = vpack.i.bf16 %v1765_v56, %v1768_v59 }
  0x37   : > { %1293 = vxpose.xlu1.b32.cont [9/16] (narrow) %v1292_v47, 8  ;;  %1151 = vmatprep.subr.bf16.mxu0 %v1150_v20  ;;  %v1325_v47 = vpack.i.bf16 %v1771_v62, %v1774_v0  ;;  %v1797_v20 = vld [vmem:[%s1458_s17 + $0x340] sm:$0xff] }
  0x39   : > { %1256 = vxpose.xlu0.b32.cont [9/16] (narrow) %v1255_v9, 8  ;;  %v1790_v9 = vld [vmem:[%s1458_s17 + $0x2b8] sm:$0xff] }
  0x3a   : > { %v1327_v15 = vpack.i.bf16 %v1787_v6, %v1790_v9 }
  0x3b   : > { %1295 = vxpose.xlu1.b32.cont [10/16] (narrow) %v1294_v24, 8  ;;  %v1803_v24 = vld [vmem:[%s1458_s17 + $0x240] sm:$0xff] }
  0x3d   : > { %1258 = vxpose.xlu0.b32.cont [10/16] (narrow) %v1257_v60, 8  ;;  %v1806_v60 = vld [vmem:[%s1458_s17 + $0x2c0] sm:$0xff] }
  0x3f   : > { %1297 = vxpose.xlu1.b32.cont [11/16] (narrow) %v1296_v57, 8  ;;  %v1366_v57 = vpack.i.bf16 %v1797_v20, %v1800_v23 }
  0x41   : > { %1260 = vxpose.xlu0.b32.cont [11/16] (narrow) %v1259_v63, 8  ;;  %v1329_v63 = vpack.i.bf16 %v1803_v24, %v1806_v60 }
  0x43   : > { %1299 = vxpose.xlu1.b32.cont [12/16] (narrow) %v1298_v2, 8  ;;  %v1813_v2 = vld [vmem:[%s1458_s17 + $0x348] sm:$0xff] }
  0x45   : > { %1262 = vxpose.xlu0.b32.cont [12/16] (narrow) %v1261_v61, 8  ;;  %v1816_v61 = vld [vmem:[%s1458_s17 + $0x3c8] sm:$0xff] }
  0x47   : > { %1301 = vxpose.xlu1.b32.cont [13/16] (narrow) %v1300_v58, 8  ;;  %v1819_v58 = vld [vmem:[%s1458_s17 + $0x248] sm:$0xff] }
  0x49   : > { %1264 = vxpose.xlu0.b32.cont [13/16] (narrow) %v1263_v1, 8  ;;  %v1822_v1 = vld [vmem:[%s1458_s17 + $0x2c8] sm:$0xff] }
  0x4b   : > { %1303 = vxpose.xlu1.b32.cont [14/16] (narrow) %v1302_v3, 8  ;;  %v1368_v3 = vpack.i.bf16 %v1813_v2, %v1816_v61 }
  0x4d   : > { %1266 = vxpose.xlu0.b32.cont [14/16] (narrow) %v1265_v7, 8  ;;  %v1331_v7 = vpack.i.bf16 %v1819_v58, %v1822_v1 }
  0x4f   : > { %1305 = vxpose.xlu1.b32.cont [15/16] (narrow) %v1304_v8, 8  ;;  %v1829_v8 = vld [vmem:[%s1458_s17 + $0x350] sm:$0xff] }
  0x51   : > { %1268 = vxpose.xlu0.b32.cont [15/16] (narrow) %v1267_v10, 8  ;;  %v1832_v10 = vld [vmem:[%s1458_s17 + $0x3d0] sm:$0xff] }
  0x53   : > { %1307 = vxpose.xlu1.b32.end [16/16] (narrow) %v1306_v11, 8  ;;  %v1835_v11 = vld [vmem:[%s1458_s17 + $0x250] sm:$0xff] }
  0x55   : > { %1270 = vxpose.xlu0.b32.end [16/16] (narrow) %v1269_v12, 8  ;;  %v1838_v12 = vld [vmem:[%s1458_s17 + $0x2d0] sm:$0xff] }
  0x57   : > { %1351 = vxpose.xlu1.b32.start [1/16] (narrow) %v1350_v14, 8  ;;  %v1370_v14 = vpack.i.bf16 %v1829_v8, %v1832_v10 }
  0x59   : > { %1314 = vxpose.xlu0.b32.start [1/16] (narrow) %v1313_v18, 8  ;;  %v1333_v18 = vpack.i.bf16 %v1835_v11, %v1838_v12 }
  0x5b   : > { %1353 = vxpose.xlu1.b32.cont [2/16] (narrow) %v1352_v19, 8  ;;  %v1845_v19 = vld [vmem:[%s1458_s17 + $0x358] sm:$0xff] }
  0x5d   : > { %1316 = vxpose.xlu0.b32.cont [2/16] (narrow) %v1315_v21, 8  ;;  %v1848_v21 = vld [vmem:[%s1458_s17 + $0x3d8] sm:$0xff] }
  0x5f   : > { %1355 = vxpose.xlu1.b32.cont [3/16] (narrow) %v1354_v29, 8  ;;  %v1851_v29 = vld [vmem:[%s1458_s17 + $0x258] sm:$0xff] }
  0x61   : > { %1318 = vxpose.xlu0.b32.cont [3/16] (narrow) %v1317_v30, 8  ;;  %v1854_v30 = vld [vmem:[%s1458_s17 + $0x2d8] sm:$0xff] }
  0x63   : > { %1357 = vxpose.xlu1.b32.cont [4/16] (narrow) %v1356_v33, 8  ;;  %v1372_v33 = vpack.i.bf16 %v1845_v19, %v1848_v21 }
  0x65   : > { %1320 = vxpose.xlu0.b32.cont [4/16] (narrow) %v1319_v35, 8  ;;  %v1335_v35 = vpack.i.bf16 %v1851_v29, %v1854_v30 }
  0x67   : > { %1359 = vxpose.xlu1.b32.cont [5/16] (narrow) %v1358_v45, 8  ;;  %v1861_v45 = vld [vmem:[%s1458_s17 + $0x360] sm:$0xff] }
  0x69   : > { %1322 = vxpose.xlu0.b32.cont [5/16] (narrow) %v1321_v48, 8  ;;  %v1864_v48 = vld [vmem:[%s1458_s17 + $0x3e0] sm:$0xff] }
  0x6b   : > { %1361 = vxpose.xlu1.b32.cont [6/16] (narrow) %v1360_v53, 8  ;;  %v1867_v53 = vld [vmem:[%s1458_s17 + $0x260] sm:$0xff] }
  0x6c   : > { %2017 = vst [vmem:[#allocation4_spill] sm:$0xff] %v1867_v53 }
  0x6d   : > { %1324 = vxpose.xlu0.b32.cont [6/16] (narrow) %v1323_v55, 8  ;;  %v1870_v55 = vld [vmem:[%s1458_s17 + $0x2e0] sm:$0xff] }
  0x6f   : > { %1363 = vxpose.xlu1.b32.cont [7/16] (narrow) %v1362_v4, 8  ;;  %v1374_v4 = vpack.i.bf16 %v1861_v45, %v1864_v48 }
  0x71   : > { %1326 = vxpose.xlu0.b32.cont [7/16] (narrow) %v1325_v47, 8  ;;  %v1337_v47 = vpack.i.bf16 %v1867_v53, %v1870_v55 }
  0x73   : > { %1365 = vxpose.xlu1.b32.cont [8/16] (narrow) %v1364_v13, 8  ;;  %v1877_v13 = vld [vmem:[%s1458_s17 + $0x368] sm:$0xff] }
  0x74   : > { %2018 = vst [vmem:[#allocation5_spill] sm:$0xff] %v1877_v13 }
  0x75   : > { %1328 = vxpose.xlu0.b32.cont [8/16] (narrow) %v1327_v15, 8  ;;  %v1880_v15 = vld [vmem:[%s1458_s17 + $0x3e8] sm:$0xff] }
  0x77   : > { %1367 = vxpose.xlu1.b32.cont [9/16] (narrow) %v1366_v57, 8  ;;  %v1883_v57 = vld [vmem:[%s1458_s17 + $0x268] sm:$0xff] }
  0x78   : > { %2019 = vst [vmem:[#allocation6_spill] sm:$0xff] %v1883_v57 }
  0x79   : > { %1330 = vxpose.xlu0.b32.cont [9/16] (narrow) %v1329_v63, 8  ;;  %v1886_v63 = vld [vmem:[%s1458_s17 + $0x2e8] sm:$0xff] }
  0x7b   : > { %1369 = vxpose.xlu1.b32.cont [10/16] (narrow) %v1368_v3, 8  ;;  %v1376_v3 = vpack.i.bf16 %v1877_v13, %v1880_v15 }
  0x7d   : > { %1332 = vxpose.xlu0.b32.cont [10/16] (narrow) %v1331_v7, 8  ;;  %v1339_v7 = vpack.i.bf16 %v1883_v57, %v1886_v63 }
  0x7f   : > { %1371 = vxpose.xlu1.b32.cont [11/16] (narrow) %v1370_v14, 8  ;;  %v1893_v14 = vld [vmem:[%s1458_s17 + $0x370] sm:$0xff] }
  0x80   : > { %2020 = vst [vmem:[#allocation7_spill] sm:$0xff] %v1893_v14 }
  0x81   : > { %1334 = vxpose.xlu0.b32.cont [11/16] (narrow) %v1333_v18, 8  ;;  %v1896_v18 = vld [vmem:[%s1458_s17 + $0x3f0] sm:$0xff] }
  0x82   : > { %2021 = vst [vmem:[#allocation8_spill] sm:$0xff] %v1896_v18  ;;  %v1378_v51 = vpack.i.bf16 %v1893_v14, %v1896_v18 }
  0x83   : > { %1373 = vxpose.xlu1.b32.cont [12/16] (narrow) %v1372_v33, 8  ;;  %v1899_v33 = vld [vmem:[%s1458_s17 + $0x270] sm:$0xff] }
  0x84   : > { %2022 = vst [vmem:[#allocation9_spill] sm:$0xff] %v1899_v33 }
  0x85   : > { %1336 = vxpose.xlu0.b32.cont [12/16] (narrow) %v1335_v35, 8  ;;  %v1902_v35 = vld [vmem:[%s1458_s17 + $0x2f0] sm:$0xff] }
  0x86   : > { %2023 = vst [vmem:[#allocation10_spill] sm:$0xff] %v1902_v35 }
  0x87   : > { %1375 = vxpose.xlu1.b32.cont [13/16] (narrow) %v1374_v4, 8  ;;  %v1341_v4 = vpack.i.bf16 %v1899_v33, %v1902_v35  ;;  %v1186_v33 = vpack.c.bf16 %v1723_v31, %v1713_v25  ;;  %v1190_v25 = vpack.c.bf16 %v1752_v52, %v1736_v39  ;;  %v1158_v31 = vpack.c.bf16 %v1758_v46, %v1742_v44 }
  0x88   : > { %v1168_v39 = vpack.c.bf16 %v1819_v58, %v1803_v24  ;;  %v1170_v44 = vpack.c.bf16 %v1854_v30, %v1838_v12  ;;  %v1172_v52 = vpack.c.bf16 %v1851_v29, %v1835_v11  ;;  %v1174_v46 = vpack.c.bf16 %v1886_v63, %v1870_v55 }
  0x89   : > { %1338 = vxpose.xlu0.b32.cont [13/16] (narrow) %v1337_v47, 8  ;;  %v1909_v47 = vld [vmem:[%s1458_s17 + $0x378] sm:$0xff] }
  0x8a   : > { %v1380_v57 = vpack.i.bf16 %v1909_v47, %v1912_v42 }
  0x8b   : > { %1377 = vxpose.xlu1.b32.cont [14/16] (narrow) %v1376_v3, 8  ;;  %v1343_v3 = vpack.i.bf16 %v1915_v34, %v1918_v22 }
  0x8d   : > { %1340 = vxpose.xlu0.b32.cont [14/16] (narrow) %v1339_v7, 8 }
  0x8f   : > { %1379 = vxpose.xlu1.b32.cont [15/16] (narrow) %v1378_v51, 8  ;;  %v1154_v51 = vpack.c.bf16 %v1726_v32, %v1716_v28  ;;  %v1192_v28 = vpack.c.bf16 %v1749_v49, %v1733_v36  ;;  %v2026_v32 = vpack.c.bf16 %v1645_v38, %v1642_v37  ;;  %v1196_v36 = vpack.c.bf16 %v1781_v50, %v1765_v56  ;;  %v2028_v56 = vld [vmem:[#allocation5_spill] sm:$0xff] }
  0x90   : > { %v1164_v37 = vpack.c.bf16 %v1787_v6, %v1771_v62  ;;  %v1198_v38 = vpack.c.bf16 %v1816_v61, %v1800_v23  ;;  %v1204_v49 = vpack.c.bf16 %v1845_v19, %v1829_v8  ;;  %v2029_v62 = vld [vmem:[#allocation4_spill] sm:$0xff]  ;;  %v2033_v23 = vld [vmem:[#allocation7_spill] sm:$0xff] }
  0x91   : > { %1342 = vxpose.xlu0.b32.cont [15/16] (narrow) %v1341_v4, 8  ;;  %v2025_v4 = vpack.c.bf16 %v1616_v27, %v1613_v26  ;;  %v1194_v26 = vpack.c.bf16 %v1784_v5, %v1768_v59  ;;  %v1162_v27 = vpack.c.bf16 %v1790_v9, %v1774_v0  ;;  %v1208_v59 = vpack.c.bf16 %v2028_v56, %v1861_v45  ;;  %v2030_v0 = vld [vmem:[#allocation6_spill] sm:$0xff]  ;;  %v2031_v5 = vld [vmem:[#allocation8_spill] sm:$0xff] }
  0x92   : > { %v1176_v50 = vpack.c.bf16 %v2030_v0, %v2029_v62  ;;  %v1210_v6 = vpack.c.bf16 %v1912_v42, %v2031_v5  ;;  %v2032_v9 = vld [vmem:[#allocation10_spill] sm:$0xff]  ;;  %v1212_v24 = vpack.c.bf16 %v1909_v47, %v2033_v23 }
  0x93   : > { %1381 = vxpose.xlu1.b32.end [16/16] (narrow) %v1380_v57, 8  ;;  %v2024_v57 = vpack.c.bf16 %v1590_v17, %v1587_v16  ;;  %v1160_v16 = vpack.c.bf16 %v1755_v54, %v1739_v40  ;;  %v2027_v17 = vpack.c.bf16 %v1658_v43, %v1653_v41  ;;  %v1166_v41 = vpack.c.bf16 %v1822_v1, %v1806_v60  ;;  %v2034_v60 = vld [vmem:[#allocation9_spill] sm:$0xff] }
  0x94   : > { %v1200_v43 = vpack.c.bf16 %v1813_v2, %v1797_v20  ;;  %v1202_v40 = vpack.c.bf16 %v1848_v21, %v1832_v10  ;;  %v1206_v54 = vpack.c.bf16 %v1880_v15, %v1864_v48  ;;  %v1178_v20 = vpack.c.bf16 %v1918_v22, %v2032_v9 }
  0x95   : > { %1344 = vxpose.xlu0.b32.end [16/16] (narrow) %v1343_v3, 8  ;;  %v1180_v2 = vpack.c.bf16 %v1915_v34, %v2034_v60  ;;  %v1415_v22 = vmov 0.0  }
  0x96   : > { %176 = vst.msk [vmem:[#allocation2] sm:$0xf] %vm175_vm0, %v1415_v22 }
  0x97   : > { %v1308_v7 = vpop.trf.xlu1 }
  0x98   : > { %v1309_v35 = vunpack.i.l.bf16 %v1308_v7  ;;  %v1312_v18 = vunpack.i.h.bf16 %v1308_v7 }
  0x99   : > { %v1271_v14 = vpop.trf.xlu0 }
  0x9a   : > { %v1272_v53 = vunpack.i.l.bf16 %v1271_v14  ;;  %v1275_v13 = vunpack.i.h.bf16 %v1271_v14  ;;  %696 = vmatprep.mubr.f32.mxu1 %v1309_v35 }
  0x9b   : > { %697 = vmatmul.mubr.f32.vlgmr.msra.gmra.mrb[0].mxu1 %v1312_v18 }
  0x9c   : > { %626 = vmatprep.mubr.f32.mxu0 %v1272_v53  ;;  %1185 = vmatpush3.bf16.msra.mxu1 %v2024_v57 }
  0x9d   : > { %627 = vmatmul.mubr.f32.vlgmr.msra.gmra.mrb[0].mxu0 %v1275_v13  ;;  %1187 = vmatprep.subr.bf16.mxu1 %v1186_v33  ;;  %v305_v14 = vld [vmem:[#allocation2] sm:$0xf] }
  0x9e   : > { %1153 = vmatpush3.bf16.msra.mxu0 %v2025_v4 }
  0x9f   : > { %1155 = vmatprep.subr.bf16.mxu0 %v1154_v51 }
  0xa0   : > { %1189 = vmatpush3.bf16.msra.mxu1 %v2026_v32 }
  0xa1   : > { %1191 = vmatprep.subr.bf16.mxu1 %v1190_v25 }
  0xa2   : > { %1157 = vmatpush3.bf16.msra.mxu0 %v2027_v17  ;;  %v865_v17 = vstv %s864_s18 }
  0xa3   : > { %1159 = vmatprep.subr.bf16.mxu0 %v1158_v31 }
  0xa4   : > { %1193 = vmatpush3.bf16.msra.mxu1 %v1192_v28 }
  0xa5   : > { %1195 = vmatprep.subr.bf16.mxu1 %v1194_v26 }
  0xa6   : > { %1161 = vmatpush3.bf16.msra.mxu0 %v1160_v16 }
  0xa7   : > { %1163 = vmatprep.subr.bf16.mxu0 %v1162_v27 }
  0xa8   : > { %1197 = vmatpush3.bf16.msra.mxu1 %v1196_v36 }
  0xa9   : > { %1199 = vmatprep.subr.bf16.mxu1 %v1198_v38 }
  0xaa   : > { %1165 = vmatpush3.bf16.msra.mxu0 %v1164_v37 }
  0xab   : > { %1167 = vmatprep.subr.bf16.mxu0 %v1166_v41 }
  0xac   : > { %1201 = vmatpush3.bf16.msra.mxu1 %v1200_v43 }
  0xad   : > { %1203 = vmatprep.subr.bf16.mxu1 %v1202_v40 }
  0xae   : > { %1169 = vmatpush3.bf16.msra.mxu0 %v1168_v39 }
  0xaf   : > { %1171 = vmatprep.subr.bf16.mxu0 %v1170_v44 }
  0xb0   : > { %1205 = vmatpush3.bf16.msra.mxu1 %v1204_v49 }
  0xb1   : > { %1207 = vmatprep.subr.bf16.mxu1 %v1206_v54 }
  0xb2   : > { %1173 = vmatpush3.bf16.msra.mxu0 %v1172_v52 }
  0xb3   : > { %1175 = vmatprep.subr.bf16.mxu0 %v1174_v46 }
  0xb4   : > { %1209 = vmatpush3.bf16.msra.mxu1 %v1208_v59 }
  0xb5   : > { %1211 = vmatprep.subr.bf16.mxu1 %v1210_v6 }
  0xb6   : > { %1177 = vmatpush3.bf16.msra.mxu0 %v1176_v50 }
  0xb7   : > { %1179 = vmatprep.subr.bf16.mxu0 %v1178_v20 }
  0xb8   : > { %1213 = vmatpush3.bf16.msra.mxu1 %v1212_v24 }
  0xba   : > { %1181 = vmatpush3.bf16.msra.mxu0 %v1180_v2 }
  0xd7   : > { %v1382_v61 = vpop.trf.xlu1 }
  0xd8   : > { %v1386_v58 = vunpack.i.h.bf16 %v1382_v61  ;;  %v1383_v42 = vunpack.i.l.bf16 %v1382_v61 }
  0xd9   : > { %v1345_v1 = vpop.trf.xlu0 }
  0xda   : > { %v1349_v8 = vunpack.i.h.bf16 %v1345_v1  ;;  %v1346_v10 = vunpack.i.l.bf16 %v1345_v1  ;;  %836 = vmatprep.mubr.f32.mxu1 %v1383_v42 }
  0xdb   : > { %837 = vmatmul.mubr.f32.vlgmr.msra.gmra.mrb[2].mxu1 %v1386_v58 }
  0xdc   : > { %766 = vmatprep.mubr.f32.mxu0 %v1346_v10 }
  0xdd   : > { %767 = vmatmul.mubr.f32.vlgmr.msra.gmra.mrb[2].mxu0 %v1349_v8 }
 0x16e   : > { %v1013_v34 = vpop.f32.mrb[0].mxu1 }
 0x16f   : > { %v1014_v12 = vpop.f32.mrb[1].mxu1 }
 0x170   : > { %v978_v11 = vpop.f32.mrb[0].mxu0  ;;  %v1015_v21 = vadd.f32 %v1014_v12, %v1013_v34 }
 0x171   : > { %v979_v19 = vpop.f32.mrb[1].mxu0 }
 0x172   : > { %v980_v29 = vadd.f32 %v979_v19, %v978_v11 }
 0x174   : > { %v699_v30 = vadd.f32 %v1015_v21, %v980_v29 }
 0x1ae   : > { %v1083_v45 = vpop.f32.mrb[2].mxu1 }
 0x1af   : > { %v1084_v53 = vpop.f32.mrb[3].mxu1 }
 0x1b0   : > { %v1048_v48 = vpop.f32.mrb[2].mxu0  ;;  %v1085_v13 = vadd.f32 %v1084_v53, %v1083_v45 }
 0x1b1   : > { %v1049_v55 = vpop.f32.mrb[3].mxu0 }
 0x1b2   : > { %v1050_v15 = vadd.f32 %v1049_v55, %v1048_v48 }
 0x1b4   : > { %v769_v63 = vadd.f32 %v1050_v15, %v699_v30 }
 0x1b6   : > { %v839_v18 = vadd.f32 %v1085_v13, %v769_v63 }
 0x1b8   : > { %v842_v33 = vadd.f32 %v839_v18, %v305_v14 }
 0x1ba   : > { %844 = vst.msk [vmem:[#allocation2] sm:$0xf] %vm175_vm0, %v842_v33 }
 0x1c1   : > { %v848_v35 = vld [vmem:[#allocation2] sm:$0xf] }
 0x1c2   : > { %v849_v47 = vsel %vm175_vm0, %v848_v35, -inf }
 0x1c3   : > { %850 = vmax.xlane.f32.xlu0 %v849_v47 }
 0x250   : > { %v851_v3 = vpop.xlane.xlu0 %850 }
 0x251   : > { %v852_v7 = vsub.f32 %v851_v3, %v848_v35 }
 0x253   : > { %v853_v51 = vsel %vm175_vm0, %v852_v7, -inf }
 0x254   : > { %854 = vmax.xlane.f32.xlu1 %v853_v51 }
 0x2e1   : > { %v855_v57 = vpop.xlane.xlu1 %854 }
 0x2e2   : > { %v856_v4 = vsub.f32 %v852_v7, %v855_v57 }
 0x2e4   : > { %v857_v25 = vmul.f32 1.442695, %v856_v4 }
 0x2e6   : > { %1387 = vpow2.f32 %v857_v25 }
 0x2f0   : > { %v1388_v31 = vpop.eup %1387 }
 0x2f1   : > { %v859_v28 = vsel %vm175_vm0, %v1388_v31, 0.0 }
 0x2f2   : > { %860 = vadd.xlane.f32.xlu1 %v859_v28 }
 0x37f   : > { %v861_v32 = vpop.xlane.xlu1 %860 }
 0x380   : > { %1389 = vrcp.f32 %v861_v32 }
 0x38a   : > { %v1390_v16 = vpop.eup %1389 }
 0x38b   : > { %v863_v26 = vmul.f32 %v1390_v16, %v1388_v31 }
 0x38d   : > { %v866_v27 = vmul.f32 %v865_v17, %v863_v26 }
 0x38f   : > { %867 = vst.msk [vmem:[%s170_s22] sm:$0xf] %vm175_vm0, %v866_v27 }
 0x390 PF: > { %s13_s13 = sadd.s32 1, %s1413_s13   ;;  %s2035_s11 = smov %s1409_s12 }
 0x391   : > { %p10_p5 = scmp.ge.s32.totalorder %s13_s13, 4   ;;  %s2036_s12 = smov %s2038_s0 }
 0x393   :  { %12 = sbr.rel (!%p10_p5) target bundleno = 2 (0x2), region = 66 }

// kernel: cnet_head_forward.6
= control target key start
LH: loop header
LB: loop body
LE: loop exit
PB: predicated region body
PF: predicated region fallthrough
CT: control target
= control target key end

     0   :  { %s2181_s9 = smov 0   ;;  %s2183_s10 = smov 0   ;;  %s3254_s0 = inlined_call_operand.vmem [shape: f32[2,4,4], index: 0, kind: input, shape index: {}]   ;;  %s3255_s1 = inlined_call_operand.vmem [shape: f32[2,1024,4], index: 1, kind: input, shape index: {}]   ;;  %s3256_s2 = inlined_call_operand.vmem [shape: f32[2,1024,4], index: 2, kind: output, shape index: {}]  }
   0x1   :  { %s2185_s11 = smov 0  }
   0x2 LB: > { %s24_s12 = sadd.s32 1, %s2160_s10  ;;  %p1653_p0 = scmp.ge.s32.totalorder %s2164_s11, 1  ;;  %s2164_s11 = sphi %s2185_s11, %s12_s11   ;;  %s2160_s10 = sphi %s2183_s10, %s3474_s10   ;;  %s2156_s9 = sphi %s2181_s9, %s3473_s9  }
   0x3   : > { %p26_p1 = scmp.ge.s32.totalorder %s24_s12, 2  ;;  %p142_p2 = scmp.lt.s32.totalorder %s2164_s11, 3 }
   0x5   : > { %s3476_s12 = smov (%p26_p1, %s24_s12), 0  ;;  %p143_p3 = pnand %p1653_p0, %p142_p2 }
   0x7   : > { %146 = sbr.rel (%p143_p3) target bundleno = 364 (0x16c), region = 28 }
   0xe   : > { %p176_p4 = scmp.lt.s32.totalorder %s2156_s9, 1  ;;  %vm329_vm0 = vcmask 31744  }
  0x10   : > { %s3478_s9 = smov (!%p176_p4, %s2156_s9), 1 }
  0x11   : > { %s1654_s13 = sshll.u32 %s3478_s9, 2  ;;  %s1790_s14 = sshll.u32 %s3478_s9, 10 }
  0x12   : > { %s179_s17 = scalar_lea.vmem %s3254_s0, %s1654_s13  ;;  %s2211_s20 = scalar_lea.vmem %s3255_s1, %s1790_s14 }
  0x13   : > { %v200_v0 = vld [vmem:[%s179_s17] sm:$0xf]  ;;  %v263_v1 = vld [vmem:[%s2211_s20 + $0x1f0] sm:$0xff]  ;;  %v2219_v2 = vld [vmem:[%s2211_s20 + $0x8] sm:$0xff]  ;;  %s2859_s23 = scalar_lea.vmem %s3256_s2, %s1790_s14 }
  0x14   : > { %1921 = vmatprep.subr.msk.mxu0 %vm329_vm0, %v200_v0  ;;  %2115 = vmatprep.subr.msk.mxu1 %vm329_vm0, %v200_v0  ;;  %v2222_v3 = vld [vmem:[%s2211_s20 + $0x208] sm:$0xff]  ;;  %v2226_v4 = vld [vmem:[%s2211_s20] sm:$0xff]  ;;  %v2240_v6 = vld [vmem:[%s2211_s20 + $0x18] sm:$0xff] }
  0x15   : > { %1922 = vmatpush3.xpose.msk.msra.mxu0 %vm329_vm0, %v200_v0  ;;  %2116 = vmatpush3.xpose.msk.msra.mxu1 %vm329_vm0, %v200_v0  ;;  %v2229_v5 = vld [vmem:[%s2211_s20 + $0x200] sm:$0xff]  ;;  %v2243_v7 = vld [vmem:[%s2211_s20 + $0x218] sm:$0xff]  ;;  %v2246_v8 = vld [vmem:[%s2211_s20 + $0x10] sm:$0xff] }
  0x16   : > { %2016 = vmatprep.mubr.msk.f32.mxu1 %vm329_vm0, %v263_v1  ;;  %v2249_v9 = vld [vmem:[%s2211_s20 + $0x210] sm:$0xff]  ;;  %v2260_v10 = vld [vmem:[%s2211_s20 + $0x28] sm:$0xff]  ;;  %v2266_v12 = vld [vmem:[%s2211_s20 + $0x20] sm:$0xff] }
  0x17   : > { %v2263_v11 = vld [vmem:[%s2211_s20 + $0x228] sm:$0xff]  ;;  %v2269_v13 = vld [vmem:[%s2211_s20 + $0x220] sm:$0xff]  ;;  %v2280_v14 = vld [vmem:[%s2211_s20 + $0x38] sm:$0xff] }
  0x18   : > { %1924 = vmatmul.mubr.msk.f32.vlgmr.msra.gmra.mrb[0].mxu0 %vm329_vm0, %v2219_v2  ;;  %2020 = vmatmul.mubr.msk.f32.vlgmr.msra.gmra.mrb[0].mxu1 %vm329_vm0, %v2222_v3  ;;  %v2283_v15 = vld [vmem:[%s2211_s20 + $0x238] sm:$0xff]  ;;  %v2286_v16 = vld [vmem:[%s2211_s20 + $0x30] sm:$0xff]  ;;  %v2300_v18 = vld [vmem:[%s2211_s20 + $0x48] sm:$0xff] }
  0x19   : > { %1923 = vmatprep.mubr.msk.f32.mxu0 %vm329_vm0, %v2226_v4  ;;  %2019 = vmatprep.mubr.msk.f32.mxu1 %vm329_vm0, %v2229_v5  ;;  %v2289_v17 = vld [vmem:[%s2211_s20 + $0x230] sm:$0xff]  ;;  %v2303_v19 = vld [vmem:[%s2211_s20 + $0x248] sm:$0xff]  ;;  %v2306_v20 = vld [vmem:[%s2211_s20 + $0x40] sm:$0xff] }
  0x1a   : > { %v2309_v21 = vld [vmem:[%s2211_s20 + $0x240] sm:$0xff]  ;;  %v2320_v22 = vld [vmem:[%s2211_s20 + $0x58] sm:$0xff]  ;;  %v2326_v24 = vld [vmem:[%s2211_s20 + $0x50] sm:$0xff] }
  0x1b   : > { %v2323_v23 = vld [vmem:[%s2211_s20 + $0x258] sm:$0xff]  ;;  %v2329_v25 = vld [vmem:[%s2211_s20 + $0x250] sm:$0xff]  ;;  %v2340_v26 = vld [vmem:[%s2211_s20 + $0x68] sm:$0xff] }
  0x1c   : > { %1927 = vmatmul.mubr.msk.f32.gmra.mrb[2].mxu0 %vm329_vm0, %v2240_v6  ;;  %2023 = vmatmul.mubr.msk.f32.gmra.mrb[2].mxu1 %vm329_vm0, %v2243_v7  ;;  %v2343_v27 = vld [vmem:[%s2211_s20 + $0x268] sm:$0xff]  ;;  %v2346_v28 = vld [vmem:[%s2211_s20 + $0x60] sm:$0xff]  ;;  %v2360_v30 = vld [vmem:[%s2211_s20 + $0x78] sm:$0xff] }
  0x1d   : > { %1926 = vmatprep.mubr.msk.f32.mxu0 %vm329_vm0, %v2246_v8  ;;  %2022 = vmatprep.mubr.msk.f32.mxu1 %vm329_vm0, %v2249_v9  ;;  %v2349_v29 = vld [vmem:[%s2211_s20 + $0x260] sm:$0xff]  ;;  %v2363_v31 = vld [vmem:[%s2211_s20 + $0x278] sm:$0xff]  ;;  %v2366_v32 = vld [vmem:[%s2211_s20 + $0x70] sm:$0xff] }
  0x1e   : > { %v2369_v33 = vld [vmem:[%s2211_s20 + $0x270] sm:$0xff]  ;;  %v2380_v34 = vld [vmem:[%s2211_s20 + $0x88] sm:$0xff]  ;;  %v2386_v36 = vld [vmem:[%s2211_s20 + $0x80] sm:$0xff] }
  0x1f   : > { %v2383_v35 = vld [vmem:[%s2211_s20 + $0x288] sm:$0xff]  ;;  %v2389_v37 = vld [vmem:[%s2211_s20 + $0x280] sm:$0xff]  ;;  %v2400_v38 = vld [vmem:[%s2211_s20 + $0x98] sm:$0xff] }
  0x20   : > { %1930 = vmatmul.mubr.msk.f32.gmra.mrb[4].mxu0 %vm329_vm0, %v2260_v10  ;;  %2026 = vmatmul.mubr.msk.f32.gmra.mrb[4].mxu1 %vm329_vm0, %v2263_v11  ;;  %v2403_v39 = vld [vmem:[%s2211_s20 + $0x298] sm:$0xff]  ;;  %v2406_v40 = vld [vmem:[%s2211_s20 + $0x90] sm:$0xff]  ;;  %v2420_v42 = vld [vmem:[%s2211_s20 + $0xa8] sm:$0xff] }
  0x21   : > { %1929 = vmatprep.mubr.msk.f32.mxu0 %vm329_vm0, %v2266_v12  ;;  %2025 = vmatprep.mubr.msk.f32.mxu1 %vm329_vm0, %v2269_v13  ;;  %v2409_v41 = vld [vmem:[%s2211_s20 + $0x290] sm:$0xff]  ;;  %v2423_v43 = vld [vmem:[%s2211_s20 + $0x2a8] sm:$0xff]  ;;  %v2426_v44 = vld [vmem:[%s2211_s20 + $0xa0] sm:$0xff] }
  0x22   : > { %v2429_v45 = vld [vmem:[%s2211_s20 + $0x2a0] sm:$0xff]  ;;  %v2440_v46 = vld [vmem:[%s2211_s20 + $0xb8] sm:$0xff]  ;;  %v2446_v48 = vld [vmem:[%s2211_s20 + $0xb0] sm:$0xff] }
  0x23   : > { %v2443_v47 = vld [vmem:[%s2211_s20 + $0x2b8] sm:$0xff]  ;;  %v2449_v49 = vld [vmem:[%s2211_s20 + $0x2b0] sm:$0xff]  ;;  %v2460_v50 = vld [vmem:[%s2211_s20 + $0xc8] sm:$0xff] }
  0x24   : > { %1933 = vmatmul.mubr.msk.f32.gmra.mrb[6].mxu0 %vm329_vm0, %v2280_v14  ;;  %2029 = vmatmul.mubr.msk.f32.gmra.mrb[6].mxu1 %vm329_vm0, %v2283_v15  ;;  %v2463_v51 = vld [vmem:[%s2211_s20 + $0x2c8] sm:$0xff]  ;;  %v2466_v52 = vld [vmem:[%s2211_s20 + $0xc0] sm:$0xff]  ;;  %v2480_v54 = vld [vmem:[%s2211_s20 + $0xd8] sm:$0xff] }
  0x25   : > { %1932 = vmatprep.mubr.msk.f32.mxu0 %vm329_vm0, %v2286_v16  ;;  %2028 = vmatprep.mubr.msk.f32.mxu1 %vm329_vm0, %v2289_v17  ;;  %v2469_v53 = vld [vmem:[%s2211_s20 + $0x2c0] sm:$0xff]  ;;  %v2483_v55 = vld [vmem:[%s2211_s20 + $0x2d8] sm:$0xff]  ;;  %v2486_v56 = vld [vmem:[%s2211_s20 + $0xd0] sm:$0xff] }
  0x26   : > { %v2489_v57 = vld [vmem:[%s2211_s20 + $0x2d0] sm:$0xff]  ;;  %v2500_v58 = vld [vmem:[%s2211_s20 + $0xe8] sm:$0xff]  ;;  %v2506_v60 = vld [vmem:[%s2211_s20 + $0xe0] sm:$0xff] }
  0x27   : > { %3329 = vst [vmem:[#allocation2_spill] sm:$0xff] %v2489_v57  ;;  %3330 = vst [vmem:[#allocation3_spill] sm:$0xff] %v2500_v58  ;;  %v2503_v59 = vld [vmem:[%s2211_s20 + $0x2e8] sm:$0xff]  ;;  %v2509_v61 = vld [vmem:[%s2211_s20 + $0x2e0] sm:$0xff] }
  0x28   : > { %1936 = vmatmul.mubr.msk.f32.gmra.mrb[8].mxu0 %vm329_vm0, %v2300_v18  ;;  %2032 = vmatmul.mubr.msk.f32.gmra.mrb[8].mxu1 %vm329_vm0, %v2303_v19  ;;  %3331 = vst [vmem:[#allocation4_spill] sm:$0xff] %v2503_v59  ;;  %3332 = vst [vmem:[#allocation5_spill] sm:$0xff] %v2506_v60  ;;  %v2520_v62 = vld [vmem:[%s2211_s20 + $0xf8] sm:$0xff]  ;;  %v2526_v0 = vld [vmem:[%s2211_s20 + $0xf0] sm:$0xff] }
  0x29   : > { %1935 = vmatprep.mubr.msk.f32.mxu0 %vm329_vm0, %v2306_v20  ;;  %2031 = vmatprep.mubr.msk.f32.mxu1 %vm329_vm0, %v2309_v21  ;;  %3333 = vst [vmem:[#allocation6_spill] sm:$0xff] %v2509_v61  ;;  %3334 = vst [vmem:[#allocation7_spill] sm:$0xff] %v2520_v62  ;;  %v2523_v63 = vld [vmem:[%s2211_s20 + $0x2f8] sm:$0xff]  ;;  %v2529_v1 = vld [vmem:[%s2211_s20 + $0x2f0] sm:$0xff] }
  0x2a   : > { %3335 = vst [vmem:[#allocation8_spill] sm:$0xff] %v2523_v63  ;;  %3336 = vst [vmem:[#allocation9_spill] sm:$0xff] %v2526_v0 }
  0x2b   : > { %3337 = vst [vmem:[#allocation10_spill] sm:$0xff] %v2529_v1 }
  0x2c   : > { %1939 = vmatmul.mubr.msk.f32.gmra.mrb[10].mxu0 %vm329_vm0, %v2320_v22  ;;  %2035 = vmatmul.mubr.msk.f32.gmra.mrb[10].mxu1 %vm329_vm0, %v2323_v23 }
  0x2d   : > { %1938 = vmatprep.mubr.msk.f32.mxu0 %vm329_vm0, %v2326_v24  ;;  %2034 = vmatprep.mubr.msk.f32.mxu1 %vm329_vm0, %v2329_v25 }
  0x30   : > { %1942 = vmatmul.mubr.msk.f32.gmra.mrb[12].mxu0 %vm329_vm0, %v2340_v26  ;;  %2038 = vmatmul.mubr.msk.f32.gmra.mrb[12].mxu1 %vm329_vm0, %v2343_v27 }
  0x31   : > { %1941 = vmatprep.mubr.msk.f32.mxu0 %vm329_vm0, %v2346_v28  ;;  %2037 = vmatprep.mubr.msk.f32.mxu1 %vm329_vm0, %v2349_v29 }
  0x34   : > { %1945 = vmatmul.mubr.msk.f32.gmra.mrb[14].mxu0 %vm329_vm0, %v2360_v30  ;;  %2041 = vmatmul.mubr.msk.f32.gmra.mrb[14].mxu1 %vm329_vm0, %v2363_v31 }
  0x35   : > { %1944 = vmatprep.mubr.msk.f32.mxu0 %vm329_vm0, %v2366_v32  ;;  %2040 = vmatprep.mubr.msk.f32.mxu1 %vm329_vm0, %v2369_v33 }
  0x38   : > { %1948 = vmatmul.mubr.msk.f32.gmra.mrb[16].mxu0 %vm329_vm0, %v2380_v34  ;;  %2044 = vmatmul.mubr.msk.f32.gmra.mrb[16].mxu1 %vm329_vm0, %v2383_v35 }
  0x39   : > { %1947 = vmatprep.mubr.msk.f32.mxu0 %vm329_vm0, %v2386_v36  ;;  %2043 = vmatprep.mubr.msk.f32.mxu1 %vm329_vm0, %v2389_v37 }
  0x3c   : > { %1951 = vmatmul.mubr.msk.f32.gmra.mrb[18].mxu0 %vm329_vm0, %v2400_v38  ;;  %2047 = vmatmul.mubr.msk.f32.gmra.mrb[18].mxu1 %vm329_vm0, %v2403_v39 }
  0x3d   : > { %1950 = vmatprep.mubr.msk.f32.mxu0 %vm329_vm0, %v2406_v40  ;;  %2046 = vmatprep.mubr.msk.f32.mxu1 %vm329_vm0, %v2409_v41 }
  0x40   : > { %1954 = vmatmul.mubr.msk.f32.gmra.mrb[20].mxu0 %vm329_vm0, %v2420_v42  ;;  %2050 = vmatmul.mubr.msk.f32.gmra.mrb[20].mxu1 %vm329_vm0, %v2423_v43 }
  0x41   : > { %1953 = vmatprep.mubr.msk.f32.mxu0 %vm329_vm0, %v2426_v44  ;;  %2049 = vmatprep.mubr.msk.f32.mxu1 %vm329_vm0, %v2429_v45 }
  0x44   : > { %1957 = vmatmul.mubr.msk.f32.gmra.mrb[22].mxu0 %vm329_vm0, %v2440_v46  ;;  %2053 = vmatmul.mubr.msk.f32.gmra.mrb[22].mxu1 %vm329_vm0, %v2443_v47 }
  0x45   : > { %1956 = vmatprep.mubr.msk.f32.mxu0 %vm329_vm0, %v2446_v48  ;;  %2052 = vmatprep.mubr.msk.f32.mxu1 %vm329_vm0, %v2449_v49 }
  0x48   : > { %1960 = vmatmul.mubr.msk.f32.gmra.mrb[24].mxu0 %vm329_vm0, %v2460_v50  ;;  %2056 = vmatmul.mubr.msk.f32.gmra.mrb[24].mxu1 %vm329_vm0, %v2463_v51 }
  0x49   : > { %1959 = vmatprep.mubr.msk.f32.mxu0 %vm329_vm0, %v2466_v52  ;;  %2055 = vmatprep.mubr.msk.f32.mxu1 %vm329_vm0, %v2469_v53 }
  0x4c   : > { %1963 = vmatmul.mubr.msk.f32.gmra.mrb[26].mxu0 %vm329_vm0, %v2480_v54  ;;  %2059 = vmatmul.mubr.msk.f32.gmra.mrb[26].mxu1 %vm329_vm0, %v2483_v55 }
  0x4d   : > { %1962 = vmatprep.mubr.msk.f32.mxu0 %vm329_vm0, %v2486_v56  ;;  %2058 = vmatprep.mubr.msk.f32.mxu1 %vm329_vm0, %v2489_v57 }
  0x50   : > { %1966 = vmatmul.mubr.msk.f32.gmra.mrb[28].mxu0 %vm329_vm0, %v2500_v58  ;;  %2062 = vmatmul.mubr.msk.f32.gmra.mrb[28].mxu1 %vm329_vm0, %v2503_v59  ;;  %v2546_v59 = vld [vmem:[%s2211_s20 + $0x100] sm:$0xff] }
  0x51   : > { %1965 = vmatprep.mubr.msk.f32.mxu0 %vm329_vm0, %v2506_v60  ;;  %2061 = vmatprep.mubr.msk.f32.mxu1 %vm329_vm0, %v2509_v61  ;;  %v2540_v61 = vld [vmem:[%s2211_s20 + $0x108] sm:$0xff]  ;;  %3340 = vst [vmem:[#allocation13_spill] sm:$0xff] %v2546_v59  ;;  %v2549_v58 = vld [vmem:[%s2211_s20 + $0x300] sm:$0xff] }
  0x52   : > { %3338 = vst [vmem:[#allocation11_spill] sm:$0xff] %v2540_v61  ;;  %v2543_v60 = vld [vmem:[%s2211_s20 + $0x308] sm:$0xff]  ;;  %3341 = vst [vmem:[#allocation14_spill] sm:$0xff] %v2549_v58 }
  0x53   : > { %3339 = vst [vmem:[#allocation12_spill] sm:$0xff] %v2543_v60 }
  0x54   : > { %1969 = vmatmul.mubr.msk.f32.gmra.mrb[30].mxu0 %vm329_vm0, %v2520_v62  ;;  %2065 = vmatmul.mubr.msk.f32.gmra.mrb[30].mxu1 %vm329_vm0, %v2523_v63  ;;  %v2566_v63 = vld [vmem:[%s2211_s20 + $0x110] sm:$0xff] }
  0x55   : > { %1968 = vmatprep.mubr.msk.f32.mxu0 %vm329_vm0, %v2526_v0  ;;  %2064 = vmatprep.mubr.msk.f32.mxu1 %vm329_vm0, %v2529_v1  ;;  %v2560_v1 = vld [vmem:[%s2211_s20 + $0x118] sm:$0xff]  ;;  %3344 = vst [vmem:[#allocation17_spill] sm:$0xff] %v2566_v63  ;;  %v2569_v62 = vld [vmem:[%s2211_s20 + $0x310] sm:$0xff] }
  0x56   : > { %3342 = vst [vmem:[#allocation15_spill] sm:$0xff] %v2560_v1  ;;  %v2563_v0 = vld [vmem:[%s2211_s20 + $0x318] sm:$0xff]  ;;  %3345 = vst [vmem:[#allocation18_spill] sm:$0xff] %v2569_v62 }
  0x57   : > { %3343 = vst [vmem:[#allocation16_spill] sm:$0xff] %v2563_v0 }
  0x58   : > { %1972 = vmatmul.mubr.msk.f32.gmra.mrb[32].mxu0 %vm329_vm0, %v2540_v61  ;;  %2068 = vmatmul.mubr.msk.f32.gmra.mrb[32].mxu1 %vm329_vm0, %v2543_v60  ;;  %v2586_v60 = vld [vmem:[%s2211_s20 + $0x120] sm:$0xff] }
  0x59   : > { %1971 = vmatprep.mubr.msk.f32.mxu0 %vm329_vm0, %v2546_v59  ;;  %2067 = vmatprep.mubr.msk.f32.mxu1 %vm329_vm0, %v2549_v58  ;;  %v2580_v58 = vld [vmem:[%s2211_s20 + $0x128] sm:$0xff]  ;;  %3348 = vst [vmem:[#allocation21_spill] sm:$0xff] %v2586_v60  ;;  %v2589_v61 = vld [vmem:[%s2211_s20 + $0x320] sm:$0xff] }
  0x5a   : > { %3346 = vst [vmem:[#allocation19_spill] sm:$0xff] %v2580_v58  ;;  %v2583_v59 = vld [vmem:[%s2211_s20 + $0x328] sm:$0xff]  ;;  %3349 = vst [vmem:[#allocation22_spill] sm:$0xff] %v2589_v61 }
  0x5b   : > { %3347 = vst [vmem:[#allocation20_spill] sm:$0xff] %v2583_v59 }
  0x5c   : > { %1975 = vmatmul.mubr.msk.f32.gmra.mrb[34].mxu0 %vm329_vm0, %v2560_v1  ;;  %2071 = vmatmul.mubr.msk.f32.gmra.mrb[34].mxu1 %vm329_vm0, %v2563_v0  ;;  %v2606_v0 = vld [vmem:[%s2211_s20 + $0x130] sm:$0xff] }
  0x5d   : > { %1974 = vmatprep.mubr.msk.f32.mxu0 %vm329_vm0, %v2566_v63  ;;  %2070 = vmatprep.mubr.msk.f32.mxu1 %vm329_vm0, %v2569_v62  ;;  %v2600_v62 = vld [vmem:[%s2211_s20 + $0x138] sm:$0xff]  ;;  %3352 = vst [vmem:[#allocation25_spill] sm:$0xff] %v2606_v0  ;;  %v2609_v1 = vld [vmem:[%s2211_s20 + $0x330] sm:$0xff] }
  0x5e   : > { %3350 = vst [vmem:[#allocation23_spill] sm:$0xff] %v2600_v62  ;;  %v2603_v63 = vld [vmem:[%s2211_s20 + $0x338] sm:$0xff]  ;;  %3353 = vst [vmem:[#allocation26_spill] sm:$0xff] %v2609_v1 }
  0x5f   : > { %3351 = vst [vmem:[#allocation24_spill] sm:$0xff] %v2603_v63 }
  0x60   : > { %1978 = vmatmul.mubr.msk.f32.gmra.mrb[36].mxu0 %vm329_vm0, %v2580_v58  ;;  %2074 = vmatmul.mubr.msk.f32.gmra.mrb[36].mxu1 %vm329_vm0, %v2583_v59  ;;  %v2626_v59 = vld [vmem:[%s2211_s20 + $0x140] sm:$0xff] }
  0x61   : > { %1977 = vmatprep.mubr.msk.f32.mxu0 %vm329_vm0, %v2586_v60  ;;  %2073 = vmatprep.mubr.msk.f32.mxu1 %vm329_vm0, %v2589_v61  ;;  %v2620_v61 = vld [vmem:[%s2211_s20 + $0x148] sm:$0xff]  ;;  %3356 = vst [vmem:[#allocation29_spill] sm:$0xff] %v2626_v59  ;;  %v2629_v58 = vld [vmem:[%s2211_s20 + $0x340] sm:$0xff] }
  0x62   : > { %3354 = vst [vmem:[#allocation27_spill] sm:$0xff] %v2620_v61  ;;  %v2623_v60 = vld [vmem:[%s2211_s20 + $0x348] sm:$0xff]  ;;  %3357 = vst [vmem:[#allocation30_spill] sm:$0xff] %v2629_v58 }
  0x63   : > { %3355 = vst [vmem:[#allocation28_spill] sm:$0xff] %v2623_v60 }
  0x64   : > { %1981 = vmatmul.mubr.msk.f32.gmra.mrb[38].mxu0 %vm329_vm0, %v2600_v62  ;;  %2077 = vmatmul.mubr.msk.f32.gmra.mrb[38].mxu1 %vm329_vm0, %v2603_v63  ;;  %v2646_v63 = vld [vmem:[%s2211_s20 + $0x150] sm:$0xff] }
  0x65   : > { %1980 = vmatprep.mubr.msk.f32.mxu0 %vm329_vm0, %v2606_v0  ;;  %2076 = vmatprep.mubr.msk.f32.mxu1 %vm329_vm0, %v2609_v1  ;;  %v2640_v1 = vld [vmem:[%s2211_s20 + $0x158] sm:$0xff]  ;;  %3360 = vst [vmem:[#allocation33_spill] sm:$0xff] %v2646_v63  ;;  %v2649_v62 = vld [vmem:[%s2211_s20 + $0x350] sm:$0xff] }
  0x66   : > { %3358 = vst [vmem:[#allocation31_spill] sm:$0xff] %v2640_v1  ;;  %v2643_v0 = vld [vmem:[%s2211_s20 + $0x358] sm:$0xff]  ;;  %3361 = vst [vmem:[#allocation34_spill] sm:$0xff] %v2649_v62 }
  0x67   : > { %3359 = vst [vmem:[#allocation32_spill] sm:$0xff] %v2643_v0 }
  0x68   : > { %1984 = vmatmul.mubr.msk.f32.gmra.mrb[40].mxu0 %vm329_vm0, %v2620_v61  ;;  %2080 = vmatmul.mubr.msk.f32.gmra.mrb[40].mxu1 %vm329_vm0, %v2623_v60  ;;  %v2666_v60 = vld [vmem:[%s2211_s20 + $0x160] sm:$0xff] }
  0x69   : > { %1983 = vmatprep.mubr.msk.f32.mxu0 %vm329_vm0, %v2626_v59  ;;  %2079 = vmatprep.mubr.msk.f32.mxu1 %vm329_vm0, %v2629_v58  ;;  %v2660_v58 = vld [vmem:[%s2211_s20 + $0x168] sm:$0xff]  ;;  %3364 = vst [vmem:[#allocation37_spill] sm:$0xff] %v2666_v60  ;;  %v2669_v61 = vld [vmem:[%s2211_s20 + $0x360] sm:$0xff] }
  0x6a   : > { %3362 = vst [vmem:[#allocation35_spill] sm:$0xff] %v2660_v58  ;;  %v2663_v59 = vld [vmem:[%s2211_s20 + $0x368] sm:$0xff]  ;;  %3365 = vst [vmem:[#allocation38_spill] sm:$0xff] %v2669_v61 }
  0x6b   : > { %3363 = vst [vmem:[#allocation36_spill] sm:$0xff] %v2663_v59 }
  0x6c   : > { %1987 = vmatmul.mubr.msk.f32.gmra.mrb[42].mxu0 %vm329_vm0, %v2640_v1  ;;  %2083 = vmatmul.mubr.msk.f32.gmra.mrb[42].mxu1 %vm329_vm0, %v2643_v0  ;;  %v2686_v0 = vld [vmem:[%s2211_s20 + $0x170] sm:$0xff] }
  0x6d   : > { %1986 = vmatprep.mubr.msk.f32.mxu0 %vm329_vm0, %v2646_v63  ;;  %2082 = vmatprep.mubr.msk.f32.mxu1 %vm329_vm0, %v2649_v62  ;;  %v2680_v62 = vld [vmem:[%s2211_s20 + $0x178] sm:$0xff]  ;;  %3368 = vst [vmem:[#allocation41_spill] sm:$0xff] %v2686_v0  ;;  %v2689_v1 = vld [vmem:[%s2211_s20 + $0x370] sm:$0xff] }
  0x6e   : > { %3366 = vst [vmem:[#allocation39_spill] sm:$0xff] %v2680_v62  ;;  %v2683_v63 = vld [vmem:[%s2211_s20 + $0x378] sm:$0xff]  ;;  %3369 = vst [vmem:[#allocation42_spill] sm:$0xff] %v2689_v1 }
  0x6f   : > { %3367 = vst [vmem:[#allocation40_spill] sm:$0xff] %v2683_v63 }
  0x70   : > { %1990 = vmatmul.mubr.msk.f32.gmra.mrb[44].mxu0 %vm329_vm0, %v2660_v58  ;;  %2086 = vmatmul.mubr.msk.f32.gmra.mrb[44].mxu1 %vm329_vm0, %v2663_v59  ;;  %v2706_v59 = vld [vmem:[%s2211_s20 + $0x180] sm:$0xff] }
  0x71   : > { %1989 = vmatprep.mubr.msk.f32.mxu0 %vm329_vm0, %v2666_v60  ;;  %2085 = vmatprep.mubr.msk.f32.mxu1 %vm329_vm0, %v2669_v61  ;;  %v2700_v61 = vld [vmem:[%s2211_s20 + $0x188] sm:$0xff]  ;;  %3372 = vst [vmem:[#allocation45_spill] sm:$0xff] %v2706_v59  ;;  %v2709_v58 = vld [vmem:[%s2211_s20 + $0x380] sm:$0xff] }
  0x72   : > { %3370 = vst [vmem:[#allocation43_spill] sm:$0xff] %v2700_v61  ;;  %v2703_v60 = vld [vmem:[%s2211_s20 + $0x388] sm:$0xff]  ;;  %3373 = vst [vmem:[#allocation46_spill] sm:$0xff] %v2709_v58 }
  0x73   : > { %3371 = vst [vmem:[#allocation44_spill] sm:$0xff] %v2703_v60 }
  0x74   : > { %1993 = vmatmul.mubr.msk.f32.gmra.mrb[46].mxu0 %vm329_vm0, %v2680_v62  ;;  %2089 = vmatmul.mubr.msk.f32.gmra.mrb[46].mxu1 %vm329_vm0, %v2683_v63  ;;  %v2726_v63 = vld [vmem:[%s2211_s20 + $0x190] sm:$0xff] }
  0x75   : > { %1992 = vmatprep.mubr.msk.f32.mxu0 %vm329_vm0, %v2686_v0  ;;  %2088 = vmatprep.mubr.msk.f32.mxu1 %vm329_vm0, %v2689_v1  ;;  %v2720_v1 = vld [vmem:[%s2211_s20 + $0x198] sm:$0xff]  ;;  %3376 = vst [vmem:[#allocation49_spill] sm:$0xff] %v2726_v63  ;;  %v2729_v62 = vld [vmem:[%s2211_s20 + $0x390] sm:$0xff] }
  0x76   : > { %3374 = vst [vmem:[#allocation47_spill] sm:$0xff] %v2720_v1  ;;  %v2723_v0 = vld [vmem:[%s2211_s20 + $0x398] sm:$0xff]  ;;  %3377 = vst [vmem:[#allocation50_spill] sm:$0xff] %v2729_v62 }
  0x77   : > { %3375 = vst [vmem:[#allocation48_spill] sm:$0xff] %v2723_v0 }
  0x78   : > { %1996 = vmatmul.mubr.msk.f32.gmra.mrb[48].mxu0 %vm329_vm0, %v2700_v61  ;;  %2092 = vmatmul.mubr.msk.f32.gmra.mrb[48].mxu1 %vm329_vm0, %v2703_v60  ;;  %v2746_v60 = vld [vmem:[%s2211_s20 + $0x1a0] sm:$0xff] }
  0x79   : > { %1995 = vmatprep.mubr.msk.f32.mxu0 %vm329_vm0, %v2706_v59  ;;  %2091 = vmatprep.mubr.msk.f32.mxu1 %vm329_vm0, %v2709_v58  ;;  %v2740_v58 = vld [vmem:[%s2211_s20 + $0x1a8] sm:$0xff]  ;;  %3380 = vst [vmem:[#allocation53_spill] sm:$0xff] %v2746_v60  ;;  %v2749_v61 = vld [vmem:[%s2211_s20 + $0x3a0] sm:$0xff] }
  0x7a   : > { %3378 = vst [vmem:[#allocation51_spill] sm:$0xff] %v2740_v58  ;;  %v2743_v59 = vld [vmem:[%s2211_s20 + $0x3a8] sm:$0xff]  ;;  %3381 = vst [vmem:[#allocation54_spill] sm:$0xff] %v2749_v61 }
  0x7b   : > { %3379 = vst [vmem:[#allocation52_spill] sm:$0xff] %v2743_v59 }
  0x7c   : > { %1999 = vmatmul.mubr.msk.f32.gmra.mrb[50].mxu0 %vm329_vm0, %v2720_v1  ;;  %2095 = vmatmul.mubr.msk.f32.gmra.mrb[50].mxu1 %vm329_vm0, %v2723_v0  ;;  %v2766_v0 = vld [vmem:[%s2211_s20 + $0x1b0] sm:$0xff] }
  0x7d   : > { %1998 = vmatprep.mubr.msk.f32.mxu0 %vm329_vm0, %v2726_v63  ;;  %2094 = vmatprep.mubr.msk.f32.mxu1 %vm329_vm0, %v2729_v62  ;;  %v2760_v62 = vld [vmem:[%s2211_s20 + $0x1b8] sm:$0xff]  ;;  %3384 = vst [vmem:[#allocation57_spill] sm:$0xff] %v2766_v0  ;;  %v2769_v1 = vld [vmem:[%s2211_s20 + $0x3b0] sm:$0xff] }
  0x7e   : > { %3382 = vst [vmem:[#allocation55_spill] sm:$0xff] %v2760_v62  ;;  %v2763_v63 = vld [vmem:[%s2211_s20 + $0x3b8] sm:$0xff]  ;;  %3385 = vst [vmem:[#allocation58_spill] sm:$0xff] %v2769_v1 }
  0x7f   : > { %3383 = vst [vmem:[#allocation56_spill] sm:$0xff] %v2763_v63 }
  0x80   : > { %2002 = vmatmul.mubr.msk.f32.gmra.mrb[52].mxu0 %vm329_vm0, %v2740_v58  ;;  %2098 = vmatmul.mubr.msk.f32.gmra.mrb[52].mxu1 %vm329_vm0, %v2743_v59  ;;  %v2786_v59 = vld [vmem:[%s2211_s20 + $0x1c0] sm:$0xff] }
  0x81   : > { %2001 = vmatprep.mubr.msk.f32.mxu0 %vm329_vm0, %v2746_v60  ;;  %2097 = vmatprep.mubr.msk.f32.mxu1 %vm329_vm0, %v2749_v61  ;;  %v2780_v61 = vld [vmem:[%s2211_s20 + $0x1c8] sm:$0xff]  ;;  %3388 = vst [vmem:[#allocation61_spill] sm:$0xff] %v2786_v59  ;;  %v2789_v58 = vld [vmem:[%s2211_s20 + $0x3c0] sm:$0xff] }
  0x82   : > { %3386 = vst [vmem:[#allocation59_spill] sm:$0xff] %v2780_v61  ;;  %v2783_v60 = vld [vmem:[%s2211_s20 + $0x3c8] sm:$0xff]  ;;  %3389 = vst [vmem:[#allocation62_spill] sm:$0xff] %v2789_v58 }
  0x83   : > { %3387 = vst [vmem:[#allocation60_spill] sm:$0xff] %v2783_v60 }
  0x84   : > { %2005 = vmatmul.mubr.msk.f32.gmra.mrb[54].mxu0 %vm329_vm0, %v2760_v62  ;;  %2101 = vmatmul.mubr.msk.f32.gmra.mrb[54].mxu1 %vm329_vm0, %v2763_v63  ;;  %v2806_v63 = vld [vmem:[%s2211_s20 + $0x1d0] sm:$0xff] }
  0x85   : > { %2004 = vmatprep.mubr.msk.f32.mxu0 %vm329_vm0, %v2766_v0  ;;  %2100 = vmatprep.mubr.msk.f32.mxu1 %vm329_vm0, %v2769_v1  ;;  %v2800_v1 = vld [vmem:[%s2211_s20 + $0x1d8] sm:$0xff]  ;;  %3392 = vst [vmem:[#allocation65_spill] sm:$0xff] %v2806_v63  ;;  %v2809_v62 = vld [vmem:[%s2211_s20 + $0x3d0] sm:$0xff] }
  0x86   : > { %3390 = vst [vmem:[#allocation63_spill] sm:$0xff] %v2800_v1  ;;  %v2803_v0 = vld [vmem:[%s2211_s20 + $0x3d8] sm:$0xff]  ;;  %3393 = vst [vmem:[#allocation66_spill] sm:$0xff] %v2809_v62 }
  0x87   : > { %3391 = vst [vmem:[#allocation64_spill] sm:$0xff] %v2803_v0 }
  0x88   : > { %2008 = vmatmul.mubr.msk.f32.gmra.mrb[56].mxu0 %vm329_vm0, %v2780_v61  ;;  %2104 = vmatmul.mubr.msk.f32.gmra.mrb[56].mxu1 %vm329_vm0, %v2783_v60  ;;  %v2826_v60 = vld [vmem:[%s2211_s20 + $0x1e0] sm:$0xff] }
  0x89   : > { %2007 = vmatprep.mubr.msk.f32.mxu0 %vm329_vm0, %v2786_v59  ;;  %2103 = vmatprep.mubr.msk.f32.mxu1 %vm329_vm0, %v2789_v58  ;;  %v2820_v58 = vld [vmem:[%s2211_s20 + $0x1e8] sm:$0xff]  ;;  %3396 = vst [vmem:[#allocation69_spill] sm:$0xff] %v2826_v60  ;;  %v2829_v61 = vld [vmem:[%s2211_s20 + $0x3e0] sm:$0xff] }
  0x8a   : > { %3394 = vst [vmem:[#allocation67_spill] sm:$0xff] %v2820_v58  ;;  %v2823_v59 = vld [vmem:[%s2211_s20 + $0x3e8] sm:$0xff]  ;;  %3397 = vst [vmem:[#allocation70_spill] sm:$0xff] %v2829_v61 }
  0x8b   : > { %3395 = vst [vmem:[#allocation68_spill] sm:$0xff] %v2823_v59 }
  0x8c   : > { %2011 = vmatmul.mubr.msk.f32.gmra.mrb[58].mxu0 %vm329_vm0, %v2800_v1  ;;  %2107 = vmatmul.mubr.msk.f32.gmra.mrb[58].mxu1 %vm329_vm0, %v2803_v0 }
  0x8d   : > { %2010 = vmatprep.mubr.msk.f32.mxu0 %vm329_vm0, %v2806_v63  ;;  %2106 = vmatprep.mubr.msk.f32.mxu1 %vm329_vm0, %v2809_v62  ;;  %v2840_v62 = vld [vmem:[%s2211_s20 + $0x1f8] sm:$0xff] }
  0x8e   : > { %3398 = vst [vmem:[#allocation71_spill] sm:$0xff] %v2840_v62  ;;  %v2843_v63 = vld [vmem:[%s2211_s20 + $0x3f8] sm:$0xff] }
  0x8f   : > { %3399 = vst [vmem:[#allocation72_spill] sm:$0xff] %v2843_v63 }
  0x90   : > { %2014 = vmatmul.mubr.msk.f32.gmra.mrb[60].mxu0 %vm329_vm0, %v2820_v58  ;;  %2110 = vmatmul.mubr.msk.f32.gmra.mrb[60].mxu1 %vm329_vm0, %v2823_v59  ;;  %v2850_v58 = vld [vmem:[%s2211_s20 + $0x3f0] sm:$0xff] }
  0x91   : > { %2013 = vmatprep.mubr.msk.f32.mxu0 %vm329_vm0, %v2826_v60  ;;  %2109 = vmatprep.mubr.msk.f32.mxu1 %vm329_vm0, %v2829_v61  ;;  %3400 = vst [vmem:[#allocation73_spill] sm:$0xff] %v2850_v58 }
  0x94   : > { %2017 = vmatmul.mubr.msk.f32.gmra.mrb[62].mxu0 %vm329_vm0, %v2840_v62  ;;  %2113 = vmatmul.mubr.msk.f32.gmra.mrb[62].mxu1 %vm329_vm0, %v2843_v63 }
  0x95   : > { %2112 = vmatprep.mubr.msk.f32.mxu0 %vm329_vm0, %v2850_v58 }
  0xeb   : > { %v1925_v61 = vpop.f32.mrb[0].mxu0  ;;  %v2021_v62 = vpop.f32.mrb[0].mxu1 }
  0xec   : > { %v789_v60 = vadd.f32 %v1925_v61, %v2219_v2  ;;  %v1109_v63 = vadd.f32 %v2021_v62, %v2222_v3  ;;  %v783_v59 = vpop.f32.mrb[1].mxu0  ;;  %v1103_v0 = vpop.f32.mrb[1].mxu1 }
  0xed   : > { %v784_v58 = vadd.f32 %v783_v59, %v2226_v4  ;;  %v1104_v1 = vadd.f32 %v1103_v0, %v2229_v5 }
  0xee   : > { %1423 = vst.msk [vmem:[%s2859_s23 + $0x8] sm:$0xff] %vm329_vm0, %v789_v60  ;;  %1487 = vst.msk [vmem:[%s2859_s23 + $0x208] sm:$0xff] %vm329_vm0, %v1109_v63 }
  0xef   : > { %1422 = vst.msk [vmem:[%s2859_s23] sm:$0xff] %vm329_vm0, %v784_v58  ;;  %1486 = vst.msk [vmem:[%s2859_s23 + $0x200] sm:$0xff] %vm329_vm0, %v1104_v1  ;;  %v1928_v2 = vpop.f32.mrb[2].mxu0  ;;  %v2024_v3 = vpop.f32.mrb[2].mxu1 }
  0xf0   : > { %v799_v61 = vadd.f32 %v1928_v2, %v2240_v6  ;;  %v1119_v62 = vadd.f32 %v2024_v3, %v2243_v7  ;;  %v793_v57 = vpop.f32.mrb[3].mxu0  ;;  %v1113_v4 = vpop.f32.mrb[3].mxu1 }
  0xf1   : > { %v794_v5 = vadd.f32 %v793_v57, %v2246_v8  ;;  %v1114_v59 = vadd.f32 %v1113_v4, %v2249_v9 }
  0xf2   : > { %1425 = vst.msk [vmem:[%s2859_s23 + $0x18] sm:$0xff] %vm329_vm0, %v799_v61  ;;  %1489 = vst.msk [vmem:[%s2859_s23 + $0x218] sm:$0xff] %vm329_vm0, %v1119_v62 }
  0xf3   : > { %1424 = vst.msk [vmem:[%s2859_s23 + $0x10] sm:$0xff] %vm329_vm0, %v794_v5  ;;  %1488 = vst.msk [vmem:[%s2859_s23 + $0x210] sm:$0xff] %vm329_vm0, %v1114_v59  ;;  %v1931_v6 = vpop.f32.mrb[4].mxu0  ;;  %v2027_v7 = vpop.f32.mrb[4].mxu1 }
  0xf4   : > { %v809_v58 = vadd.f32 %v1931_v6, %v2260_v10  ;;  %v1129_v60 = vadd.f32 %v2027_v7, %v2263_v11  ;;  %v803_v63 = vpop.f32.mrb[5].mxu0  ;;  %v1123_v8 = vpop.f32.mrb[5].mxu1 }
  0xf5   : > { %v804_v9 = vadd.f32 %v803_v63, %v2266_v12  ;;  %v1124_v57 = vadd.f32 %v1123_v8, %v2269_v13 }
  0xf6   : > { %1427 = vst.msk [vmem:[%s2859_s23 + $0x28] sm:$0xff] %vm329_vm0, %v809_v58  ;;  %1491 = vst.msk [vmem:[%s2859_s23 + $0x228] sm:$0xff] %vm329_vm0, %v1129_v60 }
  0xf7   : > { %1426 = vst.msk [vmem:[%s2859_s23 + $0x20] sm:$0xff] %vm329_vm0, %v804_v9  ;;  %1490 = vst.msk [vmem:[%s2859_s23 + $0x220] sm:$0xff] %vm329_vm0, %v1124_v57  ;;  %v1934_v10 = vpop.f32.mrb[6].mxu0  ;;  %v2030_v11 = vpop.f32.mrb[6].mxu1 }
  0xf8   : > { %v819_v0 = vadd.f32 %v1934_v10, %v2280_v14  ;;  %v1139_v1 = vadd.f32 %v2030_v11, %v2283_v15  ;;  %v813_v2 = vpop.f32.mrb[7].mxu0  ;;  %v1133_v12 = vpop.f32.mrb[7].mxu1 }
  0xf9   : > { %v814_v13 = vadd.f32 %v813_v2, %v2286_v16  ;;  %v1134_v3 = vadd.f32 %v1133_v12, %v2289_v17 }
  0xfa   : > { %1429 = vst.msk [vmem:[%s2859_s23 + $0x38] sm:$0xff] %vm329_vm0, %v819_v0  ;;  %1493 = vst.msk [vmem:[%s2859_s23 + $0x238] sm:$0xff] %vm329_vm0, %v1139_v1 }
  0xfb   : > { %1428 = vst.msk [vmem:[%s2859_s23 + $0x30] sm:$0xff] %vm329_vm0, %v814_v13  ;;  %1492 = vst.msk [vmem:[%s2859_s23 + $0x230] sm:$0xff] %vm329_vm0, %v1134_v3  ;;  %v1937_v14 = vpop.f32.mrb[8].mxu0  ;;  %v2033_v15 = vpop.f32.mrb[8].mxu1 }
  0xfc   : > { %v829_v61 = vadd.f32 %v1937_v14, %v2300_v18  ;;  %v1149_v62 = vadd.f32 %v2033_v15, %v2303_v19  ;;  %v823_v4 = vpop.f32.mrb[9].mxu0  ;;  %v1143_v16 = vpop.f32.mrb[9].mxu1 }
  0xfd   : > { %v824_v17 = vadd.f32 %v823_v4, %v2306_v20  ;;  %v1144_v5 = vadd.f32 %v1143_v16, %v2309_v21 }
  0xfe   : > { %1431 = vst.msk [vmem:[%s2859_s23 + $0x48] sm:$0xff] %vm329_vm0, %v829_v61  ;;  %1495 = vst.msk [vmem:[%s2859_s23 + $0x248] sm:$0xff] %vm329_vm0, %v1149_v62 }
  0xff   : > { %1430 = vst.msk [vmem:[%s2859_s23 + $0x40] sm:$0xff] %vm329_vm0, %v824_v17  ;;  %1494 = vst.msk [vmem:[%s2859_s23 + $0x240] sm:$0xff] %vm329_vm0, %v1144_v5  ;;  %v1940_v18 = vpop.f32.mrb[10].mxu0  ;;  %v2036_v19 = vpop.f32.mrb[10].mxu1 }
 0x100   : > { %v839_v59 = vadd.f32 %v1940_v18, %v2320_v22  ;;  %v1159_v6 = vadd.f32 %v2036_v19, %v2323_v23  ;;  %v833_v7 = vpop.f32.mrb[11].mxu0  ;;  %v1153_v20 = vpop.f32.mrb[11].mxu1 }
 0x101   : > { %v834_v21 = vadd.f32 %v833_v7, %v2326_v24  ;;  %v1154_v58 = vadd.f32 %v1153_v20, %v2329_v25 }
 0x102   : > { %1433 = vst.msk [vmem:[%s2859_s23 + $0x58] sm:$0xff] %vm329_vm0, %v839_v59  ;;  %1497 = vst.msk [vmem:[%s2859_s23 + $0x258] sm:$0xff] %vm329_vm0, %v1159_v6 }
 0x103   : > { %1432 = vst.msk [vmem:[%s2859_s23 + $0x50] sm:$0xff] %vm329_vm0, %v834_v21  ;;  %1496 = vst.msk [vmem:[%s2859_s23 + $0x250] sm:$0xff] %vm329_vm0, %v1154_v58  ;;  %v1943_v22 = vpop.f32.mrb[12].mxu0  ;;  %v2039_v23 = vpop.f32.mrb[12].mxu1 }
 0x104   : > { %v849_v60 = vadd.f32 %v1943_v22, %v2340_v26  ;;  %v1169_v63 = vadd.f32 %v2039_v23, %v2343_v27  ;;  %v843_v8 = vpop.f32.mrb[13].mxu0  ;;  %v1163_v24 = vpop.f32.mrb[13].mxu1 }
 0x105   : > { %v844_v25 = vadd.f32 %v843_v8, %v2346_v28  ;;  %v1164_v9 = vadd.f32 %v1163_v24, %v2349_v29  ;;  %v3402_v8 = vld [vmem:[#allocation3_spill] sm:$0xff] }
 0x106   : > { %1435 = vst.msk [vmem:[%s2859_s23 + $0x68] sm:$0xff] %vm329_vm0, %v849_v60  ;;  %1499 = vst.msk [vmem:[%s2859_s23 + $0x268] sm:$0xff] %vm329_vm0, %v1169_v63  ;;  %v3401_v60 = vld [vmem:[#allocation2_spill] sm:$0xff] }
 0x107   : > { %1434 = vst.msk [vmem:[%s2859_s23 + $0x60] sm:$0xff] %vm329_vm0, %v844_v25  ;;  %1498 = vst.msk [vmem:[%s2859_s23 + $0x260] sm:$0xff] %vm329_vm0, %v1164_v9  ;;  %v1946_v26 = vpop.f32.mrb[14].mxu0  ;;  %v2042_v27 = vpop.f32.mrb[14].mxu1  ;;  %v3403_v25 = vld [vmem:[#allocation4_spill] sm:$0xff] }
 0x108   : > { %v859_v57 = vadd.f32 %v1946_v26, %v2360_v30  ;;  %v1179_v10 = vadd.f32 %v2042_v27, %v2363_v31  ;;  %v853_v11 = vpop.f32.mrb[15].mxu0  ;;  %v1173_v28 = vpop.f32.mrb[15].mxu1  ;;  %v3404_v27 = vld [vmem:[#allocation5_spill] sm:$0xff] }
 0x109   : > { %v854_v29 = vadd.f32 %v853_v11, %v2366_v32  ;;  %v1174_v0 = vadd.f32 %v1173_v28, %v2369_v33 }
 0x10a   : > { %1437 = vst.msk [vmem:[%s2859_s23 + $0x78] sm:$0xff] %vm329_vm0, %v859_v57  ;;  %1501 = vst.msk [vmem:[%s2859_s23 + $0x278] sm:$0xff] %vm329_vm0, %v1179_v10  ;;  %v3405_v10 = vld [vmem:[#allocation6_spill] sm:$0xff] }
 0x10b   : > { %1436 = vst.msk [vmem:[%s2859_s23 + $0x70] sm:$0xff] %vm329_vm0, %v854_v29  ;;  %1500 = vst.msk [vmem:[%s2859_s23 + $0x270] sm:$0xff] %vm329_vm0, %v1174_v0  ;;  %v1949_v30 = vpop.f32.mrb[16].mxu0  ;;  %v2045_v31 = vpop.f32.mrb[16].mxu1  ;;  %v3406_v0 = vld [vmem:[#allocation7_spill] sm:$0xff] }
 0x10c   : > { %v869_v1 = vadd.f32 %v1949_v30, %v2380_v34  ;;  %v1189_v2 = vadd.f32 %v2045_v31, %v2383_v35  ;;  %v863_v12 = vpop.f32.mrb[17].mxu0  ;;  %v1183_v32 = vpop.f32.mrb[17].mxu1  ;;  %v3407_v31 = vld [vmem:[#allocation8_spill] sm:$0xff] }
 0x10d   : > { %v864_v33 = vadd.f32 %v863_v12, %v2386_v36  ;;  %v1184_v13 = vadd.f32 %v1183_v32, %v2389_v37  ;;  %v3408_v32 = vld [vmem:[#allocation9_spill] sm:$0xff] }
 0x10e   : > { %1439 = vst.msk [vmem:[%s2859_s23 + $0x88] sm:$0xff] %vm329_vm0, %v869_v1  ;;  %1503 = vst.msk [vmem:[%s2859_s23 + $0x288] sm:$0xff] %vm329_vm0, %v1189_v2 }
 0x10f   : > { %1438 = vst.msk [vmem:[%s2859_s23 + $0x80] sm:$0xff] %vm329_vm0, %v864_v33  ;;  %1502 = vst.msk [vmem:[%s2859_s23 + $0x280] sm:$0xff] %vm329_vm0, %v1184_v13  ;;  %v1952_v34 = vpop.f32.mrb[18].mxu0  ;;  %v2048_v35 = vpop.f32.mrb[18].mxu1  ;;  %v3409_v13 = vld [vmem:[#allocation10_spill] sm:$0xff] }
 0x110   : > { %v879_v3 = vadd.f32 %v1952_v34, %v2400_v38  ;;  %v1199_v14 = vadd.f32 %v2048_v35, %v2403_v39  ;;  %v873_v15 = vpop.f32.mrb[19].mxu0  ;;  %v1193_v36 = vpop.f32.mrb[19].mxu1 }
 0x111   : > { %v874_v37 = vadd.f32 %v873_v15, %v2406_v40  ;;  %v1194_v61 = vadd.f32 %v1193_v36, %v2409_v41  ;;  %v3411_v36 = vld [vmem:[#allocation12_spill] sm:$0xff] }
 0x112   : > { %1441 = vst.msk [vmem:[%s2859_s23 + $0x98] sm:$0xff] %vm329_vm0, %v879_v3  ;;  %1505 = vst.msk [vmem:[%s2859_s23 + $0x298] sm:$0xff] %vm329_vm0, %v1199_v14  ;;  %v3410_v14 = vld [vmem:[#allocation11_spill] sm:$0xff] }
 0x113   : > { %1440 = vst.msk [vmem:[%s2859_s23 + $0x90] sm:$0xff] %vm329_vm0, %v874_v37  ;;  %1504 = vst.msk [vmem:[%s2859_s23 + $0x290] sm:$0xff] %vm329_vm0, %v1194_v61  ;;  %v1955_v38 = vpop.f32.mrb[20].mxu0  ;;  %v2051_v39 = vpop.f32.mrb[20].mxu1 }
 0x114   : > { %v889_v62 = vadd.f32 %v1955_v38, %v2420_v42  ;;  %v1209_v4 = vadd.f32 %v2051_v39, %v2423_v43  ;;  %v883_v16 = vpop.f32.mrb[21].mxu0  ;;  %v1203_v40 = vpop.f32.mrb[21].mxu1  ;;  %v3412_v39 = vld [vmem:[#allocation13_spill] sm:$0xff] }
 0x115   : > { %v884_v41 = vadd.f32 %v883_v16, %v2426_v44  ;;  %v1204_v17 = vadd.f32 %v1203_v40, %v2429_v45 }
 0x116   : > { %1443 = vst.msk [vmem:[%s2859_s23 + $0xa8] sm:$0xff] %vm329_vm0, %v889_v62  ;;  %1507 = vst.msk [vmem:[%s2859_s23 + $0x2a8] sm:$0xff] %vm329_vm0, %v1209_v4  ;;  %v3413_v4 = vld [vmem:[#allocation14_spill] sm:$0xff] }
 0x117   : > { %1442 = vst.msk [vmem:[%s2859_s23 + $0xa0] sm:$0xff] %vm329_vm0, %v884_v41  ;;  %1506 = vst.msk [vmem:[%s2859_s23 + $0x2a0] sm:$0xff] %vm329_vm0, %v1204_v17  ;;  %v1958_v42 = vpop.f32.mrb[22].mxu0  ;;  %v2054_v43 = vpop.f32.mrb[22].mxu1  ;;  %v3414_v17 = vld [vmem:[#allocation15_spill] sm:$0xff] }
 0x118   : > { %v899_v5 = vadd.f32 %v1958_v42, %v2440_v46  ;;  %v1219_v18 = vadd.f32 %v2054_v43, %v2443_v47  ;;  %v893_v19 = vpop.f32.mrb[23].mxu0  ;;  %v1213_v44 = vpop.f32.mrb[23].mxu1  ;;  %v3415_v43 = vld [vmem:[#allocation16_spill] sm:$0xff] }
 0x119   : > { %v894_v45 = vadd.f32 %v893_v19, %v2446_v48  ;;  %v1214_v59 = vadd.f32 %v1213_v44, %v2449_v49  ;;  %v3416_v44 = vld [vmem:[#allocation17_spill] sm:$0xff] }
 0x11a   : > { %1445 = vst.msk [vmem:[%s2859_s23 + $0xb8] sm:$0xff] %vm329_vm0, %v899_v5  ;;  %1509 = vst.msk [vmem:[%s2859_s23 + $0x2b8] sm:$0xff] %vm329_vm0, %v1219_v18 }
 0x11b   : > { %1444 = vst.msk [vmem:[%s2859_s23 + $0xb0] sm:$0xff] %vm329_vm0, %v894_v45  ;;  %1508 = vst.msk [vmem:[%s2859_s23 + $0x2b0] sm:$0xff] %vm329_vm0, %v1214_v59  ;;  %v1961_v46 = vpop.f32.mrb[24].mxu0  ;;  %v2057_v47 = vpop.f32.mrb[24].mxu1  ;;  %v3417_v59 = vld [vmem:[#allocation18_spill] sm:$0xff] }
 0x11c   : > { %v909_v6 = vadd.f32 %v1961_v46, %v2460_v50  ;;  %v1229_v7 = vadd.f32 %v2057_v47, %v2463_v51  ;;  %v903_v20 = vpop.f32.mrb[25].mxu0  ;;  %v1223_v48 = vpop.f32.mrb[25].mxu1 }
 0x11d   : > { %v904_v49 = vadd.f32 %v903_v20, %v2466_v52  ;;  %v1224_v21 = vadd.f32 %v1223_v48, %v2469_v53  ;;  %v3419_v48 = vld [vmem:[#allocation20_spill] sm:$0xff] }
 0x11e   : > { %1447 = vst.msk [vmem:[%s2859_s23 + $0xc8] sm:$0xff] %vm329_vm0, %v909_v6  ;;  %1511 = vst.msk [vmem:[%s2859_s23 + $0x2c8] sm:$0xff] %vm329_vm0, %v1229_v7  ;;  %v3418_v7 = vld [vmem:[#allocation19_spill] sm:$0xff] }
 0x11f   : > { %1446 = vst.msk [vmem:[%s2859_s23 + $0xc0] sm:$0xff] %vm329_vm0, %v904_v49  ;;  %1510 = vst.msk [vmem:[%s2859_s23 + $0x2c0] sm:$0xff] %vm329_vm0, %v1224_v21  ;;  %v1964_v50 = vpop.f32.mrb[26].mxu0  ;;  %v2060_v51 = vpop.f32.mrb[26].mxu1 }
 0x120   : > { %v919_v58 = vadd.f32 %v1964_v50, %v2480_v54  ;;  %v1239_v22 = vadd.f32 %v2060_v51, %v2483_v55  ;;  %v913_v23 = vpop.f32.mrb[27].mxu0  ;;  %v1233_v52 = vpop.f32.mrb[27].mxu1  ;;  %v3420_v51 = vld [vmem:[#allocation21_spill] sm:$0xff] }
 0x121   : > { %v914_v53 = vadd.f32 %v913_v23, %v2486_v56  ;;  %v1234_v63 = vadd.f32 %v1233_v52, %v3401_v60  ;;  %v3422_v60 = vld [vmem:[#allocation23_spill] sm:$0xff] }
 0x122   : > { %1449 = vst.msk [vmem:[%s2859_s23 + $0xd8] sm:$0xff] %vm329_vm0, %v919_v58  ;;  %1513 = vst.msk [vmem:[%s2859_s23 + $0x2d8] sm:$0xff] %vm329_vm0, %v1239_v22  ;;  %v3421_v22 = vld [vmem:[#allocation22_spill] sm:$0xff] }
 0x123   : > { %1448 = vst.msk [vmem:[%s2859_s23 + $0xd0] sm:$0xff] %vm329_vm0, %v914_v53  ;;  %1512 = vst.msk [vmem:[%s2859_s23 + $0x2d0] sm:$0xff] %vm329_vm0, %v1234_v63  ;;  %v1967_v54 = vpop.f32.mrb[28].mxu0  ;;  %v2063_v55 = vpop.f32.mrb[28].mxu1 }
 0x124   : > { %v929_v24 = vadd.f32 %v1967_v54, %v3402_v8  ;;  %v1249_v9 = vadd.f32 %v2063_v55, %v3403_v25  ;;  %v923_v26 = vpop.f32.mrb[29].mxu0  ;;  %v1243_v56 = vpop.f32.mrb[29].mxu1  ;;  %v3423_v54 = vld [vmem:[#allocation24_spill] sm:$0xff]  ;;  %v3424_v25 = vld [vmem:[#allocation25_spill] sm:$0xff] }
 0x125   : > { %v924_v57 = vadd.f32 %v923_v26, %v3404_v27  ;;  %v1244_v11 = vadd.f32 %v1243_v56, %v3405_v10  ;;  %v3425_v26 = vld [vmem:[#allocation26_spill] sm:$0xff]  ;;  %v3426_v10 = vld [vmem:[#allocation27_spill] sm:$0xff] }
 0x126   : > { %1451 = vst.msk [vmem:[%s2859_s23 + $0xe8] sm:$0xff] %vm329_vm0, %v929_v24  ;;  %1515 = vst.msk [vmem:[%s2859_s23 + $0x2e8] sm:$0xff] %vm329_vm0, %v1249_v9 }
 0x127   : > { %1450 = vst.msk [vmem:[%s2859_s23 + $0xe0] sm:$0xff] %vm329_vm0, %v924_v57  ;;  %1514 = vst.msk [vmem:[%s2859_s23 + $0x2e0] sm:$0xff] %vm329_vm0, %v1244_v11  ;;  %v1970_v28 = vpop.f32.mrb[30].mxu0  ;;  %v2066_v29 = vpop.f32.mrb[30].mxu1 }
 0x128   : > { %v939_v30 = vadd.f32 %v1970_v28, %v3406_v0  ;;  %v1259_v1 = vadd.f32 %v2066_v29, %v3407_v31  ;;  %v933_v2 = vpop.f32.mrb[31].mxu0  ;;  %v1253_v12 = vpop.f32.mrb[31].mxu1  ;;  %v3427_v28 = vld [vmem:[#allocation28_spill] sm:$0xff]  ;;  %v3428_v31 = vld [vmem:[#allocation29_spill] sm:$0xff] }
 0x129   : > { %v934_v33 = vadd.f32 %v933_v2, %v3408_v32  ;;  %v1254_v34 = vadd.f32 %v1253_v12, %v3409_v13  ;;  %v3429_v2 = vld [vmem:[#allocation30_spill] sm:$0xff]  ;;  %v3430_v13 = vld [vmem:[#allocation31_spill] sm:$0xff] }
 0x12a   : > { %1453 = vst.msk [vmem:[%s2859_s23 + $0xf8] sm:$0xff] %vm329_vm0, %v939_v30  ;;  %1517 = vst.msk [vmem:[%s2859_s23 + $0x2f8] sm:$0xff] %vm329_vm0, %v1259_v1 }
 0x12b   : > { %1452 = vst.msk [vmem:[%s2859_s23 + $0xf0] sm:$0xff] %vm329_vm0, %v934_v33  ;;  %1516 = vst.msk [vmem:[%s2859_s23 + $0x2f0] sm:$0xff] %vm329_vm0, %v1254_v34  ;;  %v1973_v35 = vpop.f32.mrb[32].mxu0  ;;  %v2069_v3 = vpop.f32.mrb[32].mxu1 }
 0x12c   : > { %v949_v15 = vadd.f32 %v1973_v35, %v3410_v14  ;;  %v1269_v37 = vadd.f32 %v2069_v3, %v3411_v36  ;;  %v943_v61 = vpop.f32.mrb[33].mxu0  ;;  %v1263_v38 = vpop.f32.mrb[33].mxu1  ;;  %v3431_v35 = vld [vmem:[#allocation32_spill] sm:$0xff]  ;;  %v3432_v36 = vld [vmem:[#allocation33_spill] sm:$0xff] }
 0x12d   : > { %v944_v62 = vadd.f32 %v943_v61, %v3412_v39  ;;  %v1264_v16 = vadd.f32 %v1263_v38, %v3413_v4  ;;  %v3433_v61 = vld [vmem:[#allocation34_spill] sm:$0xff]  ;;  %v3434_v4 = vld [vmem:[#allocation35_spill] sm:$0xff] }
 0x12e   : > { %1455 = vst.msk [vmem:[%s2859_s23 + $0x108] sm:$0xff] %vm329_vm0, %v949_v15  ;;  %1519 = vst.msk [vmem:[%s2859_s23 + $0x308] sm:$0xff] %vm329_vm0, %v1269_v37 }
 0x12f   : > { %1454 = vst.msk [vmem:[%s2859_s23 + $0x100] sm:$0xff] %vm329_vm0, %v944_v62  ;;  %1518 = vst.msk [vmem:[%s2859_s23 + $0x300] sm:$0xff] %vm329_vm0, %v1264_v16  ;;  %v1976_v40 = vpop.f32.mrb[34].mxu0  ;;  %v2072_v41 = vpop.f32.mrb[34].mxu1 }
 0x130   : > { %v959_v42 = vadd.f32 %v1976_v40, %v3414_v17  ;;  %v1279_v5 = vadd.f32 %v2072_v41, %v3415_v43  ;;  %v953_v18 = vpop.f32.mrb[35].mxu0  ;;  %v1273_v19 = vpop.f32.mrb[35].mxu1  ;;  %v3435_v40 = vld [vmem:[#allocation36_spill] sm:$0xff]  ;;  %v3436_v43 = vld [vmem:[#allocation37_spill] sm:$0xff] }
 0x131   : > { %v954_v45 = vadd.f32 %v953_v18, %v3416_v44  ;;  %v1274_v46 = vadd.f32 %v1273_v19, %v3417_v59  ;;  %v3437_v18 = vld [vmem:[#allocation38_spill] sm:$0xff]  ;;  %v3438_v59 = vld [vmem:[#allocation39_spill] sm:$0xff] }
 0x132   : > { %1457 = vst.msk [vmem:[%s2859_s23 + $0x118] sm:$0xff] %vm329_vm0, %v959_v42  ;;  %1521 = vst.msk [vmem:[%s2859_s23 + $0x318] sm:$0xff] %vm329_vm0, %v1279_v5 }
 0x133   : > { %1456 = vst.msk [vmem:[%s2859_s23 + $0x110] sm:$0xff] %vm329_vm0, %v954_v45  ;;  %1520 = vst.msk [vmem:[%s2859_s23 + $0x310] sm:$0xff] %vm329_vm0, %v1274_v46  ;;  %v1979_v47 = vpop.f32.mrb[36].mxu0  ;;  %v2075_v6 = vpop.f32.mrb[36].mxu1 }
 0x134   : > { %v969_v20 = vadd.f32 %v1979_v47, %v3418_v7  ;;  %v1289_v49 = vadd.f32 %v2075_v6, %v3419_v48  ;;  %v963_v21 = vpop.f32.mrb[37].mxu0  ;;  %v1283_v50 = vpop.f32.mrb[37].mxu1  ;;  %v3439_v47 = vld [vmem:[#allocation40_spill] sm:$0xff]  ;;  %v3440_v48 = vld [vmem:[#allocation41_spill] sm:$0xff] }
 0x135   : > { %v964_v58 = vadd.f32 %v963_v21, %v3420_v51  ;;  %v1284_v23 = vadd.f32 %v1283_v50, %v3421_v22  ;;  %v3441_v21 = vld [vmem:[#allocation42_spill] sm:$0xff]  ;;  %v3442_v22 = vld [vmem:[#allocation43_spill] sm:$0xff] }
 0x136   : > { %1459 = vst.msk [vmem:[%s2859_s23 + $0x128] sm:$0xff] %vm329_vm0, %v969_v20  ;;  %1523 = vst.msk [vmem:[%s2859_s23 + $0x328] sm:$0xff] %vm329_vm0, %v1289_v49 }
 0x137   : > { %1458 = vst.msk [vmem:[%s2859_s23 + $0x120] sm:$0xff] %vm329_vm0, %v964_v58  ;;  %1522 = vst.msk [vmem:[%s2859_s23 + $0x320] sm:$0xff] %vm329_vm0, %v1284_v23  ;;  %v1982_v52 = vpop.f32.mrb[38].mxu0  ;;  %v2078_v53 = vpop.f32.mrb[38].mxu1 }
 0x138   : > { %v979_v63 = vadd.f32 %v1982_v52, %v3422_v60  ;;  %v1299_v55 = vadd.f32 %v2078_v53, %v3423_v54  ;;  %v973_v8 = vpop.f32.mrb[39].mxu0  ;;  %v1293_v24 = vpop.f32.mrb[39].mxu1  ;;  %v3443_v52 = vld [vmem:[#allocation44_spill] sm:$0xff]  ;;  %v3444_v54 = vld [vmem:[#allocation45_spill] sm:$0xff] }
 0x139   : > { %v974_v9 = vadd.f32 %v973_v8, %v3424_v25  ;;  %v1294_v56 = vadd.f32 %v1293_v24, %v3425_v26  ;;  %v3445_v8 = vld [vmem:[#allocation46_spill] sm:$0xff]  ;;  %v3446_v26 = vld [vmem:[#allocation47_spill] sm:$0xff] }
 0x13a   : > { %1461 = vst.msk [vmem:[%s2859_s23 + $0x138] sm:$0xff] %vm329_vm0, %v979_v63  ;;  %1525 = vst.msk [vmem:[%s2859_s23 + $0x338] sm:$0xff] %vm329_vm0, %v1299_v55 }
 0x13b   : > { %1460 = vst.msk [vmem:[%s2859_s23 + $0x130] sm:$0xff] %vm329_vm0, %v974_v9  ;;  %1524 = vst.msk [vmem:[%s2859_s23 + $0x330] sm:$0xff] %vm329_vm0, %v1294_v56  ;;  %v1985_v27 = vpop.f32.mrb[40].mxu0  ;;  %v2081_v57 = vpop.f32.mrb[40].mxu1 }
 0x13c   : > { %v989_v11 = vadd.f32 %v1985_v27, %v3426_v10  ;;  %v1309_v29 = vadd.f32 %v2081_v57, %v3427_v28  ;;  %v983_v0 = vpop.f32.mrb[41].mxu0  ;;  %v1303_v30 = vpop.f32.mrb[41].mxu1  ;;  %v3447_v27 = vld [vmem:[#allocation48_spill] sm:$0xff]  ;;  %v3448_v28 = vld [vmem:[#allocation49_spill] sm:$0xff] }
 0x13d   : > { %v984_v1 = vadd.f32 %v983_v0, %v3428_v31  ;;  %v1304_v12 = vadd.f32 %v1303_v30, %v3429_v2  ;;  %v3449_v0 = vld [vmem:[#allocation50_spill] sm:$0xff]  ;;  %v3450_v2 = vld [vmem:[#allocation51_spill] sm:$0xff] }
 0x13e   : > { %1463 = vst.msk [vmem:[%s2859_s23 + $0x148] sm:$0xff] %vm329_vm0, %v989_v11  ;;  %1527 = vst.msk [vmem:[%s2859_s23 + $0x348] sm:$0xff] %vm329_vm0, %v1309_v29 }
 0x13f   : > { %1462 = vst.msk [vmem:[%s2859_s23 + $0x140] sm:$0xff] %vm329_vm0, %v984_v1  ;;  %1526 = vst.msk [vmem:[%s2859_s23 + $0x340] sm:$0xff] %vm329_vm0, %v1304_v12  ;;  %v1988_v32 = vpop.f32.mrb[42].mxu0  ;;  %v2084_v33 = vpop.f32.mrb[42].mxu1 }
 0x140   : > { %v999_v34 = vadd.f32 %v1988_v32, %v3430_v13  ;;  %v1319_v3 = vadd.f32 %v2084_v33, %v3431_v35  ;;  %v993_v14 = vpop.f32.mrb[43].mxu0  ;;  %v1313_v15 = vpop.f32.mrb[43].mxu1  ;;  %v3451_v32 = vld [vmem:[#allocation52_spill] sm:$0xff]  ;;  %v3452_v35 = vld [vmem:[#allocation53_spill] sm:$0xff] }
 0x141   : > { %v994_v37 = vadd.f32 %v993_v14, %v3432_v36  ;;  %v1314_v38 = vadd.f32 %v1313_v15, %v3433_v61  ;;  %v3453_v14 = vld [vmem:[#allocation54_spill] sm:$0xff]  ;;  %v3454_v61 = vld [vmem:[#allocation55_spill] sm:$0xff] }
 0x142   : > { %1465 = vst.msk [vmem:[%s2859_s23 + $0x158] sm:$0xff] %vm329_vm0, %v999_v34  ;;  %1529 = vst.msk [vmem:[%s2859_s23 + $0x358] sm:$0xff] %vm329_vm0, %v1319_v3 }
 0x143   : > { %1464 = vst.msk [vmem:[%s2859_s23 + $0x150] sm:$0xff] %vm329_vm0, %v994_v37  ;;  %1528 = vst.msk [vmem:[%s2859_s23 + $0x350] sm:$0xff] %vm329_vm0, %v1314_v38  ;;  %v1991_v39 = vpop.f32.mrb[44].mxu0  ;;  %v2087_v62 = vpop.f32.mrb[44].mxu1 }
 0x144   : > { %v1009_v16 = vadd.f32 %v1991_v39, %v3434_v4  ;;  %v1329_v41 = vadd.f32 %v2087_v62, %v3435_v40  ;;  %v1003_v17 = vpop.f32.mrb[45].mxu0  ;;  %v1323_v42 = vpop.f32.mrb[45].mxu1  ;;  %v3455_v39 = vld [vmem:[#allocation56_spill] sm:$0xff]  ;;  %v3456_v40 = vld [vmem:[#allocation57_spill] sm:$0xff] }
 0x145   : > { %v1004_v5 = vadd.f32 %v1003_v17, %v3436_v43  ;;  %v1324_v19 = vadd.f32 %v1323_v42, %v3437_v18  ;;  %v3457_v17 = vld [vmem:[#allocation58_spill] sm:$0xff]  ;;  %v3458_v18 = vld [vmem:[#allocation59_spill] sm:$0xff] }
 0x146   : > { %1467 = vst.msk [vmem:[%s2859_s23 + $0x168] sm:$0xff] %vm329_vm0, %v1009_v16  ;;  %1531 = vst.msk [vmem:[%s2859_s23 + $0x368] sm:$0xff] %vm329_vm0, %v1329_v41 }
 0x147   : > { %1466 = vst.msk [vmem:[%s2859_s23 + $0x160] sm:$0xff] %vm329_vm0, %v1004_v5  ;;  %1530 = vst.msk [vmem:[%s2859_s23 + $0x360] sm:$0xff] %vm329_vm0, %v1324_v19  ;;  %v1994_v44 = vpop.f32.mrb[46].mxu0  ;;  %v2090_v45 = vpop.f32.mrb[46].mxu1 }
 0x148   : > { %v1019_v46 = vadd.f32 %v1994_v44, %v3438_v59  ;;  %v1339_v6 = vadd.f32 %v2090_v45, %v3439_v47  ;;  %v1013_v7 = vpop.f32.mrb[47].mxu0  ;;  %v1333_v20 = vpop.f32.mrb[47].mxu1  ;;  %v3459_v44 = vld [vmem:[#allocation60_spill] sm:$0xff]  ;;  %v3460_v47 = vld [vmem:[#allocation61_spill] sm:$0xff] }
 0x149   : > { %v1014_v49 = vadd.f32 %v1013_v7, %v3440_v48  ;;  %v1334_v50 = vadd.f32 %v1333_v20, %v3441_v21  ;;  %v3461_v7 = vld [vmem:[#allocation62_spill] sm:$0xff]  ;;  %v3462_v21 = vld [vmem:[#allocation63_spill] sm:$0xff] }
 0x14a   : > { %1469 = vst.msk [vmem:[%s2859_s23 + $0x178] sm:$0xff] %vm329_vm0, %v1019_v46  ;;  %1533 = vst.msk [vmem:[%s2859_s23 + $0x378] sm:$0xff] %vm329_vm0, %v1339_v6 }
 0x14b   : > { %1468 = vst.msk [vmem:[%s2859_s23 + $0x170] sm:$0xff] %vm329_vm0, %v1014_v49  ;;  %1532 = vst.msk [vmem:[%s2859_s23 + $0x370] sm:$0xff] %vm329_vm0, %v1334_v50  ;;  %v1997_v51 = vpop.f32.mrb[48].mxu0  ;;  %v2093_v58 = vpop.f32.mrb[48].mxu1 }
 0x14c   : > { %v1029_v23 = vadd.f32 %v1997_v51, %v3442_v22  ;;  %v1349_v53 = vadd.f32 %v2093_v58, %v3443_v52  ;;  %v1023_v60 = vpop.f32.mrb[49].mxu0  ;;  %v1343_v63 = vpop.f32.mrb[49].mxu1  ;;  %v3463_v51 = vld [vmem:[#allocation64_spill] sm:$0xff]  ;;  %v3464_v52 = vld [vmem:[#allocation65_spill] sm:$0xff] }
 0x14d   : > { %v1024_v55 = vadd.f32 %v1023_v60, %v3444_v54  ;;  %v1344_v24 = vadd.f32 %v1343_v63, %v3445_v8  ;;  %v3465_v60 = vld [vmem:[#allocation66_spill] sm:$0xff]  ;;  %v3466_v8 = vld [vmem:[#allocation67_spill] sm:$0xff] }
 0x14e   : > { %1471 = vst.msk [vmem:[%s2859_s23 + $0x188] sm:$0xff] %vm329_vm0, %v1029_v23  ;;  %1535 = vst.msk [vmem:[%s2859_s23 + $0x388] sm:$0xff] %vm329_vm0, %v1349_v53 }
 0x14f   : > { %1470 = vst.msk [vmem:[%s2859_s23 + $0x180] sm:$0xff] %vm329_vm0, %v1024_v55  ;;  %1534 = vst.msk [vmem:[%s2859_s23 + $0x380] sm:$0xff] %vm329_vm0, %v1344_v24  ;;  %v2000_v25 = vpop.f32.mrb[50].mxu0  ;;  %v2096_v9 = vpop.f32.mrb[50].mxu1 }
 0x150   : > { %v1039_v56 = vadd.f32 %v2000_v25, %v3446_v26  ;;  %v1359_v57 = vadd.f32 %v2096_v9, %v3447_v27  ;;  %v1033_v10 = vpop.f32.mrb[51].mxu0  ;;  %v1353_v11 = vpop.f32.mrb[51].mxu1  ;;  %v3467_v25 = vld [vmem:[#allocation68_spill] sm:$0xff]  ;;  %v3468_v27 = vld [vmem:[#allocation69_spill] sm:$0xff] }
 0x151   : > { %v1034_v29 = vadd.f32 %v1033_v10, %v3448_v28  ;;  %v1354_v30 = vadd.f32 %v1353_v11, %v3449_v0  ;;  %v3469_v10 = vld [vmem:[#allocation70_spill] sm:$0xff]  ;;  %v3470_v0 = vld [vmem:[#allocation71_spill] sm:$0xff] }
 0x152   : > { %1473 = vst.msk [vmem:[%s2859_s23 + $0x198] sm:$0xff] %vm329_vm0, %v1039_v56  ;;  %1537 = vst.msk [vmem:[%s2859_s23 + $0x398] sm:$0xff] %vm329_vm0, %v1359_v57 }
 0x153   : > { %1472 = vst.msk [vmem:[%s2859_s23 + $0x190] sm:$0xff] %vm329_vm0, %v1034_v29  ;;  %1536 = vst.msk [vmem:[%s2859_s23 + $0x390] sm:$0xff] %vm329_vm0, %v1354_v30  ;;  %v2003_v31 = vpop.f32.mrb[52].mxu0  ;;  %v2099_v1 = vpop.f32.mrb[52].mxu1 }
 0x154   : > { %v1049_v12 = vadd.f32 %v2003_v31, %v3450_v2  ;;  %v1369_v33 = vadd.f32 %v2099_v1, %v3451_v32  ;;  %v1043_v13 = vpop.f32.mrb[53].mxu0  ;;  %v1363_v34 = vpop.f32.mrb[53].mxu1  ;;  %v3471_v31 = vld [vmem:[#allocation72_spill] sm:$0xff] }
 0x155   : > { %v1044_v3 = vadd.f32 %v1043_v13, %v3452_v35  ;;  %v1364_v15 = vadd.f32 %v1363_v34, %v3453_v14  ;;  %v2141_v32 = vld [vmem:[%s2211_s20 + $0x1f0] sm:$0xff]  ;;  %v3472_v13 = vld [vmem:[#allocation73_spill] sm:$0xff] }
 0x156   : > { %1475 = vst.msk [vmem:[%s2859_s23 + $0x1a8] sm:$0xff] %vm329_vm0, %v1049_v12  ;;  %1539 = vst.msk [vmem:[%s2859_s23 + $0x3a8] sm:$0xff] %vm329_vm0, %v1369_v33 }
 0x157   : > { %1474 = vst.msk [vmem:[%s2859_s23 + $0x1a0] sm:$0xff] %vm329_vm0, %v1044_v3  ;;  %1538 = vst.msk [vmem:[%s2859_s23 + $0x3a0] sm:$0xff] %vm329_vm0, %v1364_v15  ;;  %v2006_v36 = vpop.f32.mrb[54].mxu0  ;;  %v2102_v37 = vpop.f32.mrb[54].mxu1 }
 0x158   : > { %v1059_v38 = vadd.f32 %v2006_v36, %v3454_v61  ;;  %v1379_v62 = vadd.f32 %v2102_v37, %v3455_v39  ;;  %v1053_v4 = vpop.f32.mrb[55].mxu0  ;;  %v1373_v16 = vpop.f32.mrb[55].mxu1 }
 0x159   : > { %v1054_v41 = vadd.f32 %v1053_v4, %v3456_v40  ;;  %v1374_v42 = vadd.f32 %v1373_v16, %v3457_v17 }
 0x15a   : > { %1477 = vst.msk [vmem:[%s2859_s23 + $0x1b8] sm:$0xff] %vm329_vm0, %v1059_v38  ;;  %1541 = vst.msk [vmem:[%s2859_s23 + $0x3b8] sm:$0xff] %vm329_vm0, %v1379_v62 }
 0x15b   : > { %1476 = vst.msk [vmem:[%s2859_s23 + $0x1b0] sm:$0xff] %vm329_vm0, %v1054_v41  ;;  %1540 = vst.msk [vmem:[%s2859_s23 + $0x3b0] sm:$0xff] %vm329_vm0, %v1374_v42  ;;  %v2009_v43 = vpop.f32.mrb[56].mxu0  ;;  %v2105_v5 = vpop.f32.mrb[56].mxu1 }
 0x15c   : > { %v1069_v19 = vadd.f32 %v2009_v43, %v3458_v18  ;;  %v1389_v45 = vadd.f32 %v2105_v5, %v3459_v44  ;;  %v1063_v59 = vpop.f32.mrb[57].mxu0  ;;  %v1383_v46 = vpop.f32.mrb[57].mxu1 }
 0x15d   : > { %v1064_v6 = vadd.f32 %v1063_v59, %v3460_v47  ;;  %v1384_v20 = vadd.f32 %v1383_v46, %v3461_v7 }
 0x15e   : > { %1479 = vst.msk [vmem:[%s2859_s23 + $0x1c8] sm:$0xff] %vm329_vm0, %v1069_v19  ;;  %1543 = vst.msk [vmem:[%s2859_s23 + $0x3c8] sm:$0xff] %vm329_vm0, %v1389_v45 }
 0x15f   : > { %1478 = vst.msk [vmem:[%s2859_s23 + $0x1c0] sm:$0xff] %vm329_vm0, %v1064_v6  ;;  %1542 = vst.msk [vmem:[%s2859_s23 + $0x3c0] sm:$0xff] %vm329_vm0, %v1384_v20  ;;  %v2012_v48 = vpop.f32.mrb[58].mxu0  ;;  %v2108_v49 = vpop.f32.mrb[58].mxu1 }
 0x160   : > { %v1079_v50 = vadd.f32 %v2012_v48, %v3462_v21  ;;  %v1399_v58 = vadd.f32 %v2108_v49, %v3463_v51  ;;  %v1073_v22 = vpop.f32.mrb[59].mxu0  ;;  %v1393_v23 = vpop.f32.mrb[59].mxu1 }
 0x161   : > { %v1074_v53 = vadd.f32 %v1073_v22, %v3464_v52  ;;  %v1394_v63 = vadd.f32 %v1393_v23, %v3465_v60 }
 0x162   : > { %1481 = vst.msk [vmem:[%s2859_s23 + $0x1d8] sm:$0xff] %vm329_vm0, %v1079_v50  ;;  %1545 = vst.msk [vmem:[%s2859_s23 + $0x3d8] sm:$0xff] %vm329_vm0, %v1399_v58 }
 0x163   : > { %1480 = vst.msk [vmem:[%s2859_s23 + $0x1d0] sm:$0xff] %vm329_vm0, %v1074_v53  ;;  %1544 = vst.msk [vmem:[%s2859_s23 + $0x3d0] sm:$0xff] %vm329_vm0, %v1394_v63  ;;  %v2015_v54 = vpop.f32.mrb[60].mxu0  ;;  %v2111_v55 = vpop.f32.mrb[60].mxu1 }
 0x164   : > { %v1089_v24 = vadd.f32 %v2015_v54, %v3466_v8  ;;  %v1409_v9 = vadd.f32 %v2111_v55, %v3467_v25  ;;  %v1083_v26 = vpop.f32.mrb[61].mxu0  ;;  %v1403_v56 = vpop.f32.mrb[61].mxu1 }
 0x165   : > { %v1084_v57 = vadd.f32 %v1083_v26, %v3468_v27  ;;  %v1404_v11 = vadd.f32 %v1403_v56, %v3469_v10 }
 0x166   : > { %1483 = vst.msk [vmem:[%s2859_s23 + $0x1e8] sm:$0xff] %vm329_vm0, %v1089_v24  ;;  %1547 = vst.msk [vmem:[%s2859_s23 + $0x3e8] sm:$0xff] %vm329_vm0, %v1409_v9 }
 0x167   : > { %1482 = vst.msk [vmem:[%s2859_s23 + $0x1e0] sm:$0xff] %vm329_vm0, %v1084_v57  ;;  %1546 = vst.msk [vmem:[%s2859_s23 + $0x3e0] sm:$0xff] %vm329_vm0, %v1404_v11  ;;  %v2018_v28 = vpop.f32.mrb[62].mxu0  ;;  %v2114_v29 = vpop.f32.mrb[62].mxu1 }
 0x168   : > { %v1099_v30 = vadd.f32 %v2018_v28, %v3470_v0  ;;  %v1419_v1 = vadd.f32 %v2114_v29, %v3471_v31  ;;  %v1093_v2 = vpop.f32.mrb[63].mxu0  ;;  %v1413_v12 = vpop.f32.mrb[63].mxu1 }
 0x169   : > { %v1094_v33 = vadd.f32 %v2141_v32, %v1093_v2  ;;  %v1414_v34 = vadd.f32 %v1413_v12, %v3472_v13 }
 0x16a   : > { %1485 = vst.msk [vmem:[%s2859_s23 + $0x1f8] sm:$0xff] %vm329_vm0, %v1099_v30  ;;  %1549 = vst.msk [vmem:[%s2859_s23 + $0x3f8] sm:$0xff] %vm329_vm0, %v1419_v1 }
 0x16b   : > { %1484 = vst.msk [vmem:[%s2859_s23 + $0x1f0] sm:$0xff] %vm329_vm0, %v1094_v33  ;;  %1548 = vst.msk [vmem:[%s2859_s23 + $0x3f0] sm:$0xff] %vm329_vm0, %v1414_v34 }
 0x16c PF: > { %s12_s11 = sadd.s32 1, %s2164_s11   ;;  %s3473_s9 = smov %s2160_s10 }
 0x16d   : > { %p9_p5 = scmp.ge.s32.totalorder %s12_s11, 4   ;;  %s3474_s10 = smov %s3476_s12 }
 0x16f   :  { %11 = sbr.rel (!%p9_p5) target bundleno = 2 (0x2), region = 61 }

// kernel: cnet_head_forward.7
= control target key start
LH: loop header
LB: loop body
LE: loop exit
PB: predicated region body
PF: predicated region fallthrough
CT: control target
= control target key end

     0   :  { %s6751_s21 = smov 0   ;;  %s6753_s22 = smov 0   ;;  %s8072_s0 = inlined_call_operand.vmem [shape: f32[2,6,342,4], index: 0, kind: input, shape index: {}]   ;;  %s8073_s1 = inlined_call_operand.vmem [shape: f32[3,9,4,4], index: 1, kind: input, shape index: {}]   ;;  %s8074_s2 = inlined_call_operand.vmem [shape: f32[1,4], index: 2, kind: input, shape index: {}]   ;;  %s8075_s3 = inlined_call_operand.vmem [shape: f32[1,4], index: 3, kind: input, shape index: {}]   ;;  %s8076_s4 = inlined_call_operand.vmem [shape: f32[4,3], index: 4, kind: input, shape index: {}]   ;;  %s8077_s5 = inlined_call_operand.vmem [shape: f32[1,3], index: 5, kind: input, shape index: {}]   ;;  %s8078_s6 = inlined_call_operand.vmem [shape: f32[2,4,288,3], index: 6, kind: output, shape index: {}]  }
   0x1   :  { %s6755_s23 = smov 0   ;;  %s6757_s24 = smov 0  }
   0x2   :  { %s6759_s25 = smov 0   ;;  %s6761_s26 = smov 0  }
   0x3   :  { %s6763_s27 = smov 0  }
   0x4 LB: > { %s28_s28 = sadd.s32 1, %s6701_s24  ;;  %s31_s29 = sadd.s32 1, %s6705_s25  ;;  %s6713_s27 = sphi %s6763_s27, %s16_s27   ;;  %s6709_s26 = sphi %s6761_s26, %s8090_s26   ;;  %s6705_s25 = sphi %s6759_s25, %s8089_s25   ;;  %s6701_s24 = sphi %s6757_s24, %s8088_s24   ;;  %s6697_s23 = sphi %s6755_s23, %s8087_s23   ;;  %s6693_s22 = sphi %s6753_s22, %s8086_s22   ;;  %s6689_s21 = sphi %s6751_s21, %s8085_s21  }
   0x5   : > { %p29_p0 = scmp.ge.s32.totalorder %s28_s28, 3  ;;  %p4986_p1 = scmp.ge.s32.totalorder %s6713_s27, 1 }
   0x6   : > { %p253_p2 = scmp.lt.s32.totalorder %s6713_s27, 25  ;;  %s35_s30 = sadd.s32 1, %s6709_s26 }
   0x7   : > { %s8092_s28 = smov (%p29_p0, %s28_s28), 0  ;;  %s8094_s29 = smov (!%p29_p0, %s31_s29), %s6705_s25 }
   0x8   : > { %8079 = sst [smem:[#allocation3_spill]] %s8092_s28  ;;  %p254_p3 = pnand %p4986_p1, %p253_p2 }
   0x9   : > { %p33_p4 = scmp.ge.s32.totalorder %s8094_s29, 4  ;;  %s297_s7 = sadd.s32 (!%p254_p3), %s6689_s21, %s6693_s22 }
   0xa   : > { %257 = sbr.rel (%p254_p3) target bundleno = 823 (0x337), region = 44  ;;  %p298_p6 = scmp.lt.s32.totalorder (!%p254_p3), %s6697_s23, 1 }
   0xb   : > { %s8096_s29 = smov (%p33_p4, %s8094_s29), 0  ;;  %s8098_s30 = smov (!%p33_p4, %s35_s30), %s6709_s26 }
   0xc   : > { %8080 = sst [smem:[#allocation4_spill]] %s8096_s29  ;;  %p37_p5 = scmp.ge.s32.totalorder %s8098_s30, 2 }
   0xd   : > { %p300_p7 = scmp.lt.s32.totalorder (!%p254_p3), %s297_s7, 5  ;;  %p308_p8 = scmp.lt.s32.totalorder (!%p254_p3), %s6689_s21, 2 }
   0xe   : > { %s8100_s30 = smov (%p37_p5, %s8098_s30), 0  ;;  %p315_p9 = scmp.lt.s32.totalorder (!%p254_p3), %s6693_s22, 3 }
   0xf   : > { %8081 = sst [smem:[#allocation5_spill]] %s8100_s30  ;;  %p4990_p10 = scmp.ne.s32.totalorder (!%p254_p3), %s6689_s21, 0 }
  0x11   : > { %s8102_s23 = smov (!%p298_p6, %s6697_s23), 1  ;;  %s8104_s7 = smov (!%p300_p7, %s297_s7), 5 }
  0x12   : > { %s6598_s8 = smul.u32 258, %s8102_s23  ;;  %s8106_s22 = smov (!%p315_p9, %s6693_s22), 3  ;;  %vm326_vm0 = vcmask (!%p4990_p10), 31744   ;;  %v6715_v0 = vmov (!%p4990_p10), 0.0  }
  0x13   : > { %s6597_s9 = smul.u32 43, %s8104_s7  ;;  %327 = vst.msk [vmem:[#allocation2] sm:$0xff] (!%p4990_p10), %vm326_vm0, %v6715_v0  ;;  %328 = vst.msk [vmem:[#allocation2 + $0x8] sm:$0xff] (!%p4990_p10), %vm326_vm0, %v6715_v0 }
  0x14   : > { %s309_s10 = scalar_select %p308_p8, %s6689_s21, 2 }
  0x15   : > { %s304_s11 = sadd.s32 %s6598_s8, %s6597_s9  ;;  %s6601_s20 = smul.u32 144, %s8102_s23  ;;  %329 = vst.msk [vmem:[#allocation2 + $0x10] sm:$0xff] (!%p4990_p10), %vm326_vm0, %v6715_v0  ;;  %330 = vst.msk [vmem:[#allocation2 + $0x18] sm:$0xff] (!%p4990_p10), %vm326_vm0, %v6715_v0 }
  0x16   : > { %s4987_s12 = sshll.u32 %s304_s11, 3  ;;  %s6599_s13 = smul.u32 36, %s309_s10  ;;  %331 = vst.msk [vmem:[#allocation2 + $0x20] sm:$0xff] (!%p4990_p10), %vm326_vm0, %v6715_v0  ;;  %332 = vst.msk [vmem:[#allocation2 + $0x28] sm:$0xff] (!%p4990_p10), %vm326_vm0, %v6715_v0 }
  0x17   : > { %s6805_s16 = scalar_lea.vmem %s8072_s0, %s4987_s12  ;;  %s6600_s30 = smul.u32 36, %s8106_s22  ;;  %333 = vst.msk [vmem:[#allocation2 + $0x30] sm:$0xff] (!%p4990_p10), %vm326_vm0, %v6715_v0  ;;  %334 = vst.msk [vmem:[#allocation2 + $0x38] sm:$0xff] (!%p4990_p10), %vm326_vm0, %v6715_v0 }
  0x18   : > { %s6810_s19 = scalar_lea.vmem %s8073_s1, %s6599_s13  ;;  %325 = sbr.rel (%p4990_p10) target bundleno = 38 (0x26), region = 48  ;;  %335 = vst.msk [vmem:[#allocation2 + $0x40] sm:$0xff] (!%p4990_p10), %vm326_vm0, %v6715_v0  ;;  %336 = vst.msk [vmem:[#allocation2 + $0x48] sm:$0xff] (!%p4990_p10), %vm326_vm0, %v6715_v0 }
  0x19   : > { %s319_s29 = sadd.s32 %s6601_s20, %s6600_s30  ;;  %337 = vst.msk [vmem:[#allocation2 + $0x50] sm:$0xff] (!%p4990_p10), %vm326_vm0, %v6715_v0  ;;  %338 = vst.msk [vmem:[#allocation2 + $0x58] sm:$0xff] (!%p4990_p10), %vm326_vm0, %v6715_v0 }
  0x1a   : > { %s4989_s7 = sshll.u32 %s319_s29, 3  ;;  %339 = vst.msk [vmem:[#allocation2 + $0x60] sm:$0xff] (!%p4990_p10), %vm326_vm0, %v6715_v0  ;;  %340 = vst.msk [vmem:[#allocation2 + $0x68] sm:$0xff] (!%p4990_p10), %vm326_vm0, %v6715_v0 }
  0x1b   : > { %s6816_s9 = scalar_lea.vmem %s8078_s6, %s4989_s7  ;;  %341 = vst.msk [vmem:[#allocation2 + $0x70] sm:$0xff] (!%p4990_p10), %vm326_vm0, %v6715_v0  ;;  %342 = vst.msk [vmem:[#allocation2 + $0x78] sm:$0xff] (!%p4990_p10), %vm326_vm0, %v6715_v0 }
  0x1c   : > { %343 = vst.msk [vmem:[#allocation2 + $0x80] sm:$0xff] (!%p4990_p10), %vm326_vm0, %v6715_v0  ;;  %344 = vst.msk [vmem:[#allocation2 + $0x88] sm:$0xff] (!%p4990_p10), %vm326_vm0, %v6715_v0 }
  0x1d   : > { %345 = vst.msk [vmem:[#allocation2 + $0x90] sm:$0xff] (!%p4990_p10), %vm326_vm0, %v6715_v0  ;;  %346 = vst.msk [vmem:[#allocation2 + $0x98] sm:$0xff] (!%p4990_p10), %vm326_vm0, %v6715_v0 }
  0x1e   : > { %347 = vst.msk [vmem:[#allocation2 + $0xa0] sm:$0xff] (!%p4990_p10), %vm326_vm0, %v6715_v0  ;;  %348 = vst.msk [vmem:[#allocation2 + $0xa8] sm:$0xff] (!%p4990_p10), %vm326_vm0, %v6715_v0 }
  0x1f   : > { %349 = vst.msk [vmem:[#allocation2 + $0xb0] sm:$0xff] %vm326_vm0, %v6715_v0  ;;  %350 = vst.msk [vmem:[#allocation2 + $0xb8] sm:$0xff] %vm326_vm0, %v6715_v0 }
  0x20   : > { %351 = vst.msk [vmem:[#allocation2 + $0xc0] sm:$0xff] %vm326_vm0, %v6715_v0  ;;  %352 = vst.msk [vmem:[#allocation2 + $0xc8] sm:$0xff] %vm326_vm0, %v6715_v0 }
  0x21   : > { %353 = vst.msk [vmem:[#allocation2 + $0xd0] sm:$0xff] %vm326_vm0, %v6715_v0  ;;  %354 = vst.msk [vmem:[#allocation2 + $0xd8] sm:$0xff] %vm326_vm0, %v6715_v0 }
  0x22   : > { %355 = vst.msk [vmem:[#allocation2 + $0xe0] sm:$0xff] %vm326_vm0, %v6715_v0  ;;  %356 = vst.msk [vmem:[#allocation2 + $0xe8] sm:$0xff] %vm326_vm0, %v6715_v0 }
  0x23   : > { %357 = vst.msk [vmem:[#allocation2 + $0xf0] sm:$0xff] %vm326_vm0, %v6715_v0  ;;  %358 = vst.msk [vmem:[#allocation2 + $0xf8] sm:$0xff] %vm326_vm0, %v6715_v0 }
  0x24   : > { %359 = vst.msk [vmem:[#allocation2 + $0x100] sm:$0xff] %vm326_vm0, %v6715_v0  ;;  %360 = vst.msk [vmem:[#allocation2 + $0x108] sm:$0xff] %vm326_vm0, %v6715_v0 }
  0x25   : > { %361 = vst.msk [vmem:[#allocation2 + $0x110] sm:$0xff] %vm326_vm0, %v6715_v0  ;;  %362 = vst.msk [vmem:[#allocation2 + $0x118] sm:$0xff] %vm326_vm0, %v6715_v0 }
  0x26 PF: > { %v4991_v1 = vld [vmem:[%s6810_s19 + $0x4] sm:$0xf]  ;;  %vm547_vm1 = vcmask 1043456   ;;  %v6857_v2 = vld [vmem:[%s6810_s19 + $0x10] sm:$0xf]  ;;  %vm438_vm2 = vcmask 31744  }
  0x27   : > { %v400_v3 = vld [vmem:[%s6805_s16 + $0x1] sm:$0xff]  ;;  %5745 = vmatprep.subr.msk.mxu1 %vm547_vm1, %v4991_v1  ;;  %5969 = vmatprep.subr.msk.mxu0 %vm547_vm1, %v6857_v2  ;;  %v2012_v4 = vld [vmem:[%s6805_s16 + $0x13] sm:$0xff]  ;;  %v401_v5 = vld [vmem:[%s6805_s16 + $0x9] sm:$0xff]  ;;  %p5332_p11 = scmp.ne.s32.totalorder %s6689_s21, 2 }
  0x28   : > { %v399_v6 = vld [vmem:[%s6810_s19] sm:$0xf]  ;;  %5746 = vmatpush3.msk.msra.mxu1 %vm547_vm1, %v4991_v1  ;;  %5747 = vmatprep.mubr.msk.f32.mxu1 %vm438_vm2, %v400_v3  ;;  %v5180_v8 = vld [vmem:[%s6810_s19 + $0x14] sm:$0xf]  ;;  %v2015_v12 = vld [vmem:[%s6805_s16 + $0x2b] sm:$0xff]  ;;  %vm4832_vm3 = vcmask (!%p5332_p11), 23552  }
  0x29   : > { %v2013_v7 = vld [vmem:[%s6805_s16 + $0x1b] sm:$0xff]  ;;  %5970 = vmatpush3.msk.msra.mxu0 %vm547_vm1, %v6857_v2  ;;  %5971 = vmatprep.mubr.msk.f32.mxu0 %vm438_vm2, %v2012_v4  ;;  %v402_v9 = vld [vmem:[%s6805_s16 + $0x11] sm:$0xff]  ;;  %v2014_v10 = vld [vmem:[%s6805_s16 + $0x23] sm:$0xff] }
  0x2a   : > { %5748 = vmatmul.mubr.msk.f32.vlgmr.msra.gmra.mrb[0].mxu1 %vm438_vm2, %v401_v5  ;;  %5801 = vmatprep.subr.msk.mxu1 %vm547_vm1, %v399_v6  ;;  %v403_v11 = vld [vmem:[%s6805_s16 + $0x19] sm:$0xff]  ;;  %v404_v13 = vld [vmem:[%s6805_s16 + $0x21] sm:$0xff]  ;;  %v405_v15 = vld [vmem:[%s6805_s16 + $0x29] sm:$0xff] }
  0x2b   : > { %5972 = vmatmul.mubr.msk.f32.vlgmr.msra.gmra.mrb[0].mxu0 %vm438_vm2, %v2013_v7  ;;  %6025 = vmatprep.subr.msk.mxu0 %vm547_vm1, %v5180_v8  ;;  %v2016_v14 = vld [vmem:[%s6805_s16 + $0x33] sm:$0xff]  ;;  %v2017_v16 = vld [vmem:[%s6805_s16 + $0x3b] sm:$0xff]  ;;  %v2018_v18 = vld [vmem:[%s6805_s16 + $0x43] sm:$0xff] }
  0x2c   : > { %5802 = vmatpush3.msk.msra.mxu1 %vm547_vm1, %v399_v6  ;;  %6026 = vmatpush3.msk.msra.mxu0 %vm547_vm1, %v5180_v8  ;;  %v406_v17 = vld [vmem:[%s6805_s16 + $0x31] sm:$0xff]  ;;  %v407_v19 = vld [vmem:[%s6805_s16 + $0x39] sm:$0xff]  ;;  %v408_v21 = vld [vmem:[%s6805_s16 + $0x41] sm:$0xff] }
  0x2d   : > { %5750 = vmatprep.mubr.msk.f32.mxu1 %vm438_vm2, %v402_v9  ;;  %5974 = vmatprep.mubr.msk.f32.mxu0 %vm438_vm2, %v2014_v10  ;;  %v2019_v20 = vld [vmem:[%s6805_s16 + $0x4b] sm:$0xff]  ;;  %v5218_v22 = vld [vmem:[%s6810_s19 + $0x18] sm:$0xf]  ;;  %v2022_v27 = vld [vmem:[%s6805_s16 + $0x63] sm:$0xff] }
  0x2e   : > { %5751 = vmatmul.mubr.msk.f32.gmra.mrb[2].mxu1 %vm438_vm2, %v403_v11  ;;  %v2020_v23 = vld [vmem:[%s6805_s16 + $0x53] sm:$0xff]  ;;  %6081 = vmatprep.subr.msk.mxu0 %vm547_vm1, %v5218_v22  ;;  %v409_v24 = vld [vmem:[%s6805_s16 + $0x49] sm:$0xff]  ;;  %v2021_v25 = vld [vmem:[%s6805_s16 + $0x5b] sm:$0xff] }
  0x2f   : > { %5975 = vmatmul.mubr.msk.f32.gmra.mrb[2].mxu0 %vm438_vm2, %v2015_v12  ;;  %5753 = vmatprep.mubr.msk.f32.mxu1 %vm438_vm2, %v404_v13  ;;  %v410_v26 = vld [vmem:[%s6805_s16 + $0x51] sm:$0xff]  ;;  %v411_v28 = vld [vmem:[%s6805_s16 + $0x59] sm:$0xff]  ;;  %v412_v30 = vld [vmem:[%s6805_s16 + $0x61] sm:$0xff] }
  0x30   : > { %5977 = vmatprep.mubr.msk.f32.mxu0 %vm438_vm2, %v2016_v14  ;;  %v2023_v29 = vld [vmem:[%s6805_s16 + $0x6b] sm:$0xff]  ;;  %v2024_v31 = vld [vmem:[%s6805_s16 + $0x73] sm:$0xff]  ;;  %v2025_v33 = vld [vmem:[%s6805_s16 + $0x7b] sm:$0xff] }
  0x31   : > { %v413_v32 = vld [vmem:[%s6805_s16 + $0x69] sm:$0xff]  ;;  %v414_v34 = vld [vmem:[%s6805_s16 + $0x71] sm:$0xff]  ;;  %v415_v37 = vld [vmem:[%s6805_s16 + $0x79] sm:$0xff] }
  0x32   : > { %5754 = vmatmul.mubr.msk.f32.gmra.mrb[4].mxu1 %vm438_vm2, %v405_v15  ;;  %v6929_v35 = vld [vmem:[%s6810_s19 + $0x8] sm:$0xf]  ;;  %v2028_v40 = vld [vmem:[%s6805_s16 + $0x93] sm:$0xff]  ;;  %v2029_v42 = vld [vmem:[%s6805_s16 + $0x9b] sm:$0xff] }
  0x33   : > { %5978 = vmatmul.mubr.msk.f32.gmra.mrb[4].mxu0 %vm438_vm2, %v2017_v16  ;;  %5756 = vmatprep.mubr.msk.f32.mxu1 %vm438_vm2, %v406_v17  ;;  %v2026_v36 = vld [vmem:[%s6805_s16 + $0x83] sm:$0xff]  ;;  %v2027_v38 = vld [vmem:[%s6805_s16 + $0x8b] sm:$0xff]  ;;  %v2442_v44 = vld [vmem:[%s6805_s16 + $0x14] sm:$0xff] }
  0x34   : > { %5980 = vmatprep.mubr.msk.f32.mxu0 %vm438_vm2, %v2018_v18  ;;  %5857 = vmatprep.subr.msk.mxu1 %vm547_vm1, %v6929_v35  ;;  %v416_v39 = vld [vmem:[%s6805_s16 + $0x81] sm:$0xff]  ;;  %v417_v41 = vld [vmem:[%s6805_s16 + $0x89] sm:$0xff]  ;;  %v418_v43 = vld [vmem:[%s6805_s16 + $0x91] sm:$0xff] }
  0x35   : > { %v419_v45 = vld [vmem:[%s6805_s16 + $0x99] sm:$0xff]  ;;  %v420_v47 = vld [vmem:[%s6805_s16 + $0xa1] sm:$0xff]  ;;  %v421_v50 = vld [vmem:[%s6805_s16 + $0xa9] sm:$0xff] }
  0x36   : > { %5757 = vmatmul.mubr.msk.f32.gmra.mrb[6].mxu1 %vm438_vm2, %v407_v19  ;;  %v2443_v46 = vld [vmem:[%s6805_s16 + $0x1c] sm:$0xff]  ;;  %v6958_v48 = vld [vmem:[%s6805_s16 + $0x24] sm:$0xff]  ;;  %v6971_v51 = vld [vmem:[%s6805_s16 + $0x2c] sm:$0xff] }
  0x37   : > { %5981 = vmatmul.mubr.msk.f32.gmra.mrb[6].mxu0 %vm438_vm2, %v2019_v20  ;;  %5759 = vmatprep.mubr.msk.f32.mxu1 %vm438_vm2, %v408_v21  ;;  %v6962_v49 = vld [vmem:[%s6810_s19 + $0x1c] sm:$0xf]  ;;  %v422_v52 = vld [vmem:[%s6805_s16 + $0xb1] sm:$0xff]  ;;  %v424_v56 = vld [vmem:[%s6805_s16 + $0xc1] sm:$0xff] }
  0x38   : > { %5983 = vmatprep.mubr.msk.f32.mxu0 %vm438_vm2, %v2020_v23  ;;  %v6975_v53 = vld [vmem:[%s6805_s16 + $0x34] sm:$0xff]  ;;  %v6987_v55 = vld [vmem:[%s6805_s16 + $0x3c] sm:$0xff]  ;;  %v6991_v57 = vld [vmem:[%s6805_s16 + $0x44] sm:$0xff] }
  0x39   : > { %v423_v54 = vld [vmem:[%s6805_s16 + $0xb9] sm:$0xff]  ;;  %v425_v58 = vld [vmem:[%s6805_s16 + $0xc9] sm:$0xff]  ;;  %v426_v60 = vld [vmem:[%s6805_s16 + $0xd1] sm:$0xff] }
  0x3a   : > { %5760 = vmatmul.mubr.msk.f32.gmra.mrb[8].mxu1 %vm438_vm2, %v409_v24  ;;  %v7001_v59 = vld [vmem:[%s6805_s16 + $0x4c] sm:$0xff]  ;;  %v7005_v61 = vld [vmem:[%s6805_s16 + $0x54] sm:$0xff]  ;;  %v7015_v63 = vld [vmem:[%s6805_s16 + $0x5c] sm:$0xff] }
  0x3b   : > { %5984 = vmatmul.mubr.msk.f32.gmra.mrb[8].mxu0 %vm438_vm2, %v2021_v25  ;;  %5762 = vmatprep.mubr.msk.f32.mxu1 %vm438_vm2, %v410_v26  ;;  %v427_v62 = vld [vmem:[%s6805_s16 + $0xd9] sm:$0xff]  ;;  %v428_v0 = vld [vmem:[%s6805_s16 + $0xe1] sm:$0xff]  ;;  %v429_v3 = vld [vmem:[%s6805_s16 + $0xe9] sm:$0xff] }
  0x3c   : > { %5986 = vmatprep.mubr.msk.f32.mxu0 %vm438_vm2, %v2022_v27  ;;  %v7019_v1 = vld [vmem:[%s6805_s16 + $0x64] sm:$0xff]  ;;  %v7029_v4 = vld [vmem:[%s6805_s16 + $0x6c] sm:$0xff]  ;;  %v7033_v6 = vld [vmem:[%s6805_s16 + $0x74] sm:$0xff] }
  0x3d   : > { %v430_v5 = vld [vmem:[%s6805_s16 + $0xf1] sm:$0xff]  ;;  %v431_v7 = vld [vmem:[%s6805_s16 + $0xf9] sm:$0xff]  ;;  %v432_v9 = vld [vmem:[%s6805_s16 + $0x101] sm:$0xff] }
  0x3e   : > { %5763 = vmatmul.mubr.msk.f32.gmra.mrb[10].mxu1 %vm438_vm2, %v411_v28  ;;  %v7043_v8 = vld [vmem:[%s6805_s16 + $0x7c] sm:$0xff]  ;;  %v7047_v10 = vld [vmem:[%s6805_s16 + $0x84] sm:$0xff]  ;;  %v7057_v12 = vld [vmem:[%s6805_s16 + $0x8c] sm:$0xff] }
  0x3f   : > { %5987 = vmatmul.mubr.msk.f32.gmra.mrb[10].mxu0 %vm438_vm2, %v2023_v29  ;;  %5765 = vmatprep.mubr.msk.f32.mxu1 %vm438_vm2, %v412_v30  ;;  %v433_v11 = vld [vmem:[%s6805_s16 + $0x109] sm:$0xff]  ;;  %v434_v13 = vld [vmem:[%s6805_s16 + $0x111] sm:$0xff]  ;;  %v435_v15 = vld [vmem:[%s6805_s16 + $0x119] sm:$0xff] }
  0x40   : > { %5989 = vmatprep.mubr.msk.f32.mxu0 %vm438_vm2, %v2024_v31  ;;  %v7061_v14 = vld [vmem:[%s6805_s16 + $0x94] sm:$0xff]  ;;  %v7071_v16 = vld [vmem:[%s6805_s16 + $0x9c] sm:$0xff]  ;;  %v7075_v18 = vld [vmem:[%s6805_s16 + $0xa4] sm:$0xff] }
  0x41   : > { %v363_v17 = vld [vmem:[%s6805_s16] sm:$0xff]  ;;  %v364_v19 = vld [vmem:[%s6805_s16 + $0x8] sm:$0xff]  ;;  %v365_v21 = vld [vmem:[%s6805_s16 + $0x10] sm:$0xff] }
  0x42   : > { %5766 = vmatmul.mubr.msk.f32.gmra.mrb[12].mxu1 %vm438_vm2, %v413_v32  ;;  %v7085_v20 = vld [vmem:[%s6805_s16 + $0xac] sm:$0xff]  ;;  %v366_v24 = vld [vmem:[%s6805_s16 + $0x18] sm:$0xff]  ;;  %v367_v26 = vld [vmem:[%s6805_s16 + $0x20] sm:$0xff] }
  0x43   : > { %5990 = vmatmul.mubr.msk.f32.gmra.mrb[12].mxu0 %vm438_vm2, %v2025_v33  ;;  %5768 = vmatprep.mubr.msk.f32.mxu1 %vm438_vm2, %v414_v34  ;;  %v7093_v23 = vld [vmem:[%s6810_s19 + $0xc] sm:$0xf]  ;;  %v7104_v25 = vld [vmem:[%s6805_s16 + $0xbc] sm:$0xff]  ;;  %v7108_v27 = vld [vmem:[%s6805_s16 + $0xc4] sm:$0xff] }
  0x44   : > { %5992 = vmatprep.mubr.msk.f32.mxu0 %vm438_vm2, %v2026_v36  ;;  %v368_v28 = vld [vmem:[%s6805_s16 + $0x28] sm:$0xff]  ;;  %v369_v30 = vld [vmem:[%s6805_s16 + $0x30] sm:$0xff]  ;;  %v370_v32 = vld [vmem:[%s6805_s16 + $0x38] sm:$0xff] }
  0x45   : > { %v7120_v29 = vld [vmem:[%s6805_s16 + $0xcc] sm:$0xff]  ;;  %v7124_v31 = vld [vmem:[%s6805_s16 + $0xd4] sm:$0xff]  ;;  %v7134_v33 = vld [vmem:[%s6805_s16 + $0xdc] sm:$0xff] }
  0x46   : > { %5769 = vmatmul.mubr.msk.f32.gmra.mrb[14].mxu1 %vm438_vm2, %v415_v37  ;;  %v371_v34 = vld [vmem:[%s6805_s16 + $0x40] sm:$0xff]  ;;  %v372_v36 = vld [vmem:[%s6805_s16 + $0x48] sm:$0xff] }
  0x47   : > { %5993 = vmatmul.mubr.msk.f32.gmra.mrb[14].mxu0 %vm438_vm2, %v2027_v38  ;;  %5771 = vmatprep.mubr.msk.f32.mxu1 %vm438_vm2, %v416_v39  ;;  %v7148_v37 = vld [vmem:[%s6805_s16 + $0xec] sm:$0xff]  ;;  %v7152_v39 = vld [vmem:[%s6805_s16 + $0xf4] sm:$0xff] }
  0x48   : > { %5995 = vmatprep.mubr.msk.f32.mxu0 %vm438_vm2, %v2028_v40  ;;  %v373_v38 = vld [vmem:[%s6805_s16 + $0x50] sm:$0xff]  ;;  %v374_v40 = vld [vmem:[%s6805_s16 + $0x58] sm:$0xff] }
  0x4a   : > { %5772 = vmatmul.mubr.msk.f32.gmra.mrb[16].mxu1 %vm438_vm2, %v417_v41  ;;  %v7162_v41 = vld [vmem:[%s6805_s16 + $0xfc] sm:$0xff] }
  0x4b   : > { %5996 = vmatmul.mubr.msk.f32.gmra.mrb[16].mxu0 %vm438_vm2, %v2029_v42  ;;  %5774 = vmatprep.mubr.msk.f32.mxu1 %vm438_vm2, %v418_v43  ;;  %v375_v42 = vld [vmem:[%s6805_s16 + $0x60] sm:$0xff] }
  0x4c   : > { %6027 = vmatprep.mubr.msk.f32.mxu0 %vm438_vm2, %v2442_v44  ;;  %v7166_v43 = vld [vmem:[%s6805_s16 + $0x104] sm:$0xff] }
  0x4d   : > { %v376_v44 = vld [vmem:[%s6805_s16 + $0x68] sm:$0xff] }
  0x4e   : > { %5775 = vmatmul.mubr.msk.f32.gmra.mrb[18].mxu1 %vm438_vm2, %v419_v45  ;;  %v7176_v45 = vld [vmem:[%s6805_s16 + $0x10c] sm:$0xff] }
  0x4f   : > { %6028 = vmatmul.mubr.msk.f32.vlgmr.msra.gmra.mrb[0].mxu0 %vm438_vm2, %v2443_v46  ;;  %5777 = vmatprep.mubr.msk.f32.mxu1 %vm438_vm2, %v420_v47  ;;  %v377_v46 = vld [vmem:[%s6805_s16 + $0x70] sm:$0xff] }
  0x50   : > { %6082 = vmatpush3.msk.msra.mxu0 %vm547_vm1, %v5218_v22  ;;  %6030 = vmatprep.mubr.msk.f32.mxu0 %vm438_vm2, %v6958_v48  ;;  %v7089_v22 = vld [vmem:[%s6805_s16 + $0xb4] sm:$0xff] }
  0x51   : > { %6137 = vmatprep.subr.msk.mxu0 %vm547_vm1, %v6962_v49  ;;  %v7180_v47 = vld [vmem:[%s6805_s16 + $0x114] sm:$0xff] }
  0x52   : > { %5778 = vmatmul.mubr.msk.f32.gmra.mrb[20].mxu1 %vm438_vm2, %v421_v50  ;;  %v378_v50 = vld [vmem:[%s6805_s16 + $0x78] sm:$0xff] }
  0x53   : > { %6031 = vmatmul.mubr.msk.f32.gmra.mrb[2].mxu0 %vm438_vm2, %v6971_v51  ;;  %5780 = vmatprep.mubr.msk.f32.mxu1 %vm438_vm2, %v422_v52  ;;  %v7190_v52 = vld [vmem:[%s6805_s16 + $0x11c] sm:$0xff] }
  0x54   : > { %6033 = vmatprep.mubr.msk.f32.mxu0 %vm438_vm2, %v6975_v53 }
  0x56   : > { %5781 = vmatmul.mubr.msk.f32.gmra.mrb[22].mxu1 %vm438_vm2, %v423_v54  ;;  %v379_v54 = vld [vmem:[%s6805_s16 + $0x80] sm:$0xff] }
  0x57   : > { %6034 = vmatmul.mubr.msk.f32.gmra.mrb[4].mxu0 %vm438_vm2, %v6987_v55  ;;  %5783 = vmatprep.mubr.msk.f32.mxu1 %vm438_vm2, %v424_v56  ;;  %v7194_v56 = vld [vmem:[%s6805_s16 + $0x124] sm:$0xff] }
  0x58   : > { %6036 = vmatprep.mubr.msk.f32.mxu0 %vm438_vm2, %v6991_v57 }
  0x5a   : > { %5784 = vmatmul.mubr.msk.f32.gmra.mrb[24].mxu1 %vm438_vm2, %v425_v58  ;;  %v380_v58 = vld [vmem:[%s6805_s16 + $0x88] sm:$0xff] }
  0x5b   : > { %6037 = vmatmul.mubr.msk.f32.gmra.mrb[6].mxu0 %vm438_vm2, %v7001_v59  ;;  %5786 = vmatprep.mubr.msk.f32.mxu1 %vm438_vm2, %v426_v60  ;;  %v7204_v60 = vld [vmem:[%s6805_s16 + $0x12c] sm:$0xff] }
  0x5c   : > { %6039 = vmatprep.mubr.msk.f32.mxu0 %vm438_vm2, %v7005_v61 }
  0x5e   : > { %5787 = vmatmul.mubr.msk.f32.gmra.mrb[26].mxu1 %vm438_vm2, %v427_v62  ;;  %v381_v62 = vld [vmem:[%s6805_s16 + $0x90] sm:$0xff] }
  0x5f   : > { %6040 = vmatmul.mubr.msk.f32.gmra.mrb[8].mxu0 %vm438_vm2, %v7015_v63  ;;  %5789 = vmatprep.mubr.msk.f32.mxu1 %vm438_vm2, %v428_v0  ;;  %v382_v0 = vld [vmem:[%s6805_s16 + $0x98] sm:$0xff] }
  0x60   : > { %6042 = vmatprep.mubr.msk.f32.mxu0 %vm438_vm2, %v7019_v1 }
  0x62   : > { %5790 = vmatmul.mubr.msk.f32.gmra.mrb[28].mxu1 %vm438_vm2, %v429_v3  ;;  %v383_v3 = vld [vmem:[%s6805_s16 + $0xa0] sm:$0xff] }
  0x63   : > { %6043 = vmatmul.mubr.msk.f32.gmra.mrb[10].mxu0 %vm438_vm2, %v7029_v4  ;;  %5792 = vmatprep.mubr.msk.f32.mxu1 %vm438_vm2, %v430_v5  ;;  %v7217_v5 = vld [vmem:[%s6810_s19 + $0x20] sm:$0xf] }
  0x64   : > { %6045 = vmatprep.mubr.msk.f32.mxu0 %vm438_vm2, %v7033_v6 }
  0x66   : > { %5793 = vmatmul.mubr.msk.f32.gmra.mrb[30].mxu1 %vm438_vm2, %v431_v7  ;;  %v384_v7 = vld [vmem:[%s6805_s16 + $0xa8] sm:$0xff] }
  0x67   : > { %6046 = vmatmul.mubr.msk.f32.gmra.mrb[12].mxu0 %vm438_vm2, %v7043_v8  ;;  %5795 = vmatprep.mubr.msk.f32.mxu1 %vm438_vm2, %v432_v9  ;;  %v398_v9 = vld [vmem:[%s6805_s16 + $0x118] sm:$0xff] }
  0x68   : > { %6048 = vmatprep.mubr.msk.f32.mxu0 %vm438_vm2, %v7047_v10 }
  0x6a   : > { %5796 = vmatmul.mubr.msk.f32.gmra.mrb[32].mxu1 %vm438_vm2, %v433_v11  ;;  %v1153_v11 = vld [vmem:[%s6805_s16 + $0xa] sm:$0xff] }
  0x6b   : > { %6049 = vmatmul.mubr.msk.f32.gmra.mrb[14].mxu0 %vm438_vm2, %v7057_v12  ;;  %5798 = vmatprep.mubr.msk.f32.mxu1 %vm438_vm2, %v434_v13  ;;  %v7302_v13 = vld [vmem:[%s6805_s16 + $0x1a] sm:$0xff] }
  0x6c   : > { %6051 = vmatprep.mubr.msk.f32.mxu0 %vm438_vm2, %v7061_v14 }
  0x6e   : > { %5799 = vmatmul.mubr.msk.f32.gmra.mrb[34].mxu1 %vm438_vm2, %v435_v15  ;;  %v7320_v15 = vld [vmem:[%s6805_s16 + $0x2a] sm:$0xff] }
  0x6f   : > { %6052 = vmatmul.mubr.msk.f32.gmra.mrb[16].mxu0 %vm438_vm2, %v7071_v16  ;;  %5803 = vmatprep.mubr.msk.f32.mxu1 %vm438_vm2, %v363_v17  ;;  %v7334_v17 = vld [vmem:[%s6805_s16 + $0x3a] sm:$0xff] }
  0x70   : > { %6054 = vmatprep.mubr.msk.f32.mxu0 %vm438_vm2, %v7075_v18 }
  0x72   : > { %5804 = vmatmul.mubr.msk.f32.vlgmr.msra.gmra.mrb[0].mxu1 %vm438_vm2, %v364_v19  ;;  %v7348_v19 = vld [vmem:[%s6805_s16 + $0x4a] sm:$0xff] }
  0x73   : > { %6055 = vmatmul.mubr.msk.f32.gmra.mrb[18].mxu0 %vm438_vm2, %v7085_v20  ;;  %5858 = vmatpush3.msk.msra.mxu1 %vm547_vm1, %v6929_v35  ;;  %v7138_v35 = vld [vmem:[%s6805_s16 + $0xe4] sm:$0xff] }
  0x74   : > { %5806 = vmatprep.mubr.msk.f32.mxu1 %vm438_vm2, %v365_v21  ;;  %6057 = vmatprep.mubr.msk.f32.mxu0 %vm438_vm2, %v7089_v22  ;;  %v7362_v21 = vld [vmem:[%s6805_s16 + $0x5a] sm:$0xff] }
  0x75   : > { %5913 = vmatprep.subr.msk.mxu1 %vm547_vm1, %v7093_v23 }
  0x76   : > { %5807 = vmatmul.mubr.msk.f32.gmra.mrb[2].mxu1 %vm438_vm2, %v366_v24  ;;  %v7381_v24 = vld [vmem:[%s6805_s16 + $0x72] sm:$0xff] }
  0x77   : > { %6058 = vmatmul.mubr.msk.f32.gmra.mrb[20].mxu0 %vm438_vm2, %v7104_v25  ;;  %5809 = vmatprep.mubr.msk.f32.mxu1 %vm438_vm2, %v367_v26  ;;  %v7395_v26 = vld [vmem:[%s6805_s16 + $0x82] sm:$0xff] }
  0x78   : > { %6060 = vmatprep.mubr.msk.f32.mxu0 %vm438_vm2, %v7108_v27 }
  0x7a   : > { %5810 = vmatmul.mubr.msk.f32.gmra.mrb[4].mxu1 %vm438_vm2, %v368_v28  ;;  %v7405_v28 = vld [vmem:[%s6805_s16 + $0x8a] sm:$0xff] }
  0x7b   : > { %6061 = vmatmul.mubr.msk.f32.gmra.mrb[22].mxu0 %vm438_vm2, %v7120_v29  ;;  %5812 = vmatprep.mubr.msk.f32.mxu1 %vm438_vm2, %v369_v30  ;;  %v7410_v30 = vld [vmem:[%s6805_s16 + $0x92] sm:$0xff] }
  0x7c   : > { %6063 = vmatprep.mubr.msk.f32.mxu0 %vm438_vm2, %v7124_v31 }
  0x7e   : > { %5813 = vmatmul.mubr.msk.f32.gmra.mrb[6].mxu1 %vm438_vm2, %v370_v32  ;;  %v7419_v32 = vld [vmem:[%s6805_s16 + $0x9a] sm:$0xff] }
  0x7f   : > { %6064 = vmatmul.mubr.msk.f32.gmra.mrb[24].mxu0 %vm438_vm2, %v7134_v33  ;;  %5815 = vmatprep.mubr.msk.f32.mxu1 %vm438_vm2, %v371_v34  ;;  %v7424_v34 = vld [vmem:[%s6805_s16 + $0xa2] sm:$0xff] }
  0x80   : > { %6066 = vmatprep.mubr.msk.f32.mxu0 %vm438_vm2, %v7138_v35 }
  0x82   : > { %5816 = vmatmul.mubr.msk.f32.gmra.mrb[8].mxu1 %vm438_vm2, %v372_v36  ;;  %v7433_v36 = vld [vmem:[%s6805_s16 + $0xaa] sm:$0xff] }
  0x83   : > { %6067 = vmatmul.mubr.msk.f32.gmra.mrb[26].mxu0 %vm438_vm2, %v7148_v37  ;;  %5818 = vmatprep.mubr.msk.f32.mxu1 %vm438_vm2, %v373_v38  ;;  %v7440_v38 = vld [vmem:[%s6805_s16 + $0xb2] sm:$0xff] }
  0x84   : > { %6069 = vmatprep.mubr.msk.f32.mxu0 %vm438_vm2, %v7152_v39 }
  0x86   : > { %5819 = vmatmul.mubr.msk.f32.gmra.mrb[10].mxu1 %vm438_vm2, %v374_v40  ;;  %v7449_v40 = vld [vmem:[%s6805_s16 + $0xba] sm:$0xff] }
  0x87   : > { %6070 = vmatmul.mubr.msk.f32.gmra.mrb[28].mxu0 %vm438_vm2, %v7162_v41  ;;  %5821 = vmatprep.mubr.msk.f32.mxu1 %vm438_vm2, %v375_v42  ;;  %v7454_v42 = vld [vmem:[%s6805_s16 + $0xc2] sm:$0xff] }
  0x88   : > { %6072 = vmatprep.mubr.msk.f32.mxu0 %vm438_vm2, %v7166_v43 }
  0x8a   : > { %5822 = vmatmul.mubr.msk.f32.gmra.mrb[12].mxu1 %vm438_vm2, %v376_v44  ;;  %v7463_v44 = vld [vmem:[%s6805_s16 + $0xca] sm:$0xff] }
  0x8b   : > { %6073 = vmatmul.mubr.msk.f32.gmra.mrb[30].mxu0 %vm438_vm2, %v7176_v45  ;;  %5824 = vmatprep.mubr.msk.f32.mxu1 %vm438_vm2, %v377_v46  ;;  %v7468_v46 = vld [vmem:[%s6805_s16 + $0xd2] sm:$0xff] }
  0x8c   : > { %6075 = vmatprep.mubr.msk.f32.mxu0 %vm438_vm2, %v7180_v47 }
  0x8e   : > { %5825 = vmatmul.mubr.msk.f32.gmra.mrb[14].mxu1 %vm438_vm2, %v378_v50  ;;  %v7477_v50 = vld [vmem:[%s6805_s16 + $0xda] sm:$0xff] }
  0x8f   : > { %6076 = vmatmul.mubr.msk.f32.gmra.mrb[32].mxu0 %vm438_vm2, %v7190_v52  ;;  %5827 = vmatprep.mubr.msk.f32.mxu1 %vm438_vm2, %v379_v54  ;;  %v7482_v54 = vld [vmem:[%s6805_s16 + $0xe2] sm:$0xff] }
  0x90   : > { %6078 = vmatprep.mubr.msk.f32.mxu0 %vm438_vm2, %v7194_v56 }
  0x92   : > { %5828 = vmatmul.mubr.msk.f32.gmra.mrb[16].mxu1 %vm438_vm2, %v380_v58  ;;  %v7491_v58 = vld [vmem:[%s6805_s16 + $0xea] sm:$0xff] }
  0x93   : > { %6079 = vmatmul.mubr.msk.f32.gmra.mrb[34].mxu0 %vm438_vm2, %v7204_v60  ;;  %5830 = vmatprep.mubr.msk.f32.mxu1 %vm438_vm2, %v381_v62  ;;  %v7496_v62 = vld [vmem:[%s6805_s16 + $0xf2] sm:$0xff] }
  0x94   : > { %6083 = vmatprep.mubr.msk.f32.mxu0 %vm438_vm2, %v6958_v48  ;;  %v385_v48 = vld [vmem:[%s6805_s16 + $0xb0] sm:$0xff] }
  0x96   : > { %5831 = vmatmul.mubr.msk.f32.gmra.mrb[18].mxu1 %vm438_vm2, %v382_v0  ;;  %v3314_v0 = vld [vmem:[%s6805_s16 + $0x85] sm:$0xff] }
  0x97   : > { %6084 = vmatmul.mubr.msk.f32.vlgmr.msra.gmra.mrb[0].mxu0 %vm438_vm2, %v6971_v51  ;;  %5833 = vmatprep.mubr.msk.f32.mxu1 %vm438_vm2, %v383_v3  ;;  %v386_v51 = vld [vmem:[%s6805_s16 + $0xb8] sm:$0xff] }
  0x98   : > { %6138 = vmatpush3.msk.msra.mxu0 %vm547_vm1, %v6962_v49  ;;  %6086 = vmatprep.mubr.msk.f32.mxu0 %vm438_vm2, %v6975_v53  ;;  %v387_v49 = vld [vmem:[%s6805_s16 + $0xc0] sm:$0xff]  ;;  %v388_v53 = vld [vmem:[%s6805_s16 + $0xc8] sm:$0xff] }
  0x99   : > { %6193 = vmatprep.subr.msk.mxu0 %vm547_vm1, %v7217_v5  ;;  %v7505_v3 = vld [vmem:[%s6805_s16 + $0xfa] sm:$0xff] }
  0x9a   : > { %5834 = vmatmul.mubr.msk.f32.gmra.mrb[20].mxu1 %vm438_vm2, %v384_v7  ;;  %v7510_v7 = vld [vmem:[%s6805_s16 + $0x102] sm:$0xff] }
  0x9b   : > { %6087 = vmatmul.mubr.msk.f32.gmra.mrb[2].mxu0 %vm438_vm2, %v6987_v55  ;;  %5836 = vmatprep.mubr.msk.f32.mxu1 %vm438_vm2, %v385_v48  ;;  %v389_v55 = vld [vmem:[%s6805_s16 + $0xd0] sm:$0xff] }
  0x9c   : > { %6089 = vmatprep.mubr.msk.f32.mxu0 %vm438_vm2, %v6991_v57  ;;  %v390_v57 = vld [vmem:[%s6805_s16 + $0xd8] sm:$0xff] }
  0x9d   : > { %v3316_v48 = vld [vmem:[%s6805_s16 + $0x95] sm:$0xff] }
  0x9e   : > { %5837 = vmatmul.mubr.msk.f32.gmra.mrb[22].mxu1 %vm438_vm2, %v386_v51  ;;  %v7519_v51 = vld [vmem:[%s6805_s16 + $0x10a] sm:$0xff] }
  0x9f   : > { %6090 = vmatmul.mubr.msk.f32.gmra.mrb[4].mxu0 %vm438_vm2, %v7001_v59  ;;  %5839 = vmatprep.mubr.msk.f32.mxu1 %vm438_vm2, %v387_v49  ;;  %v391_v59 = vld [vmem:[%s6805_s16 + $0xe0] sm:$0xff] }
  0xa0   : > { %6092 = vmatprep.mubr.msk.f32.mxu0 %vm438_vm2, %v7005_v61  ;;  %v392_v61 = vld [vmem:[%s6805_s16 + $0xe8] sm:$0xff]  ;;  %v3317_v49 = vld [vmem:[%s6805_s16 + $0x9d] sm:$0xff] }
  0xa2   : > { %5840 = vmatmul.mubr.msk.f32.gmra.mrb[24].mxu1 %vm438_vm2, %v388_v53  ;;  %v7524_v53 = vld [vmem:[%s6805_s16 + $0x112] sm:$0xff] }
  0xa3   : > { %6093 = vmatmul.mubr.msk.f32.gmra.mrb[6].mxu0 %vm438_vm2, %v7015_v63  ;;  %5842 = vmatprep.mubr.msk.f32.mxu1 %vm438_vm2, %v389_v55  ;;  %v393_v63 = vld [vmem:[%s6805_s16 + $0xf0] sm:$0xff]  ;;  %v3318_v55 = vld [vmem:[%s6805_s16 + $0xa5] sm:$0xff] }
  0xa4   : > { %6095 = vmatprep.mubr.msk.f32.mxu0 %vm438_vm2, %v7019_v1  ;;  %v394_v1 = vld [vmem:[%s6805_s16 + $0xf8] sm:$0xff] }
  0xa6   : > { %5843 = vmatmul.mubr.msk.f32.gmra.mrb[26].mxu1 %vm438_vm2, %v390_v57  ;;  %v7533_v57 = vld [vmem:[%s6805_s16 + $0x11a] sm:$0xff] }
  0xa7   : > { %6096 = vmatmul.mubr.msk.f32.gmra.mrb[8].mxu0 %vm438_vm2, %v7029_v4  ;;  %5845 = vmatprep.mubr.msk.f32.mxu1 %vm438_vm2, %v391_v59  ;;  %v395_v4 = vld [vmem:[%s6805_s16 + $0x100] sm:$0xff]  ;;  %v3319_v59 = vld [vmem:[%s6805_s16 + $0xad] sm:$0xff] }
  0xa8   : > { %6098 = vmatprep.mubr.msk.f32.mxu0 %vm438_vm2, %v7033_v6  ;;  %v396_v6 = vld [vmem:[%s6805_s16 + $0x108] sm:$0xff] }
  0xaa   : > { %5846 = vmatmul.mubr.msk.f32.gmra.mrb[28].mxu1 %vm438_vm2, %v392_v61  ;;  %v3320_v61 = vld [vmem:[%s6805_s16 + $0xb5] sm:$0xff] }
  0xab   : > { %6099 = vmatmul.mubr.msk.f32.gmra.mrb[10].mxu0 %vm438_vm2, %v7043_v8  ;;  %5848 = vmatprep.mubr.msk.f32.mxu1 %vm438_vm2, %v393_v63  ;;  %v397_v8 = vld [vmem:[%s6805_s16 + $0x110] sm:$0xff]  ;;  %v3321_v63 = vld [vmem:[%s6805_s16 + $0xbd] sm:$0xff] }
  0xac   : > { %6101 = vmatprep.mubr.msk.f32.mxu0 %vm438_vm2, %v7047_v10  ;;  %v1152_v10 = vld [vmem:[%s6805_s16 + $0x2] sm:$0xff] }
  0xae   : > { %5849 = vmatmul.mubr.msk.f32.gmra.mrb[30].mxu1 %vm438_vm2, %v394_v1  ;;  %v3322_v1 = vld [vmem:[%s6805_s16 + $0xc5] sm:$0xff] }
  0xaf   : > { %6102 = vmatmul.mubr.msk.f32.gmra.mrb[12].mxu0 %vm438_vm2, %v7057_v12  ;;  %5851 = vmatprep.mubr.msk.f32.mxu1 %vm438_vm2, %v395_v4  ;;  %v7294_v12 = vld [vmem:[%s6805_s16 + $0x12] sm:$0xff] }
  0xb0   : > { %6104 = vmatprep.mubr.msk.f32.mxu0 %vm438_vm2, %v7061_v14  ;;  %v7309_v14 = vld [vmem:[%s6805_s16 + $0x22] sm:$0xff]  ;;  %v3323_v4 = vld [vmem:[%s6805_s16 + $0xcd] sm:$0xff] }
  0xb2   : > { %5852 = vmatmul.mubr.msk.f32.gmra.mrb[32].mxu1 %vm438_vm2, %v396_v6  ;;  %v3324_v6 = vld [vmem:[%s6805_s16 + $0xd5] sm:$0xff] }
  0xb3   : > { %6105 = vmatmul.mubr.msk.f32.gmra.mrb[14].mxu0 %vm438_vm2, %v7071_v16  ;;  %5854 = vmatprep.mubr.msk.f32.mxu1 %vm438_vm2, %v397_v8  ;;  %v7325_v16 = vld [vmem:[%s6805_s16 + $0x32] sm:$0xff]  ;;  %v3326_v8 = vld [vmem:[%s6805_s16 + $0xe5] sm:$0xff] }
  0xb4   : > { %6107 = vmatprep.mubr.msk.f32.mxu0 %vm438_vm2, %v7075_v18  ;;  %v7339_v18 = vld [vmem:[%s6805_s16 + $0x42] sm:$0xff] }
  0xb6   : > { %5855 = vmatmul.mubr.msk.f32.gmra.mrb[34].mxu1 %vm438_vm2, %v398_v9  ;;  %v3327_v9 = vld [vmem:[%s6805_s16 + $0xed] sm:$0xff] }
  0xb7   : > { %6108 = vmatmul.mubr.msk.f32.gmra.mrb[16].mxu0 %vm438_vm2, %v7085_v20  ;;  %5859 = vmatprep.mubr.msk.f32.mxu1 %vm438_vm2, %v1152_v10  ;;  %v7353_v20 = vld [vmem:[%s6805_s16 + $0x52] sm:$0xff] }
  0xb8   : > { %6110 = vmatprep.mubr.msk.f32.mxu0 %vm438_vm2, %v7089_v22  ;;  %v7367_v22 = vld [vmem:[%s6805_s16 + $0x62] sm:$0xff]  ;;  %v3328_v10 = vld [vmem:[%s6805_s16 + $0xf5] sm:$0xff] }
  0xba   : > { %5860 = vmatmul.mubr.msk.f32.vlgmr.msra.gmra.mrb[0].mxu1 %vm438_vm2, %v1153_v11  ;;  %v3329_v11 = vld [vmem:[%s6805_s16 + $0xfd] sm:$0xff] }
  0xbb   : > { %6111 = vmatmul.mubr.msk.f32.gmra.mrb[18].mxu0 %vm438_vm2, %v7104_v25  ;;  %5914 = vmatpush3.msk.msra.mxu1 %vm547_vm1, %v7093_v23  ;;  %v7376_v23 = vld [vmem:[%s6805_s16 + $0x6a] sm:$0xff]  ;;  %v7390_v25 = vld [vmem:[%s6805_s16 + $0x7a] sm:$0xff] }
  0xbc   : > { %5862 = vmatprep.mubr.msk.f32.mxu1 %vm438_vm2, %v7294_v12  ;;  %6113 = vmatprep.mubr.msk.f32.mxu0 %vm438_vm2, %v7108_v27  ;;  %v2906_v27 = vld [vmem:[%s6805_s16 + $0x134] sm:$0xff] }
  0xbd   : > { %6305 = vmatprep.subr.msk.mxu1 %vm547_vm1, %v6857_v2 }
  0xbe   : > { %5863 = vmatmul.mubr.msk.f32.gmra.mrb[2].mxu1 %vm438_vm2, %v7302_v13 }
  0xbf   : > { %6114 = vmatmul.mubr.msk.f32.gmra.mrb[20].mxu0 %vm438_vm2, %v7120_v29  ;;  %5865 = vmatprep.mubr.msk.f32.mxu1 %vm438_vm2, %v7309_v14  ;;  %v2907_v29 = vld [vmem:[%s6805_s16 + $0x13c] sm:$0xff] }
  0xc0   : > { %6116 = vmatprep.mubr.msk.f32.mxu0 %vm438_vm2, %v7124_v31  ;;  %v3302_v31 = vld [vmem:[%s6805_s16 + $0x25] sm:$0xff] }
  0xc2   : > { %5866 = vmatmul.mubr.msk.f32.gmra.mrb[4].mxu1 %vm438_vm2, %v7320_v15 }
  0xc3   : > { %6117 = vmatmul.mubr.msk.f32.gmra.mrb[22].mxu0 %vm438_vm2, %v7134_v33  ;;  %5868 = vmatprep.mubr.msk.f32.mxu1 %vm438_vm2, %v7325_v16  ;;  %v3303_v33 = vld [vmem:[%s6805_s16 + $0x2d] sm:$0xff] }
  0xc4   : > { %6119 = vmatprep.mubr.msk.f32.mxu0 %vm438_vm2, %v7138_v35  ;;  %v3304_v35 = vld [vmem:[%s6805_s16 + $0x35] sm:$0xff] }
  0xc6   : > { %5869 = vmatmul.mubr.msk.f32.gmra.mrb[6].mxu1 %vm438_vm2, %v7334_v17 }
  0xc7   : > { %6120 = vmatmul.mubr.msk.f32.gmra.mrb[24].mxu0 %vm438_vm2, %v7148_v37  ;;  %5871 = vmatprep.mubr.msk.f32.mxu1 %vm438_vm2, %v7339_v18  ;;  %v3305_v37 = vld [vmem:[%s6805_s16 + $0x3d] sm:$0xff] }
  0xc8   : > { %6122 = vmatprep.mubr.msk.f32.mxu0 %vm438_vm2, %v7152_v39  ;;  %v3306_v39 = vld [vmem:[%s6805_s16 + $0x45] sm:$0xff] }
  0xca   : > { %5872 = vmatmul.mubr.msk.f32.gmra.mrb[8].mxu1 %vm438_vm2, %v7348_v19 }
  0xcb   : > { %6123 = vmatmul.mubr.msk.f32.gmra.mrb[26].mxu0 %vm438_vm2, %v7162_v41  ;;  %5874 = vmatprep.mubr.msk.f32.mxu1 %vm438_vm2, %v7353_v20  ;;  %v3307_v41 = vld [vmem:[%s6805_s16 + $0x4d] sm:$0xff] }
  0xcc   : > { %6125 = vmatprep.mubr.msk.f32.mxu0 %vm438_vm2, %v7166_v43  ;;  %v3308_v43 = vld [vmem:[%s6805_s16 + $0x55] sm:$0xff] }
  0xce   : > { %5875 = vmatmul.mubr.msk.f32.gmra.mrb[10].mxu1 %vm438_vm2, %v7362_v21 }
  0xcf   : > { %6126 = vmatmul.mubr.msk.f32.gmra.mrb[28].mxu0 %vm438_vm2, %v7176_v45  ;;  %5877 = vmatprep.mubr.msk.f32.mxu1 %vm438_vm2, %v7367_v22  ;;  %v3309_v45 = vld [vmem:[%s6805_s16 + $0x5d] sm:$0xff] }
  0xd0   : > { %6128 = vmatprep.mubr.msk.f32.mxu0 %vm438_vm2, %v7180_v47  ;;  %v3310_v47 = vld [vmem:[%s6805_s16 + $0x65] sm:$0xff] }
  0xd2   : > { %5878 = vmatmul.mubr.msk.f32.gmra.mrb[12].mxu1 %vm438_vm2, %v7376_v23 }
  0xd3   : > { %6129 = vmatmul.mubr.msk.f32.gmra.mrb[30].mxu0 %vm438_vm2, %v7190_v52  ;;  %5880 = vmatprep.mubr.msk.f32.mxu1 %vm438_vm2, %v7381_v24  ;;  %v3311_v52 = vld [vmem:[%s6805_s16 + $0x6d] sm:$0xff] }
  0xd4   : > { %6131 = vmatprep.mubr.msk.f32.mxu0 %vm438_vm2, %v7194_v56  ;;  %v3312_v56 = vld [vmem:[%s6805_s16 + $0x75] sm:$0xff] }
  0xd6   : > { %5881 = vmatmul.mubr.msk.f32.gmra.mrb[14].mxu1 %vm438_vm2, %v7390_v25 }
  0xd7   : > { %6132 = vmatmul.mubr.msk.f32.gmra.mrb[32].mxu0 %vm438_vm2, %v7204_v60  ;;  %5883 = vmatprep.mubr.msk.f32.mxu1 %vm438_vm2, %v7395_v26  ;;  %v3313_v60 = vld [vmem:[%s6805_s16 + $0x7d] sm:$0xff] }
  0xd8   : > { %6134 = vmatprep.mubr.msk.f32.mxu0 %vm438_vm2, %v2906_v27  ;;  %v3739_v27 = vld [vmem:[%s6805_s16 + $0x5e] sm:$0xff] }
  0xda   : > { %5884 = vmatmul.mubr.msk.f32.gmra.mrb[16].mxu1 %vm438_vm2, %v7405_v28 }
  0xdb   : > { %6135 = vmatmul.mubr.msk.f32.gmra.mrb[34].mxu0 %vm438_vm2, %v2907_v29  ;;  %5886 = vmatprep.mubr.msk.f32.mxu1 %vm438_vm2, %v7410_v30  ;;  %v3741_v29 = vld [vmem:[%s6805_s16 + $0x6e] sm:$0xff] }
  0xdc   : > { %6139 = vmatprep.mubr.msk.f32.mxu0 %vm438_vm2, %v3302_v31  ;;  %v3743_v31 = vld [vmem:[%s6805_s16 + $0x7e] sm:$0xff] }
  0xde   : > { %5887 = vmatmul.mubr.msk.f32.gmra.mrb[18].mxu1 %vm438_vm2, %v7419_v32 }
  0xdf   : > { %6140 = vmatmul.mubr.msk.f32.vlgmr.msra.gmra.mrb[0].mxu0 %vm438_vm2, %v3303_v33  ;;  %5889 = vmatprep.mubr.msk.f32.mxu1 %vm438_vm2, %v7424_v34  ;;  %v3745_v33 = vld [vmem:[%s6805_s16 + $0x8e] sm:$0xff] }
  0xe0   : > { %6194 = vmatpush3.msk.msra.mxu0 %vm547_vm1, %v7217_v5  ;;  %6142 = vmatprep.mubr.msk.f32.mxu0 %vm438_vm2, %v3304_v35  ;;  %v3315_v5 = vld [vmem:[%s6805_s16 + $0x8d] sm:$0xff]  ;;  %v3747_v35 = vld [vmem:[%s6805_s16 + $0x9e] sm:$0xff] }
  0xe2   : > { %5890 = vmatmul.mubr.msk.f32.gmra.mrb[20].mxu1 %vm438_vm2, %v7433_v36 }
  0xe3   : > { %6143 = vmatmul.mubr.msk.f32.gmra.mrb[2].mxu0 %vm438_vm2, %v3305_v37  ;;  %5892 = vmatprep.mubr.msk.f32.mxu1 %vm438_vm2, %v7440_v38  ;;  %v3748_v37 = vld [vmem:[%s6805_s16 + $0xa6] sm:$0xff] }
  0xe4   : > { %6145 = vmatprep.mubr.msk.f32.mxu0 %vm438_vm2, %v3306_v39  ;;  %v3749_v39 = vld [vmem:[%s6805_s16 + $0xae] sm:$0xff] }
  0xe6   : > { %5893 = vmatmul.mubr.msk.f32.gmra.mrb[22].mxu1 %vm438_vm2, %v7449_v40 }
  0xe7   : > { %6146 = vmatmul.mubr.msk.f32.gmra.mrb[4].mxu0 %vm438_vm2, %v3307_v41  ;;  %5895 = vmatprep.mubr.msk.f32.mxu1 %vm438_vm2, %v7454_v42  ;;  %v3750_v41 = vld [vmem:[%s6805_s16 + $0xb6] sm:$0xff] }
  0xe8   : > { %6148 = vmatprep.mubr.msk.f32.mxu0 %vm438_vm2, %v3308_v43  ;;  %v3751_v43 = vld [vmem:[%s6805_s16 + $0xbe] sm:$0xff] }
  0xea   : > { %5896 = vmatmul.mubr.msk.f32.gmra.mrb[24].mxu1 %vm438_vm2, %v7463_v44 }
  0xeb   : > { %6149 = vmatmul.mubr.msk.f32.gmra.mrb[6].mxu0 %vm438_vm2, %v3309_v45  ;;  %5898 = vmatprep.mubr.msk.f32.mxu1 %vm438_vm2, %v7468_v46  ;;  %v3752_v45 = vld [vmem:[%s6805_s16 + $0xc6] sm:$0xff] }
  0xec   : > { %6151 = vmatprep.mubr.msk.f32.mxu0 %vm438_vm2, %v3310_v47  ;;  %v3753_v47 = vld [vmem:[%s6805_s16 + $0xce] sm:$0xff] }
  0xee   : > { %5899 = vmatmul.mubr.msk.f32.gmra.mrb[26].mxu1 %vm438_vm2, %v7477_v50 }
  0xef   : > { %6152 = vmatmul.mubr.msk.f32.gmra.mrb[8].mxu0 %vm438_vm2, %v3311_v52  ;;  %5901 = vmatprep.mubr.msk.f32.mxu1 %vm438_vm2, %v7482_v54  ;;  %v3754_v52 = vld [vmem:[%s6805_s16 + $0xd6] sm:$0xff] }
  0xf0   : > { %6154 = vmatprep.mubr.msk.f32.mxu0 %vm438_vm2, %v3312_v56  ;;  %v3755_v56 = vld [vmem:[%s6805_s16 + $0xde] sm:$0xff] }
  0xf2   : > { %5902 = vmatmul.mubr.msk.f32.gmra.mrb[28].mxu1 %vm438_vm2, %v7491_v58 }
  0xf3   : > { %6155 = vmatmul.mubr.msk.f32.gmra.mrb[10].mxu0 %vm438_vm2, %v3313_v60  ;;  %5904 = vmatprep.mubr.msk.f32.mxu1 %vm438_vm2, %v7496_v62  ;;  %v3756_v60 = vld [vmem:[%s6805_s16 + $0xe6] sm:$0xff] }
  0xf4   : > { %6157 = vmatprep.mubr.msk.f32.mxu0 %vm438_vm2, %v3314_v0  ;;  %v3757_v0 = vld [vmem:[%s6805_s16 + $0xee] sm:$0xff] }
  0xf6   : > { %5905 = vmatmul.mubr.msk.f32.gmra.mrb[30].mxu1 %vm438_vm2, %v7505_v3 }
  0xf7   : > { %6158 = vmatmul.mubr.msk.f32.gmra.mrb[12].mxu0 %vm438_vm2, %v3315_v5  ;;  %5907 = vmatprep.mubr.msk.f32.mxu1 %vm438_vm2, %v7510_v7  ;;  %v3758_v5 = vld [vmem:[%s6805_s16 + $0xf6] sm:$0xff] }
  0xf8   : > { %6160 = vmatprep.mubr.msk.f32.mxu0 %vm438_vm2, %v3316_v48  ;;  %v3759_v48 = vld [vmem:[%s6805_s16 + $0xfe] sm:$0xff] }
  0xfa   : > { %5908 = vmatmul.mubr.msk.f32.gmra.mrb[32].mxu1 %vm438_vm2, %v7519_v51 }
  0xfb   : > { %6161 = vmatmul.mubr.msk.f32.gmra.mrb[14].mxu0 %vm438_vm2, %v3317_v49  ;;  %5910 = vmatprep.mubr.msk.f32.mxu1 %vm438_vm2, %v7524_v53  ;;  %v3760_v49 = vld [vmem:[%s6805_s16 + $0x106] sm:$0xff] }
  0xfc   : > { %6163 = vmatprep.mubr.msk.f32.mxu0 %vm438_vm2, %v3318_v55  ;;  %v3761_v55 = vld [vmem:[%s6805_s16 + $0x10e] sm:$0xff] }
  0xfe   : > { %5911 = vmatmul.mubr.msk.f32.gmra.mrb[34].mxu1 %vm438_vm2, %v7533_v57 }
  0xff   : > { %6164 = vmatmul.mubr.msk.f32.gmra.mrb[16].mxu0 %vm438_vm2, %v3319_v59  ;;  %5915 = vmatprep.mubr.msk.f32.mxu1 %vm438_vm2, %v7294_v12  ;;  %v3330_v12 = vld [vmem:[%s6805_s16 + $0x105] sm:$0xff]  ;;  %v3762_v59 = vld [vmem:[%s6805_s16 + $0x116] sm:$0xff] }
 0x100   : > { %6166 = vmatprep.mubr.msk.f32.mxu0 %vm438_vm2, %v3320_v61  ;;  %v2043_v61 = vld [vmem:[%s6805_s16 + $0x10b] sm:$0xff] }
 0x102   : > { %5916 = vmatmul.mubr.msk.f32.vlgmr.msra.gmra.mrb[0].mxu1 %vm438_vm2, %v7302_v13  ;;  %v3331_v13 = vld [vmem:[%s6805_s16 + $0x10d] sm:$0xff] }
 0x103   : > { %6167 = vmatmul.mubr.msk.f32.gmra.mrb[18].mxu0 %vm438_vm2, %v3321_v63  ;;  %6306 = vmatpush3.msk.msra.mxu1 %vm547_vm1, %v6857_v2  ;;  %v3325_v2 = vld [vmem:[%s6805_s16 + $0xdd] sm:$0xff] }
 0x104   : > { %5918 = vmatprep.mubr.msk.f32.mxu1 %vm438_vm2, %v7309_v14  ;;  %6169 = vmatprep.mubr.msk.f32.mxu0 %vm438_vm2, %v3322_v1  ;;  %v3332_v14 = vld [vmem:[%s6805_s16 + $0x115] sm:$0xff]  ;;  %v3763_v63 = vld [vmem:[%s6805_s16 + $0x11e] sm:$0xff] }
 0x105   : > { %v2044_v1 = vld [vmem:[%s6805_s16 + $0x113] sm:$0xff] }
 0x106   : > { %5919 = vmatmul.mubr.msk.f32.gmra.mrb[2].mxu1 %vm438_vm2, %v7320_v15  ;;  %v3333_v15 = vld [vmem:[%s6805_s16 + $0x11d] sm:$0xff] }
 0x107   : > { %6170 = vmatmul.mubr.msk.f32.gmra.mrb[20].mxu0 %vm438_vm2, %v3323_v4  ;;  %5921 = vmatprep.mubr.msk.f32.mxu1 %vm438_vm2, %v7325_v16  ;;  %v3334_v16 = vld [vmem:[%s6805_s16 + $0x125] sm:$0xff] }
 0x108   : > { %6172 = vmatprep.mubr.msk.f32.mxu0 %vm438_vm2, %v3324_v6  ;;  %v3764_v4 = vld [vmem:[%s6805_s16 + $0x126] sm:$0xff]  ;;  %v2045_v6 = vld [vmem:[%s6805_s16 + $0x11b] sm:$0xff] }
 0x10a   : > { %5922 = vmatmul.mubr.msk.f32.gmra.mrb[4].mxu1 %vm438_vm2, %v7334_v17  ;;  %v3335_v17 = vld [vmem:[%s6805_s16 + $0x12d] sm:$0xff] }
 0x10b   : > { %6173 = vmatmul.mubr.msk.f32.gmra.mrb[22].mxu0 %vm438_vm2, %v3325_v2  ;;  %5924 = vmatprep.mubr.msk.f32.mxu1 %vm438_vm2, %v7339_v18  ;;  %v3336_v18 = vld [vmem:[%s6805_s16 + $0x135] sm:$0xff] }
 0x10c   : > { %6175 = vmatprep.mubr.msk.f32.mxu0 %vm438_vm2, %v3326_v8  ;;  %v3765_v2 = vld [vmem:[%s6805_s16 + $0x12e] sm:$0xff]  ;;  %v2046_v8 = vld [vmem:[%s6805_s16 + $0x123] sm:$0xff] }
 0x10e   : > { %5925 = vmatmul.mubr.msk.f32.gmra.mrb[6].mxu1 %vm438_vm2, %v7348_v19  ;;  %v3337_v19 = vld [vmem:[%s6805_s16 + $0x13d] sm:$0xff] }
 0x10f   : > { %6176 = vmatmul.mubr.msk.f32.gmra.mrb[24].mxu0 %vm438_vm2, %v3327_v9  ;;  %5927 = vmatprep.mubr.msk.f32.mxu1 %vm438_vm2, %v7353_v20  ;;  %v3732_v20 = vld [vmem:[%s6805_s16 + $0x26] sm:$0xff]  ;;  %v3766_v9 = vld [vmem:[%s6805_s16 + $0x136] sm:$0xff] }
 0x110   : > { %6178 = vmatprep.mubr.msk.f32.mxu0 %vm438_vm2, %v3328_v10  ;;  %v2047_v10 = vld [vmem:[%s6805_s16 + $0x12b] sm:$0xff] }
 0x112   : > { %5928 = vmatmul.mubr.msk.f32.gmra.mrb[8].mxu1 %vm438_vm2, %v7362_v21  ;;  %v3733_v21 = vld [vmem:[%s6805_s16 + $0x2e] sm:$0xff] }
 0x113   : > { %6179 = vmatmul.mubr.msk.f32.gmra.mrb[26].mxu0 %vm438_vm2, %v3329_v11  ;;  %5930 = vmatprep.mubr.msk.f32.mxu1 %vm438_vm2, %v7367_v22  ;;  %v3734_v22 = vld [vmem:[%s6805_s16 + $0x36] sm:$0xff]  ;;  %v3767_v11 = vld [vmem:[%s6805_s16 + $0x13e] sm:$0xff] }
 0x114   : > { %6181 = vmatprep.mubr.msk.f32.mxu0 %vm438_vm2, %v3330_v12 }
 0x116   : > { %5931 = vmatmul.mubr.msk.f32.gmra.mrb[10].mxu1 %vm438_vm2, %v7376_v23  ;;  %v3735_v23 = vld [vmem:[%s6805_s16 + $0x3e] sm:$0xff] }
 0x117   : > { %6182 = vmatmul.mubr.msk.f32.gmra.mrb[28].mxu0 %vm438_vm2, %v3331_v13  ;;  %5933 = vmatprep.mubr.msk.f32.mxu1 %vm438_vm2, %v7381_v24  ;;  %v3736_v24 = vld [vmem:[%s6805_s16 + $0x46] sm:$0xff] }
 0x118   : > { %6184 = vmatprep.mubr.msk.f32.mxu0 %vm438_vm2, %v3332_v14 }
 0x11a   : > { %5934 = vmatmul.mubr.msk.f32.gmra.mrb[12].mxu1 %vm438_vm2, %v7390_v25  ;;  %v3737_v25 = vld [vmem:[%s6805_s16 + $0x4e] sm:$0xff] }
 0x11b   : > { %6185 = vmatmul.mubr.msk.f32.gmra.mrb[30].mxu0 %vm438_vm2, %v3333_v15  ;;  %5936 = vmatprep.mubr.msk.f32.mxu1 %vm438_vm2, %v7395_v26  ;;  %v3738_v26 = vld [vmem:[%s6805_s16 + $0x56] sm:$0xff] }
 0x11c   : > { %6187 = vmatprep.mubr.msk.f32.mxu0 %vm438_vm2, %v3334_v16 }
 0x11e   : > { %5937 = vmatmul.mubr.msk.f32.gmra.mrb[14].mxu1 %vm438_vm2, %v7405_v28  ;;  %v3740_v28 = vld [vmem:[%s6805_s16 + $0x66] sm:$0xff] }
 0x11f   : > { %6188 = vmatmul.mubr.msk.f32.gmra.mrb[32].mxu0 %vm438_vm2, %v3335_v17  ;;  %5939 = vmatprep.mubr.msk.f32.mxu1 %vm438_vm2, %v7410_v30  ;;  %v3742_v30 = vld [vmem:[%s6805_s16 + $0x76] sm:$0xff] }
 0x120   : > { %6190 = vmatprep.mubr.msk.f32.mxu0 %vm438_vm2, %v3336_v18 }
 0x122   : > { %5940 = vmatmul.mubr.msk.f32.gmra.mrb[16].mxu1 %vm438_vm2, %v7419_v32  ;;  %v3744_v32 = vld [vmem:[%s6805_s16 + $0x86] sm:$0xff] }
 0x123   : > { %6191 = vmatmul.mubr.msk.f32.gmra.mrb[34].mxu0 %vm438_vm2, %v3337_v19  ;;  %5942 = vmatprep.mubr.msk.f32.mxu1 %vm438_vm2, %v7424_v34  ;;  %v3746_v34 = vld [vmem:[%s6805_s16 + $0x96] sm:$0xff] }
 0x124   : > { %6195 = vmatprep.mubr.msk.f32.mxu0 %vm438_vm2, %v3732_v20 }
 0x126   : > { %5943 = vmatmul.mubr.msk.f32.gmra.mrb[18].mxu1 %vm438_vm2, %v7433_v36  ;;  %v1616_v36 = vld [vmem:[%s6805_s16 + $0x122] sm:$0xff] }
 0x127   : > { %6196 = vmatmul.mubr.msk.f32.vlgmr.msra.gmra.mrb[0].mxu0 %vm438_vm2, %v3733_v21  ;;  %5945 = vmatprep.mubr.msk.f32.mxu1 %vm438_vm2, %v7440_v38  ;;  %v1617_v38 = vld [vmem:[%s6805_s16 + $0x12a] sm:$0xff] }
 0x128   : > { %6198 = vmatprep.mubr.msk.f32.mxu0 %vm438_vm2, %v3734_v22 }
 0x12a   : > { %5946 = vmatmul.mubr.msk.f32.gmra.mrb[20].mxu1 %vm438_vm2, %v7449_v40  ;;  %v2030_v40 = vld [vmem:[%s6805_s16 + $0xa3] sm:$0xff] }
 0x12b   : > { %6199 = vmatmul.mubr.msk.f32.gmra.mrb[2].mxu0 %vm438_vm2, %v3735_v23  ;;  %5948 = vmatprep.mubr.msk.f32.mxu1 %vm438_vm2, %v7454_v42  ;;  %v2031_v42 = vld [vmem:[%s6805_s16 + $0xab] sm:$0xff] }
 0x12c   : > { %6201 = vmatprep.mubr.msk.f32.mxu0 %vm438_vm2, %v3736_v24 }
 0x12e   : > { %5949 = vmatmul.mubr.msk.f32.gmra.mrb[22].mxu1 %vm438_vm2, %v7463_v44  ;;  %v2032_v44 = vld [vmem:[%s6805_s16 + $0xb3] sm:$0xff] }
 0x12f   : > { %6202 = vmatmul.mubr.msk.f32.gmra.mrb[4].mxu0 %vm438_vm2, %v3737_v25  ;;  %5951 = vmatprep.mubr.msk.f32.mxu1 %vm438_vm2, %v7468_v46  ;;  %v2033_v46 = vld [vmem:[%s6805_s16 + $0xbb] sm:$0xff] }
 0x130   : > { %6204 = vmatprep.mubr.msk.f32.mxu0 %vm438_vm2, %v3738_v26 }
 0x132   : > { %5952 = vmatmul.mubr.msk.f32.gmra.mrb[24].mxu1 %vm438_vm2, %v7477_v50  ;;  %v2034_v50 = vld [vmem:[%s6805_s16 + $0xc3] sm:$0xff] }
 0x133   : > { %6205 = vmatmul.mubr.msk.f32.gmra.mrb[6].mxu0 %vm438_vm2, %v3739_v27  ;;  %5954 = vmatprep.mubr.msk.f32.mxu1 %vm438_vm2, %v7482_v54  ;;  %v2035_v54 = vld [vmem:[%s6805_s16 + $0xcb] sm:$0xff] }
 0x134   : > { %6207 = vmatprep.mubr.msk.f32.mxu0 %vm438_vm2, %v3740_v28 }
 0x136   : > { %5955 = vmatmul.mubr.msk.f32.gmra.mrb[26].mxu1 %vm438_vm2, %v7491_v58  ;;  %v2036_v58 = vld [vmem:[%s6805_s16 + $0xd3] sm:$0xff] }
 0x137   : > { %6208 = vmatmul.mubr.msk.f32.gmra.mrb[8].mxu0 %vm438_vm2, %v3741_v29  ;;  %5957 = vmatprep.mubr.msk.f32.mxu1 %vm438_vm2, %v7496_v62  ;;  %v2037_v62 = vld [vmem:[%s6805_s16 + $0xdb] sm:$0xff] }
 0x138   : > { %6210 = vmatprep.mubr.msk.f32.mxu0 %vm438_vm2, %v3742_v30 }
 0x13a   : > { %5958 = vmatmul.mubr.msk.f32.gmra.mrb[28].mxu1 %vm438_vm2, %v7505_v3  ;;  %v2038_v3 = vld [vmem:[%s6805_s16 + $0xe3] sm:$0xff] }
 0x13b   : > { %6211 = vmatmul.mubr.msk.f32.gmra.mrb[10].mxu0 %vm438_vm2, %v3743_v31  ;;  %5960 = vmatprep.mubr.msk.f32.mxu1 %vm438_vm2, %v7510_v7  ;;  %v2039_v7 = vld [vmem:[%s6805_s16 + $0xeb] sm:$0xff] }
 0x13c   : > { %6213 = vmatprep.mubr.msk.f32.mxu0 %vm438_vm2, %v3744_v32  ;;  %v4163_v31 = vld [vmem:[#allocation2 + $0x8] sm:$0xff] }
 0x13e   : > { %5961 = vmatmul.mubr.msk.f32.gmra.mrb[30].mxu1 %vm438_vm2, %v7519_v51  ;;  %v2040_v51 = vld [vmem:[%s6805_s16 + $0xf3] sm:$0xff] }
 0x13f   : > { %6214 = vmatmul.mubr.msk.f32.gmra.mrb[12].mxu0 %vm438_vm2, %v3745_v33  ;;  %5963 = vmatprep.mubr.msk.f32.mxu1 %vm438_vm2, %v7524_v53  ;;  %v2041_v53 = vld [vmem:[%s6805_s16 + $0xfb] sm:$0xff] }
 0x140   : > { %6216 = vmatprep.mubr.msk.f32.mxu0 %vm438_vm2, %v3746_v34  ;;  %v4162_v34 = vld [vmem:[#allocation2] sm:$0xff] }
 0x142   : > { %5964 = vmatmul.mubr.msk.f32.gmra.mrb[32].mxu1 %vm438_vm2, %v7533_v57  ;;  %v2042_v57 = vld [vmem:[%s6805_s16 + $0x103] sm:$0xff] }
 0x143   : > { %6217 = vmatmul.mubr.msk.f32.gmra.mrb[14].mxu0 %vm438_vm2, %v3747_v35  ;;  %5966 = vmatprep.mubr.msk.f32.mxu1 %vm438_vm2, %v1616_v36 }
 0x144   : > { %6219 = vmatprep.mubr.msk.f32.mxu0 %vm438_vm2, %v3748_v37 }
 0x146   : > { %5967 = vmatmul.mubr.msk.f32.gmra.mrb[34].mxu1 %vm438_vm2, %v1617_v38 }
 0x147   : > { %6220 = vmatmul.mubr.msk.f32.gmra.mrb[16].mxu0 %vm438_vm2, %v3749_v39  ;;  %5998 = vmatprep.mubr.msk.f32.mxu1 %vm438_vm2, %v2030_v40  ;;  %v4165_v39 = vld [vmem:[#allocation2 + $0x18] sm:$0xff] }
 0x148   : > { %6222 = vmatprep.mubr.msk.f32.mxu0 %vm438_vm2, %v3750_v41 }
 0x14a   : > { %5999 = vmatmul.mubr.msk.f32.vlgmr.msra.gmra.mrb[18].mxu1 %vm438_vm2, %v2031_v42  ;;  %v4164_v42 = vld [vmem:[#allocation2 + $0x10] sm:$0xff] }
 0x14b   : > { %6223 = vmatmul.mubr.msk.f32.gmra.mrb[18].mxu0 %vm438_vm2, %v3751_v43  ;;  %6001 = vmatprep.mubr.msk.f32.mxu1 %vm438_vm2, %v2032_v44 }
 0x14c   : > { %6225 = vmatprep.mubr.msk.f32.mxu0 %vm438_vm2, %v3752_v45 }
 0x14e   : > { %6002 = vmatmul.mubr.msk.f32.gmra.mrb[20].mxu1 %vm438_vm2, %v2033_v46 }
 0x14f   : > { %6226 = vmatmul.mubr.msk.f32.gmra.mrb[20].mxu0 %vm438_vm2, %v3753_v47  ;;  %6004 = vmatprep.mubr.msk.f32.mxu1 %vm438_vm2, %v2034_v50  ;;  %v4167_v47 = vld [vmem:[#allocation2 + $0x28] sm:$0xff] }
 0x150   : > { %6228 = vmatprep.mubr.msk.f32.mxu0 %vm438_vm2, %v3754_v52 }
 0x152   : > { %6005 = vmatmul.mubr.msk.f32.gmra.mrb[22].mxu1 %vm438_vm2, %v2035_v54  ;;  %v4166_v54 = vld [vmem:[#allocation2 + $0x20] sm:$0xff] }
 0x153   : > { %6229 = vmatmul.mubr.msk.f32.gmra.mrb[22].mxu0 %vm438_vm2, %v3755_v56  ;;  %6007 = vmatprep.mubr.msk.f32.mxu1 %vm438_vm2, %v2036_v58 }
 0x154   : > { %6231 = vmatprep.mubr.msk.f32.mxu0 %vm438_vm2, %v3756_v60 }
 0x156   : > { %6008 = vmatmul.mubr.msk.f32.gmra.mrb[24].mxu1 %vm438_vm2, %v2037_v62 }
 0x157   : > { %6232 = vmatmul.mubr.msk.f32.gmra.mrb[24].mxu0 %vm438_vm2, %v3757_v0  ;;  %6010 = vmatprep.mubr.msk.f32.mxu1 %vm438_vm2, %v2038_v3  ;;  %v4169_v0 = vld [vmem:[#allocation2 + $0x38] sm:$0xff] }
 0x158   : > { %6234 = vmatprep.mubr.msk.f32.mxu0 %vm438_vm2, %v3758_v5 }
 0x15a   : > { %6011 = vmatmul.mubr.msk.f32.gmra.mrb[26].mxu1 %vm438_vm2, %v2039_v7  ;;  %v4168_v7 = vld [vmem:[#allocation2 + $0x30] sm:$0xff] }
 0x15b   : > { %6235 = vmatmul.mubr.msk.f32.gmra.mrb[26].mxu0 %vm438_vm2, %v3759_v48  ;;  %6013 = vmatprep.mubr.msk.f32.mxu1 %vm438_vm2, %v2040_v51 }
 0x15c   : > { %6237 = vmatprep.mubr.msk.f32.mxu0 %vm438_vm2, %v3760_v49 }
 0x15e   : > { %6014 = vmatmul.mubr.msk.f32.gmra.mrb[28].mxu1 %vm438_vm2, %v2041_v53 }
 0x15f   : > { %6238 = vmatmul.mubr.msk.f32.gmra.mrb[28].mxu0 %vm438_vm2, %v3761_v55  ;;  %6016 = vmatprep.mubr.msk.f32.mxu1 %vm438_vm2, %v2042_v57  ;;  %v4171_v55 = vld [vmem:[#allocation2 + $0x48] sm:$0xff] }
 0x160   : > { %6240 = vmatprep.mubr.msk.f32.mxu0 %vm438_vm2, %v3762_v59 }
 0x162   : > { %6017 = vmatmul.mubr.msk.f32.gmra.mrb[30].mxu1 %vm438_vm2, %v2043_v61  ;;  %v4170_v61 = vld [vmem:[#allocation2 + $0x40] sm:$0xff] }
 0x163   : > { %6241 = vmatmul.mubr.msk.f32.gmra.mrb[30].mxu0 %vm438_vm2, %v3763_v63  ;;  %6019 = vmatprep.mubr.msk.f32.mxu1 %vm438_vm2, %v2044_v1 }
 0x164   : > { %6243 = vmatprep.mubr.msk.f32.mxu0 %vm438_vm2, %v3764_v4 }
 0x166   : > { %6020 = vmatmul.mubr.msk.f32.gmra.mrb[32].mxu1 %vm438_vm2, %v2045_v6 }
 0x167   : > { %6244 = vmatmul.mubr.msk.f32.gmra.mrb[32].mxu0 %vm438_vm2, %v3765_v2  ;;  %6022 = vmatprep.mubr.msk.f32.mxu1 %vm438_vm2, %v2046_v8  ;;  %v4173_v2 = vld [vmem:[#allocation2 + $0x58] sm:$0xff] }
 0x168   : > { %6246 = vmatprep.mubr.msk.f32.mxu0 %vm438_vm2, %v3766_v9 }
 0x16a   : > { %6023 = vmatmul.mubr.msk.f32.gmra.mrb[34].mxu1 %vm438_vm2, %v2047_v10  ;;  %v4172_v10 = vld [vmem:[#allocation2 + $0x50] sm:$0xff] }
 0x16b   : > { %6247 = vmatmul.mubr.msk.f32.gmra.mrb[34].mxu0 %vm438_vm2, %v3767_v11 }
 0x1d5   : > { %v5917_v12 = vpop.f32.mrb[0].mxu1 }
 0x1d6   : > { %v1797_v13 = vpop.f32.mrb[1].mxu1 }
 0x1d9   : > { %v5920_v14 = vpop.f32.mrb[2].mxu1 }
 0x1da   : > { %v1807_v15 = vpop.f32.mrb[3].mxu1 }
 0x1dd   : > { %v5923_v16 = vpop.f32.mrb[4].mxu1 }
 0x1de   : > { %v1817_v17 = vpop.f32.mrb[5].mxu1 }
 0x1e1   : > { %v5926_v18 = vpop.f32.mrb[6].mxu1 }
 0x1e2   : > { %v1827_v19 = vpop.f32.mrb[7].mxu1 }
 0x1e5   : > { %v5929_v20 = vpop.f32.mrb[8].mxu1 }
 0x1e6   : > { %v1837_v21 = vpop.f32.mrb[9].mxu1 }
 0x1e9   : > { %v5932_v22 = vpop.f32.mrb[10].mxu1 }
 0x1ea   : > { %v1847_v23 = vpop.f32.mrb[11].mxu1 }
 0x1ed   : > { %v7758_v24 = vpop.f32.mrb[12].mxu1 }
 0x1ee   : > { %v7760_v25 = vpop.f32.mrb[13].mxu1 }
 0x1f1   : > { %v7762_v26 = vpop.f32.mrb[14].mxu1 }
 0x1f2   : > { %v7764_v27 = vpop.f32.mrb[15].mxu1 }
 0x1f5   : > { %v7766_v28 = vpop.f32.mrb[16].mxu1 }
 0x1f6   : > { %v7768_v29 = vpop.f32.mrb[17].mxu1 }
 0x1fa   : > { %v6197_v30 = vpop.f32.mrb[0].mxu0 }
 0x1fb   : > { %v6307_v32 = vadd.f32 %v6197_v30, %v5917_v12  ;;  %v3947_v33 = vpop.f32.mrb[1].mxu0  ;;  %v4177_v30 = vld [vmem:[#allocation2 + $0x78] sm:$0xff] }
 0x1fc   : > { %v6308_v35 = vadd.f32 %v3947_v33, %v1797_v13 }
 0x1fd   : > { %v4199_v36 = vadd.f32 %v6307_v32, %v4163_v31  ;;  %v4176_v32 = vld [vmem:[#allocation2 + $0x70] sm:$0xff] }
 0x1fe   : > { %v4198_v37 = vadd.f32 %v6308_v35, %v4162_v34  ;;  %v6200_v38 = vpop.f32.mrb[2].mxu0 }
 0x1ff   : > { %4235 = vst.msk [vmem:[#allocation2 + $0x8] sm:$0xff] %vm438_vm2, %v4199_v36  ;;  %v6309_v40 = vadd.f32 %v6200_v38, %v5920_v14  ;;  %v3957_v41 = vpop.f32.mrb[3].mxu0  ;;  %v4179_v36 = vld [vmem:[#allocation2 + $0x88] sm:$0xff]  ;;  %v4178_v38 = vld [vmem:[#allocation2 + $0x80] sm:$0xff] }
 0x200   : > { %4234 = vst.msk [vmem:[#allocation2] sm:$0xff] %vm438_vm2, %v4198_v37  ;;  %v6310_v43 = vadd.f32 %v3957_v41, %v1807_v15  ;;  %v4175_v15 = vld [vmem:[#allocation2 + $0x68] sm:$0xff] }
 0x201   : > { %v4201_v44 = vadd.f32 %v6309_v40, %v4165_v39 }
 0x202   : > { %v4200_v45 = vadd.f32 %v6310_v43, %v4164_v42  ;;  %v6203_v46 = vpop.f32.mrb[4].mxu0  ;;  %v4181_v43 = vld [vmem:[#allocation2 + $0x98] sm:$0xff] }
 0x203   : > { %4237 = vst.msk [vmem:[#allocation2 + $0x18] sm:$0xff] %vm438_vm2, %v4201_v44  ;;  %v6311_v50 = vadd.f32 %v6203_v46, %v5923_v16  ;;  %v3967_v52 = vpop.f32.mrb[5].mxu0  ;;  %v4180_v46 = vld [vmem:[#allocation2 + $0x90] sm:$0xff] }
 0x204   : > { %4236 = vst.msk [vmem:[#allocation2 + $0x10] sm:$0xff] %vm438_vm2, %v4200_v45  ;;  %v6312_v56 = vadd.f32 %v3967_v52, %v1817_v17 }
 0x205   : > { %v4203_v58 = vadd.f32 %v6311_v50, %v4167_v47 }
 0x206   : > { %v4202_v60 = vadd.f32 %v6312_v56, %v4166_v54  ;;  %v6206_v62 = vpop.f32.mrb[6].mxu0  ;;  %v4183_v56 = vld [vmem:[#allocation2 + $0xa8] sm:$0xff] }
 0x207   : > { %4239 = vst.msk [vmem:[#allocation2 + $0x28] sm:$0xff] %vm438_vm2, %v4203_v58  ;;  %v6313_v3 = vadd.f32 %v6206_v62, %v5926_v18  ;;  %v3977_v5 = vpop.f32.mrb[7].mxu0  ;;  %v4174_v18 = vld [vmem:[#allocation2 + $0x60] sm:$0xff] }
 0x208   : > { %4238 = vst.msk [vmem:[#allocation2 + $0x20] sm:$0xff] %vm438_vm2, %v4202_v60  ;;  %v6314_v48 = vadd.f32 %v3977_v5, %v1827_v19  ;;  %v4182_v62 = vld [vmem:[#allocation2 + $0xa0] sm:$0xff] }
 0x209   : > { %v4205_v51 = vadd.f32 %v6313_v3, %v4169_v0 }
 0x20a   : > { %v4204_v49 = vadd.f32 %v6314_v48, %v4168_v7  ;;  %v6209_v53 = vpop.f32.mrb[8].mxu0 }
 0x20b   : > { %4241 = vst.msk [vmem:[#allocation2 + $0x38] sm:$0xff] %vm438_vm2, %v4205_v51  ;;  %v6315_v57 = vadd.f32 %v6209_v53, %v5929_v20  ;;  %v3987_v59 = vpop.f32.mrb[9].mxu0  ;;  %v4185_v51 = vld [vmem:[#allocation2 + $0xb8] sm:$0xff] }
 0x20c   : > { %4240 = vst.msk [vmem:[#allocation2 + $0x30] sm:$0xff] %vm438_vm2, %v4204_v49  ;;  %v6316_v63 = vadd.f32 %v3987_v59, %v1837_v21 }
 0x20d   : > { %v4207_v1 = vadd.f32 %v6315_v57, %v4171_v55  ;;  %v4184_v57 = vld [vmem:[#allocation2 + $0xb0] sm:$0xff] }
 0x20e   : > { %v4206_v4 = vadd.f32 %v6316_v63, %v4170_v61  ;;  %v6212_v6 = vpop.f32.mrb[10].mxu0 }
 0x20f   : > { %4243 = vst.msk [vmem:[#allocation2 + $0x48] sm:$0xff] %vm438_vm2, %v4207_v1  ;;  %v6317_v8 = vadd.f32 %v6212_v6, %v5932_v22  ;;  %v3997_v9 = vpop.f32.mrb[11].mxu0  ;;  %v4187_v6 = vld [vmem:[#allocation2 + $0xc8] sm:$0xff] }
 0x210   : > { %4242 = vst.msk [vmem:[#allocation2 + $0x40] sm:$0xff] %vm438_vm2, %v4206_v4  ;;  %v6318_v11 = vadd.f32 %v3997_v9, %v1847_v23 }
 0x211   : > { %v4209_v12 = vadd.f32 %v6317_v8, %v4173_v2 }
 0x212   : > { %v4208_v13 = vadd.f32 %v6318_v11, %v4172_v10  ;;  %v6215_v14 = vpop.f32.mrb[12].mxu0  ;;  %v4186_v10 = vld [vmem:[#allocation2 + $0xc0] sm:$0xff] }
 0x213   : > { %4245 = vst.msk [vmem:[#allocation2 + $0x58] sm:$0xff] %vm438_vm2, %v4209_v12  ;;  %v6319_v16 = vadd.f32 %v6215_v14, %v7758_v24  ;;  %v4007_v17 = vpop.f32.mrb[13].mxu0 }
 0x214   : > { %4244 = vst.msk [vmem:[#allocation2 + $0x50] sm:$0xff] %vm438_vm2, %v4208_v13  ;;  %v6320_v19 = vadd.f32 %v4007_v17, %v7760_v25 }
 0x215   : > { %v4211_v20 = vadd.f32 %v6319_v16, %v4175_v15  ;;  %v4189_v16 = vld [vmem:[#allocation2 + $0xd8] sm:$0xff] }
 0x216   : > { %v4210_v21 = vadd.f32 %v6320_v19, %v4174_v18  ;;  %v6218_v22 = vpop.f32.mrb[14].mxu0 }
 0x217   : > { %4247 = vst.msk [vmem:[#allocation2 + $0x68] sm:$0xff] %vm438_vm2, %v4211_v20  ;;  %v6321_v23 = vadd.f32 %v6218_v22, %v7762_v26  ;;  %v4017_v31 = vpop.f32.mrb[15].mxu0  ;;  %v4188_v20 = vld [vmem:[#allocation2 + $0xd0] sm:$0xff] }
 0x218   : > { %4246 = vst.msk [vmem:[#allocation2 + $0x60] sm:$0xff] %vm438_vm2, %v4210_v21  ;;  %v6322_v24 = vadd.f32 %v4017_v31, %v7764_v27 }
 0x219   : > { %v4213_v33 = vadd.f32 %v6321_v23, %v4177_v30 }
 0x21a   : > { %v4212_v34 = vadd.f32 %v6322_v24, %v4176_v32  ;;  %v6221_v35 = vpop.f32.mrb[16].mxu0  ;;  %v4191_v32 = vld [vmem:[#allocation2 + $0xe8] sm:$0xff] }
 0x21b   : > { %4249 = vst.msk [vmem:[#allocation2 + $0x78] sm:$0xff] %vm438_vm2, %v4213_v33  ;;  %v6323_v25 = vadd.f32 %v6221_v35, %v7766_v28  ;;  %v4027_v37 = vpop.f32.mrb[17].mxu0  ;;  %v4190_v35 = vld [vmem:[#allocation2 + $0xe0] sm:$0xff] }
 0x21c   : > { %4248 = vst.msk [vmem:[#allocation2 + $0x70] sm:$0xff] %vm438_vm2, %v4212_v34  ;;  %v6324_v26 = vadd.f32 %v4027_v37, %v7768_v29 }
 0x21d   : > { %v4215_v39 = vadd.f32 %v6323_v25, %v4179_v36  ;;  %v6000_v40 = vpop.f32.mrb[18].mxu1 }
 0x21e   : > { %v4214_v41 = vadd.f32 %v6324_v26, %v4178_v38  ;;  %v6224_v42 = vpop.f32.mrb[18].mxu0  ;;  %v2317_v27 = vpop.f32.mrb[19].mxu1 }
 0x21f   : > { %4251 = vst.msk [vmem:[#allocation2 + $0x88] sm:$0xff] %vm438_vm2, %v4215_v39  ;;  %v6325_v44 = vadd.f32 %v6224_v42, %v6000_v40  ;;  %v4037_v45 = vpop.f32.mrb[19].mxu0  ;;  %v4193_v39 = vld [vmem:[#allocation2 + $0xf8] sm:$0xff] }
 0x220   : > { %4250 = vst.msk [vmem:[#allocation2 + $0x80] sm:$0xff] %vm438_vm2, %v4214_v41  ;;  %v6326_v28 = vadd.f32 %v4037_v45, %v2317_v27 }
 0x221   : > { %v4217_v47 = vadd.f32 %v6325_v44, %v4181_v43  ;;  %v6003_v50 = vpop.f32.mrb[20].mxu1  ;;  %v4192_v43 = vld [vmem:[#allocation2 + $0xf0] sm:$0xff] }
 0x222   : > { %v4216_v52 = vadd.f32 %v6326_v28, %v4180_v46  ;;  %v6227_v54 = vpop.f32.mrb[20].mxu0  ;;  %v2327_v29 = vpop.f32.mrb[21].mxu1 }
 0x223   : > { %4253 = vst.msk [vmem:[#allocation2 + $0x98] sm:$0xff] %vm438_vm2, %v4217_v47  ;;  %v6327_v58 = vadd.f32 %v6227_v54, %v6003_v50  ;;  %v4047_v60 = vpop.f32.mrb[21].mxu0  ;;  %v4195_v47 = vld [vmem:[#allocation2 + $0x108] sm:$0xff] }
 0x224   : > { %4252 = vst.msk [vmem:[#allocation2 + $0x90] sm:$0xff] %vm438_vm2, %v4216_v52  ;;  %v6328_v0 = vadd.f32 %v4047_v60, %v2327_v29 }
 0x225   : > { %v4219_v3 = vadd.f32 %v6327_v58, %v4183_v56  ;;  %v6006_v5 = vpop.f32.mrb[22].mxu1  ;;  %v4194_v56 = vld [vmem:[#allocation2 + $0x100] sm:$0xff] }
 0x226   : > { %v4218_v7 = vadd.f32 %v6328_v0, %v4182_v62  ;;  %v6230_v48 = vpop.f32.mrb[22].mxu0  ;;  %v2337_v49 = vpop.f32.mrb[23].mxu1 }
 0x227   : > { %4255 = vst.msk [vmem:[#allocation2 + $0xa8] sm:$0xff] %vm438_vm2, %v4219_v3  ;;  %v6329_v53 = vadd.f32 %v6230_v48, %v6006_v5  ;;  %v4057_v55 = vpop.f32.mrb[23].mxu0  ;;  %v4197_v3 = vld [vmem:[#allocation2 + $0x118] sm:$0xff] }
 0x228   : > { %4254 = vst.msk [vmem:[#allocation2 + $0xa0] sm:$0xff] %vm438_vm2, %v4218_v7  ;;  %v6330_v59 = vadd.f32 %v4057_v55, %v2337_v49 }
 0x229   : > { %v4221_v61 = vadd.f32 %v6329_v53, %v4185_v51  ;;  %v6009_v63 = vpop.f32.mrb[24].mxu1  ;;  %v4196_v51 = vld [vmem:[#allocation2 + $0x110] sm:$0xff] }
 0x22a   : > { %v4220_v1 = vadd.f32 %v6330_v59, %v4184_v57  ;;  %v6233_v4 = vpop.f32.mrb[24].mxu0  ;;  %v2347_v2 = vpop.f32.mrb[25].mxu1  ;;  %v4432_v57 = vld [vmem:[%s8076_s4] sm:$0xf] (!%p5332_p11) }
 0x22b   : > { %4257 = vst.msk [vmem:[#allocation2 + $0xb8] sm:$0xff] %vm438_vm2, %v4221_v61  ;;  %v6331_v8 = vadd.f32 %v6233_v4, %v6009_v63  ;;  %v4067_v9 = vpop.f32.mrb[25].mxu0  ;;  %v4274_v59 = vld [vmem:[#allocation2] sm:$0xff] (!%p5332_p11)  ;;  %6249 = vmatprep.subr.msk.mxu0 (!%p5332_p11), %vm547_vm1, %v4432_v57  ;;  %6595 = vmatprep.subr.msk.mxu1 (!%p5332_p11), %vm547_vm1, %v4432_v57  ;;  %v4292_v4 = vld [vmem:[#allocation2 + $0x90] sm:$0xff] (!%p5332_p11) }
 0x22c   : > { %4256 = vst.msk [vmem:[#allocation2 + $0xb0] sm:$0xff] %vm438_vm2, %v4220_v1  ;;  %v6332_v11 = vadd.f32 %v4067_v9, %v2347_v2  ;;  %v7819_v61 = vld [vmem:[%s8074_s2] ss:$0 sm:$0xff] (!%p5332_p11)  ;;  %6250 = vmatpush3.msk.msra.mxu0 (!%p5332_p11), %vm547_vm1, %v4432_v57  ;;  %6596 = vmatpush3.msk.msra.mxu1 (!%p5332_p11), %vm547_vm1, %v4432_v57  ;;  %v4293_v9 = vld [vmem:[#allocation2 + $0x98] sm:$0xff] (!%p5332_p11) }
 0x22d   : > { %v4223_v12 = vadd.f32 %v6331_v8, %v4187_v6  ;;  %v6012_v13 = vpop.f32.mrb[26].mxu1  ;;  %v4317_v63 = vmul.f32 (!%p5332_p11), %v7819_v61, %v4274_v59  ;;  %v7827_v1 = vld [vmem:[%s8075_s3] ss:$0 sm:$0xff] (!%p5332_p11)  ;;  %v4275_v6 = vld [vmem:[#allocation2 + $0x8] sm:$0xff] (!%p5332_p11)  ;;  %v4335_v2 = vmul.f32 (!%p5332_p11), %v7819_v61, %v4292_v4  ;;  %v4284_v59 = vld [vmem:[#allocation2 + $0x50] sm:$0xff] (!%p5332_p11) }
 0x22e   : > { %v4222_v14 = vadd.f32 %v6332_v11, %v4186_v10  ;;  %v6236_v15 = vpop.f32.mrb[26].mxu0  ;;  %v2357_v17 = vpop.f32.mrb[27].mxu1  ;;  %v4318_v8 = vmul.f32 (!%p5332_p11), %v7819_v61, %v4275_v6  ;;  %v4276_v10 = vld [vmem:[#allocation2 + $0x10] sm:$0xff] (!%p5332_p11) }
 0x22f   : > { %4259 = vst.msk [vmem:[#allocation2 + $0xc8] sm:$0xff] %vm438_vm2, %v4223_v12  ;;  %v6333_v18 = vadd.f32 %v6236_v15, %v6012_v13  ;;  %v4077_v19 = vpop.f32.mrb[27].mxu0  ;;  %v4294_v11 = vld [vmem:[#allocation2 + $0xa0] sm:$0xff] (!%p5332_p11)  ;;  %v4360_v12 = vadd.f32 (!%p5332_p11), %v7827_v1, %v4317_v63  ;;  %v4336_v13 = vmul.f32 (!%p5332_p11), %v7819_v61, %v4293_v9  ;;  %v4285_v9 = vld [vmem:[#allocation2 + $0x58] sm:$0xff] (!%p5332_p11) }
 0x230   : > { %4258 = vst.msk [vmem:[#allocation2 + $0xc0] sm:$0xff] %vm438_vm2, %v4222_v14  ;;  %v6334_v21 = vadd.f32 %v4077_v19, %v2357_v17  ;;  %v4319_v14 = vmul.f32 (!%p5332_p11), %v7819_v61, %v4276_v10  ;;  %v4337_v15 = vmul.f32 (!%p5332_p11), %v7819_v61, %v4294_v11  ;;  %v4295_v17 = vld [vmem:[#allocation2 + $0xa8] sm:$0xff] (!%p5332_p11)  ;;  %v4361_v19 = vadd.f32 (!%p5332_p11), %v7827_v1, %v4318_v8 }
 0x231   : > { %v4225_v22 = vadd.f32 %v6333_v18, %v4189_v16  ;;  %v6015_v30 = vpop.f32.mrb[28].mxu1  ;;  %v4277_v16 = vld [vmem:[#allocation2 + $0x18] sm:$0xff] (!%p5332_p11)  ;;  %v4378_v18 = vadd.f32 (!%p5332_p11), %v7827_v1, %v4335_v2 }
 0x232   : > { %v4224_v23 = vadd.f32 %v6334_v21, %v4188_v20  ;;  %v6239_v31 = vpop.f32.mrb[28].mxu0  ;;  %v2367_v24 = vpop.f32.mrb[29].mxu1  ;;  %v4320_v20 = vmul.f32 (!%p5332_p11), %v7819_v61, %v4277_v16  ;;  %v4338_v21 = vmul.f32 (!%p5332_p11), %v7819_v61, %v4295_v17 }
 0x233   : > { %4261 = vst.msk [vmem:[#allocation2 + $0xd8] sm:$0xff] %vm438_vm2, %v4225_v22  ;;  %v6335_v33 = vadd.f32 %v6239_v31, %v6015_v30  ;;  %v4087_v34 = vpop.f32.mrb[29].mxu0  ;;  %v4278_v22 = vld [vmem:[#allocation2 + $0x20] sm:$0xff] (!%p5332_p11)  ;;  %v4396_v30 = vmax.f32 (!%p5332_p11), %v4360_v12, 0.0  ;;  %v4362_v31 = vadd.f32 (!%p5332_p11), %v7827_v1, %v4319_v14 }
 0x234   : > { %4260 = vst.msk [vmem:[#allocation2 + $0xd0] sm:$0xff] %vm438_vm2, %v4224_v23  ;;  %v6336_v36 = vadd.f32 %v4087_v34, %v2367_v24  ;;  %v4379_v23 = vadd.f32 (!%p5332_p11), %v7827_v1, %v4336_v13  ;;  %v4296_v24 = vld [vmem:[#allocation2 + $0xb0] sm:$0xff] (!%p5332_p11)  ;;  %v4414_v34 = vmax.f32 (!%p5332_p11), %v4378_v18, 0.0  ;;  %v4327_v18 = vmul.f32 (!%p5332_p11), %v7819_v61, %v4284_v59 }
 0x235   : > { %v4227_v25 = vadd.f32 %v6335_v33, %v4191_v32  ;;  %v6018_v37 = vpop.f32.mrb[30].mxu1  ;;  %v4380_v32 = vadd.f32 (!%p5332_p11), %v7827_v1, %v4337_v15  ;;  %v4279_v33 = vld [vmem:[#allocation2 + $0x28] sm:$0xff] (!%p5332_p11)  ;;  %6251 = vmatprep.mubr.msk.f32.mxu0 (!%p5332_p11), %vm438_vm2, %v4396_v30  ;;  %v4286_v30 = vld [vmem:[#allocation2 + $0x60] sm:$0xff] (!%p5332_p11) }
 0x236   : > { %v4226_v38 = vadd.f32 %v6336_v36, %v4190_v35  ;;  %v6242_v26 = vpop.f32.mrb[30].mxu0  ;;  %v2377_v40 = vpop.f32.mrb[31].mxu1  ;;  %v4397_v35 = vmax.f32 (!%p5332_p11), %v4361_v19, 0.0  ;;  %v4363_v36 = vadd.f32 (!%p5332_p11), %v7827_v1, %v4320_v20  ;;  %6278 = vmatprep.mubr.msk.f32.mxu1 (!%p5332_p11), %vm438_vm2, %v4414_v34  ;;  %v4287_v34 = vld [vmem:[#allocation2 + $0x68] sm:$0xff] (!%p5332_p11) }
 0x237   : > { %4263 = vst.msk [vmem:[#allocation2 + $0xe8] sm:$0xff] %vm438_vm2, %v4227_v25  ;;  %v6337_v41 = vadd.f32 %v6242_v26, %v6018_v37  ;;  %v4097_v42 = vpop.f32.mrb[31].mxu0  ;;  %v4381_v25 = vadd.f32 (!%p5332_p11), %v7827_v1, %v4338_v21  ;;  %v4297_v37 = vld [vmem:[#allocation2 + $0xb8] sm:$0xff] (!%p5332_p11)  ;;  %v4415_v26 = vmax.f32 (!%p5332_p11), %v4379_v23, 0.0 }
 0x238   : > { %4262 = vst.msk [vmem:[#allocation2 + $0xe0] sm:$0xff] %vm438_vm2, %v4226_v38  ;;  %v6338_v27 = vadd.f32 %v4097_v42, %v2377_v40  ;;  %v4280_v38 = vld [vmem:[#allocation2 + $0x30] sm:$0xff] (!%p5332_p11)  ;;  %v4416_v40 = vmax.f32 (!%p5332_p11), %v4380_v32, 0.0  ;;  %v4298_v42 = vld [vmem:[#allocation2 + $0xc0] sm:$0xff] (!%p5332_p11)  ;;  %6252 = vmatmul.mubr.msk.f32.vlgmr.msra.gmra.mrb[0].mxu0 (!%p5332_p11), %vm438_vm2, %v4397_v35  ;;  %v4370_v32 = vadd.f32 (!%p5332_p11), %v7827_v1, %v4327_v18 }
 0x239   : > { %v4229_v44 = vadd.f32 %v6337_v41, %v4193_v39  ;;  %v6021_v45 = vpop.f32.mrb[32].mxu1  ;;  %v4398_v39 = vmax.f32 (!%p5332_p11), %v4362_v31, 0.0  ;;  %v4321_v41 = vmul.f32 (!%p5332_p11), %v7819_v61, %v4278_v22  ;;  %6279 = vmatmul.mubr.msk.f32.vlgmr.msra.gmra.mrb[0].mxu1 (!%p5332_p11), %vm438_vm2, %v4415_v26  ;;  %v4328_v22 = vmul.f32 (!%p5332_p11), %v7819_v61, %v4285_v9 }
 0x23a   : > { %v4228_v46 = vadd.f32 %v6338_v27, %v4192_v43  ;;  %v6245_v28 = vpop.f32.mrb[32].mxu0  ;;  %v2387_v50 = vpop.f32.mrb[33].mxu1  ;;  %v4281_v43 = vld [vmem:[#allocation2 + $0x38] sm:$0xff] (!%p5332_p11)  ;;  %v4399_v27 = vmax.f32 (!%p5332_p11), %v4363_v36, 0.0  ;;  %6281 = vmatprep.mubr.msk.f32.mxu1 (!%p5332_p11), %vm438_vm2, %v4416_v40 }
 0x23b   : > { %4265 = vst.msk [vmem:[#allocation2 + $0xf8] sm:$0xff] %vm438_vm2, %v4229_v44  ;;  %v6339_v52 = vadd.f32 %v6245_v28, %v6021_v45  ;;  %v4107_v54 = vpop.f32.mrb[33].mxu0  ;;  %v4339_v44 = vmul.f32 (!%p5332_p11), %v7819_v61, %v4296_v24  ;;  %v4322_v45 = vmul.f32 (!%p5332_p11), %v7819_v61, %v4279_v33  ;;  %6254 = vmatprep.mubr.msk.f32.mxu0 (!%p5332_p11), %vm438_vm2, %v4398_v39  ;;  %v4417_v28 = vmax.f32 (!%p5332_p11), %v4381_v25, 0.0  ;;  %v4301_v57 = vld [vmem:[#allocation2 + $0xd8] sm:$0xff] (!%p5332_p11) }
 0x23c   : > { %4264 = vst.msk [vmem:[#allocation2 + $0xf0] sm:$0xff] %vm438_vm2, %v4228_v46  ;;  %v6340_v29 = vadd.f32 %v4107_v54, %v2387_v50  ;;  %v4299_v46 = vld [vmem:[#allocation2 + $0xc8] sm:$0xff] (!%p5332_p11)  ;;  %v4340_v50 = vmul.f32 (!%p5332_p11), %v7819_v61, %v4297_v37  ;;  %6255 = vmatmul.mubr.msk.f32.gmra.mrb[2].mxu0 (!%p5332_p11), %vm438_vm2, %v4399_v27  ;;  %v4344_v17 = vmul.f32 (!%p5332_p11), %v7819_v61, %v4301_v57  ;;  %v4288_v37 = vld [vmem:[#allocation2 + $0x70] sm:$0xff] (!%p5332_p11) }
 0x23d   : > { %v4231_v58 = vadd.f32 %v6339_v52, %v4195_v47  ;;  %v6024_v60 = vpop.f32.mrb[34].mxu1  ;;  %v4364_v47 = vadd.f32 (!%p5332_p11), %v7827_v1, %v4321_v41  ;;  %v4323_v52 = vmul.f32 (!%p5332_p11), %v7819_v61, %v4280_v38  ;;  %v4382_v54 = vadd.f32 (!%p5332_p11), %v7827_v1, %v4339_v44  ;;  %6282 = vmatmul.mubr.msk.f32.gmra.mrb[2].mxu1 (!%p5332_p11), %vm438_vm2, %v4417_v28 }
 0x23e   : > { %v4230_v62 = vadd.f32 %v6340_v29, %v4194_v56  ;;  %v6248_v0 = vpop.f32.mrb[34].mxu0  ;;  %v2397_v5 = vpop.f32.mrb[35].mxu1  ;;  %4273 = sbr.rel (%p5332_p11) target bundleno = 823 (0x337), region = 52  ;;  %v4365_v56 = vadd.f32 (!%p5332_p11), %v7827_v1, %v4322_v45  ;;  %v4341_v29 = vmul.f32 (!%p5332_p11), %v7819_v61, %v4298_v42  ;;  %v4303_v14 = vld [vmem:[#allocation2 + $0xe8] sm:$0xff] (!%p5332_p11)  ;;  %v4387_v31 = vadd.f32 (!%p5332_p11), %v7827_v1, %v4344_v17 }
 0x23f   : > { %4267 = vst.msk [vmem:[#allocation2 + $0x108] sm:$0xff] %vm438_vm2, %v4231_v58  ;;  %v6341_v7 = vadd.f32 %v6248_v0, %v6024_v60  ;;  %v4117_v48 = vpop.f32.mrb[35].mxu0  ;;  %v4324_v58 = vmul.f32 (!%p5332_p11), %v7819_v61, %v4281_v43  ;;  %v4282_v60 = vld [vmem:[#allocation2 + $0x40] sm:$0xff] (!%p5332_p11)  ;;  %v4383_v0 = vadd.f32 (!%p5332_p11), %v7827_v1, %v4340_v50  ;;  %v4346_v24 = vmul.f32 (!%p5332_p11), %v7819_v61, %v4303_v14 }
 0x240   : > { %4266 = vst.msk [vmem:[#allocation2 + $0x100] sm:$0xff] %vm438_vm2, %v4230_v62  ;;  %v6342_v49 = vadd.f32 %v4117_v48, %v2397_v5  ;;  %v4400_v62 = vmax.f32 (!%p5332_p11), %v4364_v47, 0.0  ;;  %v4342_v5 = vmul.f32 (!%p5332_p11), %v7819_v61, %v4299_v46  ;;  %v4283_v48 = vld [vmem:[#allocation2 + $0x48] sm:$0xff] (!%p5332_p11)  ;;  %v4325_v2 = vmul.f32 (!%p5332_p11), %v7819_v61, %v4282_v60  ;;  %v4302_v8 = vld [vmem:[#allocation2 + $0xe0] sm:$0xff] (!%p5332_p11)  ;;  %v4289_v47 = vld [vmem:[#allocation2 + $0x78] sm:$0xff] (!%p5332_p11) }
 0x241   : > { %v4233_v53 = vadd.f32 %v6341_v7, %v4197_v3  ;;  %v4366_v3 = vadd.f32 (!%p5332_p11), %v7827_v1, %v4323_v52  ;;  %v4300_v7 = vld [vmem:[#allocation2 + $0xd0] sm:$0xff] (!%p5332_p11)  ;;  %v4419_v63 = vmax.f32 (!%p5332_p11), %v4383_v0, 0.0  ;;  %v4326_v13 = vmul.f32 (!%p5332_p11), %v7819_v61, %v4283_v48 }
 0x242   : > { %v4232_v55 = vadd.f32 %v6342_v49, %v4196_v51  ;;  %v4418_v51 = vmax.f32 (!%p5332_p11), %v4382_v54, 0.0  ;;  %v4401_v49 = vmax.f32 (!%p5332_p11), %v4365_v56, 0.0  ;;  %6257 = vmatprep.mubr.msk.f32.mxu0 (!%p5332_p11), %vm438_vm2, %v4400_v62  ;;  %v4385_v6 = vadd.f32 (!%p5332_p11), %v7827_v1, %v4342_v5  ;;  %v4305_v25 = vld [vmem:[#allocation2 + $0xf8] sm:$0xff] (!%p5332_p11) }
 0x243   : > { %4269 = vst.msk [vmem:[#allocation2 + $0x118] sm:$0xff] %vm438_vm2, %v4233_v53  ;;  %v4384_v53 = vadd.f32 (!%p5332_p11), %v7827_v1, %v4341_v29  ;;  %v4402_v4 = vmax.f32 (!%p5332_p11), %v4366_v3, 0.0  ;;  %v4343_v12 = vmul.f32 (!%p5332_p11), %v7819_v61, %v4300_v7  ;;  %v4368_v16 = vadd.f32 (!%p5332_p11), %v7827_v1, %v4325_v2  ;;  %v4304_v33 = vld [vmem:[#allocation2 + $0xf0] sm:$0xff] (!%p5332_p11)  ;;  %v4290_v29 = vld [vmem:[#allocation2 + $0x80] sm:$0xff] (!%p5332_p11) }
 0x244   : > { %4268 = vst.msk [vmem:[#allocation2 + $0x110] sm:$0xff] %vm438_vm2, %v4232_v55  ;;  %v4367_v55 = vadd.f32 (!%p5332_p11), %v7827_v1, %v4324_v58  ;;  %6284 = vmatprep.mubr.msk.f32.mxu1 (!%p5332_p11), %vm438_vm2, %v4418_v51  ;;  %v4421_v15 = vmax.f32 (!%p5332_p11), %v4385_v6, 0.0  ;;  %6258 = vmatmul.mubr.msk.f32.gmra.mrb[4].mxu0 (!%p5332_p11), %vm438_vm2, %v4401_v49  ;;  %v4369_v20 = vadd.f32 (!%p5332_p11), %v7827_v1, %v4326_v13  ;;  %v4423_v41 = vmax.f32 (!%p5332_p11), %v4387_v31, 0.0 }
 0x245   : > { %v4420_v10 = vmax.f32 %v4384_v53, 0.0  ;;  %v4386_v19 = vadd.f32 %v7827_v1, %v4343_v12  ;;  %v4345_v21 = vmul.f32 %v7819_v61, %v4302_v8  ;;  %6285 = vmatmul.mubr.msk.f32.gmra.mrb[4].mxu1 %vm438_vm2, %v4419_v63  ;;  %6260 = vmatprep.mubr.msk.f32.mxu0 %vm438_vm2, %v4402_v4  ;;  %v4404_v23 = vmax.f32 %v4368_v16, 0.0  ;;  %v4291_v53 = vld [vmem:[#allocation2 + $0x88] sm:$0xff] }
 0x246   : > { %v4403_v11 = vmax.f32 %v4367_v55, 0.0  ;;  %v4405_v38 = vmax.f32 %v4369_v20, 0.0  ;;  %v4371_v26 = vadd.f32 %v7827_v1, %v4328_v22  ;;  %v4329_v39 = vmul.f32 %v7819_v61, %v4286_v30  ;;  %v4307_v56 = vld [vmem:[#allocation2 + $0x108] sm:$0xff] }
 0x247   : > { %6287 = vmatprep.mubr.msk.f32.mxu1 %vm438_vm2, %v4420_v10  ;;  %v4422_v35 = vmax.f32 %v4386_v19, 0.0  ;;  %v4388_v36 = vadd.f32 %v7827_v1, %v4345_v21  ;;  %v4306_v40 = vld [vmem:[#allocation2 + $0x100] sm:$0xff]  ;;  %v4389_v42 = vadd.f32 %v7827_v1, %v4346_v24  ;;  %v4347_v43 = vmul.f32 %v7819_v61, %v4304_v33 }
 0x248   : > { %6261 = vmatmul.mubr.msk.f32.gmra.mrb[6].mxu0 %vm438_vm2, %v4403_v11  ;;  %v4330_v27 = vmul.f32 %v7819_v61, %v4287_v34  ;;  %v4406_v44 = vmax.f32 %v4370_v32, 0.0  ;;  %v4372_v45 = vadd.f32 %v7827_v1, %v4329_v39  ;;  %v4348_v46 = vmul.f32 %v7819_v61, %v4305_v25 }
 0x249   : > { %6288 = vmatmul.mubr.msk.f32.gmra.mrb[6].mxu1 %vm438_vm2, %v4421_v15  ;;  %6263 = vmatprep.mubr.msk.f32.mxu0 %vm438_vm2, %v4404_v23  ;;  %v4331_v28 = vmul.f32 %v7819_v61, %v4288_v37  ;;  %v4424_v50 = vmax.f32 %v4388_v36, 0.0  ;;  %v4390_v52 = vadd.f32 %v7827_v1, %v4347_v43  ;;  %v4349_v54 = vmul.f32 %v7819_v61, %v4306_v40 }
 0x24a   : > { %6290 = vmatprep.mubr.msk.f32.mxu1 %vm438_vm2, %v4422_v35  ;;  %v4407_v58 = vmax.f32 %v4371_v26, 0.0  ;;  %v4425_v62 = vmax.f32 %v4389_v42, 0.0  ;;  %v4373_v0 = vadd.f32 %v7827_v1, %v4330_v27  ;;  %v4391_v3 = vadd.f32 %v7827_v1, %v4348_v46  ;;  %v4309_v63 = vld [vmem:[#allocation2 + $0x118] sm:$0xff] }
 0x24b   : > { %v4308_v60 = vld [vmem:[#allocation2 + $0x110] sm:$0xff]  ;;  %v4332_v5 = vmul.f32 %v7819_v61, %v4289_v47  ;;  %v4408_v7 = vmax.f32 %v4372_v45, 0.0  ;;  %v4374_v48 = vadd.f32 %v7827_v1, %v4331_v28  ;;  %v4350_v51 = vmul.f32 %v7819_v61, %v4307_v56 }
 0x24c   : > { %6264 = vmatmul.mubr.msk.f32.gmra.mrb[8].mxu0 %vm438_vm2, %v4405_v38  ;;  %v4333_v49 = vmul.f32 %v7819_v61, %v4290_v29  ;;  %v4426_v55 = vmax.f32 %v4390_v52, 0.0  ;;  %v4392_v57 = vadd.f32 %v7827_v1, %v4349_v54  ;;  %v4351_v59 = vmul.f32 %v7819_v61, %v4308_v60 }
 0x24d   : > { %6291 = vmatmul.mubr.msk.f32.gmra.mrb[8].mxu1 %vm438_vm2, %v4423_v41  ;;  %6266 = vmatprep.mubr.msk.f32.mxu0 %vm438_vm2, %v4406_v44  ;;  %v4409_v4 = vmax.f32 %v4373_v0, 0.0  ;;  %v4427_v6 = vmax.f32 %v4391_v3, 0.0  ;;  %v4375_v2 = vadd.f32 %v7827_v1, %v4332_v5  ;;  %v4334_v8 = vmul.f32 %v7819_v61, %v4291_v53 }
 0x24e   : > { %6293 = vmatprep.mubr.msk.f32.mxu1 %vm438_vm2, %v4424_v50  ;;  %v4410_v9 = vmax.f32 %v4374_v48, 0.0  ;;  %v4393_v10 = vadd.f32 %v7827_v1, %v4350_v51  ;;  %v4376_v11 = vadd.f32 %v7827_v1, %v4333_v49  ;;  %v4352_v12 = vmul.f32 %v7819_v61, %v4309_v63 }
 0x24f   : > { %v4428_v13 = vmax.f32 %v4392_v57, 0.0  ;;  %v4394_v14 = vadd.f32 %v7827_v1, %v4351_v59  ;;  %v4411_v15 = vmax.f32 %v4375_v2, 0.0  ;;  %v4377_v16 = vadd.f32 %v7827_v1, %v4334_v8 }
 0x250   : > { %6267 = vmatmul.mubr.msk.f32.gmra.mrb[10].mxu0 %vm438_vm2, %v4407_v58  ;;  %v4429_v17 = vmax.f32 %v4393_v10, 0.0  ;;  %v4412_v18 = vmax.f32 %v4376_v11, 0.0  ;;  %v4395_v19 = vadd.f32 %v7827_v1, %v4352_v12  ;;  %v7941_v1 = vld [vmem:[%s8077_s5] ss:$0 sm:$0xff] }
 0x251   : > { %6294 = vmatmul.mubr.msk.f32.gmra.mrb[10].mxu1 %vm438_vm2, %v4425_v62  ;;  %6269 = vmatprep.mubr.msk.f32.mxu0 %vm438_vm2, %v4408_v7  ;;  %v4430_v61 = vmax.f32 %v4394_v14, 0.0  ;;  %v4413_v20 = vmax.f32 %v4377_v16, 0.0 }
 0x252   : > { %6296 = vmatprep.mubr.msk.f32.mxu1 %vm438_vm2, %v4426_v55  ;;  %v4431_v21 = vmax.f32 %v4395_v19, 0.0 }
 0x254   : > { %6270 = vmatmul.mubr.msk.f32.gmra.mrb[12].mxu0 %vm438_vm2, %v4409_v4 }
 0x255   : > { %6297 = vmatmul.mubr.msk.f32.gmra.mrb[12].mxu1 %vm438_vm2, %v4427_v6  ;;  %6272 = vmatprep.mubr.msk.f32.mxu0 %vm438_vm2, %v4410_v9 }
 0x256   : > { %6299 = vmatprep.mubr.msk.f32.mxu1 %vm438_vm2, %v4428_v13 }
 0x258   : > { %6273 = vmatmul.mubr.msk.f32.gmra.mrb[14].mxu0 %vm438_vm2, %v4411_v15 }
 0x259   : > { %6300 = vmatmul.mubr.msk.f32.gmra.mrb[14].mxu1 %vm438_vm2, %v4429_v17  ;;  %6275 = vmatprep.mubr.msk.f32.mxu0 %vm438_vm2, %v4412_v18 }
 0x25a   : > { %6302 = vmatprep.mubr.msk.f32.mxu1 %vm438_vm2, %v4430_v61 }
 0x25c   : > { %6276 = vmatmul.mubr.msk.f32.gmra.mrb[16].mxu0 %vm438_vm2, %v4413_v20 }
 0x25d   : > { %6303 = vmatmul.mubr.msk.f32.gmra.mrb[16].mxu1 %vm438_vm2, %v4431_v21 }
 0x30b   : > { %v6253_v22 = vpop.f32.mrb[0].mxu0 }
 0x30c   : > { %v4623_v30 = vadd.f32 %v6253_v22, %v7941_v1  ;;  %v6280_v23 = vpop.f32.mrb[0].mxu1  ;;  %v4617_v31 = vpop.f32.mrb[1].mxu0 }
 0x30d   : > { %v4713_v32 = vadd.f32 %v6280_v23, %v7941_v1  ;;  %v4618_v24 = vadd.f32 %v7941_v1, %v4617_v31  ;;  %v4707_v33 = vpop.f32.mrb[1].mxu1 }
 0x30e   : > { %v4797_v34 = vmax.f32 %v4623_v30, 0.0  ;;  %v4708_v35 = vadd.f32 %v7941_v1, %v4707_v33 }
 0x30f   : > { %v4815_v36 = vmax.f32 %v4713_v32, 0.0  ;;  %v4796_v25 = vmax.f32 %v4618_v24, 0.0  ;;  %v6256_v37 = vpop.f32.mrb[2].mxu0 }
 0x310   : > { %4834 = vst.msk [vmem:[%s6816_s9 + $0x8] sm:$0xff] %vm4832_vm3, %v4797_v34  ;;  %v4814_v38 = vmax.f32 %v4708_v35, 0.0  ;;  %v4633_v26 = vadd.f32 %v6256_v37, %v7941_v1  ;;  %v6283_v39 = vpop.f32.mrb[2].mxu1  ;;  %v4627_v40 = vpop.f32.mrb[3].mxu0 }
 0x311   : > { %4852 = vst.msk [vmem:[%s6816_s9 + $0x98] sm:$0xff] %vm4832_vm3, %v4815_v36  ;;  %4833 = vst.msk [vmem:[%s6816_s9] sm:$0xff] %vm4832_vm3, %v4796_v25  ;;  %v4723_v41 = vadd.f32 %v6283_v39, %v7941_v1  ;;  %v4628_v42 = vadd.f32 %v7941_v1, %v4627_v40  ;;  %v4717_v43 = vpop.f32.mrb[3].mxu1 }
 0x312   : > { %4851 = vst.msk [vmem:[%s6816_s9 + $0x90] sm:$0xff] %vm4832_vm3, %v4814_v38  ;;  %v4799_v27 = vmax.f32 %v4633_v26, 0.0  ;;  %v4718_v44 = vadd.f32 %v7941_v1, %v4717_v43 }
 0x313   : > { %v4817_v45 = vmax.f32 %v4723_v41, 0.0  ;;  %v4798_v46 = vmax.f32 %v4628_v42, 0.0 }
 0x314   : > { %4836 = vst.msk [vmem:[%s6816_s9 + $0x18] sm:$0xff] %vm4832_vm3, %v4799_v27  ;;  %v4816_v47 = vmax.f32 %v4718_v44, 0.0 }
 0x315   : > { %4854 = vst.msk [vmem:[%s6816_s9 + $0xa8] sm:$0xff] %vm4832_vm3, %v4817_v45  ;;  %4835 = vst.msk [vmem:[%s6816_s9 + $0x10] sm:$0xff] %vm4832_vm3, %v4798_v46 }
 0x316   : > { %4853 = vst.msk [vmem:[%s6816_s9 + $0xa0] sm:$0xff] %vm4832_vm3, %v4816_v47 }
 0x317   : > { %v6259_v28 = vpop.f32.mrb[4].mxu0 }
 0x318   : > { %v4643_v50 = vadd.f32 %v6259_v28, %v7941_v1  ;;  %v6286_v52 = vpop.f32.mrb[4].mxu1  ;;  %v4637_v54 = vpop.f32.mrb[5].mxu0 }
 0x319   : > { %v4733_v56 = vadd.f32 %v6286_v52, %v7941_v1  ;;  %v4638_v29 = vadd.f32 %v7941_v1, %v4637_v54  ;;  %v4727_v58 = vpop.f32.mrb[5].mxu1 }
 0x31a   : > { %v4801_v60 = vmax.f32 %v4643_v50, 0.0  ;;  %v4728_v62 = vadd.f32 %v7941_v1, %v4727_v58 }
 0x31b   : > { %v4819_v0 = vmax.f32 %v4733_v56, 0.0  ;;  %v4800_v3 = vmax.f32 %v4638_v29, 0.0  ;;  %v6262_v5 = vpop.f32.mrb[6].mxu0 }
 0x31c   : > { %4838 = vst.msk [vmem:[%s6816_s9 + $0x28] sm:$0xff] %vm4832_vm3, %v4801_v60  ;;  %v4818_v7 = vmax.f32 %v4728_v62, 0.0  ;;  %v4653_v48 = vadd.f32 %v6262_v5, %v7941_v1  ;;  %v6289_v51 = vpop.f32.mrb[6].mxu1  ;;  %v4647_v49 = vpop.f32.mrb[7].mxu0 }
 0x31d   : > { %4856 = vst.msk [vmem:[%s6816_s9 + $0xb8] sm:$0xff] %vm4832_vm3, %v4819_v0  ;;  %4837 = vst.msk [vmem:[%s6816_s9 + $0x20] sm:$0xff] %vm4832_vm3, %v4800_v3  ;;  %v4743_v53 = vadd.f32 %v6289_v51, %v7941_v1  ;;  %v4648_v55 = vadd.f32 %v7941_v1, %v4647_v49  ;;  %v4737_v57 = vpop.f32.mrb[7].mxu1 }
 0x31e   : > { %4855 = vst.msk [vmem:[%s6816_s9 + $0xb0] sm:$0xff] %vm4832_vm3, %v4818_v7  ;;  %v4803_v59 = vmax.f32 %v4653_v48, 0.0  ;;  %v4738_v63 = vadd.f32 %v7941_v1, %v4737_v57 }
 0x31f   : > { %v4821_v4 = vmax.f32 %v4743_v53, 0.0  ;;  %v4802_v6 = vmax.f32 %v4648_v55, 0.0  ;;  %v6265_v2 = vpop.f32.mrb[8].mxu0 }
 0x320   : > { %4840 = vst.msk [vmem:[%s6816_s9 + $0x38] sm:$0xff] %vm4832_vm3, %v4803_v59  ;;  %v4820_v8 = vmax.f32 %v4738_v63, 0.0  ;;  %v4663_v9 = vadd.f32 %v6265_v2, %v7941_v1  ;;  %v6292_v10 = vpop.f32.mrb[8].mxu1  ;;  %v4657_v11 = vpop.f32.mrb[9].mxu0 }
 0x321   : > { %4858 = vst.msk [vmem:[%s6816_s9 + $0xc8] sm:$0xff] %vm4832_vm3, %v4821_v4  ;;  %4839 = vst.msk [vmem:[%s6816_s9 + $0x30] sm:$0xff] %vm4832_vm3, %v4802_v6  ;;  %v4753_v12 = vadd.f32 %v6292_v10, %v7941_v1  ;;  %v4658_v13 = vadd.f32 %v7941_v1, %v4657_v11  ;;  %v4747_v14 = vpop.f32.mrb[9].mxu1 }
 0x322   : > { %4857 = vst.msk [vmem:[%s6816_s9 + $0xc0] sm:$0xff] %vm4832_vm3, %v4820_v8  ;;  %v4805_v15 = vmax.f32 %v4663_v9, 0.0  ;;  %v4748_v16 = vadd.f32 %v7941_v1, %v4747_v14 }
 0x323   : > { %v4823_v17 = vmax.f32 %v4753_v12, 0.0  ;;  %v4804_v18 = vmax.f32 %v4658_v13, 0.0  ;;  %v6268_v19 = vpop.f32.mrb[10].mxu0 }
 0x324   : > { %4842 = vst.msk [vmem:[%s6816_s9 + $0x48] sm:$0xff] %vm4832_vm3, %v4805_v15  ;;  %v4822_v61 = vmax.f32 %v4748_v16, 0.0  ;;  %v4673_v20 = vadd.f32 %v6268_v19, %v7941_v1  ;;  %v6295_v21 = vpop.f32.mrb[10].mxu1  ;;  %v4667_v22 = vpop.f32.mrb[11].mxu0 }
 0x325   : > { %4860 = vst.msk [vmem:[%s6816_s9 + $0xd8] sm:$0xff] %vm4832_vm3, %v4823_v17  ;;  %4841 = vst.msk [vmem:[%s6816_s9 + $0x40] sm:$0xff] %vm4832_vm3, %v4804_v18  ;;  %v4763_v30 = vadd.f32 %v6295_v21, %v7941_v1  ;;  %v4668_v23 = vadd.f32 %v7941_v1, %v4667_v22  ;;  %v4757_v31 = vpop.f32.mrb[11].mxu1 }
 0x326   : > { %4859 = vst.msk [vmem:[%s6816_s9 + $0xd0] sm:$0xff] %vm4832_vm3, %v4822_v61  ;;  %v4807_v32 = vmax.f32 %v4673_v20, 0.0  ;;  %v4758_v24 = vadd.f32 %v7941_v1, %v4757_v31 }
 0x327   : > { %v4825_v33 = vmax.f32 %v4763_v30, 0.0  ;;  %v4806_v34 = vmax.f32 %v4668_v23, 0.0  ;;  %v6271_v35 = vpop.f32.mrb[12].mxu0 }
 0x328   : > { %4844 = vst.msk [vmem:[%s6816_s9 + $0x58] sm:$0xff] %vm4832_vm3, %v4807_v32  ;;  %v4824_v36 = vmax.f32 %v4758_v24, 0.0  ;;  %v4683_v25 = vadd.f32 %v6271_v35, %v7941_v1  ;;  %v6298_v37 = vpop.f32.mrb[12].mxu1  ;;  %v4677_v38 = vpop.f32.mrb[13].mxu0 }
 0x329   : > { %4862 = vst.msk [vmem:[%s6816_s9 + $0xe8] sm:$0xff] %vm4832_vm3, %v4825_v33  ;;  %4843 = vst.msk [vmem:[%s6816_s9 + $0x50] sm:$0xff] %vm4832_vm3, %v4806_v34  ;;  %v4773_v26 = vadd.f32 %v6298_v37, %v7941_v1  ;;  %v4678_v39 = vadd.f32 %v7941_v1, %v4677_v38  ;;  %v4767_v40 = vpop.f32.mrb[13].mxu1 }
 0x32a   : > { %4861 = vst.msk [vmem:[%s6816_s9 + $0xe0] sm:$0xff] %vm4832_vm3, %v4824_v36  ;;  %v4809_v41 = vmax.f32 %v4683_v25, 0.0  ;;  %v4768_v42 = vadd.f32 %v7941_v1, %v4767_v40 }
 0x32b   : > { %v4827_v43 = vmax.f32 %v4773_v26, 0.0  ;;  %v4808_v27 = vmax.f32 %v4678_v39, 0.0  ;;  %v6274_v44 = vpop.f32.mrb[14].mxu0 }
 0x32c   : > { %4846 = vst.msk [vmem:[%s6816_s9 + $0x68] sm:$0xff] %vm4832_vm3, %v4809_v41  ;;  %v4826_v45 = vmax.f32 %v4768_v42, 0.0  ;;  %v4693_v46 = vadd.f32 %v6274_v44, %v7941_v1  ;;  %v6301_v28 = vpop.f32.mrb[14].mxu1  ;;  %v4687_v47 = vpop.f32.mrb[15].mxu0 }
 0x32d   : > { %4864 = vst.msk [vmem:[%s6816_s9 + $0xf8] sm:$0xff] %vm4832_vm3, %v4827_v43  ;;  %4845 = vst.msk [vmem:[%s6816_s9 + $0x60] sm:$0xff] %vm4832_vm3, %v4808_v27  ;;  %v4783_v50 = vadd.f32 %v6301_v28, %v7941_v1  ;;  %v4688_v52 = vadd.f32 %v7941_v1, %v4687_v47  ;;  %v4777_v54 = vpop.f32.mrb[15].mxu1 }
 0x32e   : > { %4863 = vst.msk [vmem:[%s6816_s9 + $0xf0] sm:$0xff] %vm4832_vm3, %v4826_v45  ;;  %v4811_v56 = vmax.f32 %v4693_v46, 0.0  ;;  %v4778_v29 = vadd.f32 %v7941_v1, %v4777_v54 }
 0x32f   : > { %v4829_v58 = vmax.f32 %v4783_v50, 0.0  ;;  %v4810_v60 = vmax.f32 %v4688_v52, 0.0  ;;  %v6277_v62 = vpop.f32.mrb[16].mxu0 }
 0x330   : > { %4848 = vst.msk [vmem:[%s6816_s9 + $0x78] sm:$0xff] %vm4832_vm3, %v4811_v56  ;;  %v4828_v0 = vmax.f32 %v4778_v29, 0.0  ;;  %v4703_v3 = vadd.f32 %v6277_v62, %v7941_v1  ;;  %v6304_v5 = vpop.f32.mrb[16].mxu1  ;;  %v4697_v7 = vpop.f32.mrb[17].mxu0 }
 0x331   : > { %4866 = vst.msk [vmem:[%s6816_s9 + $0x108] sm:$0xff] %vm4832_vm3, %v4829_v58  ;;  %4847 = vst.msk [vmem:[%s6816_s9 + $0x70] sm:$0xff] %vm4832_vm3, %v4810_v60  ;;  %v4793_v48 = vadd.f32 %v6304_v5, %v7941_v1  ;;  %v4698_v51 = vadd.f32 %v7941_v1, %v4697_v7  ;;  %v4787_v49 = vpop.f32.mrb[17].mxu1 }
 0x332   : > { %4865 = vst.msk [vmem:[%s6816_s9 + $0x100] sm:$0xff] %vm4832_vm3, %v4828_v0  ;;  %v4813_v53 = vmax.f32 %v4703_v3, 0.0  ;;  %v4788_v55 = vadd.f32 %v7941_v1, %v4787_v49 }
 0x333   : > { %v4831_v57 = vmax.f32 %v4793_v48, 0.0  ;;  %v4812_v59 = vmax.f32 %v4698_v51, 0.0 }
 0x334   : > { %4850 = vst.msk [vmem:[%s6816_s9 + $0x88] sm:$0xff] %vm4832_vm3, %v4813_v53  ;;  %v4830_v63 = vmax.f32 %v4788_v55, 0.0 }
 0x335   : > { %4868 = vst.msk [vmem:[%s6816_s9 + $0x118] sm:$0xff] %vm4832_vm3, %v4831_v57  ;;  %4849 = vst.msk [vmem:[%s6816_s9 + $0x80] sm:$0xff] %vm4832_vm3, %v4812_v59 }
 0x336   : > { %4867 = vst.msk [vmem:[%s6816_s9 + $0x110] sm:$0xff] %vm4832_vm3, %v4830_v63 }
 0x337 PF: > { %s16_s27 = sadd.s32 1, %s6713_s27   ;;  %s8082_s12 = sld [smem:[#allocation3_spill]] }
 0x338   : > { %p13_p12 = scmp.ge.s32.totalorder %s16_s27, 26   ;;  %s8083_s13 = sld [smem:[#allocation4_spill]] }
 0x339   : > { %s8084_s14 = sld [smem:[#allocation5_spill]]  ;;  %s8085_s21 = smov %s6701_s24 }
 0x33a   : > { %s8086_s22 = smov %s6705_s25  ;;  %s8087_s23 = smov %s6709_s26 }
 0x33b   :  { %15 = sbr.rel (!%p13_p12) target bundleno = 4 (0x4), region = 93 }
 0x33d   : > { %s8088_s24 = smov %s8082_s12 }
 0x33e   : > { %s8089_s25 = smov %s8083_s13 }
 0x33f   : > { %s8090_s26 = smov %s8084_s14 }

</bundles_post_ra>
